<compile_context>
chip_gen: v7x
topology: tpu7x:2x2x1
jax: 0.10.0
libtpu: 0.0.40
codegen_flags: <defaults>
</compile_context>

<pallas_src>
import functools
import math

import jax
import jax.numpy as jnp
from jax.experimental import pallas as pl
from jax.experimental.pallas import tpu as pltpu

_ROW_PAD = 8  # zero rows appended per image so tap-shifted reads stay in bounds


# ----------------------------------------------------------------------------
# Kernel bodies
# ----------------------------------------------------------------------------
def _conv_s2_kernel(x_ref, w_ref, b_ref, o_ref, *, Hh, Wh):
    """Fused 4x4/stride-2 conv + ReLU as 4 tap matmuls on the unshuffled input.

    x_ref: (1, Hh*Wh + PAD, 4*Cin) f32   padded + space-to-depth(2) input (one image)
    w_ref: (4, 4*Cin, Cout)        bf16  per-(dh,dw) tap weights
    b_ref: (1, Cout)               f32
    o_ref: (1, Qh, Cout)           f32   Qh = (Hh-1)*Wh; column j == Wh-1 is discarded in glue
    """
    Qh = (Hh - 1) * Wh
    acc = None
    for t, (dh, dw) in enumerate(((0, 0), (0, 1), (1, 0), (1, 1))):
        off = dh * Wh + dw
        xa = x_ref[0, off:off + Qh, :].astype(jnp.bfloat16)
        part = jnp.dot(xa, w_ref[t], preferred_element_type=jnp.float32)
        acc = part if acc is None else acc + part
    acc = jnp.maximum(acc + b_ref[...], 0.0)
    o_ref[0] = acc


def _deconv_s2_kernel(x_ref, w_ref, b_ref, o_ref, *, Hp, Wp, last):
    """Fused 4x4/stride-2 ConvTranspose + ReLU (+Sigmoid) via sub-pixel phases.

    x_ref: (1, Hp*Wp + PAD, Cin) f32   spatially 1-padded input (one image)
    w_ref: (4, 4, Cin, Cout)     bf16  [phase, tap] 2x2 weights
    b_ref: (1, Cout)             f32
    o_ref: (1, 4*Qd, Cout)       f32   Qd = (Hp-2)*Wp; phase p owns rows [p*Qd, (p+1)*Qd)
                                        (columns oj in {Wp-2, Wp-1} are discarded in glue)
    """
    Qd = (Hp - 2) * Wp
    for p, (phi, phj) in enumerate(((0, 0), (0, 1), (1, 0), (1, 1))):
        acc = None
        for t, (a, bj) in enumerate(((0, 0), (0, 1), (1, 0), (1, 1))):
            off = (phi + a) * Wp + (phj + bj)
            xa = x_ref[0, off:off + Qd, :].astype(jnp.bfloat16)
            part = jnp.dot(xa, w_ref[p, t], preferred_element_type=jnp.float32)
            acc = part if acc is None else acc + part
        acc = jnp.maximum(acc + b_ref[...], 0.0)
        if last:
            acc = jax.nn.sigmoid(acc)
        o_ref[0, p * Qd:(p + 1) * Qd, :] = acc


def _latent_kernel(x_ref, w_ref, b_ref, o_ref):
    """Fused mean/logvar projection: (B, D) @ (D, 2L) + bias."""
    acc = jnp.dot(x_ref[...].astype(jnp.bfloat16), w_ref[...],
                  preferred_element_type=jnp.float32)
    o_ref[...] = acc + b_ref[...]


def _reparam_up_kernel(mean_ref, logvar_ref, eps_ref, w_ref, b_ref, o_ref):
    """z = mean + eps * exp(0.5*logvar) (f32), then z @ W_up + b_up."""
    z = mean_ref[...] + eps_ref[...] * jnp.exp(0.5 * logvar_ref[...])
    acc = jnp.dot(z.astype(jnp.bfloat16), w_ref[...],
                  preferred_element_type=jnp.float32)
    o_ref[...] = acc + b_ref[...]


# ----------------------------------------------------------------------------
# Layer wrappers (thin glue: pad / space-to-depth / phase interleave only)
# ----------------------------------------------------------------------------
def conv_s2(x_nhwc, wg, bias):
    """nn.Conv2d(k=4, s=2, p=1) + ReLU.  x (B,H,W,Cin) -> (B,H/2,W/2,Cout)."""
    B, H, W, Cin = x_nhwc.shape
    OH, OW = H // 2, W // 2
    Hh, Wh = OH + 1, OW + 1
    C4 = 4 * Cin
    Cout = wg.shape[-1]
    Qh = OH * Wh
    # pad by 1 and pixel-unshuffle (space-to-depth, factor 2), then flatten rows
    xp = jnp.pad(x_nhwc, ((0, 0), (1, 1), (1, 1), (0, 0)))
    xs = xp.reshape(B, Hh, 2, Wh, 2, Cin).transpose(0, 1, 3, 2, 4, 5)
    xs = xs.reshape(B, Hh * Wh, C4)
    xs = jnp.pad(xs, ((0, 0), (0, _ROW_PAD), (0, 0)))
    R = Hh * Wh + _ROW_PAD

    out = pl.pallas_call(
        functools.partial(_conv_s2_kernel, Hh=Hh, Wh=Wh),
        out_shape=jax.ShapeDtypeStruct((B, Qh, Cout), jnp.float32),
        grid=(B,),
        in_specs=[
            pl.BlockSpec((1, R, C4), lambda b: (b, 0, 0)),
            pl.BlockSpec((4, C4, Cout), lambda b: (0, 0, 0)),
            pl.BlockSpec((1, Cout), lambda b: (0, 0)),
        ],
        out_specs=pl.BlockSpec((1, Qh, Cout), lambda b: (b, 0, 0)),
        compiler_params=pltpu.CompilerParams(dimension_semantics=("parallel",)),
    )(xs, wg, bias)
    # drop the halo column j == OW and return NHWC
    return out.reshape(B, OH, Wh, Cout)[:, :, :OW, :]


def deconv_s2(x_nhwc, wph, bias, last=False):
    """nn.ConvTranspose2d(k=4, s=2, p=1) + ReLU (+ Sigmoid if last)."""
    B, H, W, Cin = x_nhwc.shape
    Hp, Wp = H + 2, W + 2
    Cout = wph.shape[-1]
    Qd = H * Wp
    xp = jnp.pad(x_nhwc, ((0, 0), (1, 1), (1, 1), (0, 0))).reshape(B, Hp * Wp, Cin)
    xp = jnp.pad(xp, ((0, 0), (0, _ROW_PAD), (0, 0)))
    R = Hp * Wp + _ROW_PAD

    out = pl.pallas_call(
        functools.partial(_deconv_s2_kernel, Hp=Hp, Wp=Wp, last=last),
        out_shape=jax.ShapeDtypeStruct((B, 4 * Qd, Cout), jnp.float32),
        grid=(B,),
        in_specs=[
            pl.BlockSpec((1, R, Cin), lambda b: (b, 0, 0)),
            pl.BlockSpec((4, 4, Cin, Cout), lambda b: (0, 0, 0, 0)),
            pl.BlockSpec((1, Cout), lambda b: (0, 0)),
        ],
        out_specs=pl.BlockSpec((1, 4 * Qd, Cout), lambda b: (b, 0, 0)),
        compiler_params=pltpu.CompilerParams(dimension_semantics=("parallel",)),
    )(xp, wph, bias)
    # interleave the 4 phase grids -> (B, 2H, 2W, Cout), dropping halo columns
    out = out.reshape(B, 2, 2, H, Wp, Cout)[:, :, :, :, :W, :]
    return out.transpose(0, 3, 1, 4, 2, 5).reshape(B, 2 * H, 2 * W, Cout)


def latent_proj(flat, w_mv, b_mv, latent_size):
    """Fused latent_mean / latent_var projections in one kernel call."""
    B, D = flat.shape
    N = w_mv.shape[-1]
    mv = pl.pallas_call(
        _latent_kernel,
        out_shape=jax.ShapeDtypeStruct((B, N), jnp.float32),
        grid=(1,),
        in_specs=[
            pl.BlockSpec((B, D), lambda i: (0, 0)),
            pl.BlockSpec((D, N), lambda i: (0, 0)),
            pl.BlockSpec((1, N), lambda i: (0, 0)),
        ],
        out_specs=pl.BlockSpec((B, N), lambda i: (0, 0)),
    )(flat, w_mv, b_mv)
    return mv[:, :latent_size], mv[:, latent_size:]


def reparam_upscale(mean, logvar, eps, w_up, b_up):
    """Reparameterisation fused with the linear_upscale projection."""
    B, L = mean.shape
    N = w_up.shape[-1]
    return pl.pallas_call(
        _reparam_up_kernel,
        out_shape=jax.ShapeDtypeStruct((B, N), jnp.float32),
        grid=(1,),
        in_specs=[
            pl.BlockSpec((B, L), lambda i: (0, 0)),
            pl.BlockSpec((B, L), lambda i: (0, 0)),
            pl.BlockSpec((B, L), lambda i: (0, 0)),
            pl.BlockSpec((L, N), lambda i: (0, 0)),
            pl.BlockSpec((1, N), lambda i: (0, 0)),
        ],
        out_specs=pl.BlockSpec((B, N), lambda i: (0, 0)),
    )(mean, logvar, eps, w_up, b_up)


# ----------------------------------------------------------------------------
# Parameters: PyTorch-layout init + one-time preprocessing into kernel layouts
# ----------------------------------------------------------------------------
def init_params(key, input_channels, image_size, latent_size, max_channels):
    """Deterministic, PyTorch-like fan-in uniform init in torch tensor layouts."""
    mc = max_channels
    last_dim = (image_size // 8) ** 2 * mc
    k = 4
    specs = {
        "enc1_w": ((mc // 4, input_channels, k, k), input_channels * k * k),
        "enc1_b": ((mc // 4,), input_channels * k * k),
        "enc2_w": ((mc // 2, mc // 4, k, k), (mc // 4) * k * k),
        "enc2_b": ((mc // 2,), (mc // 4) * k * k),
        "enc3_w": ((mc, mc // 2, k, k), (mc // 2) * k * k),
        "enc3_b": ((mc,), (mc // 2) * k * k),
        "mean_w": ((latent_size, last_dim), last_dim),
        "mean_b": ((latent_size,), last_dim),
        "var_w": ((latent_size, last_dim), last_dim),
        "var_b": ((latent_size,), last_dim),
        "up_w": ((last_dim, latent_size), latent_size),
        "up_b": ((last_dim,), latent_size),
        "dec1_w": ((mc, mc // 2, k, k), mc * k * k),
        "dec1_b": ((mc // 2,), mc * k * k),
        "dec2_w": ((mc // 2, mc // 4, k, k), (mc // 2) * k * k),
        "dec2_b": ((mc // 4,), (mc // 2) * k * k),
        "dec3_w": ((mc // 4, input_channels, k, k), (mc // 4) * k * k),
        "dec3_b": ((input_channels,), (mc // 4) * k * k),
    }
    params = {}
    for kk, (name, (shape, fan_in)) in zip(jax.random.split(key, len(specs)),
                                           specs.items()):
        bound = 1.0 / math.sqrt(fan_in)
        params[name] = jax.random.uniform(kk, shape, jnp.float32, -bound, bound)
    return params


def preprocess_params(params, latent_size, max_channels):
    """One-time layout transforms (hoisted out of forward): tap grouping, kernel
    flips, NCHW->NHWC permutations of the linears, bf16 weight casts."""
    mc = max_channels

    def conv_taps(w):              # torch (Cout, Cin, 4, 4) -> (4 taps, 4*Cin, Cout) bf16
        co, ci = w.shape[0], w.shape[1]
        w6 = w.reshape(co, ci, 2, 2, 2, 2)           # (co, c, dh, ph, dw, pw)
        wg = jnp.transpose(w6, (2, 4, 3, 5, 1, 0))   # (dh, dw, ph, pw, c, co)
        return wg.reshape(4, 4 * ci, co).astype(jnp.bfloat16)

    def deconv_taps(w):            # torch (Cin, Cout, 4, 4) -> (4 phases, 4 taps, Cin, Cout)
        phases = []
        for phi in (0, 1):
            for phj in (0, 1):
                taps = [w[:, :, 3 - phi - 2 * a, 3 - phj - 2 * bj]
                        for a in (0, 1) for bj in (0, 1)]
                phases.append(jnp.stack(taps))
        return jnp.stack(phases).astype(jnp.bfloat16)

    def lin_in_nhwc(w):            # Linear weight (L, mc*16) with NCHW cols -> (16*mc, L) NHWC rows
        L = w.shape[0]
        return jnp.transpose(w.reshape(L, mc, 4, 4), (2, 3, 1, 0)).reshape(16 * mc, L)

    p = {}
    p["enc_w"] = [conv_taps(params[f"enc{i}_w"]) for i in (1, 2, 3)]
    p["enc_b"] = [params[f"enc{i}_b"].reshape(1, -1) for i in (1, 2, 3)]
    p["dec_w"] = [deconv_taps(params[f"dec{i}_w"]) for i in (1, 2, 3)]
    p["dec_b"] = [params[f"dec{i}_b"].reshape(1, -1) for i in (1, 2, 3)]

    # fused mean/logvar projection, inputs permuted to NHWC flatten order
    p["w_mv"] = jnp.concatenate([lin_in_nhwc(params["mean_w"]),
                                 lin_in_nhwc(params["var_w"])], axis=1).astype(jnp.bfloat16)
    p["b_mv"] = jnp.concatenate([params["mean_b"], params["var_b"]]).reshape(1, -1)

    # upscale projection, outputs permuted to NHWC order
    up_w = params["up_w"]                            # (mc*16, L), rows in NCHW order
    w_up = jnp.transpose(up_w.reshape(mc, 4, 4, latent_size), (3, 1, 2, 0))
    p["w_up"] = w_up.reshape(latent_size, 16 * mc).astype(jnp.bfloat16)
    p["b_up"] = jnp.transpose(params["up_b"].reshape(mc, 4, 4), (1, 2, 0)).reshape(1, 16 * mc)
    return p


# ----------------------------------------------------------------------------
# Forward pass
# ----------------------------------------------------------------------------
def cnn_vae_forward(prep, x_nchw, eps, *, latent_size, max_channels):
    B = x_nchw.shape[0]
    h = jnp.transpose(x_nchw, (0, 2, 3, 1))          # NCHW -> NHWC

    # encoder: 3 x (Conv2d(k4,s2,p1) + ReLU)
    for wg, bb in zip(prep["enc_w"], prep["enc_b"]):
        h = conv_s2(h, wg, bb)

    # distribute (mean/logvar weights pre-permuted to the NHWC flatten order)
    flat = h.reshape(B, -1)
    mean, logvar = latent_proj(flat, prep["w_mv"], prep["b_mv"], latent_size)

    # reparameterise (training mode; eps supplied by caller) fused with upscale
    z_up = reparam_upscale(mean, logvar, eps, prep["w_up"], prep["b_up"])
    h = z_up.reshape(B, 4, 4, max_channels)          # NHWC (weights pre-permuted)

    # decoder: 3 x (ConvTranspose2d(k4,s2,p1) + ReLU), Sigmoid after the last
    h = deconv_s2(h, prep["dec_w"][0], prep["dec_b"][0])
    h = deconv_s2(h, prep["dec_w"][1], prep["dec_b"][1])
    h = deconv_s2(h, prep["dec_w"][2], prep["dec_b"][2], last=True)

    recon = jnp.transpose(h, (0, 3, 1, 2))           # NHWC -> NCHW
    return recon, mean, logvar


if __name__ == "__main__":
    # image_size must be 32: the module hard-codes view(-1, max_channels, 4, 4)
    input_channels, image_size, latent_size, max_channels = 3, 32, 16, 32

    key = jax.random.PRNGKey(0)
    k_params, k_x, k_eps = jax.random.split(key, 3)
    params = init_params(k_params, input_channels, image_size, latent_size, max_channels)
    prep = preprocess_params(params, latent_size, max_channels)

    x = jax.random.uniform(k_x, (2, input_channels, image_size, image_size), jnp.float32)
    eps = jax.random.normal(k_eps, (2, latent_size), jnp.float32)

    fwd = jax.jit(functools.partial(cnn_vae_forward,
                                    latent_size=latent_size,
                                    max_channels=max_channels))
    recon, mean, logvar = fwd(prep, x, eps)
    jax.block_until_ready((recon, mean, logvar))

    assert recon.shape == x.shape, recon.shape
    assert mean.shape == (2, latent_size) and logvar.shape == (2, latent_size)
    assert bool(jnp.all(jnp.isfinite(recon)))
    print("KERNEL_OK")
</pallas_src>

<mosaic_0001>
module attributes {stable_mosaic.version = 11 : i64} {
  func.func @_conv_s2_kernel(%arg0: i32, %arg1: memref<1x297x12xf32, #tpu.memory_space<vmem>>, %arg2: memref<4x12x8xbf16, #tpu.memory_space<vmem>>, %arg3: memref<1x8xf32, #tpu.memory_space<vmem>>, %arg4: memref<1x272x8xf32, #tpu.memory_space<vmem>>) attributes {dimension_semantics = [#tpu.dimension_semantics<parallel>], iteration_bounds = array<i64: 2>, scalar_prefetch = 0 : i64, scratch_operands = 0 : i64, tpu.core_type = #tpu.core_type<tc>, window_params = [{transform_indices = @transform_0, window_bounds = array<i64: 1, 297, 12>}, {pipeline_mode = #tpu.pipeline_mode<synchronous>, transform_indices = @transform_1, window_bounds = array<i64: 4, 12, 8>}, {pipeline_mode = #tpu.pipeline_mode<synchronous>, transform_indices = @transform_2, window_bounds = array<i64: 1, 8>}, {transform_indices = @transform_3, window_bounds = array<i64: 1, 272, 8>}]} {
    %c0 = arith.constant 0 : index
    %c0_0 = arith.constant 0 : index
    %c0_1 = arith.constant 0 : index
    %0 = vector.load %arg1[%c0, %c0_0, %c0_1] : memref<1x297x12xf32, #tpu.memory_space<vmem>>, vector<1x272x12xf32>
    %1 = vector.shape_cast %0 : vector<1x272x12xf32> to vector<272x12xf32>
    %2 = arith.truncf %1 : vector<272x12xf32> to vector<272x12xbf16>
    %c0_2 = arith.constant 0 : index
    %c0_3 = arith.constant 0 : index
    %c0_4 = arith.constant 0 : index
    %3 = vector.load %arg2[%c0_2, %c0_3, %c0_4] : memref<4x12x8xbf16, #tpu.memory_space<vmem>>, vector<1x12x8xbf16>
    %4 = vector.shape_cast %3 : vector<1x12x8xbf16> to vector<12x8xbf16>
    %cst = arith.constant dense<0.000000e+00> : vector<272x8xf32>
    %5 = tpu.matmul %2, %4, %cst {dimension_numbers = #tpu.dot_dimension_numbers<[1], [0], [0], [1], [0, 0, 1, 1], [], []>} : vector<272x12xbf16>, vector<12x8xbf16>, vector<272x8xf32> -> vector<272x8xf32>
    %c0_5 = arith.constant 0 : index
    %c1 = arith.constant 1 : index
    %c0_6 = arith.constant 0 : index
    %6 = vector.load %arg1[%c0_5, %c1, %c0_6] : memref<1x297x12xf32, #tpu.memory_space<vmem>>, vector<1x272x12xf32>
    %7 = vector.shape_cast %6 : vector<1x272x12xf32> to vector<272x12xf32>
    %8 = arith.truncf %7 : vector<272x12xf32> to vector<272x12xbf16>
    %c1_7 = arith.constant 1 : index
    %c0_8 = arith.constant 0 : index
    %c0_9 = arith.constant 0 : index
    %9 = vector.load %arg2[%c1_7, %c0_8, %c0_9] : memref<4x12x8xbf16, #tpu.memory_space<vmem>>, vector<1x12x8xbf16>
    %10 = vector.shape_cast %9 : vector<1x12x8xbf16> to vector<12x8xbf16>
    %cst_10 = arith.constant dense<0.000000e+00> : vector<272x8xf32>
    %11 = tpu.matmul %8, %10, %cst_10 {dimension_numbers = #tpu.dot_dimension_numbers<[1], [0], [0], [1], [0, 0, 1, 1], [], []>} : vector<272x12xbf16>, vector<12x8xbf16>, vector<272x8xf32> -> vector<272x8xf32>
    %12 = arith.addf %5, %11 : vector<272x8xf32>
    %c0_11 = arith.constant 0 : index
    %c17 = arith.constant 17 : index
    %c0_12 = arith.constant 0 : index
    %13 = vector.load %arg1[%c0_11, %c17, %c0_12] : memref<1x297x12xf32, #tpu.memory_space<vmem>>, vector<1x272x12xf32>
    %14 = vector.shape_cast %13 : vector<1x272x12xf32> to vector<272x12xf32>
    %15 = arith.truncf %14 : vector<272x12xf32> to vector<272x12xbf16>
    %c2 = arith.constant 2 : index
    %c0_13 = arith.constant 0 : index
    %c0_14 = arith.constant 0 : index
    %16 = vector.load %arg2[%c2, %c0_13, %c0_14] : memref<4x12x8xbf16, #tpu.memory_space<vmem>>, vector<1x12x8xbf16>
    %17 = vector.shape_cast %16 : vector<1x12x8xbf16> to vector<12x8xbf16>
    %cst_15 = arith.constant dense<0.000000e+00> : vector<272x8xf32>
    %18 = tpu.matmul %15, %17, %cst_15 {dimension_numbers = #tpu.dot_dimension_numbers<[1], [0], [0], [1], [0, 0, 1, 1], [], []>} : vector<272x12xbf16>, vector<12x8xbf16>, vector<272x8xf32> -> vector<272x8xf32>
    %19 = arith.addf %12, %18 : vector<272x8xf32>
    %c0_16 = arith.constant 0 : index
    %c18 = arith.constant 18 : index
    %c0_17 = arith.constant 0 : index
    %20 = vector.load %arg1[%c0_16, %c18, %c0_17] : memref<1x297x12xf32, #tpu.memory_space<vmem>>, vector<1x272x12xf32>
    %21 = vector.shape_cast %20 : vector<1x272x12xf32> to vector<272x12xf32>
    %22 = arith.truncf %21 : vector<272x12xf32> to vector<272x12xbf16>
    %c3 = arith.constant 3 : index
    %c0_18 = arith.constant 0 : index
    %c0_19 = arith.constant 0 : index
    %23 = vector.load %arg2[%c3, %c0_18, %c0_19] : memref<4x12x8xbf16, #tpu.memory_space<vmem>>, vector<1x12x8xbf16>
    %24 = vector.shape_cast %23 : vector<1x12x8xbf16> to vector<12x8xbf16>
    %cst_20 = arith.constant dense<0.000000e+00> : vector<272x8xf32>
    %25 = tpu.matmul %22, %24, %cst_20 {dimension_numbers = #tpu.dot_dimension_numbers<[1], [0], [0], [1], [0, 0, 1, 1], [], []>} : vector<272x12xbf16>, vector<12x8xbf16>, vector<272x8xf32> -> vector<272x8xf32>
    %26 = arith.addf %19, %25 : vector<272x8xf32>
    %c0_21 = arith.constant 0 : index
    %c0_22 = arith.constant 0 : index
    %27 = vector.load %arg3[%c0_21, %c0_22] : memref<1x8xf32, #tpu.memory_space<vmem>>, vector<1x8xf32>
    %28 = vector.broadcast %27 : vector<1x8xf32> to vector<272x8xf32>
    %29 = arith.addf %26, %28 : vector<272x8xf32>
    %cst_23 = arith.constant 0.000000e+00 : f32
    %30 = vector.broadcast %cst_23 : f32 to vector<272x8xf32>
    %31 = arith.maximumf %29, %30 : vector<272x8xf32>
    %c0_24 = arith.constant 0 : index
    %c0_25 = arith.constant 0 : index
    %c0_26 = arith.constant 0 : index
    %32 = vector.load %arg4[%c0_24, %c0_25, %c0_26] : memref<1x272x8xf32, #tpu.memory_space<vmem>>, vector<1x272x8xf32>
    %33 = vector.shape_cast %32 : vector<1x272x8xf32> to vector<272x8xf32>
    %34 = vector.shape_cast %31 : vector<272x8xf32> to vector<1x272x8xf32>
    tpu.vector_store %arg4[%c0_24, %c0_25, %c0_26], %34 {strides = array<i32>} : memref<1x272x8xf32, #tpu.memory_space<vmem>>, vector<1x272x8xf32>,
    return
  }
  func.func @transform_0(%arg0: i32) -> (i32, i32, i32) {
    %c0_i32 = arith.constant 0 : i32
    %c0_i32_0 = arith.constant 0 : i32
    %c0_i32_1 = arith.constant 0 : i32
    return %arg0, %c0_i32, %c0_i32_0 : i32, i32, i32
  }
  func.func @transform_1(%arg0: i32) -> (i32, i32, i32) {
    %c0_i32 = arith.constant 0 : i32
    %c0_i32_0 = arith.constant 0 : i32
    %c0_i32_1 = arith.constant 0 : i32
    %c0_i32_2 = arith.constant 0 : i32
    return %c0_i32, %c0_i32_0, %c0_i32_1 : i32, i32, i32
  }
  func.func @transform_2(%arg0: i32) -> (i32, i32) {
    %c0_i32 = arith.constant 0 : i32
    %c0_i32_0 = arith.constant 0 : i32
    %c0_i32_1 = arith.constant 0 : i32
    return %c0_i32, %c0_i32_0 : i32, i32
  }
  func.func @transform_3(%arg0: i32) -> (i32, i32, i32) {
    %c0_i32 = arith.constant 0 : i32
    %c0_i32_0 = arith.constant 0 : i32
    %c0_i32_1 = arith.constant 0 : i32
    return %arg0, %c0_i32, %c0_i32_0 : i32, i32, i32
  }
}

module attributes {stable_mosaic.version = 11 : i64} {
  func.func @_conv_s2_kernel(%arg0: i32, %arg1: memref<1x89x32xf32, #tpu.memory_space<vmem>>, %arg2: memref<4x32x16xbf16, #tpu.memory_space<vmem>>, %arg3: memref<1x16xf32, #tpu.memory_space<vmem>>, %arg4: memref<1x72x16xf32, #tpu.memory_space<vmem>>) attributes {dimension_semantics = [#tpu.dimension_semantics<parallel>], iteration_bounds = array<i64: 2>, scalar_prefetch = 0 : i64, scratch_operands = 0 : i64, tpu.core_type = #tpu.core_type<tc>, window_params = [{transform_indices = @transform_0, window_bounds = array<i64: 1, 89, 32>}, {pipeline_mode = #tpu.pipeline_mode<synchronous>, transform_indices = @transform_1, window_bounds = array<i64: 4, 32, 16>}, {pipeline_mode = #tpu.pipeline_mode<synchronous>, transform_indices = @transform_2, window_bounds = array<i64: 1, 16>}, {transform_indices = @transform_3, window_bounds = array<i64: 1, 72, 16>}]} {
    %c0 = arith.constant 0 : index
    %c0_0 = arith.constant 0 : index
    %c0_1 = arith.constant 0 : index
    %0 = vector.load %arg1[%c0, %c0_0, %c0_1] : memref<1x89x32xf32, #tpu.memory_space<vmem>>, vector<1x72x32xf32>
    %1 = vector.shape_cast %0 : vector<1x72x32xf32> to vector<72x32xf32>
    %2 = arith.truncf %1 : vector<72x32xf32> to vector<72x32xbf16>
    %c0_2 = arith.constant 0 : index
    %c0_3 = arith.constant 0 : index
    %c0_4 = arith.constant 0 : index
    %3 = vector.load %arg2[%c0_2, %c0_3, %c0_4] : memref<4x32x16xbf16, #tpu.memory_space<vmem>>, vector<1x32x16xbf16>
    %4 = vector.shape_cast %3 : vector<1x32x16xbf16> to vector<32x16xbf16>
    %cst = arith.constant dense<0.000000e+00> : vector<72x16xf32>
    %5 = tpu.matmul %2, %4, %cst {dimension_numbers = #tpu.dot_dimension_numbers<[1], [0], [0], [1], [0, 0, 1, 1], [], []>} : vector<72x32xbf16>, vector<32x16xbf16>, vector<72x16xf32> -> vector<72x16xf32>
    %c0_5 = arith.constant 0 : index
    %c1 = arith.constant 1 : index
    %c0_6 = arith.constant 0 : index
    %6 = vector.load %arg1[%c0_5, %c1, %c0_6] : memref<1x89x32xf32, #tpu.memory_space<vmem>>, vector<1x72x32xf32>
    %7 = vector.shape_cast %6 : vector<1x72x32xf32> to vector<72x32xf32>
    %8 = arith.truncf %7 : vector<72x32xf32> to vector<72x32xbf16>
    %c1_7 = arith.constant 1 : index
    %c0_8 = arith.constant 0 : index
    %c0_9 = arith.constant 0 : index
    %9 = vector.load %arg2[%c1_7, %c0_8, %c0_9] : memref<4x32x16xbf16, #tpu.memory_space<vmem>>, vector<1x32x16xbf16>
    %10 = vector.shape_cast %9 : vector<1x32x16xbf16> to vector<32x16xbf16>
    %cst_10 = arith.constant dense<0.000000e+00> : vector<72x16xf32>
    %11 = tpu.matmul %8, %10, %cst_10 {dimension_numbers = #tpu.dot_dimension_numbers<[1], [0], [0], [1], [0, 0, 1, 1], [], []>} : vector<72x32xbf16>, vector<32x16xbf16>, vector<72x16xf32> -> vector<72x16xf32>
    %12 = arith.addf %5, %11 : vector<72x16xf32>
    %c0_11 = arith.constant 0 : index
    %c9 = arith.constant 9 : index
    %c0_12 = arith.constant 0 : index
    %13 = vector.load %arg1[%c0_11, %c9, %c0_12] : memref<1x89x32xf32, #tpu.memory_space<vmem>>, vector<1x72x32xf32>
    %14 = vector.shape_cast %13 : vector<1x72x32xf32> to vector<72x32xf32>
    %15 = arith.truncf %14 : vector<72x32xf32> to vector<72x32xbf16>
    %c2 = arith.constant 2 : index
    %c0_13 = arith.constant 0 : index
    %c0_14 = arith.constant 0 : index
    %16 = vector.load %arg2[%c2, %c0_13, %c0_14] : memref<4x32x16xbf16, #tpu.memory_space<vmem>>, vector<1x32x16xbf16>
    %17 = vector.shape_cast %16 : vector<1x32x16xbf16> to vector<32x16xbf16>
    %cst_15 = arith.constant dense<0.000000e+00> : vector<72x16xf32>
    %18 = tpu.matmul %15, %17, %cst_15 {dimension_numbers = #tpu.dot_dimension_numbers<[1], [0], [0], [1], [0, 0, 1, 1], [], []>} : vector<72x32xbf16>, vector<32x16xbf16>, vector<72x16xf32> -> vector<72x16xf32>
    %19 = arith.addf %12, %18 : vector<72x16xf32>
    %c0_16 = arith.constant 0 : index
    %c10 = arith.constant 10 : index
    %c0_17 = arith.constant 0 : index
    %20 = vector.load %arg1[%c0_16, %c10, %c0_17] : memref<1x89x32xf32, #tpu.memory_space<vmem>>, vector<1x72x32xf32>
    %21 = vector.shape_cast %20 : vector<1x72x32xf32> to vector<72x32xf32>
    %22 = arith.truncf %21 : vector<72x32xf32> to vector<72x32xbf16>
    %c3 = arith.constant 3 : index
    %c0_18 = arith.constant 0 : index
    %c0_19 = arith.constant 0 : index
    %23 = vector.load %arg2[%c3, %c0_18, %c0_19] : memref<4x32x16xbf16, #tpu.memory_space<vmem>>, vector<1x32x16xbf16>
    %24 = vector.shape_cast %23 : vector<1x32x16xbf16> to vector<32x16xbf16>
    %cst_20 = arith.constant dense<0.000000e+00> : vector<72x16xf32>
    %25 = tpu.matmul %22, %24, %cst_20 {dimension_numbers = #tpu.dot_dimension_numbers<[1], [0], [0], [1], [0, 0, 1, 1], [], []>} : vector<72x32xbf16>, vector<32x16xbf16>, vector<72x16xf32> -> vector<72x16xf32>
    %26 = arith.addf %19, %25 : vector<72x16xf32>
    %c0_21 = arith.constant 0 : index
    %c0_22 = arith.constant 0 : index
    %27 = vector.load %arg3[%c0_21, %c0_22] : memref<1x16xf32, #tpu.memory_space<vmem>>, vector<1x16xf32>
    %28 = vector.broadcast %27 : vector<1x16xf32> to vector<72x16xf32>
    %29 = arith.addf %26, %28 : vector<72x16xf32>
    %cst_23 = arith.constant 0.000000e+00 : f32
    %30 = vector.broadcast %cst_23 : f32 to vector<72x16xf32>
    %31 = arith.maximumf %29, %30 : vector<72x16xf32>
    %c0_24 = arith.constant 0 : index
    %c0_25 = arith.constant 0 : index
    %c0_26 = arith.constant 0 : index
    %32 = vector.load %arg4[%c0_24, %c0_25, %c0_26] : memref<1x72x16xf32, #tpu.memory_space<vmem>>, vector<1x72x16xf32>
    %33 = vector.shape_cast %32 : vector<1x72x16xf32> to vector<72x16xf32>
    %34 = vector.shape_cast %31 : vector<72x16xf32> to vector<1x72x16xf32>
    tpu.vector_store %arg4[%c0_24, %c0_25, %c0_26], %34 {strides = array<i32>} : memref<1x72x16xf32, #tpu.memory_space<vmem>>, vector<1x72x16xf32>,
    return
  }
  func.func @transform_0(%arg0: i32) -> (i32, i32, i32) {
    %c0_i32 = arith.constant 0 : i32
    %c0_i32_0 = arith.constant 0 : i32
    %c0_i32_1 = arith.constant 0 : i32
    return %arg0, %c0_i32, %c0_i32_0 : i32, i32, i32
  }
  func.func @transform_1(%arg0: i32) -> (i32, i32, i32) {
    %c0_i32 = arith.constant 0 : i32
    %c0_i32_0 = arith.constant 0 : i32
    %c0_i32_1 = arith.constant 0 : i32
    %c0_i32_2 = arith.constant 0 : i32
    return %c0_i32, %c0_i32_0, %c0_i32_1 : i32, i32, i32
  }
  func.func @transform_2(%arg0: i32) -> (i32, i32) {
    %c0_i32 = arith.constant 0 : i32
    %c0_i32_0 = arith.constant 0 : i32
    %c0_i32_1 = arith.constant 0 : i32
    return %c0_i32, %c0_i32_0 : i32, i32
  }
  func.func @transform_3(%arg0: i32) -> (i32, i32, i32) {
    %c0_i32 = arith.constant 0 : i32
    %c0_i32_0 = arith.constant 0 : i32
    %c0_i32_1 = arith.constant 0 : i32
    return %arg0, %c0_i32, %c0_i32_0 : i32, i32, i32
  }
}

module attributes {stable_mosaic.version = 11 : i64} {
  func.func @_conv_s2_kernel(%arg0: i32, %arg1: memref<1x33x64xf32, #tpu.memory_space<vmem>>, %arg2: memref<4x64x32xbf16, #tpu.memory_space<vmem>>, %arg3: memref<1x32xf32, #tpu.memory_space<vmem>>, %arg4: memref<1x20x32xf32, #tpu.memory_space<vmem>>) attributes {dimension_semantics = [#tpu.dimension_semantics<parallel>], iteration_bounds = array<i64: 2>, scalar_prefetch = 0 : i64, scratch_operands = 0 : i64, tpu.core_type = #tpu.core_type<tc>, window_params = [{transform_indices = @transform_0, window_bounds = array<i64: 1, 33, 64>}, {pipeline_mode = #tpu.pipeline_mode<synchronous>, transform_indices = @transform_1, window_bounds = array<i64: 4, 64, 32>}, {pipeline_mode = #tpu.pipeline_mode<synchronous>, transform_indices = @transform_2, window_bounds = array<i64: 1, 32>}, {transform_indices = @transform_3, window_bounds = array<i64: 1, 20, 32>}]} {
    %c0 = arith.constant 0 : index
    %c0_0 = arith.constant 0 : index
    %c0_1 = arith.constant 0 : index
    %0 = vector.load %arg1[%c0, %c0_0, %c0_1] : memref<1x33x64xf32, #tpu.memory_space<vmem>>, vector<1x20x64xf32>
    %1 = vector.shape_cast %0 : vector<1x20x64xf32> to vector<20x64xf32>
    %2 = arith.truncf %1 : vector<20x64xf32> to vector<20x64xbf16>
    %c0_2 = arith.constant 0 : index
    %c0_3 = arith.constant 0 : index
    %c0_4 = arith.constant 0 : index
    %3 = vector.load %arg2[%c0_2, %c0_3, %c0_4] : memref<4x64x32xbf16, #tpu.memory_space<vmem>>, vector<1x64x32xbf16>
    %4 = vector.shape_cast %3 : vector<1x64x32xbf16> to vector<64x32xbf16>
    %cst = arith.constant dense<0.000000e+00> : vector<20x32xf32>
    %5 = tpu.matmul %2, %4, %cst {dimension_numbers = #tpu.dot_dimension_numbers<[1], [0], [0], [1], [0, 0, 1, 1], [], []>} : vector<20x64xbf16>, vector<64x32xbf16>, vector<20x32xf32> -> vector<20x32xf32>
    %c0_5 = arith.constant 0 : index
    %c1 = arith.constant 1 : index
    %c0_6 = arith.constant 0 : index
    %6 = vector.load %arg1[%c0_5, %c1, %c0_6] : memref<1x33x64xf32, #tpu.memory_space<vmem>>, vector<1x20x64xf32>
    %7 = vector.shape_cast %6 : vector<1x20x64xf32> to vector<20x64xf32>
    %8 = arith.truncf %7 : vector<20x64xf32> to vector<20x64xbf16>
    %c1_7 = arith.constant 1 : index
    %c0_8 = arith.constant 0 : index
    %c0_9 = arith.constant 0 : index
    %9 = vector.load %arg2[%c1_7, %c0_8, %c0_9] : memref<4x64x32xbf16, #tpu.memory_space<vmem>>, vector<1x64x32xbf16>
    %10 = vector.shape_cast %9 : vector<1x64x32xbf16> to vector<64x32xbf16>
    %cst_10 = arith.constant dense<0.000000e+00> : vector<20x32xf32>
    %11 = tpu.matmul %8, %10, %cst_10 {dimension_numbers = #tpu.dot_dimension_numbers<[1], [0], [0], [1], [0, 0, 1, 1], [], []>} : vector<20x64xbf16>, vector<64x32xbf16>, vector<20x32xf32> -> vector<20x32xf32>
    %12 = arith.addf %5, %11 : vector<20x32xf32>
    %c0_11 = arith.constant 0 : index
    %c5 = arith.constant 5 : index
    %c0_12 = arith.constant 0 : index
    %13 = vector.load %arg1[%c0_11, %c5, %c0_12] : memref<1x33x64xf32, #tpu.memory_space<vmem>>, vector<1x20x64xf32>
    %14 = vector.shape_cast %13 : vector<1x20x64xf32> to vector<20x64xf32>
    %15 = arith.truncf %14 : vector<20x64xf32> to vector<20x64xbf16>
    %c2 = arith.constant 2 : index
    %c0_13 = arith.constant 0 : index
    %c0_14 = arith.constant 0 : index
    %16 = vector.load %arg2[%c2, %c0_13, %c0_14] : memref<4x64x32xbf16, #tpu.memory_space<vmem>>, vector<1x64x32xbf16>
    %17 = vector.shape_cast %16 : vector<1x64x32xbf16> to vector<64x32xbf16>
    %cst_15 = arith.constant dense<0.000000e+00> : vector<20x32xf32>
    %18 = tpu.matmul %15, %17, %cst_15 {dimension_numbers = #tpu.dot_dimension_numbers<[1], [0], [0], [1], [0, 0, 1, 1], [], []>} : vector<20x64xbf16>, vector<64x32xbf16>, vector<20x32xf32> -> vector<20x32xf32>
    %19 = arith.addf %12, %18 : vector<20x32xf32>
    %c0_16 = arith.constant 0 : index
    %c6 = arith.constant 6 : index
    %c0_17 = arith.constant 0 : index
    %20 = vector.load %arg1[%c0_16, %c6, %c0_17] : memref<1x33x64xf32, #tpu.memory_space<vmem>>, vector<1x20x64xf32>
    %21 = vector.shape_cast %20 : vector<1x20x64xf32> to vector<20x64xf32>
    %22 = arith.truncf %21 : vector<20x64xf32> to vector<20x64xbf16>
    %c3 = arith.constant 3 : index
    %c0_18 = arith.constant 0 : index
    %c0_19 = arith.constant 0 : index
    %23 = vector.load %arg2[%c3, %c0_18, %c0_19] : memref<4x64x32xbf16, #tpu.memory_space<vmem>>, vector<1x64x32xbf16>
    %24 = vector.shape_cast %23 : vector<1x64x32xbf16> to vector<64x32xbf16>
    %cst_20 = arith.constant dense<0.000000e+00> : vector<20x32xf32>
    %25 = tpu.matmul %22, %24, %cst_20 {dimension_numbers = #tpu.dot_dimension_numbers<[1], [0], [0], [1], [0, 0, 1, 1], [], []>} : vector<20x64xbf16>, vector<64x32xbf16>, vector<20x32xf32> -> vector<20x32xf32>
    %26 = arith.addf %19, %25 : vector<20x32xf32>
    %c0_21 = arith.constant 0 : index
    %c0_22 = arith.constant 0 : index
    %27 = vector.load %arg3[%c0_21, %c0_22] : memref<1x32xf32, #tpu.memory_space<vmem>>, vector<1x32xf32>
    %28 = vector.broadcast %27 : vector<1x32xf32> to vector<20x32xf32>
    %29 = arith.addf %26, %28 : vector<20x32xf32>
    %cst_23 = arith.constant 0.000000e+00 : f32
    %30 = vector.broadcast %cst_23 : f32 to vector<20x32xf32>
    %31 = arith.maximumf %29, %30 : vector<20x32xf32>
    %c0_24 = arith.constant 0 : index
    %c0_25 = arith.constant 0 : index
    %c0_26 = arith.constant 0 : index
    %32 = vector.load %arg4[%c0_24, %c0_25, %c0_26] : memref<1x20x32xf32, #tpu.memory_space<vmem>>, vector<1x20x32xf32>
    %33 = vector.shape_cast %32 : vector<1x20x32xf32> to vector<20x32xf32>
    %34 = vector.shape_cast %31 : vector<20x32xf32> to vector<1x20x32xf32>
    tpu.vector_store %arg4[%c0_24, %c0_25, %c0_26], %34 {strides = array<i32>} : memref<1x20x32xf32, #tpu.memory_space<vmem>>, vector<1x20x32xf32>,
    return
  }
  func.func @transform_0(%arg0: i32) -> (i32, i32, i32) {
    %c0_i32 = arith.constant 0 : i32
    %c0_i32_0 = arith.constant 0 : i32
    %c0_i32_1 = arith.constant 0 : i32
    return %arg0, %c0_i32, %c0_i32_0 : i32, i32, i32
  }
  func.func @transform_1(%arg0: i32) -> (i32, i32, i32) {
    %c0_i32 = arith.constant 0 : i32
    %c0_i32_0 = arith.constant 0 : i32
    %c0_i32_1 = arith.constant 0 : i32
    %c0_i32_2 = arith.constant 0 : i32
    return %c0_i32, %c0_i32_0, %c0_i32_1 : i32, i32, i32
  }
  func.func @transform_2(%arg0: i32) -> (i32, i32) {
    %c0_i32 = arith.constant 0 : i32
    %c0_i32_0 = arith.constant 0 : i32
    %c0_i32_1 = arith.constant 0 : i32
    return %c0_i32, %c0_i32_0 : i32, i32
  }
  func.func @transform_3(%arg0: i32) -> (i32, i32, i32) {
    %c0_i32 = arith.constant 0 : i32
    %c0_i32_0 = arith.constant 0 : i32
    %c0_i32_1 = arith.constant 0 : i32
    return %arg0, %c0_i32, %c0_i32_0 : i32, i32, i32
  }
}

module attributes {stable_mosaic.version = 11 : i64} {
  func.func @_latent_kernel(%arg0: i32, %arg1: memref<2x512xf32, #tpu.memory_space<vmem>>, %arg2: memref<512x32xbf16, #tpu.memory_space<vmem>>, %arg3: memref<1x32xf32, #tpu.memory_space<vmem>>, %arg4: memref<2x32xf32, #tpu.memory_space<vmem>>) attributes {dimension_semantics = [#tpu.dimension_semantics<arbitrary>], iteration_bounds = array<i64: 1>, scalar_prefetch = 0 : i64, scratch_operands = 0 : i64, tpu.core_type = #tpu.core_type<tc>, window_params = [{pipeline_mode = #tpu.pipeline_mode<synchronous>, transform_indices = @transform_0, window_bounds = array<i64: 2, 512>}, {pipeline_mode = #tpu.pipeline_mode<synchronous>, transform_indices = @transform_1, window_bounds = array<i64: 512, 32>}, {pipeline_mode = #tpu.pipeline_mode<synchronous>, transform_indices = @transform_2, window_bounds = array<i64: 1, 32>}, {pipeline_mode = #tpu.pipeline_mode<synchronous>, transform_indices = @transform_3, window_bounds = array<i64: 2, 32>}]} {
    %c0 = arith.constant 0 : index
    %c0_0 = arith.constant 0 : index
    %0 = vector.load %arg1[%c0, %c0_0] : memref<2x512xf32, #tpu.memory_space<vmem>>, vector<2x512xf32>
    %1 = arith.truncf %0 : vector<2x512xf32> to vector<2x512xbf16>
    %c0_1 = arith.constant 0 : index
    %c0_2 = arith.constant 0 : index
    %2 = vector.load %arg2[%c0_1, %c0_2] : memref<512x32xbf16, #tpu.memory_space<vmem>>, vector<512x32xbf16>
    %cst = arith.constant dense<0.000000e+00> : vector<2x32xf32>
    %3 = tpu.matmul %1, %2, %cst {dimension_numbers = #tpu.dot_dimension_numbers<[1], [0], [0], [1], [0, 0, 1, 1], [], []>} : vector<2x512xbf16>, vector<512x32xbf16>, vector<2x32xf32> -> vector<2x32xf32>
    %c0_3 = arith.constant 0 : index
    %c0_4 = arith.constant 0 : index
    %4 = vector.load %arg3[%c0_3, %c0_4] : memref<1x32xf32, #tpu.memory_space<vmem>>, vector<1x32xf32>
    %5 = vector.broadcast %4 : vector<1x32xf32> to vector<2x32xf32>
    %6 = arith.addf %3, %5 : vector<2x32xf32>
    %c0_5 = arith.constant 0 : index
    %c0_6 = arith.constant 0 : index
    %7 = vector.load %arg4[%c0_5, %c0_6] : memref<2x32xf32, #tpu.memory_space<vmem>>, vector<2x32xf32>
    tpu.vector_store %arg4[%c0_5, %c0_6], %6 {strides = array<i32>} : memref<2x32xf32, #tpu.memory_space<vmem>>, vector<2x32xf32>,
    return
  }
  func.func @transform_0(%arg0: i32) -> (i32, i32) {
    %c0_i32 = arith.constant 0 : i32
    %c0_i32_0 = arith.constant 0 : i32
    %c0_i32_1 = arith.constant 0 : i32
    return %c0_i32, %c0_i32_0 : i32, i32
  }
  func.func @transform_1(%arg0: i32) -> (i32, i32) {
    %c0_i32 = arith.constant 0 : i32
    %c0_i32_0 = arith.constant 0 : i32
    %c0_i32_1 = arith.constant 0 : i32
    return %c0_i32, %c0_i32_0 : i32, i32
  }
  func.func @transform_2(%arg0: i32) -> (i32, i32) {
    %c0_i32 = arith.constant 0 : i32
    %c0_i32_0 = arith.constant 0 : i32
    %c0_i32_1 = arith.constant 0 : i32
    return %c0_i32, %c0_i32_0 : i32, i32
  }
  func.func @transform_3(%arg0: i32) -> (i32, i32) {
    %c0_i32 = arith.constant 0 : i32
    %c0_i32_0 = arith.constant 0 : i32
    %c0_i32_1 = arith.constant 0 : i32
    return %c0_i32, %c0_i32_0 : i32, i32
  }
}

module attributes {stable_mosaic.version = 11 : i64} {
  func.func @_reparam_up_kernel(%arg0: i32, %arg1: memref<2x16xf32, #tpu.memory_space<vmem>>, %arg2: memref<2x16xf32, #tpu.memory_space<vmem>>, %arg3: memref<2x16xf32, #tpu.memory_space<vmem>>, %arg4: memref<16x512xbf16, #tpu.memory_space<vmem>>, %arg5: memref<1x512xf32, #tpu.memory_space<vmem>>, %arg6: memref<2x512xf32, #tpu.memory_space<vmem>>) attributes {dimension_semantics = [#tpu.dimension_semantics<arbitrary>], iteration_bounds = array<i64: 1>, scalar_prefetch = 0 : i64, scratch_operands = 0 : i64, tpu.core_type = #tpu.core_type<tc>, window_params = [{pipeline_mode = #tpu.pipeline_mode<synchronous>, transform_indices = @transform_0, window_bounds = array<i64: 2, 16>}, {pipeline_mode = #tpu.pipeline_mode<synchronous>, transform_indices = @transform_1, window_bounds = array<i64: 2, 16>}, {pipeline_mode = #tpu.pipeline_mode<synchronous>, transform_indices = @transform_2, window_bounds = array<i64: 2, 16>}, {pipeline_mode = #tpu.pipeline_mode<synchronous>, transform_indices = @transform_3, window_bounds = array<i64: 16, 512>}, {pipeline_mode = #tpu.pipeline_mode<synchronous>, transform_indices = @transform_4, window_bounds = array<i64: 1, 512>}, {pipeline_mode = #tpu.pipeline_mode<synchronous>, transform_indices = @transform_5, window_bounds = array<i64: 2, 512>}]} {
    %c0 = arith.constant 0 : index
    %c0_0 = arith.constant 0 : index
    %0 = vector.load %arg1[%c0, %c0_0] : memref<2x16xf32, #tpu.memory_space<vmem>>, vector<2x16xf32>
    %c0_1 = arith.constant 0 : index
    %c0_2 = arith.constant 0 : index
    %1 = vector.load %arg3[%c0_1, %c0_2] : memref<2x16xf32, #tpu.memory_space<vmem>>, vector<2x16xf32>
    %c0_3 = arith.constant 0 : index
    %c0_4 = arith.constant 0 : index
    %2 = vector.load %arg2[%c0_3, %c0_4] : memref<2x16xf32, #tpu.memory_space<vmem>>, vector<2x16xf32>
    %cst = arith.constant 5.000000e-01 : f32
    %3 = vector.broadcast %cst : f32 to vector<2x16xf32>
    %4 = arith.mulf %3, %2 : vector<2x16xf32>
    %5 = math.exp %4 : vector<2x16xf32>
    %6 = arith.mulf %1, %5 : vector<2x16xf32>
    %7 = arith.addf %0, %6 : vector<2x16xf32>
    %8 = arith.truncf %7 : vector<2x16xf32> to vector<2x16xbf16>
    %c0_5 = arith.constant 0 : index
    %c0_6 = arith.constant 0 : index
    %9 = vector.load %arg4[%c0_5, %c0_6] : memref<16x512xbf16, #tpu.memory_space<vmem>>, vector<16x512xbf16>
    %cst_7 = arith.constant dense<0.000000e+00> : vector<2x512xf32>
    %10 = tpu.matmul %8, %9, %cst_7 {dimension_numbers = #tpu.dot_dimension_numbers<[1], [0], [0], [1], [0, 0, 1, 1], [], []>} : vector<2x16xbf16>, vector<16x512xbf16>, vector<2x512xf32> -> vector<2x512xf32>
    %c0_8 = arith.constant 0 : index
    %c0_9 = arith.constant 0 : index
    %11 = vector.load %arg5[%c0_8, %c0_9] : memref<1x512xf32, #tpu.memory_space<vmem>>, vector<1x512xf32>
    %12 = vector.broadcast %11 : vector<1x512xf32> to vector<2x512xf32>
    %13 = arith.addf %10, %12 : vector<2x512xf32>
    %c0_10 = arith.constant 0 : index
    %c0_11 = arith.constant 0 : index
    %14 = vector.load %arg6[%c0_10, %c0_11] : memref<2x512xf32, #tpu.memory_space<vmem>>, vector<2x512xf32>
    tpu.vector_store %arg6[%c0_10, %c0_11], %13 {strides = array<i32>} : memref<2x512xf32, #tpu.memory_space<vmem>>, vector<2x512xf32>,
    return
  }
  func.func @transform_0(%arg0: i32) -> (i32, i32) {
    %c0_i32 = arith.constant 0 : i32
    %c0_i32_0 = arith.constant 0 : i32
    %c0_i32_1 = arith.constant 0 : i32
    return %c0_i32, %c0_i32_0 : i32, i32
  }
  func.func @transform_1(%arg0: i32) -> (i32, i32) {
    %c0_i32 = arith.constant 0 : i32
    %c0_i32_0 = arith.constant 0 : i32
    %c0_i32_1 = arith.constant 0 : i32
    return %c0_i32, %c0_i32_0 : i32, i32
  }
  func.func @transform_2(%arg0: i32) -> (i32, i32) {
    %c0_i32 = arith.constant 0 : i32
    %c0_i32_0 = arith.constant 0 : i32
    %c0_i32_1 = arith.constant 0 : i32
    return %c0_i32, %c0_i32_0 : i32, i32
  }
  func.func @transform_3(%arg0: i32) -> (i32, i32) {
    %c0_i32 = arith.constant 0 : i32
    %c0_i32_0 = arith.constant 0 : i32
    %c0_i32_1 = arith.constant 0 : i32
    return %c0_i32, %c0_i32_0 : i32, i32
  }
  func.func @transform_4(%arg0: i32) -> (i32, i32) {
    %c0_i32 = arith.constant 0 : i32
    %c0_i32_0 = arith.constant 0 : i32
    %c0_i32_1 = arith.constant 0 : i32
    return %c0_i32, %c0_i32_0 : i32, i32
  }
  func.func @transform_5(%arg0: i32) -> (i32, i32) {
    %c0_i32 = arith.constant 0 : i32
    %c0_i32_0 = arith.constant 0 : i32
    %c0_i32_1 = arith.constant 0 : i32
    return %c0_i32, %c0_i32_0 : i32, i32
  }
}

module attributes {stable_mosaic.version = 11 : i64} {
  func.func @_deconv_s2_kernel(%arg0: i32, %arg1: memref<1x44x32xf32, #tpu.memory_space<vmem>>, %arg2: memref<4x4x32x16xbf16, #tpu.memory_space<vmem>>, %arg3: memref<1x16xf32, #tpu.memory_space<vmem>>, %arg4: memref<1x96x16xf32, #tpu.memory_space<vmem>>) attributes {dimension_semantics = [#tpu.dimension_semantics<parallel>], iteration_bounds = array<i64: 2>, scalar_prefetch = 0 : i64, scratch_operands = 0 : i64, tpu.core_type = #tpu.core_type<tc>, window_params = [{transform_indices = @transform_0, window_bounds = array<i64: 1, 44, 32>}, {pipeline_mode = #tpu.pipeline_mode<synchronous>, transform_indices = @transform_1, window_bounds = array<i64: 4, 4, 32, 16>}, {pipeline_mode = #tpu.pipeline_mode<synchronous>, transform_indices = @transform_2, window_bounds = array<i64: 1, 16>}, {transform_indices = @transform_3, window_bounds = array<i64: 1, 96, 16>}]} {
    %c0 = arith.constant 0 : index
    %c0_0 = arith.constant 0 : index
    %c0_1 = arith.constant 0 : index
    %0 = vector.load %arg1[%c0, %c0_0, %c0_1] : memref<1x44x32xf32, #tpu.memory_space<vmem>>, vector<1x24x32xf32>
    %1 = vector.shape_cast %0 : vector<1x24x32xf32> to vector<24x32xf32>
    %2 = arith.truncf %1 : vector<24x32xf32> to vector<24x32xbf16>
    %c0_2 = arith.constant 0 : index
    %c0_3 = arith.constant 0 : index
    %c0_4 = arith.constant 0 : index
    %c0_5 = arith.constant 0 : index
    %3 = vector.load %arg2[%c0_2, %c0_3, %c0_4, %c0_5] : memref<4x4x32x16xbf16, #tpu.memory_space<vmem>>, vector<1x1x32x16xbf16>
    %4 = vector.shape_cast %3 : vector<1x1x32x16xbf16> to vector<32x16xbf16>
    %cst = arith.constant dense<0.000000e+00> : vector<24x16xf32>
    %5 = tpu.matmul %2, %4, %cst {dimension_numbers = #tpu.dot_dimension_numbers<[1], [0], [0], [1], [0, 0, 1, 1], [], []>} : vector<24x32xbf16>, vector<32x16xbf16>, vector<24x16xf32> -> vector<24x16xf32>
    %c0_6 = arith.constant 0 : index
    %c1 = arith.constant 1 : index
    %c0_7 = arith.constant 0 : index
    %6 = vector.load %arg1[%c0_6, %c1, %c0_7] : memref<1x44x32xf32, #tpu.memory_space<vmem>>, vector<1x24x32xf32>
    %7 = vector.shape_cast %6 : vector<1x24x32xf32> to vector<24x32xf32>
    %8 = arith.truncf %7 : vector<24x32xf32> to vector<24x32xbf16>
    %c0_8 = arith.constant 0 : index
    %c1_9 = arith.constant 1 : index
    %c0_10 = arith.constant 0 : index
    %c0_11 = arith.constant 0 : index
    %9 = vector.load %arg2[%c0_8, %c1_9, %c0_10, %c0_11] : memref<4x4x32x16xbf16, #tpu.memory_space<vmem>>, vector<1x1x32x16xbf16>
    %10 = vector.shape_cast %9 : vector<1x1x32x16xbf16> to vector<32x16xbf16>
    %cst_12 = arith.constant dense<0.000000e+00> : vector<24x16xf32>
    %11 = tpu.matmul %8, %10, %cst_12 {dimension_numbers = #tpu.dot_dimension_numbers<[1], [0], [0], [1], [0, 0, 1, 1], [], []>} : vector<24x32xbf16>, vector<32x16xbf16>, vector<24x16xf32> -> vector<24x16xf32>
    %12 = arith.addf %5, %11 : vector<24x16xf32>
    %c0_13 = arith.constant 0 : index
    %c6 = arith.constant 6 : index
    %c0_14 = arith.constant 0 : index
    %13 = vector.load %arg1[%c0_13, %c6, %c0_14] : memref<1x44x32xf32, #tpu.memory_space<vmem>>, vector<1x24x32xf32>
    %14 = vector.shape_cast %13 : vector<1x24x32xf32> to vector<24x32xf32>
    %15 = arith.truncf %14 : vector<24x32xf32> to vector<24x32xbf16>
    %c0_15 = arith.constant 0 : index
    %c2 = arith.constant 2 : index
    %c0_16 = arith.constant 0 : index
    %c0_17 = arith.constant 0 : index
    %16 = vector.load %arg2[%c0_15, %c2, %c0_16, %c0_17] : memref<4x4x32x16xbf16, #tpu.memory_space<vmem>>, vector<1x1x32x16xbf16>
    %17 = vector.shape_cast %16 : vector<1x1x32x16xbf16> to vector<32x16xbf16>
    %cst_18 = arith.constant dense<0.000000e+00> : vector<24x16xf32>
    %18 = tpu.matmul %15, %17, %cst_18 {dimension_numbers = #tpu.dot_dimension_numbers<[1], [0], [0], [1], [0, 0, 1, 1], [], []>} : vector<24x32xbf16>, vector<32x16xbf16>, vector<24x16xf32> -> vector<24x16xf32>
    %19 = arith.addf %12, %18 : vector<24x16xf32>
    %c0_19 = arith.constant 0 : index
    %c7 = arith.constant 7 : index
    %c0_20 = arith.constant 0 : index
    %20 = vector.load %arg1[%c0_19, %c7, %c0_20] : memref<1x44x32xf32, #tpu.memory_space<vmem>>, vector<1x24x32xf32>
    %21 = vector.shape_cast %20 : vector<1x24x32xf32> to vector<24x32xf32>
    %22 = arith.truncf %21 : vector<24x32xf32> to vector<24x32xbf16>
    %c0_21 = arith.constant 0 : index
    %c3 = arith.constant 3 : index
    %c0_22 = arith.constant 0 : index
    %c0_23 = arith.constant 0 : index
    %23 = vector.load %arg2[%c0_21, %c3, %c0_22, %c0_23] : memref<4x4x32x16xbf16, #tpu.memory_space<vmem>>, vector<1x1x32x16xbf16>
    %24 = vector.shape_cast %23 : vector<1x1x32x16xbf16> to vector<32x16xbf16>
    %cst_24 = arith.constant dense<0.000000e+00> : vector<24x16xf32>
    %25 = tpu.matmul %22, %24, %cst_24 {dimension_numbers = #tpu.dot_dimension_numbers<[1], [0], [0], [1], [0, 0, 1, 1], [], []>} : vector<24x32xbf16>, vector<32x16xbf16>, vector<24x16xf32> -> vector<24x16xf32>
    %26 = arith.addf %19, %25 : vector<24x16xf32>
    %c0_25 = arith.constant 0 : index
    %c0_26 = arith.constant 0 : index
    %27 = vector.load %arg3[%c0_25, %c0_26] : memref<1x16xf32, #tpu.memory_space<vmem>>, vector<1x16xf32>
    %28 = vector.broadcast %27 : vector<1x16xf32> to vector<24x16xf32>
    %29 = arith.addf %26, %28 : vector<24x16xf32>
    %cst_27 = arith.constant 0.000000e+00 : f32
    %30 = vector.broadcast %cst_27 : f32 to vector<24x16xf32>
    %31 = arith.maximumf %29, %30 : vector<24x16xf32>
    %c0_28 = arith.constant 0 : index
    %c0_29 = arith.constant 0 : index
    %c0_30 = arith.constant 0 : index
    %32 = vector.load %arg4[%c0_28, %c0_29, %c0_30] : memref<1x96x16xf32, #tpu.memory_space<vmem>>, vector<1x24x16xf32>
    %33 = vector.shape_cast %32 : vector<1x24x16xf32> to vector<24x16xf32>
    %34 = vector.shape_cast %31 : vector<24x16xf32> to vector<1x24x16xf32>
    tpu.vector_store %arg4[%c0_28, %c0_29, %c0_30], %34 {strides = array<i32>} : memref<1x96x16xf32, #tpu.memory_space<vmem>>, vector<1x24x16xf32>,
    %c0_31 = arith.constant 0 : index
    %c1_32 = arith.constant 1 : index
    %c0_33 = arith.constant 0 : index
    %35 = vector.load %arg1[%c0_31, %c1_32, %c0_33] : memref<1x44x32xf32, #tpu.memory_space<vmem>>, vector<1x24x32xf32>
    %36 = vector.shape_cast %35 : vector<1x24x32xf32> to vector<24x32xf32>
    %37 = arith.truncf %36 : vector<24x32xf32> to vector<24x32xbf16>
    %c1_34 = arith.constant 1 : index
    %c0_35 = arith.constant 0 : index
    %c0_36 = arith.constant 0 : index
    %c0_37 = arith.constant 0 : index
    %38 = vector.load %arg2[%c1_34, %c0_35, %c0_36, %c0_37] : memref<4x4x32x16xbf16, #tpu.memory_space<vmem>>, vector<1x1x32x16xbf16>
    %39 = vector.shape_cast %38 : vector<1x1x32x16xbf16> to vector<32x16xbf16>
    %cst_38 = arith.constant dense<0.000000e+00> : vector<24x16xf32>
    %40 = tpu.matmul %37, %39, %cst_38 {dimension_numbers = #tpu.dot_dimension_numbers<[1], [0], [0], [1], [0, 0, 1, 1], [], []>} : vector<24x32xbf16>, vector<32x16xbf16>, vector<24x16xf32> -> vector<24x16xf32>
    %c0_39 = arith.constant 0 : index
    %c2_40 = arith.constant 2 : index
    %c0_41 = arith.constant 0 : index
    %41 = vector.load %arg1[%c0_39, %c2_40, %c0_41] : memref<1x44x32xf32, #tpu.memory_space<vmem>>, vector<1x24x32xf32>
    %42 = vector.shape_cast %41 : vector<1x24x32xf32> to vector<24x32xf32>
    %43 = arith.truncf %42 : vector<24x32xf32> to vector<24x32xbf16>
    %c1_42 = arith.constant 1 : index
    %c1_43 = arith.constant 1 : index
    %c0_44 = arith.constant 0 : index
    %c0_45 = arith.constant 0 : index
    %44 = vector.load %arg2[%c1_42, %c1_43, %c0_44, %c0_45] : memref<4x4x32x16xbf16, #tpu.memory_space<vmem>>, vector<1x1x32x16xbf16>
    %45 = vector.shape_cast %44 : vector<1x1x32x16xbf16> to vector<32x16xbf16>
    %cst_46 = arith.constant dense<0.000000e+00> : vector<24x16xf32>
    %46 = tpu.matmul %43, %45, %cst_46 {dimension_numbers = #tpu.dot_dimension_numbers<[1], [0], [0], [1], [0, 0, 1, 1], [], []>} : vector<24x32xbf16>, vector<32x16xbf16>, vector<24x16xf32> -> vector<24x16xf32>
    %47 = arith.addf %40, %46 : vector<24x16xf32>
    %c0_47 = arith.constant 0 : index
    %c7_48 = arith.constant 7 : index
    %c0_49 = arith.constant 0 : index
    %48 = vector.load %arg1[%c0_47, %c7_48, %c0_49] : memref<1x44x32xf32, #tpu.memory_space<vmem>>, vector<1x24x32xf32>
    %49 = vector.shape_cast %48 : vector<1x24x32xf32> to vector<24x32xf32>
    %50 = arith.truncf %49 : vector<24x32xf32> to vector<24x32xbf16>
    %c1_50 = arith.constant 1 : index
    %c2_51 = arith.constant 2 : index
    %c0_52 = arith.constant 0 : index
    %c0_53 = arith.constant 0 : index
    %51 = vector.load %arg2[%c1_50, %c2_51, %c0_52, %c0_53] : memref<4x4x32x16xbf16, #tpu.memory_space<vmem>>, vector<1x1x32x16xbf16>
    %52 = vector.shape_cast %51 : vector<1x1x32x16xbf16> to vector<32x16xbf16>
    %cst_54 = arith.constant dense<0.000000e+00> : vector<24x16xf32>
    %53 = tpu.matmul %50, %52, %cst_54 {dimension_numbers = #tpu.dot_dimension_numbers<[1], [0], [0], [1], [0, 0, 1, 1], [], []>} : vector<24x32xbf16>, vector<32x16xbf16>, vector<24x16xf32> -> vector<24x16xf32>
    %54 = arith.addf %47, %53 : vector<24x16xf32>
    %c0_55 = arith.constant 0 : index
    %c8 = arith.constant 8 : index
    %c0_56 = arith.constant 0 : index
    %55 = vector.load %arg1[%c0_55, %c8, %c0_56] : memref<1x44x32xf32, #tpu.memory_space<vmem>>, vector<1x24x32xf32>
    %56 = vector.shape_cast %55 : vector<1x24x32xf32> to vector<24x32xf32>
    %57 = arith.truncf %56 : vector<24x32xf32> to vector<24x32xbf16>
    %c1_57 = arith.constant 1 : index
    %c3_58 = arith.constant 3 : index
    %c0_59 = arith.constant 0 : index
    %c0_60 = arith.constant 0 : index
    %58 = vector.load %arg2[%c1_57, %c3_58, %c0_59, %c0_60] : memref<4x4x32x16xbf16, #tpu.memory_space<vmem>>, vector<1x1x32x16xbf16>
    %59 = vector.shape_cast %58 : vector<1x1x32x16xbf16> to vector<32x16xbf16>
    %cst_61 = arith.constant dense<0.000000e+00> : vector<24x16xf32>
    %60 = tpu.matmul %57, %59, %cst_61 {dimension_numbers = #tpu.dot_dimension_numbers<[1], [0], [0], [1], [0, 0, 1, 1], [], []>} : vector<24x32xbf16>, vector<32x16xbf16>, vector<24x16xf32> -> vector<24x16xf32>
    %61 = arith.addf %54, %60 : vector<24x16xf32>
    %c0_62 = arith.constant 0 : index
    %c0_63 = arith.constant 0 : index
    %62 = vector.load %arg3[%c0_62, %c0_63] : memref<1x16xf32, #tpu.memory_space<vmem>>, vector<1x16xf32>
    %63 = vector.broadcast %62 : vector<1x16xf32> to vector<24x16xf32>
    %64 = arith.addf %61, %63 : vector<24x16xf32>
    %cst_64 = arith.constant 0.000000e+00 : f32
    %65 = vector.broadcast %cst_64 : f32 to vector<24x16xf32>
    %66 = arith.maximumf %64, %65 : vector<24x16xf32>
    %c0_65 = arith.constant 0 : index
    %c24 = arith.constant 24 : index
    %c0_66 = arith.constant 0 : index
    %67 = vector.load %arg4[%c0_65, %c24, %c0_66] : memref<1x96x16xf32, #tpu.memory_space<vmem>>, vector<1x24x16xf32>
    %68 = vector.shape_cast %67 : vector<1x24x16xf32> to vector<24x16xf32>
    %69 = vector.shape_cast %66 : vector<24x16xf32> to vector<1x24x16xf32>
    tpu.vector_store %arg4[%c0_65, %c24, %c0_66], %69 {strides = array<i32>} : memref<1x96x16xf32, #tpu.memory_space<vmem>>, vector<1x24x16xf32>,
    %c0_67 = arith.constant 0 : index
    %c6_68 = arith.constant 6 : index
    %c0_69 = arith.constant 0 : index
    %70 = vector.load %arg1[%c0_67, %c6_68, %c0_69] : memref<1x44x32xf32, #tpu.memory_space<vmem>>, vector<1x24x32xf32>
    %71 = vector.shape_cast %70 : vector<1x24x32xf32> to vector<24x32xf32>
    %72 = arith.truncf %71 : vector<24x32xf32> to vector<24x32xbf16>
    %c2_70 = arith.constant 2 : index
    %c0_71 = arith.constant 0 : index
    %c0_72 = arith.constant 0 : index
    %c0_73 = arith.constant 0 : index
    %73 = vector.load %arg2[%c2_70, %c0_71, %c0_72, %c0_73] : memref<4x4x32x16xbf16, #tpu.memory_space<vmem>>, vector<1x1x32x16xbf16>
    %74 = vector.shape_cast %73 : vector<1x1x32x16xbf16> to vector<32x16xbf16>
    %cst_74 = arith.constant dense<0.000000e+00> : vector<24x16xf32>
    %75 = tpu.matmul %72, %74, %cst_74 {dimension_numbers = #tpu.dot_dimension_numbers<[1], [0], [0], [1], [0, 0, 1, 1], [], []>} : vector<24x32xbf16>, vector<32x16xbf16>, vector<24x16xf32> -> vector<24x16xf32>
    %c0_75 = arith.constant 0 : index
    %c7_76 = arith.constant 7 : index
    %c0_77 = arith.constant 0 : index
    %76 = vector.load %arg1[%c0_75, %c7_76, %c0_77] : memref<1x44x32xf32, #tpu.memory_space<vmem>>, vector<1x24x32xf32>
    %77 = vector.shape_cast %76 : vector<1x24x32xf32> to vector<24x32xf32>
    %78 = arith.truncf %77 : vector<24x32xf32> to vector<24x32xbf16>
    %c2_78 = arith.constant 2 : index
    %c1_79 = arith.constant 1 : index
    %c0_80 = arith.constant 0 : index
    %c0_81 = arith.constant 0 : index
    %79 = vector.load %arg2[%c2_78, %c1_79, %c0_80, %c0_81] : memref<4x4x32x16xbf16, #tpu.memory_space<vmem>>, vector<1x1x32x16xbf16>
    %80 = vector.shape_cast %79 : vector<1x1x32x16xbf16> to vector<32x16xbf16>
    %cst_82 = arith.constant dense<0.000000e+00> : vector<24x16xf32>
    %81 = tpu.matmul %78, %80, %cst_82 {dimension_numbers = #tpu.dot_dimension_numbers<[1], [0], [0], [1], [0, 0, 1, 1], [], []>} : vector<24x32xbf16>, vector<32x16xbf16>, vector<24x16xf32> -> vector<24x16xf32>
    %82 = arith.addf %75, %81 : vector<24x16xf32>
    %c0_83 = arith.constant 0 : index
    %c12 = arith.constant 12 : index
    %c0_84 = arith.constant 0 : index
    %83 = vector.load %arg1[%c0_83, %c12, %c0_84] : memref<1x44x32xf32, #tpu.memory_space<vmem>>, vector<1x24x32xf32>
    %84 = vector.shape_cast %83 : vector<1x24x32xf32> to vector<24x32xf32>
    %85 = arith.truncf %84 : vector<24x32xf32> to vector<24x32xbf16>
    %c2_85 = arith.constant 2 : index
    %c2_86 = arith.constant 2 : index
    %c0_87 = arith.constant 0 : index
    %c0_88 = arith.constant 0 : index
    %86 = vector.load %arg2[%c2_85, %c2_86, %c0_87, %c0_88] : memref<4x4x32x16xbf16, #tpu.memory_space<vmem>>, vector<1x1x32x16xbf16>
    %87 = vector.shape_cast %86 : vector<1x1x32x16xbf16> to vector<32x16xbf16>
    %cst_89 = arith.constant dense<0.000000e+00> : vector<24x16xf32>
    %88 = tpu.matmul %85, %87, %cst_89 {dimension_numbers = #tpu.dot_dimension_numbers<[1], [0], [0], [1], [0, 0, 1, 1], [], []>} : vector<24x32xbf16>, vector<32x16xbf16>, vector<24x16xf32> -> vector<24x16xf32>
    %89 = arith.addf %82, %88 : vector<24x16xf32>
    %c0_90 = arith.constant 0 : index
    %c13 = arith.constant 13 : index
    %c0_91 = arith.constant 0 : index
    %90 = vector.load %arg1[%c0_90, %c13, %c0_91] : memref<1x44x32xf32, #tpu.memory_space<vmem>>, vector<1x24x32xf32>
    %91 = vector.shape_cast %90 : vector<1x24x32xf32> to vector<24x32xf32>
    %92 = arith.truncf %91 : vector<24x32xf32> to vector<24x32xbf16>
    %c2_92 = arith.constant 2 : index
    %c3_93 = arith.constant 3 : index
    %c0_94 = arith.constant 0 : index
    %c0_95 = arith.constant 0 : index
    %93 = vector.load %arg2[%c2_92, %c3_93, %c0_94, %c0_95] : memref<4x4x32x16xbf16, #tpu.memory_space<vmem>>, vector<1x1x32x16xbf16>
    %94 = vector.shape_cast %93 : vector<1x1x32x16xbf16> to vector<32x16xbf16>
    %cst_96 = arith.constant dense<0.000000e+00> : vector<24x16xf32>
    %95 = tpu.matmul %92, %94, %cst_96 {dimension_numbers = #tpu.dot_dimension_numbers<[1], [0], [0], [1], [0, 0, 1, 1], [], []>} : vector<24x32xbf16>, vector<32x16xbf16>, vector<24x16xf32> -> vector<24x16xf32>
    %96 = arith.addf %89, %95 : vector<24x16xf32>
    %c0_97 = arith.constant 0 : index
    %c0_98 = arith.constant 0 : index
    %97 = vector.load %arg3[%c0_97, %c0_98] : memref<1x16xf32, #tpu.memory_space<vmem>>, vector<1x16xf32>
    %98 = vector.broadcast %97 : vector<1x16xf32> to vector<24x16xf32>
    %99 = arith.addf %96, %98 : vector<24x16xf32>
    %cst_99 = arith.constant 0.000000e+00 : f32
    %100 = vector.broadcast %cst_99 : f32 to vector<24x16xf32>
    %101 = arith.maximumf %99, %100 : vector<24x16xf32>
    %c0_100 = arith.constant 0 : index
    %c48 = arith.constant 48 : index
    %c0_101 = arith.constant 0 : index
    %102 = vector.load %arg4[%c0_100, %c48, %c0_101] : memref<1x96x16xf32, #tpu.memory_space<vmem>>, vector<1x24x16xf32>
    %103 = vector.shape_cast %102 : vector<1x24x16xf32> to vector<24x16xf32>
    %104 = vector.shape_cast %101 : vector<24x16xf32> to vector<1x24x16xf32>
    tpu.vector_store %arg4[%c0_100, %c48, %c0_101], %104 {strides = array<i32>} : memref<1x96x16xf32, #tpu.memory_space<vmem>>, vector<1x24x16xf32>,
    %c0_102 = arith.constant 0 : index
    %c7_103 = arith.constant 7 : index
    %c0_104 = arith.constant 0 : index
    %105 = vector.load %arg1[%c0_102, %c7_103, %c0_104] : memref<1x44x32xf32, #tpu.memory_space<vmem>>, vector<1x24x32xf32>
    %106 = vector.shape_cast %105 : vector<1x24x32xf32> to vector<24x32xf32>
    %107 = arith.truncf %106 : vector<24x32xf32> to vector<24x32xbf16>
    %c3_105 = arith.constant 3 : index
    %c0_106 = arith.constant 0 : index
    %c0_107 = arith.constant 0 : index
    %c0_108 = arith.constant 0 : index
    %108 = vector.load %arg2[%c3_105, %c0_106, %c0_107, %c0_108] : memref<4x4x32x16xbf16, #tpu.memory_space<vmem>>, vector<1x1x32x16xbf16>
    %109 = vector.shape_cast %108 : vector<1x1x32x16xbf16> to vector<32x16xbf16>
    %cst_109 = arith.constant dense<0.000000e+00> : vector<24x16xf32>
    %110 = tpu.matmul %107, %109, %cst_109 {dimension_numbers = #tpu.dot_dimension_numbers<[1], [0], [0], [1], [0, 0, 1, 1], [], []>} : vector<24x32xbf16>, vector<32x16xbf16>, vector<24x16xf32> -> vector<24x16xf32>
    %c0_110 = arith.constant 0 : index
    %c8_111 = arith.constant 8 : index
    %c0_112 = arith.constant 0 : index
    %111 = vector.load %arg1[%c0_110, %c8_111, %c0_112] : memref<1x44x32xf32, #tpu.memory_space<vmem>>, vector<1x24x32xf32>
    %112 = vector.shape_cast %111 : vector<1x24x32xf32> to vector<24x32xf32>
    %113 = arith.truncf %112 : vector<24x32xf32> to vector<24x32xbf16>
    %c3_113 = arith.constant 3 : index
    %c1_114 = arith.constant 1 : index
    %c0_115 = arith.constant 0 : index
    %c0_116 = arith.constant 0 : index
    %114 = vector.load %arg2[%c3_113, %c1_114, %c0_115, %c0_116] : memref<4x4x32x16xbf16, #tpu.memory_space<vmem>>, vector<1x1x32x16xbf16>
    %115 = vector.shape_cast %114 : vector<1x1x32x16xbf16> to vector<32x16xbf16>
    %cst_117 = arith.constant dense<0.000000e+00> : vector<24x16xf32>
    %116 = tpu.matmul %113, %115, %cst_117 {dimension_numbers = #tpu.dot_dimension_numbers<[1], [0], [0], [1], [0, 0, 1, 1], [], []>} : vector<24x32xbf16>, vector<32x16xbf16>, vector<24x16xf32> -> vector<24x16xf32>
    %117 = arith.addf %110, %116 : vector<24x16xf32>
    %c0_118 = arith.constant 0 : index
    %c13_119 = arith.constant 13 : index
    %c0_120 = arith.constant 0 : index
    %118 = vector.load %arg1[%c0_118, %c13_119, %c0_120] : memref<1x44x32xf32, #tpu.memory_space<vmem>>, vector<1x24x32xf32>
    %119 = vector.shape_cast %118 : vector<1x24x32xf32> to vector<24x32xf32>
    %120 = arith.truncf %119 : vector<24x32xf32> to vector<24x32xbf16>
    %c3_121 = arith.constant 3 : index
    %c2_122 = arith.constant 2 : index
    %c0_123 = arith.constant 0 : index
    %c0_124 = arith.constant 0 : index
    %121 = vector.load %arg2[%c3_121, %c2_122, %c0_123, %c0_124] : memref<4x4x32x16xbf16, #tpu.memory_space<vmem>>, vector<1x1x32x16xbf16>
    %122 = vector.shape_cast %121 : vector<1x1x32x16xbf16> to vector<32x16xbf16>
    %cst_125 = arith.constant dense<0.000000e+00> : vector<24x16xf32>
    %123 = tpu.matmul %120, %122, %cst_125 {dimension_numbers = #tpu.dot_dimension_numbers<[1], [0], [0], [1], [0, 0, 1, 1], [], []>} : vector<24x32xbf16>, vector<32x16xbf16>, vector<24x16xf32> -> vector<24x16xf32>
    %124 = arith.addf %117, %123 : vector<24x16xf32>
    %c0_126 = arith.constant 0 : index
    %c14 = arith.constant 14 : index
    %c0_127 = arith.constant 0 : index
    %125 = vector.load %arg1[%c0_126, %c14, %c0_127] : memref<1x44x32xf32, #tpu.memory_space<vmem>>, vector<1x24x32xf32>
    %126 = vector.shape_cast %125 : vector<1x24x32xf32> to vector<24x32xf32>
    %127 = arith.truncf %126 : vector<24x32xf32> to vector<24x32xbf16>
    %c3_128 = arith.constant 3 : index
    %c3_129 = arith.constant 3 : index
    %c0_130 = arith.constant 0 : index
    %c0_131 = arith.constant 0 : index
    %128 = vector.load %arg2[%c3_128, %c3_129, %c0_130, %c0_131] : memref<4x4x32x16xbf16, #tpu.memory_space<vmem>>, vector<1x1x32x16xbf16>
    %129 = vector.shape_cast %128 : vector<1x1x32x16xbf16> to vector<32x16xbf16>
    %cst_132 = arith.constant dense<0.000000e+00> : vector<24x16xf32>
    %130 = tpu.matmul %127, %129, %cst_132 {dimension_numbers = #tpu.dot_dimension_numbers<[1], [0], [0], [1], [0, 0, 1, 1], [], []>} : vector<24x32xbf16>, vector<32x16xbf16>, vector<24x16xf32> -> vector<24x16xf32>
    %131 = arith.addf %124, %130 : vector<24x16xf32>
    %c0_133 = arith.constant 0 : index
    %c0_134 = arith.constant 0 : index
    %132 = vector.load %arg3[%c0_133, %c0_134] : memref<1x16xf32, #tpu.memory_space<vmem>>, vector<1x16xf32>
    %133 = vector.broadcast %132 : vector<1x16xf32> to vector<24x16xf32>
    %134 = arith.addf %131, %133 : vector<24x16xf32>
    %cst_135 = arith.constant 0.000000e+00 : f32
    %135 = vector.broadcast %cst_135 : f32 to vector<24x16xf32>
    %136 = arith.maximumf %134, %135 : vector<24x16xf32>
    %c0_136 = arith.constant 0 : index
    %c72 = arith.constant 72 : index
    %c0_137 = arith.constant 0 : index
    %137 = vector.load %arg4[%c0_136, %c72, %c0_137] : memref<1x96x16xf32, #tpu.memory_space<vmem>>, vector<1x24x16xf32>
    %138 = vector.shape_cast %137 : vector<1x24x16xf32> to vector<24x16xf32>
    %139 = vector.shape_cast %136 : vector<24x16xf32> to vector<1x24x16xf32>
    tpu.vector_store %arg4[%c0_136, %c72, %c0_137], %139 {strides = array<i32>} : memref<1x96x16xf32, #tpu.memory_space<vmem>>, vector<1x24x16xf32>,
    return
  }
  func.func @transform_0(%arg0: i32) -> (i32, i32, i32) {
    %c0_i32 = arith.constant 0 : i32
    %c0_i32_0 = arith.constant 0 : i32
    %c0_i32_1 = arith.constant 0 : i32
    return %arg0, %c0_i32, %c0_i32_0 : i32, i32, i32
  }
  func.func @transform_1(%arg0: i32) -> (i32, i32, i32, i32) {
    %c0_i32 = arith.constant 0 : i32
    %c0_i32_0 = arith.constant 0 : i32
    %c0_i32_1 = arith.constant 0 : i32
    %c0_i32_2 = arith.constant 0 : i32
    %c0_i32_3 = arith.constant 0 : i32
    return %c0_i32, %c0_i32_0, %c0_i32_1, %c0_i32_2 : i32, i32, i32, i32
  }
  func.func @transform_2(%arg0: i32) -> (i32, i32) {
    %c0_i32 = arith.constant 0 : i32
    %c0_i32_0 = arith.constant 0 : i32
    %c0_i32_1 = arith.constant 0 : i32
    return %c0_i32, %c0_i32_0 : i32, i32
  }
  func.func @transform_3(%arg0: i32) -> (i32, i32, i32) {
    %c0_i32 = arith.constant 0 : i32
    %c0_i32_0 = arith.constant 0 : i32
    %c0_i32_1 = arith.constant 0 : i32
    return %arg0, %c0_i32, %c0_i32_0 : i32, i32, i32
  }
}

module attributes {stable_mosaic.version = 11 : i64} {
  func.func @_deconv_s2_kernel(%arg0: i32, %arg1: memref<1x108x16xf32, #tpu.memory_space<vmem>>, %arg2: memref<4x4x16x8xbf16, #tpu.memory_space<vmem>>, %arg3: memref<1x8xf32, #tpu.memory_space<vmem>>, %arg4: memref<1x320x8xf32, #tpu.memory_space<vmem>>) attributes {dimension_semantics = [#tpu.dimension_semantics<parallel>], iteration_bounds = array<i64: 2>, scalar_prefetch = 0 : i64, scratch_operands = 0 : i64, tpu.core_type = #tpu.core_type<tc>, window_params = [{transform_indices = @transform_0, window_bounds = array<i64: 1, 108, 16>}, {pipeline_mode = #tpu.pipeline_mode<synchronous>, transform_indices = @transform_1, window_bounds = array<i64: 4, 4, 16, 8>}, {pipeline_mode = #tpu.pipeline_mode<synchronous>, transform_indices = @transform_2, window_bounds = array<i64: 1, 8>}, {transform_indices = @transform_3, window_bounds = array<i64: 1, 320, 8>}]} {
    %c0 = arith.constant 0 : index
    %c0_0 = arith.constant 0 : index
    %c0_1 = arith.constant 0 : index
    %0 = vector.load %arg1[%c0, %c0_0, %c0_1] : memref<1x108x16xf32, #tpu.memory_space<vmem>>, vector<1x80x16xf32>
    %1 = vector.shape_cast %0 : vector<1x80x16xf32> to vector<80x16xf32>
    %2 = arith.truncf %1 : vector<80x16xf32> to vector<80x16xbf16>
    %c0_2 = arith.constant 0 : index
    %c0_3 = arith.constant 0 : index
    %c0_4 = arith.constant 0 : index
    %c0_5 = arith.constant 0 : index
    %3 = vector.load %arg2[%c0_2, %c0_3, %c0_4, %c0_5] : memref<4x4x16x8xbf16, #tpu.memory_space<vmem>>, vector<1x1x16x8xbf16>
    %4 = vector.shape_cast %3 : vector<1x1x16x8xbf16> to vector<16x8xbf16>
    %cst = arith.constant dense<0.000000e+00> : vector<80x8xf32>
    %5 = tpu.matmul %2, %4, %cst {dimension_numbers = #tpu.dot_dimension_numbers<[1], [0], [0], [1], [0, 0, 1, 1], [], []>} : vector<80x16xbf16>, vector<16x8xbf16>, vector<80x8xf32> -> vector<80x8xf32>
    %c0_6 = arith.constant 0 : index
    %c1 = arith.constant 1 : index
    %c0_7 = arith.constant 0 : index
    %6 = vector.load %arg1[%c0_6, %c1, %c0_7] : memref<1x108x16xf32, #tpu.memory_space<vmem>>, vector<1x80x16xf32>
    %7 = vector.shape_cast %6 : vector<1x80x16xf32> to vector<80x16xf32>
    %8 = arith.truncf %7 : vector<80x16xf32> to vector<80x16xbf16>
    %c0_8 = arith.constant 0 : index
    %c1_9 = arith.constant 1 : index
    %c0_10 = arith.constant 0 : index
    %c0_11 = arith.constant 0 : index
    %9 = vector.load %arg2[%c0_8, %c1_9, %c0_10, %c0_11] : memref<4x4x16x8xbf16, #tpu.memory_space<vmem>>, vector<1x1x16x8xbf16>
    %10 = vector.shape_cast %9 : vector<1x1x16x8xbf16> to vector<16x8xbf16>
    %cst_12 = arith.constant dense<0.000000e+00> : vector<80x8xf32>
    %11 = tpu.matmul %8, %10, %cst_12 {dimension_numbers = #tpu.dot_dimension_numbers<[1], [0], [0], [1], [0, 0, 1, 1], [], []>} : vector<80x16xbf16>, vector<16x8xbf16>, vector<80x8xf32> -> vector<80x8xf32>
    %12 = arith.addf %5, %11 : vector<80x8xf32>
    %c0_13 = arith.constant 0 : index
    %c10 = arith.constant 10 : index
    %c0_14 = arith.constant 0 : index
    %13 = vector.load %arg1[%c0_13, %c10, %c0_14] : memref<1x108x16xf32, #tpu.memory_space<vmem>>, vector<1x80x16xf32>
    %14 = vector.shape_cast %13 : vector<1x80x16xf32> to vector<80x16xf32>
    %15 = arith.truncf %14 : vector<80x16xf32> to vector<80x16xbf16>
    %c0_15 = arith.constant 0 : index
    %c2 = arith.constant 2 : index
    %c0_16 = arith.constant 0 : index
    %c0_17 = arith.constant 0 : index
    %16 = vector.load %arg2[%c0_15, %c2, %c0_16, %c0_17] : memref<4x4x16x8xbf16, #tpu.memory_space<vmem>>, vector<1x1x16x8xbf16>
    %17 = vector.shape_cast %16 : vector<1x1x16x8xbf16> to vector<16x8xbf16>
    %cst_18 = arith.constant dense<0.000000e+00> : vector<80x8xf32>
    %18 = tpu.matmul %15, %17, %cst_18 {dimension_numbers = #tpu.dot_dimension_numbers<[1], [0], [0], [1], [0, 0, 1, 1], [], []>} : vector<80x16xbf16>, vector<16x8xbf16>, vector<80x8xf32> -> vector<80x8xf32>
    %19 = arith.addf %12, %18 : vector<80x8xf32>
    %c0_19 = arith.constant 0 : index
    %c11 = arith.constant 11 : index
    %c0_20 = arith.constant 0 : index
    %20 = vector.load %arg1[%c0_19, %c11, %c0_20] : memref<1x108x16xf32, #tpu.memory_space<vmem>>, vector<1x80x16xf32>
    %21 = vector.shape_cast %20 : vector<1x80x16xf32> to vector<80x16xf32>
    %22 = arith.truncf %21 : vector<80x16xf32> to vector<80x16xbf16>
    %c0_21 = arith.constant 0 : index
    %c3 = arith.constant 3 : index
    %c0_22 = arith.constant 0 : index
    %c0_23 = arith.constant 0 : index
    %23 = vector.load %arg2[%c0_21, %c3, %c0_22, %c0_23] : memref<4x4x16x8xbf16, #tpu.memory_space<vmem>>, vector<1x1x16x8xbf16>
    %24 = vector.shape_cast %23 : vector<1x1x16x8xbf16> to vector<16x8xbf16>
    %cst_24 = arith.constant dense<0.000000e+00> : vector<80x8xf32>
    %25 = tpu.matmul %22, %24, %cst_24 {dimension_numbers = #tpu.dot_dimension_numbers<[1], [0], [0], [1], [0, 0, 1, 1], [], []>} : vector<80x16xbf16>, vector<16x8xbf16>, vector<80x8xf32> -> vector<80x8xf32>
    %26 = arith.addf %19, %25 : vector<80x8xf32>
    %c0_25 = arith.constant 0 : index
    %c0_26 = arith.constant 0 : index
    %27 = vector.load %arg3[%c0_25, %c0_26] : memref<1x8xf32, #tpu.memory_space<vmem>>, vector<1x8xf32>
    %28 = vector.broadcast %27 : vector<1x8xf32> to vector<80x8xf32>
    %29 = arith.addf %26, %28 : vector<80x8xf32>
    %cst_27 = arith.constant 0.000000e+00 : f32
    %30 = vector.broadcast %cst_27 : f32 to vector<80x8xf32>
    %31 = arith.maximumf %29, %30 : vector<80x8xf32>
    %c0_28 = arith.constant 0 : index
    %c0_29 = arith.constant 0 : index
    %c0_30 = arith.constant 0 : index
    %32 = vector.load %arg4[%c0_28, %c0_29, %c0_30] : memref<1x320x8xf32, #tpu.memory_space<vmem>>, vector<1x80x8xf32>
    %33 = vector.shape_cast %32 : vector<1x80x8xf32> to vector<80x8xf32>
    %34 = vector.shape_cast %31 : vector<80x8xf32> to vector<1x80x8xf32>
    tpu.vector_store %arg4[%c0_28, %c0_29, %c0_30], %34 {strides = array<i32>} : memref<1x320x8xf32, #tpu.memory_space<vmem>>, vector<1x80x8xf32>,
    %c0_31 = arith.constant 0 : index
    %c1_32 = arith.constant 1 : index
    %c0_33 = arith.constant 0 : index
    %35 = vector.load %arg1[%c0_31, %c1_32, %c0_33] : memref<1x108x16xf32, #tpu.memory_space<vmem>>, vector<1x80x16xf32>
    %36 = vector.shape_cast %35 : vector<1x80x16xf32> to vector<80x16xf32>
    %37 = arith.truncf %36 : vector<80x16xf32> to vector<80x16xbf16>
    %c1_34 = arith.constant 1 : index
    %c0_35 = arith.constant 0 : index
    %c0_36 = arith.constant 0 : index
    %c0_37 = arith.constant 0 : index
    %38 = vector.load %arg2[%c1_34, %c0_35, %c0_36, %c0_37] : memref<4x4x16x8xbf16, #tpu.memory_space<vmem>>, vector<1x1x16x8xbf16>
    %39 = vector.shape_cast %38 : vector<1x1x16x8xbf16> to vector<16x8xbf16>
    %cst_38 = arith.constant dense<0.000000e+00> : vector<80x8xf32>
    %40 = tpu.matmul %37, %39, %cst_38 {dimension_numbers = #tpu.dot_dimension_numbers<[1], [0], [0], [1], [0, 0, 1, 1], [], []>} : vector<80x16xbf16>, vector<16x8xbf16>, vector<80x8xf32> -> vector<80x8xf32>
    %c0_39 = arith.constant 0 : index
    %c2_40 = arith.constant 2 : index
    %c0_41 = arith.constant 0 : index
    %41 = vector.load %arg1[%c0_39, %c2_40, %c0_41] : memref<1x108x16xf32, #tpu.memory_space<vmem>>, vector<1x80x16xf32>
    %42 = vector.shape_cast %41 : vector<1x80x16xf32> to vector<80x16xf32>
    %43 = arith.truncf %42 : vector<80x16xf32> to vector<80x16xbf16>
    %c1_42 = arith.constant 1 : index
    %c1_43 = arith.constant 1 : index
    %c0_44 = arith.constant 0 : index
    %c0_45 = arith.constant 0 : index
    %44 = vector.load %arg2[%c1_42, %c1_43, %c0_44, %c0_45] : memref<4x4x16x8xbf16, #tpu.memory_space<vmem>>, vector<1x1x16x8xbf16>
    %45 = vector.shape_cast %44 : vector<1x1x16x8xbf16> to vector<16x8xbf16>
    %cst_46 = arith.constant dense<0.000000e+00> : vector<80x8xf32>
    %46 = tpu.matmul %43, %45, %cst_46 {dimension_numbers = #tpu.dot_dimension_numbers<[1], [0], [0], [1], [0, 0, 1, 1], [], []>} : vector<80x16xbf16>, vector<16x8xbf16>, vector<80x8xf32> -> vector<80x8xf32>
    %47 = arith.addf %40, %46 : vector<80x8xf32>
    %c0_47 = arith.constant 0 : index
    %c11_48 = arith.constant 11 : index
    %c0_49 = arith.constant 0 : index
    %48 = vector.load %arg1[%c0_47, %c11_48, %c0_49] : memref<1x108x16xf32, #tpu.memory_space<vmem>>, vector<1x80x16xf32>
    %49 = vector.shape_cast %48 : vector<1x80x16xf32> to vector<80x16xf32>
    %50 = arith.truncf %49 : vector<80x16xf32> to vector<80x16xbf16>
    %c1_50 = arith.constant 1 : index
    %c2_51 = arith.constant 2 : index
    %c0_52 = arith.constant 0 : index
    %c0_53 = arith.constant 0 : index
    %51 = vector.load %arg2[%c1_50, %c2_51, %c0_52, %c0_53] : memref<4x4x16x8xbf16, #tpu.memory_space<vmem>>, vector<1x1x16x8xbf16>
    %52 = vector.shape_cast %51 : vector<1x1x16x8xbf16> to vector<16x8xbf16>
    %cst_54 = arith.constant dense<0.000000e+00> : vector<80x8xf32>
    %53 = tpu.matmul %50, %52, %cst_54 {dimension_numbers = #tpu.dot_dimension_numbers<[1], [0], [0], [1], [0, 0, 1, 1], [], []>} : vector<80x16xbf16>, vector<16x8xbf16>, vector<80x8xf32> -> vector<80x8xf32>
    %54 = arith.addf %47, %53 : vector<80x8xf32>
    %c0_55 = arith.constant 0 : index
    %c12 = arith.constant 12 : index
    %c0_56 = arith.constant 0 : index
    %55 = vector.load %arg1[%c0_55, %c12, %c0_56] : memref<1x108x16xf32, #tpu.memory_space<vmem>>, vector<1x80x16xf32>
    %56 = vector.shape_cast %55 : vector<1x80x16xf32> to vector<80x16xf32>
    %57 = arith.truncf %56 : vector<80x16xf32> to vector<80x16xbf16>
    %c1_57 = arith.constant 1 : index
    %c3_58 = arith.constant 3 : index
    %c0_59 = arith.constant 0 : index
    %c0_60 = arith.constant 0 : index
    %58 = vector.load %arg2[%c1_57, %c3_58, %c0_59, %c0_60] : memref<4x4x16x8xbf16, #tpu.memory_space<vmem>>, vector<1x1x16x8xbf16>
    %59 = vector.shape_cast %58 : vector<1x1x16x8xbf16> to vector<16x8xbf16>
    %cst_61 = arith.constant dense<0.000000e+00> : vector<80x8xf32>
    %60 = tpu.matmul %57, %59, %cst_61 {dimension_numbers = #tpu.dot_dimension_numbers<[1], [0], [0], [1], [0, 0, 1, 1], [], []>} : vector<80x16xbf16>, vector<16x8xbf16>, vector<80x8xf32> -> vector<80x8xf32>
    %61 = arith.addf %54, %60 : vector<80x8xf32>
    %c0_62 = arith.constant 0 : index
    %c0_63 = arith.constant 0 : index
    %62 = vector.load %arg3[%c0_62, %c0_63] : memref<1x8xf32, #tpu.memory_space<vmem>>, vector<1x8xf32>
    %63 = vector.broadcast %62 : vector<1x8xf32> to vector<80x8xf32>
    %64 = arith.addf %61, %63 : vector<80x8xf32>
    %cst_64 = arith.constant 0.000000e+00 : f32
    %65 = vector.broadcast %cst_64 : f32 to vector<80x8xf32>
    %66 = arith.maximumf %64, %65 : vector<80x8xf32>
    %c0_65 = arith.constant 0 : index
    %c80 = arith.constant 80 : index
    %c0_66 = arith.constant 0 : index
    %67 = vector.load %arg4[%c0_65, %c80, %c0_66] : memref<1x320x8xf32, #tpu.memory_space<vmem>>, vector<1x80x8xf32>
    %68 = vector.shape_cast %67 : vector<1x80x8xf32> to vector<80x8xf32>
    %69 = vector.shape_cast %66 : vector<80x8xf32> to vector<1x80x8xf32>
    tpu.vector_store %arg4[%c0_65, %c80, %c0_66], %69 {strides = array<i32>} : memref<1x320x8xf32, #tpu.memory_space<vmem>>, vector<1x80x8xf32>,
    %c0_67 = arith.constant 0 : index
    %c10_68 = arith.constant 10 : index
    %c0_69 = arith.constant 0 : index
    %70 = vector.load %arg1[%c0_67, %c10_68, %c0_69] : memref<1x108x16xf32, #tpu.memory_space<vmem>>, vector<1x80x16xf32>
    %71 = vector.shape_cast %70 : vector<1x80x16xf32> to vector<80x16xf32>
    %72 = arith.truncf %71 : vector<80x16xf32> to vector<80x16xbf16>
    %c2_70 = arith.constant 2 : index
    %c0_71 = arith.constant 0 : index
    %c0_72 = arith.constant 0 : index
    %c0_73 = arith.constant 0 : index
    %73 = vector.load %arg2[%c2_70, %c0_71, %c0_72, %c0_73] : memref<4x4x16x8xbf16, #tpu.memory_space<vmem>>, vector<1x1x16x8xbf16>
    %74 = vector.shape_cast %73 : vector<1x1x16x8xbf16> to vector<16x8xbf16>
    %cst_74 = arith.constant dense<0.000000e+00> : vector<80x8xf32>
    %75 = tpu.matmul %72, %74, %cst_74 {dimension_numbers = #tpu.dot_dimension_numbers<[1], [0], [0], [1], [0, 0, 1, 1], [], []>} : vector<80x16xbf16>, vector<16x8xbf16>, vector<80x8xf32> -> vector<80x8xf32>
    %c0_75 = arith.constant 0 : index
    %c11_76 = arith.constant 11 : index
    %c0_77 = arith.constant 0 : index
    %76 = vector.load %arg1[%c0_75, %c11_76, %c0_77] : memref<1x108x16xf32, #tpu.memory_space<vmem>>, vector<1x80x16xf32>
    %77 = vector.shape_cast %76 : vector<1x80x16xf32> to vector<80x16xf32>
    %78 = arith.truncf %77 : vector<80x16xf32> to vector<80x16xbf16>
    %c2_78 = arith.constant 2 : index
    %c1_79 = arith.constant 1 : index
    %c0_80 = arith.constant 0 : index
    %c0_81 = arith.constant 0 : index
    %79 = vector.load %arg2[%c2_78, %c1_79, %c0_80, %c0_81] : memref<4x4x16x8xbf16, #tpu.memory_space<vmem>>, vector<1x1x16x8xbf16>
    %80 = vector.shape_cast %79 : vector<1x1x16x8xbf16> to vector<16x8xbf16>
    %cst_82 = arith.constant dense<0.000000e+00> : vector<80x8xf32>
    %81 = tpu.matmul %78, %80, %cst_82 {dimension_numbers = #tpu.dot_dimension_numbers<[1], [0], [0], [1], [0, 0, 1, 1], [], []>} : vector<80x16xbf16>, vector<16x8xbf16>, vector<80x8xf32> -> vector<80x8xf32>
    %82 = arith.addf %75, %81 : vector<80x8xf32>
    %c0_83 = arith.constant 0 : index
    %c20 = arith.constant 20 : index
    %c0_84 = arith.constant 0 : index
    %83 = vector.load %arg1[%c0_83, %c20, %c0_84] : memref<1x108x16xf32, #tpu.memory_space<vmem>>, vector<1x80x16xf32>
    %84 = vector.shape_cast %83 : vector<1x80x16xf32> to vector<80x16xf32>
    %85 = arith.truncf %84 : vector<80x16xf32> to vector<80x16xbf16>
    %c2_85 = arith.constant 2 : index
    %c2_86 = arith.constant 2 : index
    %c0_87 = arith.constant 0 : index
    %c0_88 = arith.constant 0 : index
    %86 = vector.load %arg2[%c2_85, %c2_86, %c0_87, %c0_88] : memref<4x4x16x8xbf16, #tpu.memory_space<vmem>>, vector<1x1x16x8xbf16>
    %87 = vector.shape_cast %86 : vector<1x1x16x8xbf16> to vector<16x8xbf16>
    %cst_89 = arith.constant dense<0.000000e+00> : vector<80x8xf32>
    %88 = tpu.matmul %85, %87, %cst_89 {dimension_numbers = #tpu.dot_dimension_numbers<[1], [0], [0], [1], [0, 0, 1, 1], [], []>} : vector<80x16xbf16>, vector<16x8xbf16>, vector<80x8xf32> -> vector<80x8xf32>
    %89 = arith.addf %82, %88 : vector<80x8xf32>
    %c0_90 = arith.constant 0 : index
    %c21 = arith.constant 21 : index
    %c0_91 = arith.constant 0 : index
    %90 = vector.load %arg1[%c0_90, %c21, %c0_91] : memref<1x108x16xf32, #tpu.memory_space<vmem>>, vector<1x80x16xf32>
    %91 = vector.shape_cast %90 : vector<1x80x16xf32> to vector<80x16xf32>
    %92 = arith.truncf %91 : vector<80x16xf32> to vector<80x16xbf16>
    %c2_92 = arith.constant 2 : index
    %c3_93 = arith.constant 3 : index
    %c0_94 = arith.constant 0 : index
    %c0_95 = arith.constant 0 : index
    %93 = vector.load %arg2[%c2_92, %c3_93, %c0_94, %c0_95] : memref<4x4x16x8xbf16, #tpu.memory_space<vmem>>, vector<1x1x16x8xbf16>
    %94 = vector.shape_cast %93 : vector<1x1x16x8xbf16> to vector<16x8xbf16>
    %cst_96 = arith.constant dense<0.000000e+00> : vector<80x8xf32>
    %95 = tpu.matmul %92, %94, %cst_96 {dimension_numbers = #tpu.dot_dimension_numbers<[1], [0], [0], [1], [0, 0, 1, 1], [], []>} : vector<80x16xbf16>, vector<16x8xbf16>, vector<80x8xf32> -> vector<80x8xf32>
    %96 = arith.addf %89, %95 : vector<80x8xf32>
    %c0_97 = arith.constant 0 : index
    %c0_98 = arith.constant 0 : index
    %97 = vector.load %arg3[%c0_97, %c0_98] : memref<1x8xf32, #tpu.memory_space<vmem>>, vector<1x8xf32>
    %98 = vector.broadcast %97 : vector<1x8xf32> to vector<80x8xf32>
    %99 = arith.addf %96, %98 : vector<80x8xf32>
    %cst_99 = arith.constant 0.000000e+00 : f32
    %100 = vector.broadcast %cst_99 : f32 to vector<80x8xf32>
    %101 = arith.maximumf %99, %100 : vector<80x8xf32>
    %c0_100 = arith.constant 0 : index
    %c160 = arith.constant 160 : index
    %c0_101 = arith.constant 0 : index
    %102 = vector.load %arg4[%c0_100, %c160, %c0_101] : memref<1x320x8xf32, #tpu.memory_space<vmem>>, vector<1x80x8xf32>
    %103 = vector.shape_cast %102 : vector<1x80x8xf32> to vector<80x8xf32>
    %104 = vector.shape_cast %101 : vector<80x8xf32> to vector<1x80x8xf32>
    tpu.vector_store %arg4[%c0_100, %c160, %c0_101], %104 {strides = array<i32>} : memref<1x320x8xf32, #tpu.memory_space<vmem>>, vector<1x80x8xf32>,
    %c0_102 = arith.constant 0 : index
    %c11_103 = arith.constant 11 : index
    %c0_104 = arith.constant 0 : index
    %105 = vector.load %arg1[%c0_102, %c11_103, %c0_104] : memref<1x108x16xf32, #tpu.memory_space<vmem>>, vector<1x80x16xf32>
    %106 = vector.shape_cast %105 : vector<1x80x16xf32> to vector<80x16xf32>
    %107 = arith.truncf %106 : vector<80x16xf32> to vector<80x16xbf16>
    %c3_105 = arith.constant 3 : index
    %c0_106 = arith.constant 0 : index
    %c0_107 = arith.constant 0 : index
    %c0_108 = arith.constant 0 : index
    %108 = vector.load %arg2[%c3_105, %c0_106, %c0_107, %c0_108] : memref<4x4x16x8xbf16, #tpu.memory_space<vmem>>, vector<1x1x16x8xbf16>
    %109 = vector.shape_cast %108 : vector<1x1x16x8xbf16> to vector<16x8xbf16>
    %cst_109 = arith.constant dense<0.000000e+00> : vector<80x8xf32>
    %110 = tpu.matmul %107, %109, %cst_109 {dimension_numbers = #tpu.dot_dimension_numbers<[1], [0], [0], [1], [0, 0, 1, 1], [], []>} : vector<80x16xbf16>, vector<16x8xbf16>, vector<80x8xf32> -> vector<80x8xf32>
    %c0_110 = arith.constant 0 : index
    %c12_111 = arith.constant 12 : index
    %c0_112 = arith.constant 0 : index
    %111 = vector.load %arg1[%c0_110, %c12_111, %c0_112] : memref<1x108x16xf32, #tpu.memory_space<vmem>>, vector<1x80x16xf32>
    %112 = vector.shape_cast %111 : vector<1x80x16xf32> to vector<80x16xf32>
    %113 = arith.truncf %112 : vector<80x16xf32> to vector<80x16xbf16>
    %c3_113 = arith.constant 3 : index
    %c1_114 = arith.constant 1 : index
    %c0_115 = arith.constant 0 : index
    %c0_116 = arith.constant 0 : index
    %114 = vector.load %arg2[%c3_113, %c1_114, %c0_115, %c0_116] : memref<4x4x16x8xbf16, #tpu.memory_space<vmem>>, vector<1x1x16x8xbf16>
    %115 = vector.shape_cast %114 : vector<1x1x16x8xbf16> to vector<16x8xbf16>
    %cst_117 = arith.constant dense<0.000000e+00> : vector<80x8xf32>
    %116 = tpu.matmul %113, %115, %cst_117 {dimension_numbers = #tpu.dot_dimension_numbers<[1], [0], [0], [1], [0, 0, 1, 1], [], []>} : vector<80x16xbf16>, vector<16x8xbf16>, vector<80x8xf32> -> vector<80x8xf32>
    %117 = arith.addf %110, %116 : vector<80x8xf32>
    %c0_118 = arith.constant 0 : index
    %c21_119 = arith.constant 21 : index
    %c0_120 = arith.constant 0 : index
    %118 = vector.load %arg1[%c0_118, %c21_119, %c0_120] : memref<1x108x16xf32, #tpu.memory_space<vmem>>, vector<1x80x16xf32>
    %119 = vector.shape_cast %118 : vector<1x80x16xf32> to vector<80x16xf32>
    %120 = arith.truncf %119 : vector<80x16xf32> to vector<80x16xbf16>
    %c3_121 = arith.constant 3 : index
    %c2_122 = arith.constant 2 : index
    %c0_123 = arith.constant 0 : index
    %c0_124 = arith.constant 0 : index
    %121 = vector.load %arg2[%c3_121, %c2_122, %c0_123, %c0_124] : memref<4x4x16x8xbf16, #tpu.memory_space<vmem>>, vector<1x1x16x8xbf16>
    %122 = vector.shape_cast %121 : vector<1x1x16x8xbf16> to vector<16x8xbf16>
    %cst_125 = arith.constant dense<0.000000e+00> : vector<80x8xf32>
    %123 = tpu.matmul %120, %122, %cst_125 {dimension_numbers = #tpu.dot_dimension_numbers<[1], [0], [0], [1], [0, 0, 1, 1], [], []>} : vector<80x16xbf16>, vector<16x8xbf16>, vector<80x8xf32> -> vector<80x8xf32>
    %124 = arith.addf %117, %123 : vector<80x8xf32>
    %c0_126 = arith.constant 0 : index
    %c22 = arith.constant 22 : index
    %c0_127 = arith.constant 0 : index
    %125 = vector.load %arg1[%c0_126, %c22, %c0_127] : memref<1x108x16xf32, #tpu.memory_space<vmem>>, vector<1x80x16xf32>
    %126 = vector.shape_cast %125 : vector<1x80x16xf32> to vector<80x16xf32>
    %127 = arith.truncf %126 : vector<80x16xf32> to vector<80x16xbf16>
    %c3_128 = arith.constant 3 : index
    %c3_129 = arith.constant 3 : index
    %c0_130 = arith.constant 0 : index
    %c0_131 = arith.constant 0 : index
    %128 = vector.load %arg2[%c3_128, %c3_129, %c0_130, %c0_131] : memref<4x4x16x8xbf16, #tpu.memory_space<vmem>>, vector<1x1x16x8xbf16>
    %129 = vector.shape_cast %128 : vector<1x1x16x8xbf16> to vector<16x8xbf16>
    %cst_132 = arith.constant dense<0.000000e+00> : vector<80x8xf32>
    %130 = tpu.matmul %127, %129, %cst_132 {dimension_numbers = #tpu.dot_dimension_numbers<[1], [0], [0], [1], [0, 0, 1, 1], [], []>} : vector<80x16xbf16>, vector<16x8xbf16>, vector<80x8xf32> -> vector<80x8xf32>
    %131 = arith.addf %124, %130 : vector<80x8xf32>
    %c0_133 = arith.constant 0 : index
    %c0_134 = arith.constant 0 : index
    %132 = vector.load %arg3[%c0_133, %c0_134] : memref<1x8xf32, #tpu.memory_space<vmem>>, vector<1x8xf32>
    %133 = vector.broadcast %132 : vector<1x8xf32> to vector<80x8xf32>
    %134 = arith.addf %131, %133 : vector<80x8xf32>
    %cst_135 = arith.constant 0.000000e+00 : f32
    %135 = vector.broadcast %cst_135 : f32 to vector<80x8xf32>
    %136 = arith.maximumf %134, %135 : vector<80x8xf32>
    %c0_136 = arith.constant 0 : index
    %c240 = arith.constant 240 : index
    %c0_137 = arith.constant 0 : index
    %137 = vector.load %arg4[%c0_136, %c240, %c0_137] : memref<1x320x8xf32, #tpu.memory_space<vmem>>, vector<1x80x8xf32>
    %138 = vector.shape_cast %137 : vector<1x80x8xf32> to vector<80x8xf32>
    %139 = vector.shape_cast %136 : vector<80x8xf32> to vector<1x80x8xf32>
    tpu.vector_store %arg4[%c0_136, %c240, %c0_137], %139 {strides = array<i32>} : memref<1x320x8xf32, #tpu.memory_space<vmem>>, vector<1x80x8xf32>,
    return
  }
  func.func @transform_0(%arg0: i32) -> (i32, i32, i32) {
    %c0_i32 = arith.constant 0 : i32
    %c0_i32_0 = arith.constant 0 : i32
    %c0_i32_1 = arith.constant 0 : i32
    return %arg0, %c0_i32, %c0_i32_0 : i32, i32, i32
  }
  func.func @transform_1(%arg0: i32) -> (i32, i32, i32, i32) {
    %c0_i32 = arith.constant 0 : i32
    %c0_i32_0 = arith.constant 0 : i32
    %c0_i32_1 = arith.constant 0 : i32
    %c0_i32_2 = arith.constant 0 : i32
    %c0_i32_3 = arith.constant 0 : i32
    return %c0_i32, %c0_i32_0, %c0_i32_1, %c0_i32_2 : i32, i32, i32, i32
  }
  func.func @transform_2(%arg0: i32) -> (i32, i32) {
    %c0_i32 = arith.constant 0 : i32
    %c0_i32_0 = arith.constant 0 : i32
    %c0_i32_1 = arith.constant 0 : i32
    return %c0_i32, %c0_i32_0 : i32, i32
  }
  func.func @transform_3(%arg0: i32) -> (i32, i32, i32) {
    %c0_i32 = arith.constant 0 : i32
    %c0_i32_0 = arith.constant 0 : i32
    %c0_i32_1 = arith.constant 0 : i32
    return %arg0, %c0_i32, %c0_i32_0 : i32, i32, i32
  }
}

module attributes {stable_mosaic.version = 11 : i64} {
  func.func @_deconv_s2_kernel(%arg0: i32, %arg1: memref<1x332x8xf32, #tpu.memory_space<vmem>>, %arg2: memref<4x4x8x3xbf16, #tpu.memory_space<vmem>>, %arg3: memref<1x3xf32, #tpu.memory_space<vmem>>, %arg4: memref<1x1152x3xf32, #tpu.memory_space<vmem>>) attributes {dimension_semantics = [#tpu.dimension_semantics<parallel>], iteration_bounds = array<i64: 2>, scalar_prefetch = 0 : i64, scratch_operands = 0 : i64, tpu.core_type = #tpu.core_type<tc>, window_params = [{transform_indices = @transform_0, window_bounds = array<i64: 1, 332, 8>}, {pipeline_mode = #tpu.pipeline_mode<synchronous>, transform_indices = @transform_1, window_bounds = array<i64: 4, 4, 8, 3>}, {pipeline_mode = #tpu.pipeline_mode<synchronous>, transform_indices = @transform_2, window_bounds = array<i64: 1, 3>}, {transform_indices = @transform_3, window_bounds = array<i64: 1, 1152, 3>}]} {
    %c0 = arith.constant 0 : index
    %c0_0 = arith.constant 0 : index
    %c0_1 = arith.constant 0 : index
    %0 = vector.load %arg1[%c0, %c0_0, %c0_1] : memref<1x332x8xf32, #tpu.memory_space<vmem>>, vector<1x288x8xf32>
    %1 = vector.shape_cast %0 : vector<1x288x8xf32> to vector<288x8xf32>
    %2 = arith.truncf %1 : vector<288x8xf32> to vector<288x8xbf16>
    %c0_2 = arith.constant 0 : index
    %c0_3 = arith.constant 0 : index
    %c0_4 = arith.constant 0 : index
    %c0_5 = arith.constant 0 : index
    %3 = vector.load %arg2[%c0_2, %c0_3, %c0_4, %c0_5] : memref<4x4x8x3xbf16, #tpu.memory_space<vmem>>, vector<1x1x8x3xbf16>
    %4 = vector.shape_cast %3 : vector<1x1x8x3xbf16> to vector<8x3xbf16>
    %cst = arith.constant dense<0.000000e+00> : vector<288x3xf32>
    %5 = tpu.matmul %2, %4, %cst {dimension_numbers = #tpu.dot_dimension_numbers<[1], [0], [0], [1], [0, 0, 1, 1], [], []>} : vector<288x8xbf16>, vector<8x3xbf16>, vector<288x3xf32> -> vector<288x3xf32>
    %c0_6 = arith.constant 0 : index
    %c1 = arith.constant 1 : index
    %c0_7 = arith.constant 0 : index
    %6 = vector.load %arg1[%c0_6, %c1, %c0_7] : memref<1x332x8xf32, #tpu.memory_space<vmem>>, vector<1x288x8xf32>
    %7 = vector.shape_cast %6 : vector<1x288x8xf32> to vector<288x8xf32>
    %8 = arith.truncf %7 : vector<288x8xf32> to vector<288x8xbf16>
    %c0_8 = arith.constant 0 : index
    %c1_9 = arith.constant 1 : index
    %c0_10 = arith.constant 0 : index
    %c0_11 = arith.constant 0 : index
    %9 = vector.load %arg2[%c0_8, %c1_9, %c0_10, %c0_11] : memref<4x4x8x3xbf16, #tpu.memory_space<vmem>>, vector<1x1x8x3xbf16>
    %10 = vector.shape_cast %9 : vector<1x1x8x3xbf16> to vector<8x3xbf16>
    %cst_12 = arith.constant dense<0.000000e+00> : vector<288x3xf32>
    %11 = tpu.matmul %8, %10, %cst_12 {dimension_numbers = #tpu.dot_dimension_numbers<[1], [0], [0], [1], [0, 0, 1, 1], [], []>} : vector<288x8xbf16>, vector<8x3xbf16>, vector<288x3xf32> -> vector<288x3xf32>
    %12 = arith.addf %5, %11 : vector<288x3xf32>
    %c0_13 = arith.constant 0 : index
    %c18 = arith.constant 18 : index
    %c0_14 = arith.constant 0 : index
    %13 = vector.load %arg1[%c0_13, %c18, %c0_14] : memref<1x332x8xf32, #tpu.memory_space<vmem>>, vector<1x288x8xf32>
    %14 = vector.shape_cast %13 : vector<1x288x8xf32> to vector<288x8xf32>
    %15 = arith.truncf %14 : vector<288x8xf32> to vector<288x8xbf16>
    %c0_15 = arith.constant 0 : index
    %c2 = arith.constant 2 : index
    %c0_16 = arith.constant 0 : index
    %c0_17 = arith.constant 0 : index
    %16 = vector.load %arg2[%c0_15, %c2, %c0_16, %c0_17] : memref<4x4x8x3xbf16, #tpu.memory_space<vmem>>, vector<1x1x8x3xbf16>
    %17 = vector.shape_cast %16 : vector<1x1x8x3xbf16> to vector<8x3xbf16>
    %cst_18 = arith.constant dense<0.000000e+00> : vector<288x3xf32>
    %18 = tpu.matmul %15, %17, %cst_18 {dimension_numbers = #tpu.dot_dimension_numbers<[1], [0], [0], [1], [0, 0, 1, 1], [], []>} : vector<288x8xbf16>, vector<8x3xbf16>, vector<288x3xf32> -> vector<288x3xf32>
    %19 = arith.addf %12, %18 : vector<288x3xf32>
    %c0_19 = arith.constant 0 : index
    %c19 = arith.constant 19 : index
    %c0_20 = arith.constant 0 : index
    %20 = vector.load %arg1[%c0_19, %c19, %c0_20] : memref<1x332x8xf32, #tpu.memory_space<vmem>>, vector<1x288x8xf32>
    %21 = vector.shape_cast %20 : vector<1x288x8xf32> to vector<288x8xf32>
    %22 = arith.truncf %21 : vector<288x8xf32> to vector<288x8xbf16>
    %c0_21 = arith.constant 0 : index
    %c3 = arith.constant 3 : index
    %c0_22 = arith.constant 0 : index
    %c0_23 = arith.constant 0 : index
    %23 = vector.load %arg2[%c0_21, %c3, %c0_22, %c0_23] : memref<4x4x8x3xbf16, #tpu.memory_space<vmem>>, vector<1x1x8x3xbf16>
    %24 = vector.shape_cast %23 : vector<1x1x8x3xbf16> to vector<8x3xbf16>
    %cst_24 = arith.constant dense<0.000000e+00> : vector<288x3xf32>
    %25 = tpu.matmul %22, %24, %cst_24 {dimension_numbers = #tpu.dot_dimension_numbers<[1], [0], [0], [1], [0, 0, 1, 1], [], []>} : vector<288x8xbf16>, vector<8x3xbf16>, vector<288x3xf32> -> vector<288x3xf32>
    %26 = arith.addf %19, %25 : vector<288x3xf32>
    %c0_25 = arith.constant 0 : index
    %c0_26 = arith.constant 0 : index
    %27 = vector.load %arg3[%c0_25, %c0_26] : memref<1x3xf32, #tpu.memory_space<vmem>>, vector<1x3xf32>
    %28 = vector.broadcast %27 : vector<1x3xf32> to vector<288x3xf32>
    %29 = arith.addf %26, %28 : vector<288x3xf32>
    %cst_27 = arith.constant 0.000000e+00 : f32
    %30 = vector.broadcast %cst_27 : f32 to vector<288x3xf32>
    %31 = arith.maximumf %29, %30 : vector<288x3xf32>
    %32 = arith.negf %31 : vector<288x3xf32>
    %33 = math.exp %32 : vector<288x3xf32>
    %cst_28 = arith.constant 1.000000e+00 : f32
    %34 = vector.broadcast %cst_28 : f32 to vector<288x3xf32>
    %35 = arith.addf %34, %33 : vector<288x3xf32>
    %36 = arith.divf %34, %35 : vector<288x3xf32>
    %c0_29 = arith.constant 0 : index
    %c0_30 = arith.constant 0 : index
    %c0_31 = arith.constant 0 : index
    %37 = vector.load %arg4[%c0_29, %c0_30, %c0_31] : memref<1x1152x3xf32, #tpu.memory_space<vmem>>, vector<1x288x3xf32>
    %38 = vector.shape_cast %37 : vector<1x288x3xf32> to vector<288x3xf32>
    %39 = vector.shape_cast %36 : vector<288x3xf32> to vector<1x288x3xf32>
    tpu.vector_store %arg4[%c0_29, %c0_30, %c0_31], %39 {strides = array<i32>} : memref<1x1152x3xf32, #tpu.memory_space<vmem>>, vector<1x288x3xf32>,
    %c0_32 = arith.constant 0 : index
    %c1_33 = arith.constant 1 : index
    %c0_34 = arith.constant 0 : index
    %40 = vector.load %arg1[%c0_32, %c1_33, %c0_34] : memref<1x332x8xf32, #tpu.memory_space<vmem>>, vector<1x288x8xf32>
    %41 = vector.shape_cast %40 : vector<1x288x8xf32> to vector<288x8xf32>
    %42 = arith.truncf %41 : vector<288x8xf32> to vector<288x8xbf16>
    %c1_35 = arith.constant 1 : index
    %c0_36 = arith.constant 0 : index
    %c0_37 = arith.constant 0 : index
    %c0_38 = arith.constant 0 : index
    %43 = vector.load %arg2[%c1_35, %c0_36, %c0_37, %c0_38] : memref<4x4x8x3xbf16, #tpu.memory_space<vmem>>, vector<1x1x8x3xbf16>
    %44 = vector.shape_cast %43 : vector<1x1x8x3xbf16> to vector<8x3xbf16>
    %cst_39 = arith.constant dense<0.000000e+00> : vector<288x3xf32>
    %45 = tpu.matmul %42, %44, %cst_39 {dimension_numbers = #tpu.dot_dimension_numbers<[1], [0], [0], [1], [0, 0, 1, 1], [], []>} : vector<288x8xbf16>, vector<8x3xbf16>, vector<288x3xf32> -> vector<288x3xf32>
    %c0_40 = arith.constant 0 : index
    %c2_41 = arith.constant 2 : index
    %c0_42 = arith.constant 0 : index
    %46 = vector.load %arg1[%c0_40, %c2_41, %c0_42] : memref<1x332x8xf32, #tpu.memory_space<vmem>>, vector<1x288x8xf32>
    %47 = vector.shape_cast %46 : vector<1x288x8xf32> to vector<288x8xf32>
    %48 = arith.truncf %47 : vector<288x8xf32> to vector<288x8xbf16>
    %c1_43 = arith.constant 1 : index
    %c1_44 = arith.constant 1 : index
    %c0_45 = arith.constant 0 : index
    %c0_46 = arith.constant 0 : index
    %49 = vector.load %arg2[%c1_43, %c1_44, %c0_45, %c0_46] : memref<4x4x8x3xbf16, #tpu.memory_space<vmem>>, vector<1x1x8x3xbf16>
    %50 = vector.shape_cast %49 : vector<1x1x8x3xbf16> to vector<8x3xbf16>
    %cst_47 = arith.constant dense<0.000000e+00> : vector<288x3xf32>
    %51 = tpu.matmul %48, %50, %cst_47 {dimension_numbers = #tpu.dot_dimension_numbers<[1], [0], [0], [1], [0, 0, 1, 1], [], []>} : vector<288x8xbf16>, vector<8x3xbf16>, vector<288x3xf32> -> vector<288x3xf32>
    %52 = arith.addf %45, %51 : vector<288x3xf32>
    %c0_48 = arith.constant 0 : index
    %c19_49 = arith.constant 19 : index
    %c0_50 = arith.constant 0 : index
    %53 = vector.load %arg1[%c0_48, %c19_49, %c0_50] : memref<1x332x8xf32, #tpu.memory_space<vmem>>, vector<1x288x8xf32>
    %54 = vector.shape_cast %53 : vector<1x288x8xf32> to vector<288x8xf32>
    %55 = arith.truncf %54 : vector<288x8xf32> to vector<288x8xbf16>
    %c1_51 = arith.constant 1 : index
    %c2_52 = arith.constant 2 : index
    %c0_53 = arith.constant 0 : index
    %c0_54 = arith.constant 0 : index
    %56 = vector.load %arg2[%c1_51, %c2_52, %c0_53, %c0_54] : memref<4x4x8x3xbf16, #tpu.memory_space<vmem>>, vector<1x1x8x3xbf16>
    %57 = vector.shape_cast %56 : vector<1x1x8x3xbf16> to vector<8x3xbf16>
    %cst_55 = arith.constant dense<0.000000e+00> : vector<288x3xf32>
    %58 = tpu.matmul %55, %57, %cst_55 {dimension_numbers = #tpu.dot_dimension_numbers<[1], [0], [0], [1], [0, 0, 1, 1], [], []>} : vector<288x8xbf16>, vector<8x3xbf16>, vector<288x3xf32> -> vector<288x3xf32>
    %59 = arith.addf %52, %58 : vector<288x3xf32>
    %c0_56 = arith.constant 0 : index
    %c20 = arith.constant 20 : index
    %c0_57 = arith.constant 0 : index
    %60 = vector.load %arg1[%c0_56, %c20, %c0_57] : memref<1x332x8xf32, #tpu.memory_space<vmem>>, vector<1x288x8xf32>
    %61 = vector.shape_cast %60 : vector<1x288x8xf32> to vector<288x8xf32>
    %62 = arith.truncf %61 : vector<288x8xf32> to vector<288x8xbf16>
    %c1_58 = arith.constant 1 : index
    %c3_59 = arith.constant 3 : index
    %c0_60 = arith.constant 0 : index
    %c0_61 = arith.constant 0 : index
    %63 = vector.load %arg2[%c1_58, %c3_59, %c0_60, %c0_61] : memref<4x4x8x3xbf16, #tpu.memory_space<vmem>>, vector<1x1x8x3xbf16>
    %64 = vector.shape_cast %63 : vector<1x1x8x3xbf16> to vector<8x3xbf16>
    %cst_62 = arith.constant dense<0.000000e+00> : vector<288x3xf32>
    %65 = tpu.matmul %62, %64, %cst_62 {dimension_numbers = #tpu.dot_dimension_numbers<[1], [0], [0], [1], [0, 0, 1, 1], [], []>} : vector<288x8xbf16>, vector<8x3xbf16>, vector<288x3xf32> -> vector<288x3xf32>
    %66 = arith.addf %59, %65 : vector<288x3xf32>
    %c0_63 = arith.constant 0 : index
    %c0_64 = arith.constant 0 : index
    %67 = vector.load %arg3[%c0_63, %c0_64] : memref<1x3xf32, #tpu.memory_space<vmem>>, vector<1x3xf32>
    %68 = vector.broadcast %67 : vector<1x3xf32> to vector<288x3xf32>
    %69 = arith.addf %66, %68 : vector<288x3xf32>
    %cst_65 = arith.constant 0.000000e+00 : f32
    %70 = vector.broadcast %cst_65 : f32 to vector<288x3xf32>
    %71 = arith.maximumf %69, %70 : vector<288x3xf32>
    %72 = arith.negf %71 : vector<288x3xf32>
    %73 = math.exp %72 : vector<288x3xf32>
    %cst_66 = arith.constant 1.000000e+00 : f32
    %74 = vector.broadcast %cst_66 : f32 to vector<288x3xf32>
    %75 = arith.addf %74, %73 : vector<288x3xf32>
    %76 = arith.divf %74, %75 : vector<288x3xf32>
    %c0_67 = arith.constant 0 : index
    %c288 = arith.constant 288 : index
    %c0_68 = arith.constant 0 : index
    %77 = vector.load %arg4[%c0_67, %c288, %c0_68] : memref<1x1152x3xf32, #tpu.memory_space<vmem>>, vector<1x288x3xf32>
    %78 = vector.shape_cast %77 : vector<1x288x3xf32> to vector<288x3xf32>
    %79 = vector.shape_cast %76 : vector<288x3xf32> to vector<1x288x3xf32>
    tpu.vector_store %arg4[%c0_67, %c288, %c0_68], %79 {strides = array<i32>} : memref<1x1152x3xf32, #tpu.memory_space<vmem>>, vector<1x288x3xf32>,
    %c0_69 = arith.constant 0 : index
    %c18_70 = arith.constant 18 : index
    %c0_71 = arith.constant 0 : index
    %80 = vector.load %arg1[%c0_69, %c18_70, %c0_71] : memref<1x332x8xf32, #tpu.memory_space<vmem>>, vector<1x288x8xf32>
    %81 = vector.shape_cast %80 : vector<1x288x8xf32> to vector<288x8xf32>
    %82 = arith.truncf %81 : vector<288x8xf32> to vector<288x8xbf16>
    %c2_72 = arith.constant 2 : index
    %c0_73 = arith.constant 0 : index
    %c0_74 = arith.constant 0 : index
    %c0_75 = arith.constant 0 : index
    %83 = vector.load %arg2[%c2_72, %c0_73, %c0_74, %c0_75] : memref<4x4x8x3xbf16, #tpu.memory_space<vmem>>, vector<1x1x8x3xbf16>
    %84 = vector.shape_cast %83 : vector<1x1x8x3xbf16> to vector<8x3xbf16>
    %cst_76 = arith.constant dense<0.000000e+00> : vector<288x3xf32>
    %85 = tpu.matmul %82, %84, %cst_76 {dimension_numbers = #tpu.dot_dimension_numbers<[1], [0], [0], [1], [0, 0, 1, 1], [], []>} : vector<288x8xbf16>, vector<8x3xbf16>, vector<288x3xf32> -> vector<288x3xf32>
    %c0_77 = arith.constant 0 : index
    %c19_78 = arith.constant 19 : index
    %c0_79 = arith.constant 0 : index
    %86 = vector.load %arg1[%c0_77, %c19_78, %c0_79] : memref<1x332x8xf32, #tpu.memory_space<vmem>>, vector<1x288x8xf32>
    %87 = vector.shape_cast %86 : vector<1x288x8xf32> to vector<288x8xf32>
    %88 = arith.truncf %87 : vector<288x8xf32> to vector<288x8xbf16>
    %c2_80 = arith.constant 2 : index
    %c1_81 = arith.constant 1 : index
    %c0_82 = arith.constant 0 : index
    %c0_83 = arith.constant 0 : index
    %89 = vector.load %arg2[%c2_80, %c1_81, %c0_82, %c0_83] : memref<4x4x8x3xbf16, #tpu.memory_space<vmem>>, vector<1x1x8x3xbf16>
    %90 = vector.shape_cast %89 : vector<1x1x8x3xbf16> to vector<8x3xbf16>
    %cst_84 = arith.constant dense<0.000000e+00> : vector<288x3xf32>
    %91 = tpu.matmul %88, %90, %cst_84 {dimension_numbers = #tpu.dot_dimension_numbers<[1], [0], [0], [1], [0, 0, 1, 1], [], []>} : vector<288x8xbf16>, vector<8x3xbf16>, vector<288x3xf32> -> vector<288x3xf32>
    %92 = arith.addf %85, %91 : vector<288x3xf32>
    %c0_85 = arith.constant 0 : index
    %c36 = arith.constant 36 : index
    %c0_86 = arith.constant 0 : index
    %93 = vector.load %arg1[%c0_85, %c36, %c0_86] : memref<1x332x8xf32, #tpu.memory_space<vmem>>, vector<1x288x8xf32>
    %94 = vector.shape_cast %93 : vector<1x288x8xf32> to vector<288x8xf32>
    %95 = arith.truncf %94 : vector<288x8xf32> to vector<288x8xbf16>
    %c2_87 = arith.constant 2 : index
    %c2_88 = arith.constant 2 : index
    %c0_89 = arith.constant 0 : index
    %c0_90 = arith.constant 0 : index
    %96 = vector.load %arg2[%c2_87, %c2_88, %c0_89, %c0_90] : memref<4x4x8x3xbf16, #tpu.memory_space<vmem>>, vector<1x1x8x3xbf16>
    %97 = vector.shape_cast %96 : vector<1x1x8x3xbf16> to vector<8x3xbf16>
    %cst_91 = arith.constant dense<0.000000e+00> : vector<288x3xf32>
    %98 = tpu.matmul %95, %97, %cst_91 {dimension_numbers = #tpu.dot_dimension_numbers<[1], [0], [0], [1], [0, 0, 1, 1], [], []>} : vector<288x8xbf16>, vector<8x3xbf16>, vector<288x3xf32> -> vector<288x3xf32>
    %99 = arith.addf %92, %98 : vector<288x3xf32>
    %c0_92 = arith.constant 0 : index
    %c37 = arith.constant 37 : index
    %c0_93 = arith.constant 0 : index
    %100 = vector.load %arg1[%c0_92, %c37, %c0_93] : memref<1x332x8xf32, #tpu.memory_space<vmem>>, vector<1x288x8xf32>
    %101 = vector.shape_cast %100 : vector<1x288x8xf32> to vector<288x8xf32>
    %102 = arith.truncf %101 : vector<288x8xf32> to vector<288x8xbf16>
    %c2_94 = arith.constant 2 : index
    %c3_95 = arith.constant 3 : index
    %c0_96 = arith.constant 0 : index
    %c0_97 = arith.constant 0 : index
    %103 = vector.load %arg2[%c2_94, %c3_95, %c0_96, %c0_97] : memref<4x4x8x3xbf16, #tpu.memory_space<vmem>>, vector<1x1x8x3xbf16>
    %104 = vector.shape_cast %103 : vector<1x1x8x3xbf16> to vector<8x3xbf16>
    %cst_98 = arith.constant dense<0.000000e+00> : vector<288x3xf32>
    %105 = tpu.matmul %102, %104, %cst_98 {dimension_numbers = #tpu.dot_dimension_numbers<[1], [0], [0], [1], [0, 0, 1, 1], [], []>} : vector<288x8xbf16>, vector<8x3xbf16>, vector<288x3xf32> -> vector<288x3xf32>
    %106 = arith.addf %99, %105 : vector<288x3xf32>
    %c0_99 = arith.constant 0 : index
    %c0_100 = arith.constant 0 : index
    %107 = vector.load %arg3[%c0_99, %c0_100] : memref<1x3xf32, #tpu.memory_space<vmem>>, vector<1x3xf32>
    %108 = vector.broadcast %107 : vector<1x3xf32> to vector<288x3xf32>
    %109 = arith.addf %106, %108 : vector<288x3xf32>
    %cst_101 = arith.constant 0.000000e+00 : f32
    %110 = vector.broadcast %cst_101 : f32 to vector<288x3xf32>
    %111 = arith.maximumf %109, %110 : vector<288x3xf32>
    %112 = arith.negf %111 : vector<288x3xf32>
    %113 = math.exp %112 : vector<288x3xf32>
    %cst_102 = arith.constant 1.000000e+00 : f32
    %114 = vector.broadcast %cst_102 : f32 to vector<288x3xf32>
    %115 = arith.addf %114, %113 : vector<288x3xf32>
    %116 = arith.divf %114, %115 : vector<288x3xf32>
    %c0_103 = arith.constant 0 : index
    %c576 = arith.constant 576 : index
    %c0_104 = arith.constant 0 : index
    %117 = vector.load %arg4[%c0_103, %c576, %c0_104] : memref<1x1152x3xf32, #tpu.memory_space<vmem>>, vector<1x288x3xf32>
    %118 = vector.shape_cast %117 : vector<1x288x3xf32> to vector<288x3xf32>
    %119 = vector.shape_cast %116 : vector<288x3xf32> to vector<1x288x3xf32>
    tpu.vector_store %arg4[%c0_103, %c576, %c0_104], %119 {strides = array<i32>} : memref<1x1152x3xf32, #tpu.memory_space<vmem>>, vector<1x288x3xf32>,
    %c0_105 = arith.constant 0 : index
    %c19_106 = arith.constant 19 : index
    %c0_107 = arith.constant 0 : index
    %120 = vector.load %arg1[%c0_105, %c19_106, %c0_107] : memref<1x332x8xf32, #tpu.memory_space<vmem>>, vector<1x288x8xf32>
    %121 = vector.shape_cast %120 : vector<1x288x8xf32> to vector<288x8xf32>
    %122 = arith.truncf %121 : vector<288x8xf32> to vector<288x8xbf16>
    %c3_108 = arith.constant 3 : index
    %c0_109 = arith.constant 0 : index
    %c0_110 = arith.constant 0 : index
    %c0_111 = arith.constant 0 : index
    %123 = vector.load %arg2[%c3_108, %c0_109, %c0_110, %c0_111] : memref<4x4x8x3xbf16, #tpu.memory_space<vmem>>, vector<1x1x8x3xbf16>
    %124 = vector.shape_cast %123 : vector<1x1x8x3xbf16> to vector<8x3xbf16>
    %cst_112 = arith.constant dense<0.000000e+00> : vector<288x3xf32>
    %125 = tpu.matmul %122, %124, %cst_112 {dimension_numbers = #tpu.dot_dimension_numbers<[1], [0], [0], [1], [0, 0, 1, 1], [], []>} : vector<288x8xbf16>, vector<8x3xbf16>, vector<288x3xf32> -> vector<288x3xf32>
    %c0_113 = arith.constant 0 : index
    %c20_114 = arith.constant 20 : index
    %c0_115 = arith.constant 0 : index
    %126 = vector.load %arg1[%c0_113, %c20_114, %c0_115] : memref<1x332x8xf32, #tpu.memory_space<vmem>>, vector<1x288x8xf32>
    %127 = vector.shape_cast %126 : vector<1x288x8xf32> to vector<288x8xf32>
    %128 = arith.truncf %127 : vector<288x8xf32> to vector<288x8xbf16>
    %c3_116 = arith.constant 3 : index
    %c1_117 = arith.constant 1 : index
    %c0_118 = arith.constant 0 : index
    %c0_119 = arith.constant 0 : index
    %129 = vector.load %arg2[%c3_116, %c1_117, %c0_118, %c0_119] : memref<4x4x8x3xbf16, #tpu.memory_space<vmem>>, vector<1x1x8x3xbf16>
    %130 = vector.shape_cast %129 : vector<1x1x8x3xbf16> to vector<8x3xbf16>
    %cst_120 = arith.constant dense<0.000000e+00> : vector<288x3xf32>
    %131 = tpu.matmul %128, %130, %cst_120 {dimension_numbers = #tpu.dot_dimension_numbers<[1], [0], [0], [1], [0, 0, 1, 1], [], []>} : vector<288x8xbf16>, vector<8x3xbf16>, vector<288x3xf32> -> vector<288x3xf32>
    %132 = arith.addf %125, %131 : vector<288x3xf32>
    %c0_121 = arith.constant 0 : index
    %c37_122 = arith.constant 37 : index
    %c0_123 = arith.constant 0 : index
    %133 = vector.load %arg1[%c0_121, %c37_122, %c0_123] : memref<1x332x8xf32, #tpu.memory_space<vmem>>, vector<1x288x8xf32>
    %134 = vector.shape_cast %133 : vector<1x288x8xf32> to vector<288x8xf32>
    %135 = arith.truncf %134 : vector<288x8xf32> to vector<288x8xbf16>
    %c3_124 = arith.constant 3 : index
    %c2_125 = arith.constant 2 : index
    %c0_126 = arith.constant 0 : index
    %c0_127 = arith.constant 0 : index
    %136 = vector.load %arg2[%c3_124, %c2_125, %c0_126, %c0_127] : memref<4x4x8x3xbf16, #tpu.memory_space<vmem>>, vector<1x1x8x3xbf16>
    %137 = vector.shape_cast %136 : vector<1x1x8x3xbf16> to vector<8x3xbf16>
    %cst_128 = arith.constant dense<0.000000e+00> : vector<288x3xf32>
    %138 = tpu.matmul %135, %137, %cst_128 {dimension_numbers = #tpu.dot_dimension_numbers<[1], [0], [0], [1], [0, 0, 1, 1], [], []>} : vector<288x8xbf16>, vector<8x3xbf16>, vector<288x3xf32> -> vector<288x3xf32>
    %139 = arith.addf %132, %138 : vector<288x3xf32>
    %c0_129 = arith.constant 0 : index
    %c38 = arith.constant 38 : index
    %c0_130 = arith.constant 0 : index
    %140 = vector.load %arg1[%c0_129, %c38, %c0_130] : memref<1x332x8xf32, #tpu.memory_space<vmem>>, vector<1x288x8xf32>
    %141 = vector.shape_cast %140 : vector<1x288x8xf32> to vector<288x8xf32>
    %142 = arith.truncf %141 : vector<288x8xf32> to vector<288x8xbf16>
    %c3_131 = arith.constant 3 : index
    %c3_132 = arith.constant 3 : index
    %c0_133 = arith.constant 0 : index
    %c0_134 = arith.constant 0 : index
    %143 = vector.load %arg2[%c3_131, %c3_132, %c0_133, %c0_134] : memref<4x4x8x3xbf16, #tpu.memory_space<vmem>>, vector<1x1x8x3xbf16>
    %144 = vector.shape_cast %143 : vector<1x1x8x3xbf16> to vector<8x3xbf16>
    %cst_135 = arith.constant dense<0.000000e+00> : vector<288x3xf32>
    %145 = tpu.matmul %142, %144, %cst_135 {dimension_numbers = #tpu.dot_dimension_numbers<[1], [0], [0], [1], [0, 0, 1, 1], [], []>} : vector<288x8xbf16>, vector<8x3xbf16>, vector<288x3xf32> -> vector<288x3xf32>
    %146 = arith.addf %139, %145 : vector<288x3xf32>
    %c0_136 = arith.constant 0 : index
    %c0_137 = arith.constant 0 : index
    %147 = vector.load %arg3[%c0_136, %c0_137] : memref<1x3xf32, #tpu.memory_space<vmem>>, vector<1x3xf32>
    %148 = vector.broadcast %147 : vector<1x3xf32> to vector<288x3xf32>
    %149 = arith.addf %146, %148 : vector<288x3xf32>
    %cst_138 = arith.constant 0.000000e+00 : f32
    %150 = vector.broadcast %cst_138 : f32 to vector<288x3xf32>
    %151 = arith.maximumf %149, %150 : vector<288x3xf32>
    %152 = arith.negf %151 : vector<288x3xf32>
    %153 = math.exp %152 : vector<288x3xf32>
    %cst_139 = arith.constant 1.000000e+00 : f32
    %154 = vector.broadcast %cst_139 : f32 to vector<288x3xf32>
    %155 = arith.addf %154, %153 : vector<288x3xf32>
    %156 = arith.divf %154, %155 : vector<288x3xf32>
    %c0_140 = arith.constant 0 : index
    %c864 = arith.constant 864 : index
    %c0_141 = arith.constant 0 : index
    %157 = vector.load %arg4[%c0_140, %c864, %c0_141] : memref<1x1152x3xf32, #tpu.memory_space<vmem>>, vector<1x288x3xf32>
    %158 = vector.shape_cast %157 : vector<1x288x3xf32> to vector<288x3xf32>
    %159 = vector.shape_cast %156 : vector<288x3xf32> to vector<1x288x3xf32>
    tpu.vector_store %arg4[%c0_140, %c864, %c0_141], %159 {strides = array<i32>} : memref<1x1152x3xf32, #tpu.memory_space<vmem>>, vector<1x288x3xf32>,
    return
  }
  func.func @transform_0(%arg0: i32) -> (i32, i32, i32) {
    %c0_i32 = arith.constant 0 : i32
    %c0_i32_0 = arith.constant 0 : i32
    %c0_i32_1 = arith.constant 0 : i32
    return %arg0, %c0_i32, %c0_i32_0 : i32, i32, i32
  }
  func.func @transform_1(%arg0: i32) -> (i32, i32, i32, i32) {
    %c0_i32 = arith.constant 0 : i32
    %c0_i32_0 = arith.constant 0 : i32
    %c0_i32_1 = arith.constant 0 : i32
    %c0_i32_2 = arith.constant 0 : i32
    %c0_i32_3 = arith.constant 0 : i32
    return %c0_i32, %c0_i32_0, %c0_i32_1, %c0_i32_2 : i32, i32, i32, i32
  }
  func.func @transform_2(%arg0: i32) -> (i32, i32) {
    %c0_i32 = arith.constant 0 : i32
    %c0_i32_0 = arith.constant 0 : i32
    %c0_i32_1 = arith.constant 0 : i32
    return %c0_i32, %c0_i32_0 : i32, i32
  }
  func.func @transform_3(%arg0: i32) -> (i32, i32, i32) {
    %c0_i32 = arith.constant 0 : i32
    %c0_i32_0 = arith.constant 0 : i32
    %c0_i32_1 = arith.constant 0 : i32
    return %arg0, %c0_i32, %c0_i32_0 : i32, i32, i32
  }
}

</mosaic_0001>

<bundles_post_ra>
// kernel: cnn_vae_forward.8
= control target key start
LH: loop header
LB: loop body
LE: loop exit
PB: predicated region body
PF: predicated region fallthrough
CT: control target
= control target key end

     0   :  { %s2020_s12 = smov 0   ;;  %s2646_s0 = inlined_call_operand.vmem [shape: f32[2,297,12], index: 0, kind: input, shape index: {}]   ;;  %s2647_s1 = inlined_call_operand.vmem [shape: bf16[4,12,8], index: 1, kind: input, shape index: {}]   ;;  %s2648_s2 = inlined_call_operand.vmem [shape: f32[1,8], index: 2, kind: input, shape index: {}]   ;;  %s2649_s3 = inlined_call_operand.vmem [shape: f32[2,272,8], index: 3, kind: output, shape index: {}]  }
   0x1 LB: > { %s1534_s13 = sadd.s32 4294967295, %s1996_s12   ;;  %p1538_p0 = scmp.ge.s32.totalorder %s1996_s12, 1  ;;  %s1996_s12 = sphi %s2020_s12, %s13_s12  }
   0x2   : > { %p137_p1 = scmp.lt.s32.totalorder %s1996_s12, 3 }
   0x4   : > { %p138_p2 = pnand %p1538_p0, %p137_p1 }
   0x5   : > { %vm336_vm0 = vcmask (!%p138_p2), 1045504   ;;  %v1998_v0 = vmov (!%p138_p2), 0.0   ;;  %v1986_v1 = vld [vmem:[%s2647_s1 + $0x8] sm:$0x3f] (!%p138_p2)   ;;  %v1987_v2 = vld [vmem:[%s2647_s1] sm:$0x3f] (!%p138_p2)  }
   0x6   : > { %141 = sbr.rel (%p138_p2) target bundleno = 507 (0x1fb), region = 32  ;;  %1694 = vmatprep.subr.bf16.mxu0 (!%p138_p2), %v1998_v0  ;;  %1764 = vmatprep.subr.bf16.mxu1 (!%p138_p2), %v1998_v0  ;;  %p161_p3 = scmp.lt.s32.totalorder (!%p138_p2), %s1534_s13, 1  ;;  %v338_v3 = vsel (!%p138_p2), %vm336_vm0, %v1986_v1, 0  ;;  %vm1999_vm1 = vmmov (!%p138_p2), 0   ;;  %v566_v4 = vsel (!%p138_p2), %vm336_vm0, %v1987_v2, 0  ;;  %vm284_vm2 = vcmask (!%p138_p2), 97280  }
   0x7   : > { %1696 = vmatprep.mubr.msk.bf16.mxu0 (!%p138_p2), %vm1999_vm1, %v1998_v0  ;;  %1766 = vmatprep.mubr.msk.bf16.mxu1 (!%p138_p2), %vm1999_vm1, %v1998_v0  ;;  %v1988_v5 = vld [vmem:[%s2647_s1 + $0x10] sm:$0x3f] (!%p138_p2)   ;;  %v1989_v6 = vld [vmem:[%s2647_s1 + $0x18] sm:$0x3f] (!%p138_p2)   ;;  %vm1444_vm3 = vcmask (!%p138_p2), 64512  }
   0x8   : > { %1695 = vmatpush3.bf16.msra.mxu0 (!%p138_p2), %v338_v3  ;;  %1765 = vmatpush3.bf16.msra.mxu1 (!%p138_p2), %v566_v4  ;;  %v848_v12 = vsel (!%p138_p2), %vm336_vm0, %v1988_v5, 0  ;;  %v1164_v14 = vsel (!%p138_p2), %vm336_vm0, %v1989_v6, 0 }
   0x9   : > { %1834 = vmatprep.subr.bf16.mxu0 (!%p138_p2), %v1998_v0  ;;  %1904 = vmatprep.subr.bf16.mxu1 (!%p138_p2), %v1998_v0 }
   0xd   : > { %s2651_s13 = smov (!%p161_p3, %s1534_s13), 1 }
   0xe   : > { %s1974_s18 = smul.u32 304, %s2651_s13 }
   0xf   : > { %s1975_s26 = smul.u32 272, %s2651_s13 }
  0x10   : > { %s2056_s25 = scalar_lea.vmem %s2646_s0, %s1974_s18 }
  0x11   : > { %v225_v7 = vld [vmem:[%s2056_s25 + $0x1] sm:$0xff]  ;;  %v226_v8 = vld [vmem:[%s2056_s25 + $0x9] sm:$0xff]  ;;  %v227_v15 = vld [vmem:[%s2056_s25 + $0x11] sm:$0xff]  ;;  %s2508_s4 = scalar_lea.vmem %s2649_s3, %s1975_s26 }
  0x12   : > { %v172_v9 = vld [vmem:[%s2056_s25] sm:$0xff]  ;;  %v259_v10 = vpack.c.bf16 %v226_v8, %v225_v7  ;;  %v173_v11 = vld [vmem:[%s2056_s25 + $0x8] sm:$0xff]  ;;  %v174_v17 = vld [vmem:[%s2056_s25 + $0x10] sm:$0xff] }
  0x13   : > { %v206_v13 = vpack.c.bf16 %v173_v11, %v172_v9  ;;  %v228_v16 = vld [vmem:[%s2056_s25 + $0x19] sm:$0xff]  ;;  %v229_v21 = vld [vmem:[%s2056_s25 + $0x21] sm:$0xff]  ;;  %v230_v22 = vld [vmem:[%s2056_s25 + $0x29] sm:$0xff] }
  0x14   : > { %1697 = vmatmul.mubr.msk.bf16.vlgmr.msra.gmra.mrb[0].mxu0 %vm284_vm2, %v259_v10  ;;  %v175_v18 = vld [vmem:[%s2056_s25 + $0x18] sm:$0xff]  ;;  %v2074_v19 = vpack.c.bf16 %v228_v16, %v227_v15  ;;  %v176_v23 = vld [vmem:[%s2056_s25 + $0x20] sm:$0xff]  ;;  %v177_v24 = vld [vmem:[%s2056_s25 + $0x28] sm:$0xff]  ;;  %v2087_v25 = vpack.c.bf16 %v230_v22, %v229_v21 }
  0x15   : > { %1767 = vmatmul.mubr.msk.bf16.vlgmr.msra.gmra.mrb[0].mxu1 %vm284_vm2, %v206_v13  ;;  %1835 = vmatpush3.bf16.msra.mxu0 %v848_v12  ;;  %v207_v20 = vpack.c.bf16 %v175_v18, %v174_v17  ;;  %v208_v26 = vpack.c.bf16 %v177_v24, %v176_v23  ;;  %v231_v27 = vld [vmem:[%s2056_s25 + $0x31] sm:$0xff]  ;;  %v232_v28 = vld [vmem:[%s2056_s25 + $0x39] sm:$0xff]  ;;  %v233_v33 = vld [vmem:[%s2056_s25 + $0x41] sm:$0xff] }
  0x16   : > { %1905 = vmatpush3.bf16.msra.mxu1 %v1164_v14  ;;  %1700 = vmatprep.mubr.msk.bf16.mxu0 %vm1999_vm1, %v1998_v0  ;;  %v178_v29 = vld [vmem:[%s2056_s25 + $0x30] sm:$0xff]  ;;  %v179_v30 = vld [vmem:[%s2056_s25 + $0x38] sm:$0xff]  ;;  %v2100_v31 = vpack.c.bf16 %v232_v28, %v231_v27  ;;  %v180_v35 = vld [vmem:[%s2056_s25 + $0x40] sm:$0xff] }
  0x17   : > { %1770 = vmatprep.mubr.msk.bf16.mxu1 %vm1999_vm1, %v1998_v0  ;;  %v209_v32 = vpack.c.bf16 %v179_v30, %v178_v29  ;;  %v234_v34 = vld [vmem:[%s2056_s25 + $0x49] sm:$0xff]  ;;  %v235_v39 = vld [vmem:[%s2056_s25 + $0x51] sm:$0xff]  ;;  %v236_v40 = vld [vmem:[%s2056_s25 + $0x59] sm:$0xff] }
  0x18   : > { %v181_v36 = vld [vmem:[%s2056_s25 + $0x48] sm:$0xff]  ;;  %v2113_v37 = vpack.c.bf16 %v234_v34, %v233_v33  ;;  %v182_v41 = vld [vmem:[%s2056_s25 + $0x50] sm:$0xff]  ;;  %v183_v42 = vld [vmem:[%s2056_s25 + $0x58] sm:$0xff]  ;;  %v2126_v43 = vpack.c.bf16 %v236_v40, %v235_v39 }
  0x19   : > { %v210_v38 = vpack.c.bf16 %v181_v36, %v180_v35  ;;  %v211_v44 = vpack.c.bf16 %v183_v42, %v182_v41  ;;  %v237_v45 = vld [vmem:[%s2056_s25 + $0x61] sm:$0xff]  ;;  %v238_v46 = vld [vmem:[%s2056_s25 + $0x69] sm:$0xff]  ;;  %v239_v51 = vld [vmem:[%s2056_s25 + $0x71] sm:$0xff] }
  0x1a   : > { %v184_v47 = vld [vmem:[%s2056_s25 + $0x60] sm:$0xff]  ;;  %v185_v48 = vld [vmem:[%s2056_s25 + $0x68] sm:$0xff]  ;;  %v2139_v49 = vpack.c.bf16 %v238_v46, %v237_v45  ;;  %v186_v53 = vld [vmem:[%s2056_s25 + $0x70] sm:$0xff] }
  0x1b   : > { %v212_v50 = vpack.c.bf16 %v185_v48, %v184_v47  ;;  %v240_v52 = vld [vmem:[%s2056_s25 + $0x79] sm:$0xff]  ;;  %v241_v57 = vld [vmem:[%s2056_s25 + $0x81] sm:$0xff]  ;;  %v242_v58 = vld [vmem:[%s2056_s25 + $0x89] sm:$0xff] }
  0x1c   : > { %1701 = vmatmul.mubr.msk.bf16.gmra.mrb[4].mxu0 %vm284_vm2, %v2074_v19  ;;  %v187_v54 = vld [vmem:[%s2056_s25 + $0x78] sm:$0xff]  ;;  %v2152_v55 = vpack.c.bf16 %v240_v52, %v239_v51  ;;  %v188_v59 = vld [vmem:[%s2056_s25 + $0x80] sm:$0xff]  ;;  %v189_v60 = vld [vmem:[%s2056_s25 + $0x88] sm:$0xff]  ;;  %v2165_v61 = vpack.c.bf16 %v242_v58, %v241_v57 }
  0x1d   : > { %1771 = vmatmul.mubr.msk.bf16.gmra.mrb[4].mxu1 %vm284_vm2, %v207_v20  ;;  %1704 = vmatprep.mubr.msk.bf16.mxu0 %vm1999_vm1, %v1998_v0  ;;  %v213_v56 = vpack.c.bf16 %v187_v54, %v186_v53  ;;  %v214_v62 = vpack.c.bf16 %v189_v60, %v188_v59  ;;  %v243_v63 = vld [vmem:[%s2056_s25 + $0x91] sm:$0xff]  ;;  %v244_v1 = vld [vmem:[%s2056_s25 + $0x99] sm:$0xff]  ;;  %v245_v6 = vld [vmem:[%s2056_s25 + $0xa1] sm:$0xff] }
  0x1e   : > { %1774 = vmatprep.mubr.msk.bf16.mxu1 %vm1999_vm1, %v1998_v0  ;;  %v190_v2 = vld [vmem:[%s2056_s25 + $0x90] sm:$0xff]  ;;  %v191_v3 = vld [vmem:[%s2056_s25 + $0x98] sm:$0xff]  ;;  %v2178_v4 = vpack.c.bf16 %v244_v1, %v243_v63  ;;  %v192_v8 = vld [vmem:[%s2056_s25 + $0xa0] sm:$0xff] }
  0x1f   : > { %v215_v5 = vpack.c.bf16 %v191_v3, %v190_v2  ;;  %v246_v7 = vld [vmem:[%s2056_s25 + $0xa9] sm:$0xff]  ;;  %v247_v12 = vld [vmem:[%s2056_s25 + $0xb1] sm:$0xff]  ;;  %v248_v13 = vld [vmem:[%s2056_s25 + $0xb9] sm:$0xff] }
  0x20   : > { %v193_v9 = vld [vmem:[%s2056_s25 + $0xa8] sm:$0xff]  ;;  %v2191_v10 = vpack.c.bf16 %v246_v7, %v245_v6  ;;  %v194_v14 = vld [vmem:[%s2056_s25 + $0xb0] sm:$0xff]  ;;  %v195_v15 = vld [vmem:[%s2056_s25 + $0xb8] sm:$0xff]  ;;  %v2204_v16 = vpack.c.bf16 %v248_v13, %v247_v12 }
  0x21   : > { %v216_v11 = vpack.c.bf16 %v193_v9, %v192_v8  ;;  %v217_v17 = vpack.c.bf16 %v195_v15, %v194_v14  ;;  %v249_v18 = vld [vmem:[%s2056_s25 + $0xc1] sm:$0xff]  ;;  %v250_v20 = vld [vmem:[%s2056_s25 + $0xc9] sm:$0xff]  ;;  %v252_v27 = vld [vmem:[%s2056_s25 + $0xd9] sm:$0xff] }
  0x22   : > { %v196_v21 = vld [vmem:[%s2056_s25 + $0xc0] sm:$0xff]  ;;  %v197_v22 = vld [vmem:[%s2056_s25 + $0xc8] sm:$0xff]  ;;  %v2217_v23 = vpack.c.bf16 %v250_v20, %v249_v18  ;;  %v198_v28 = vld [vmem:[%s2056_s25 + $0xd0] sm:$0xff] }
  0x23   : > { %v218_v24 = vpack.c.bf16 %v197_v22, %v196_v21  ;;  %v199_v29 = vld [vmem:[%s2056_s25 + $0xd8] sm:$0xff]  ;;  %v253_v33 = vld [vmem:[%s2056_s25 + $0xe1] sm:$0xff]  ;;  %v254_v34 = vld [vmem:[%s2056_s25 + $0xe9] sm:$0xff] }
  0x24   : > { %1705 = vmatmul.mubr.msk.bf16.gmra.mrb[8].mxu0 %vm284_vm2, %v2087_v25  ;;  %v200_v35 = vld [vmem:[%s2056_s25 + $0xe0] sm:$0xff]  ;;  %v201_v36 = vld [vmem:[%s2056_s25 + $0xe8] sm:$0xff]  ;;  %v255_v40 = vld [vmem:[%s2056_s25 + $0xf1] sm:$0xff] }
  0x25   : > { %1775 = vmatmul.mubr.msk.bf16.gmra.mrb[8].mxu1 %vm284_vm2, %v208_v26  ;;  %1708 = vmatprep.mubr.msk.bf16.mxu0 %vm1999_vm1, %v1998_v0  ;;  %v251_v26 = vld [vmem:[%s2056_s25 + $0xd1] sm:$0xff]  ;;  %v220_v39 = vpack.c.bf16 %v201_v36, %v200_v35  ;;  %v256_v41 = vld [vmem:[%s2056_s25 + $0xf9] sm:$0xff]  ;;  %v257_v47 = vld [vmem:[%s2056_s25 + $0x101] sm:$0xff] }
  0x26   : > { %1778 = vmatprep.mubr.msk.bf16.mxu1 %vm1999_vm1, %v1998_v0  ;;  %v2230_v30 = vpack.c.bf16 %v252_v27, %v251_v26  ;;  %v202_v42 = vld [vmem:[%s2056_s25 + $0xf0] sm:$0xff]  ;;  %v2256_v45 = vpack.c.bf16 %v256_v41, %v255_v40  ;;  %v205_v51 = vld [vmem:[%s2056_s25 + $0x108] sm:$0xff]  ;;  %v1062_v3 = vld [vmem:[%s2056_s25 + $0x5a] sm:$0xff] }
  0x27   : > { %v258_v48 = vld [vmem:[%s2056_s25 + $0x109] sm:$0xff]  ;;  %v1053_v54 = vld [vmem:[%s2056_s25 + $0x12] sm:$0xff]  ;;  %v1066_v8 = vld [vmem:[%s2056_s25 + $0x7a] sm:$0xff] }
  0x28   : > { %v2269_v52 = vpack.c.bf16 %v258_v48, %v257_v47  ;;  %v1055_v58 = vld [vmem:[%s2056_s25 + $0x22] sm:$0xff]  ;;  %v1056_v59 = vld [vmem:[%s2056_s25 + $0x2a] sm:$0xff]  ;;  %v1070_v13 = vld [vmem:[%s2056_s25 + $0x9a] sm:$0xff] }
  0x29   : > { %v1088_v60 = vpack.c.bf16 %v1056_v59, %v1055_v58  ;;  %v1060_v1 = vld [vmem:[%s2056_s25 + $0x4a] sm:$0xff]  ;;  %v1074_v18 = vld [vmem:[%s2056_s25 + $0xba] sm:$0xff] }
  0x2a   : > { %v1064_v6 = vld [vmem:[%s2056_s25 + $0x6a] sm:$0xff] }
  0x2b   : > { %v1072_v15 = vld [vmem:[%s2056_s25 + $0xaa] sm:$0xff] }
  0x2c   : > { %1709 = vmatmul.mubr.msk.bf16.gmra.mrb[12].mxu0 %vm284_vm2, %v2100_v31  ;;  %v1076_v35 = vld [vmem:[%s2056_s25 + $0xca] sm:$0xff] }
  0x2d   : > { %1779 = vmatmul.mubr.msk.bf16.gmra.mrb[12].mxu1 %vm284_vm2, %v209_v32  ;;  %1712 = vmatprep.mubr.msk.bf16.mxu0 %vm1999_vm1, %v1998_v0  ;;  %v219_v32 = vpack.c.bf16 %v199_v29, %v198_v28 }
  0x2e   : > { %1782 = vmatprep.mubr.msk.bf16.mxu1 %vm1999_vm1, %v1998_v0 }
  0x34   : > { %1713 = vmatmul.mubr.msk.bf16.gmra.mrb[16].mxu0 %vm284_vm2, %v2113_v37 }
  0x35   : > { %1783 = vmatmul.mubr.msk.bf16.gmra.mrb[16].mxu1 %vm284_vm2, %v210_v38  ;;  %1716 = vmatprep.mubr.msk.bf16.mxu0 %vm1999_vm1, %v1998_v0  ;;  %v2243_v38 = vpack.c.bf16 %v254_v34, %v253_v33  ;;  %v1075_v34 = vld [vmem:[%s2056_s25 + $0xc2] sm:$0xff] }
  0x36   : > { %1786 = vmatprep.mubr.msk.bf16.mxu1 %vm1999_vm1, %v1998_v0 }
  0x3c   : > { %1717 = vmatmul.mubr.msk.bf16.gmra.mrb[20].mxu0 %vm284_vm2, %v2126_v43 }
  0x3d   : > { %1787 = vmatmul.mubr.msk.bf16.gmra.mrb[20].mxu1 %vm284_vm2, %v211_v44  ;;  %1720 = vmatprep.mubr.msk.bf16.mxu0 %vm1999_vm1, %v1998_v0  ;;  %v203_v44 = vld [vmem:[%s2056_s25 + $0xf8] sm:$0xff] }
  0x3e   : > { %1790 = vmatprep.mubr.msk.bf16.mxu1 %vm1999_vm1, %v1998_v0  ;;  %v221_v46 = vpack.c.bf16 %v203_v44, %v202_v42 }
  0x44   : > { %1721 = vmatmul.mubr.msk.bf16.gmra.mrb[24].mxu0 %vm284_vm2, %v2139_v49 }
  0x45   : > { %1791 = vmatmul.mubr.msk.bf16.gmra.mrb[24].mxu1 %vm284_vm2, %v212_v50  ;;  %1724 = vmatprep.mubr.msk.bf16.mxu0 %vm1999_vm1, %v1998_v0  ;;  %v204_v50 = vld [vmem:[%s2056_s25 + $0x100] sm:$0xff] }
  0x46   : > { %1794 = vmatprep.mubr.msk.bf16.mxu1 %vm1999_vm1, %v1998_v0  ;;  %v222_v53 = vpack.c.bf16 %v205_v51, %v204_v50  ;;  %v1077_v51 = vld [vmem:[%s2056_s25 + $0xd2] sm:$0xff] }
  0x4c   : > { %1725 = vmatmul.mubr.msk.bf16.gmra.mrb[28].mxu0 %vm284_vm2, %v2152_v55 }
  0x4d   : > { %1795 = vmatmul.mubr.msk.bf16.gmra.mrb[28].mxu1 %vm284_vm2, %v213_v56  ;;  %1728 = vmatprep.mubr.msk.bf16.mxu0 %vm1999_vm1, %v1998_v0  ;;  %v1054_v56 = vld [vmem:[%s2056_s25 + $0x1a] sm:$0xff] }
  0x4e   : > { %1798 = vmatprep.mubr.msk.bf16.mxu1 %vm1999_vm1, %v1998_v0  ;;  %v1087_v57 = vpack.c.bf16 %v1054_v56, %v1053_v54 }
  0x54   : > { %1729 = vmatmul.mubr.msk.bf16.gmra.mrb[32].mxu0 %vm284_vm2, %v2165_v61 }
  0x55   : > { %1799 = vmatmul.mubr.msk.bf16.gmra.mrb[32].mxu1 %vm284_vm2, %v214_v62  ;;  %1732 = vmatprep.mubr.msk.bf16.mxu0 %vm1999_vm1, %v1998_v0  ;;  %v1058_v62 = vld [vmem:[%s2056_s25 + $0x3a] sm:$0xff] }
  0x56   : > { %1802 = vmatprep.mubr.msk.bf16.mxu1 %vm1999_vm1, %v1998_v0 }
  0x5c   : > { %1733 = vmatmul.mubr.msk.bf16.gmra.mrb[36].mxu0 %vm284_vm2, %v2178_v4 }
  0x5d   : > { %1803 = vmatmul.mubr.msk.bf16.gmra.mrb[36].mxu1 %vm284_vm2, %v215_v5  ;;  %1736 = vmatprep.mubr.msk.bf16.mxu0 %vm1999_vm1, %v1998_v0 }
  0x5e   : > { %1806 = vmatprep.mubr.msk.bf16.mxu1 %vm1999_vm1, %v1998_v0 }
  0x64   : > { %1737 = vmatmul.mubr.msk.bf16.gmra.mrb[40].mxu0 %vm284_vm2, %v2191_v10 }
  0x65   : > { %1807 = vmatmul.mubr.msk.bf16.gmra.mrb[40].mxu1 %vm284_vm2, %v216_v11  ;;  %1740 = vmatprep.mubr.msk.bf16.mxu0 %vm1999_vm1, %v1998_v0  ;;  %v1068_v11 = vld [vmem:[%s2056_s25 + $0x8a] sm:$0xff] }
  0x66   : > { %1810 = vmatprep.mubr.msk.bf16.mxu1 %vm1999_vm1, %v1998_v0 }
  0x6c   : > { %1741 = vmatmul.mubr.msk.bf16.gmra.mrb[44].mxu0 %vm284_vm2, %v2204_v16 }
  0x6d   : > { %1811 = vmatmul.mubr.msk.bf16.gmra.mrb[44].mxu1 %vm284_vm2, %v217_v17  ;;  %1744 = vmatprep.mubr.msk.bf16.mxu0 %vm1999_vm1, %v1998_v0 }
  0x6e   : > { %1814 = vmatprep.mubr.msk.bf16.mxu1 %vm1999_vm1, %v1998_v0 }
  0x74   : > { %1745 = vmatmul.mubr.msk.bf16.gmra.mrb[48].mxu0 %vm284_vm2, %v2217_v23 }
  0x75   : > { %1815 = vmatmul.mubr.msk.bf16.gmra.mrb[48].mxu1 %vm284_vm2, %v218_v24  ;;  %1748 = vmatprep.mubr.msk.bf16.mxu0 %vm1999_vm1, %v1998_v0 }
  0x76   : > { %1818 = vmatprep.mubr.msk.bf16.mxu1 %vm1999_vm1, %v1998_v0 }
  0x7c   : > { %1749 = vmatmul.mubr.msk.bf16.gmra.mrb[52].mxu0 %vm284_vm2, %v2230_v30 }
  0x7d   : > { %1819 = vmatmul.mubr.msk.bf16.gmra.mrb[52].mxu1 %vm284_vm2, %v219_v32  ;;  %1752 = vmatprep.mubr.msk.bf16.mxu0 %vm1999_vm1, %v1998_v0 }
  0x7e   : > { %1822 = vmatprep.mubr.msk.bf16.mxu1 %vm1999_vm1, %v1998_v0 }
  0x84   : > { %1753 = vmatmul.mubr.msk.bf16.gmra.mrb[56].mxu0 %vm284_vm2, %v2243_v38 }
  0x85   : > { %1823 = vmatmul.mubr.msk.bf16.gmra.mrb[56].mxu1 %vm284_vm2, %v220_v39  ;;  %1756 = vmatprep.mubr.msk.bf16.mxu0 %vm1999_vm1, %v1998_v0 }
  0x86   : > { %1826 = vmatprep.mubr.msk.bf16.mxu1 %vm1999_vm1, %v1998_v0 }
  0x8c   : > { %1757 = vmatmul.mubr.msk.bf16.gmra.mrb[60].mxu0 %vm284_vm2, %v2256_v45 }
  0x8d   : > { %1827 = vmatmul.mubr.msk.bf16.gmra.mrb[60].mxu1 %vm284_vm2, %v221_v46  ;;  %1760 = vmatprep.mubr.msk.bf16.mxu0 %vm1999_vm1, %v1998_v0 }
  0x8e   : > { %1830 = vmatprep.mubr.msk.bf16.mxu1 %vm1999_vm1, %v1998_v0 }
  0x94   : > { %1761 = vmatmul.mubr.msk.bf16.gmra.mrb[64].mxu0 %vm284_vm2, %v2269_v52 }
  0x95   : > { %1831 = vmatmul.mubr.msk.bf16.gmra.mrb[64].mxu1 %vm284_vm2, %v222_v53  ;;  %1836 = vmatprep.mubr.msk.bf16.mxu0 %vm1999_vm1, %v1998_v0  ;;  %v1078_v53 = vld [vmem:[%s2056_s25 + $0xda] sm:$0xff] }
  0x96   : > { %1906 = vmatprep.mubr.msk.bf16.mxu1 %vm1999_vm1, %v1998_v0 }
  0x9c   : > { %1837 = vmatmul.mubr.msk.bf16.vlgmr.msra.gmra.mrb[68].mxu0 %vm284_vm2, %v2074_v19  ;;  %v1057_v19 = vld [vmem:[%s2056_s25 + $0x32] sm:$0xff] }
  0x9d   : > { %1907 = vmatmul.mubr.msk.bf16.vlgmr.msra.gmra.mrb[68].mxu1 %vm284_vm2, %v1087_v57  ;;  %1840 = vmatprep.mubr.msk.bf16.mxu0 %vm1999_vm1, %v1998_v0  ;;  %v1089_v63 = vpack.c.bf16 %v1058_v62, %v1057_v19 }
  0x9e   : > { %1910 = vmatprep.mubr.msk.bf16.mxu1 %vm1999_vm1, %v1998_v0 }
  0xa4   : > { %1841 = vmatmul.mubr.msk.bf16.gmra.mrb[72].mxu0 %vm284_vm2, %v2087_v25  ;;  %v1059_v25 = vld [vmem:[%s2056_s25 + $0x42] sm:$0xff] }
  0xa5   : > { %1911 = vmatmul.mubr.msk.bf16.gmra.mrb[72].mxu1 %vm284_vm2, %v1088_v60  ;;  %1844 = vmatprep.mubr.msk.bf16.mxu0 %vm1999_vm1, %v1998_v0  ;;  %v1090_v2 = vpack.c.bf16 %v1060_v1, %v1059_v25  ;;  %v1079_v1 = vld [vmem:[%s2056_s25 + $0xe2] sm:$0xff] }
  0xa6   : > { %1914 = vmatprep.mubr.msk.bf16.mxu1 %vm1999_vm1, %v1998_v0 }
  0xac   : > { %1845 = vmatmul.mubr.msk.bf16.gmra.mrb[76].mxu0 %vm284_vm2, %v2100_v31  ;;  %v1061_v31 = vld [vmem:[%s2056_s25 + $0x52] sm:$0xff] }
  0xad   : > { %1915 = vmatmul.mubr.msk.bf16.gmra.mrb[76].mxu1 %vm284_vm2, %v1089_v63  ;;  %1848 = vmatprep.mubr.msk.bf16.mxu0 %vm1999_vm1, %v1998_v0  ;;  %v1091_v5 = vpack.c.bf16 %v1062_v3, %v1061_v31 }
  0xae   : > { %1918 = vmatprep.mubr.msk.bf16.mxu1 %vm1999_vm1, %v1998_v0 }
  0xb4   : > { %1849 = vmatmul.mubr.msk.bf16.gmra.mrb[80].mxu0 %vm284_vm2, %v2113_v37  ;;  %v1063_v37 = vld [vmem:[%s2056_s25 + $0x62] sm:$0xff] }
  0xb5   : > { %1919 = vmatmul.mubr.msk.bf16.gmra.mrb[80].mxu1 %vm284_vm2, %v1090_v2  ;;  %1852 = vmatprep.mubr.msk.bf16.mxu0 %vm1999_vm1, %v1998_v0  ;;  %v1092_v7 = vpack.c.bf16 %v1064_v6, %v1063_v37  ;;  %v1080_v2 = vld [vmem:[%s2056_s25 + $0xea] sm:$0xff] }
  0xb6   : > { %1922 = vmatprep.mubr.msk.bf16.mxu1 %vm1999_vm1, %v1998_v0 }
  0xbc   : > { %1853 = vmatmul.mubr.msk.bf16.gmra.mrb[84].mxu0 %vm284_vm2, %v2126_v43  ;;  %v1065_v43 = vld [vmem:[%s2056_s25 + $0x72] sm:$0xff] }
  0xbd   : > { %1923 = vmatmul.mubr.msk.bf16.gmra.mrb[84].mxu1 %vm284_vm2, %v1091_v5  ;;  %1856 = vmatprep.mubr.msk.bf16.mxu0 %vm1999_vm1, %v1998_v0  ;;  %v1093_v9 = vpack.c.bf16 %v1066_v8, %v1065_v43 }
  0xbe   : > { %1926 = vmatprep.mubr.msk.bf16.mxu1 %vm1999_vm1, %v1998_v0 }
  0xc4   : > { %1857 = vmatmul.mubr.msk.bf16.gmra.mrb[88].mxu0 %vm284_vm2, %v2139_v49  ;;  %v1067_v49 = vld [vmem:[%s2056_s25 + $0x82] sm:$0xff] }
  0xc5   : > { %1927 = vmatmul.mubr.msk.bf16.gmra.mrb[88].mxu1 %vm284_vm2, %v1092_v7  ;;  %1860 = vmatprep.mubr.msk.bf16.mxu0 %vm1999_vm1, %v1998_v0  ;;  %v1094_v12 = vpack.c.bf16 %v1068_v11, %v1067_v49  ;;  %v1081_v11 = vld [vmem:[%s2056_s25 + $0xf2] sm:$0xff] }
  0xc6   : > { %1930 = vmatprep.mubr.msk.bf16.mxu1 %vm1999_vm1, %v1998_v0 }
  0xcc   : > { %1861 = vmatmul.mubr.msk.bf16.gmra.mrb[92].mxu0 %vm284_vm2, %v2152_v55  ;;  %v1069_v55 = vld [vmem:[%s2056_s25 + $0x92] sm:$0xff] }
  0xcd   : > { %1931 = vmatmul.mubr.msk.bf16.gmra.mrb[92].mxu1 %vm284_vm2, %v1093_v9  ;;  %1864 = vmatprep.mubr.msk.bf16.mxu0 %vm1999_vm1, %v1998_v0  ;;  %v1095_v14 = vpack.c.bf16 %v1070_v13, %v1069_v55 }
  0xce   : > { %1934 = vmatprep.mubr.msk.bf16.mxu1 %vm1999_vm1, %v1998_v0 }
  0xd4   : > { %1865 = vmatmul.mubr.msk.bf16.gmra.mrb[96].mxu0 %vm284_vm2, %v2165_v61  ;;  %v1071_v61 = vld [vmem:[%s2056_s25 + $0xa2] sm:$0xff] }
  0xd5   : > { %1935 = vmatmul.mubr.msk.bf16.gmra.mrb[96].mxu1 %vm284_vm2, %v1094_v12  ;;  %1868 = vmatprep.mubr.msk.bf16.mxu0 %vm1999_vm1, %v1998_v0  ;;  %v1096_v17 = vpack.c.bf16 %v1072_v15, %v1071_v61  ;;  %v1082_v12 = vld [vmem:[%s2056_s25 + $0xfa] sm:$0xff] }
  0xd6   : > { %1938 = vmatprep.mubr.msk.bf16.mxu1 %vm1999_vm1, %v1998_v0 }
  0xdc   : > { %1869 = vmatmul.mubr.msk.bf16.gmra.mrb[100].mxu0 %vm284_vm2, %v2178_v4  ;;  %v1073_v4 = vld [vmem:[%s2056_s25 + $0xb2] sm:$0xff] }
  0xdd   : > { %1939 = vmatmul.mubr.msk.bf16.gmra.mrb[100].mxu1 %vm284_vm2, %v1095_v14  ;;  %1872 = vmatprep.mubr.msk.bf16.mxu0 %vm1999_vm1, %v1998_v0 }
  0xde   : > { %1942 = vmatprep.mubr.msk.bf16.mxu1 %vm1999_vm1, %v1998_v0 }
  0xe4   : > { %1873 = vmatmul.mubr.msk.bf16.gmra.mrb[104].mxu0 %vm284_vm2, %v2191_v10  ;;  %v1097_v10 = vpack.c.bf16 %v1074_v18, %v1073_v4 }
  0xe5   : > { %1943 = vmatmul.mubr.msk.bf16.gmra.mrb[104].mxu1 %vm284_vm2, %v1096_v17  ;;  %1876 = vmatprep.mubr.msk.bf16.mxu0 %vm1999_vm1, %v1998_v0 }
  0xe6   : > { %1946 = vmatprep.mubr.msk.bf16.mxu1 %vm1999_vm1, %v1998_v0 }
  0xe7   : > { %v374_v20 = vpop.f32.mrb[0].mxu0 }
  0xe8   : > { %v602_v21 = vpop.f32.mrb[0].mxu1  ;;  %v1698_v22 = vpop.f32.mrb[1].mxu0 }
  0xe9   : > { %v2370_v24 = vadd.f32 %v602_v21, %v374_v20  ;;  %v1768_v26 = vpop.f32.mrb[1].mxu1  ;;  %v377_v27 = vpop.f32.mrb[2].mxu0  ;;  %v1083_v22 = vld [vmem:[%s2056_s25 + $0x102] sm:$0xff] }
  0xea   : > { %v605_v28 = vpop.f32.mrb[2].mxu1  ;;  %v1699_v29 = vpop.f32.mrb[3].mxu0  ;;  %v1084_v26 = vld [vmem:[%s2056_s25 + $0x10a] sm:$0xff] }
  0xeb   : > { %v2372_v32 = vadd.f32 %v605_v28, %v377_v27  ;;  %v1769_v33 = vpop.f32.mrb[3].mxu1 }
  0xec   : > { %1877 = vmatmul.mubr.msk.bf16.gmra.mrb[108].mxu0 %vm284_vm2, %v2204_v16  ;;  %v1098_v16 = vpack.c.bf16 %v1076_v35, %v1075_v34  ;;  %v1102_v34 = vpack.c.bf16 %v1084_v26, %v1083_v22 }
  0xed   : > { %1947 = vmatmul.mubr.msk.bf16.gmra.mrb[108].mxu1 %vm284_vm2, %v1097_v10  ;;  %1880 = vmatprep.mubr.msk.bf16.mxu0 %vm1999_vm1, %v1998_v0 }
  0xee   : > { %1950 = vmatprep.mubr.msk.bf16.mxu1 %vm1999_vm1, %v1998_v0 }
  0xef   : > { %v382_v36 = vpop.f32.mrb[4].mxu0 }
  0xf0   : > { %v610_v39 = vpop.f32.mrb[4].mxu1  ;;  %v1702_v40 = vpop.f32.mrb[5].mxu0 }
  0xf1   : > { %v2383_v41 = vadd.f32 %v610_v39, %v382_v36  ;;  %v1772_v42 = vpop.f32.mrb[5].mxu1  ;;  %v385_v44 = vpop.f32.mrb[6].mxu0 }
  0xf2   : > { %v613_v46 = vpop.f32.mrb[6].mxu1  ;;  %v1703_v47 = vpop.f32.mrb[7].mxu0  ;;  %v769_v42 = vld [vmem:[%s2056_s25 + $0x111] sm:$0xff] }
  0xf3   : > { %v2385_v48 = vadd.f32 %v613_v46, %v385_v44  ;;  %v1773_v50 = vpop.f32.mrb[7].mxu1  ;;  %v770_v44 = vld [vmem:[%s2056_s25 + $0x119] sm:$0xff] }
  0xf4   : > { %1881 = vmatmul.mubr.msk.bf16.gmra.mrb[112].mxu0 %vm284_vm2, %v2217_v23  ;;  %v1099_v23 = vpack.c.bf16 %v1078_v53, %v1077_v51  ;;  %v1086_v46 = vld [vmem:[%s2056_s25 + $0x11a] sm:$0xff]  ;;  %v787_v53 = vpack.c.bf16 %v770_v44, %v769_v42 }
  0xf5   : > { %1951 = vmatmul.mubr.msk.bf16.gmra.mrb[112].mxu1 %vm284_vm2, %v1098_v16  ;;  %1884 = vmatprep.mubr.msk.bf16.mxu0 %vm1999_vm1, %v1998_v0  ;;  %v1085_v16 = vld [vmem:[%s2056_s25 + $0x112] sm:$0xff] }
  0xf6   : > { %1954 = vmatprep.mubr.msk.bf16.mxu1 %vm1999_vm1, %v1998_v0 }
  0xf7   : > { %v390_v54 = vpop.f32.mrb[8].mxu0 }
  0xf8   : > { %v618_v56 = vpop.f32.mrb[8].mxu1  ;;  %v1706_v57 = vpop.f32.mrb[9].mxu0 }
  0xf9   : > { %v2396_v58 = vadd.f32 %v618_v56, %v390_v54  ;;  %v1776_v59 = vpop.f32.mrb[9].mxu1  ;;  %v393_v60 = vpop.f32.mrb[10].mxu0  ;;  %v1103_v57 = vpack.c.bf16 %v1086_v46, %v1085_v16 }
  0xfa   : > { %v621_v19 = vpop.f32.mrb[10].mxu1  ;;  %v1707_v62 = vpop.f32.mrb[11].mxu0 }
  0xfb   : > { %v2398_v63 = vadd.f32 %v621_v19, %v393_v60  ;;  %v1777_v25 = vpop.f32.mrb[11].mxu1 }
  0xfc   : > { %1885 = vmatmul.mubr.msk.bf16.gmra.mrb[116].mxu0 %vm284_vm2, %v2230_v30  ;;  %v1100_v30 = vpack.c.bf16 %v1080_v2, %v1079_v1 }
  0xfd   : > { %1955 = vmatmul.mubr.msk.bf16.gmra.mrb[116].mxu1 %vm284_vm2, %v1099_v23  ;;  %1888 = vmatprep.mubr.msk.bf16.mxu0 %vm1999_vm1, %v1998_v0 }
  0xfe   : > { %1958 = vmatprep.mubr.msk.bf16.mxu1 %vm1999_vm1, %v1998_v0 }
  0xff   : > { %v398_v31 = vpop.f32.mrb[12].mxu0 }
 0x100   : > { %v626_v3 = vpop.f32.mrb[12].mxu1  ;;  %v1710_v5 = vpop.f32.mrb[13].mxu0 }
 0x101   : > { %v2409_v37 = vadd.f32 %v626_v3, %v398_v31  ;;  %v1780_v6 = vpop.f32.mrb[13].mxu1  ;;  %v401_v7 = vpop.f32.mrb[14].mxu0 }
 0x102   : > { %v629_v43 = vpop.f32.mrb[14].mxu1  ;;  %v1711_v8 = vpop.f32.mrb[15].mxu0 }
 0x103   : > { %v2411_v9 = vadd.f32 %v629_v43, %v401_v7  ;;  %v1781_v49 = vpop.f32.mrb[15].mxu1 }
 0x104   : > { %1889 = vmatmul.mubr.msk.bf16.gmra.mrb[120].mxu0 %vm284_vm2, %v2243_v38  ;;  %v1101_v38 = vpack.c.bf16 %v1082_v12, %v1081_v11 }
 0x105   : > { %1959 = vmatmul.mubr.msk.bf16.gmra.mrb[120].mxu1 %vm284_vm2, %v1100_v30  ;;  %1892 = vmatprep.mubr.msk.bf16.mxu0 %vm1999_vm1, %v1998_v0 }
 0x106   : > { %1962 = vmatprep.mubr.msk.bf16.mxu1 %vm1999_vm1, %v1998_v0 }
 0x107   : > { %v406_v55 = vpop.f32.mrb[16].mxu0 }
 0x108   : > { %v634_v13 = vpop.f32.mrb[16].mxu1  ;;  %v1714_v14 = vpop.f32.mrb[17].mxu0 }
 0x109   : > { %v2422_v61 = vadd.f32 %v634_v13, %v406_v55  ;;  %v1784_v15 = vpop.f32.mrb[17].mxu1  ;;  %v409_v17 = vpop.f32.mrb[18].mxu0 }
 0x10a   : > { %v637_v4 = vpop.f32.mrb[18].mxu1  ;;  %v1715_v18 = vpop.f32.mrb[19].mxu0 }
 0x10b   : > { %v2424_v20 = vadd.f32 %v637_v4, %v409_v17  ;;  %v1785_v21 = vpop.f32.mrb[19].mxu1 }
 0x10c   : > { %1893 = vmatmul.mubr.msk.bf16.gmra.mrb[124].mxu0 %vm284_vm2, %v2256_v45 }
 0x10d   : > { %1963 = vmatmul.mubr.msk.bf16.gmra.mrb[124].mxu1 %vm284_vm2, %v1101_v38  ;;  %1896 = vmatprep.mubr.msk.bf16.mxu0 %vm1999_vm1, %v1998_v0 }
 0x10e   : > { %1966 = vmatprep.mubr.msk.bf16.mxu1 %vm1999_vm1, %v1998_v0 }
 0x10f   : > { %v414_v27 = vpop.f32.mrb[20].mxu0 }
 0x110   : > { %v642_v10 = vpop.f32.mrb[20].mxu1  ;;  %v1718_v28 = vpop.f32.mrb[21].mxu0 }
 0x111   : > { %v2435_v29 = vadd.f32 %v642_v10, %v414_v27  ;;  %v1788_v45 = vpop.f32.mrb[21].mxu1  ;;  %v417_v33 = vpop.f32.mrb[22].mxu0 }
 0x112   : > { %v645_v35 = vpop.f32.mrb[22].mxu1  ;;  %v1719_v36 = vpop.f32.mrb[23].mxu0 }
 0x113   : > { %v2437_v39 = vadd.f32 %v645_v35, %v417_v33  ;;  %v1789_v40 = vpop.f32.mrb[23].mxu1 }
 0x114   : > { %1897 = vmatmul.mubr.msk.bf16.gmra.mrb[128].mxu0 %vm284_vm2, %v2269_v52 }
 0x115   : > { %1967 = vmatmul.mubr.msk.bf16.gmra.mrb[128].mxu1 %vm284_vm2, %v1102_v34  ;;  %1900 = vmatprep.mubr.msk.bf16.mxu0 %vm1999_vm1, %v1998_v0 }
 0x116   : > { %1970 = vmatprep.mubr.msk.bf16.mxu1 %vm1999_vm1, %v1998_v0 }
 0x117   : > { %v422_v47 = vpop.f32.mrb[24].mxu0 }
 0x118   : > { %v650_v50 = vpop.f32.mrb[24].mxu1  ;;  %v1722_v51 = vpop.f32.mrb[25].mxu0 }
 0x119   : > { %v2450_v54 = vadd.f32 %v650_v50, %v422_v47  ;;  %v1792_v56 = vpop.f32.mrb[25].mxu1  ;;  %v425_v52 = vpop.f32.mrb[26].mxu0 }
 0x11a   : > { %v653_v59 = vpop.f32.mrb[26].mxu1  ;;  %v1723_v60 = vpop.f32.mrb[27].mxu0 }
 0x11b   : > { %v2452_v23 = vadd.f32 %v653_v59, %v425_v52  ;;  %v1793_v19 = vpop.f32.mrb[27].mxu1 }
 0x11c   : > { %1901 = vmatmul.mubr.msk.bf16.gmra.mrb[132].mxu0 %vm284_vm2, %v787_v53 }
 0x11d   : > { %1971 = vmatmul.mubr.msk.bf16.gmra.mrb[132].mxu1 %vm284_vm2, %v1103_v57 }
 0x11f   : > { %v430_v0 = vpop.f32.mrb[28].mxu0 }
 0x120   : > { %v658_v62 = vpop.f32.mrb[28].mxu1  ;;  %v1726_v25 = vpop.f32.mrb[29].mxu0 }
 0x121   : > { %v2456_v1 = vadd.f32 %v658_v62, %v430_v0  ;;  %v1796_v2 = vpop.f32.mrb[29].mxu1  ;;  %v433_v31 = vpop.f32.mrb[30].mxu0 }
 0x122   : > { %v661_v3 = vpop.f32.mrb[30].mxu1  ;;  %v1727_v5 = vpop.f32.mrb[31].mxu0 }
 0x123   : > { %v2458_v6 = vadd.f32 %v661_v3, %v433_v31  ;;  %v1797_v7 = vpop.f32.mrb[31].mxu1 }
 0x127   : > { %v438_v30 = vpop.f32.mrb[32].mxu0 }
 0x128   : > { %v666_v43 = vpop.f32.mrb[32].mxu1  ;;  %v1730_v8 = vpop.f32.mrb[33].mxu0 }
 0x129   : > { %v2460_v49 = vadd.f32 %v666_v43, %v438_v30  ;;  %v1800_v11 = vpop.f32.mrb[33].mxu1  ;;  %v441_v12 = vpop.f32.mrb[34].mxu0 }
 0x12a   : > { %v669_v55 = vpop.f32.mrb[34].mxu1  ;;  %v1731_v13 = vpop.f32.mrb[35].mxu0 }
 0x12b   : > { %v2462_v14 = vadd.f32 %v669_v55, %v441_v12  ;;  %v1801_v15 = vpop.f32.mrb[35].mxu1 }
 0x12f   : > { %v446_v17 = vpop.f32.mrb[36].mxu0 }
 0x130   : > { %v674_v38 = vpop.f32.mrb[36].mxu1  ;;  %v1734_v4 = vpop.f32.mrb[37].mxu0 }
 0x131   : > { %v2464_v18 = vadd.f32 %v674_v38, %v446_v17  ;;  %v1804_v21 = vpop.f32.mrb[37].mxu1  ;;  %v449_v22 = vpop.f32.mrb[38].mxu0 }
 0x132   : > { %v677_v26 = vpop.f32.mrb[38].mxu1  ;;  %v1735_v27 = vpop.f32.mrb[39].mxu0 }
 0x133   : > { %v2466_v10 = vadd.f32 %v677_v26, %v449_v22  ;;  %v1805_v28 = vpop.f32.mrb[39].mxu1 }
 0x137   : > { %v454_v45 = vpop.f32.mrb[40].mxu0 }
 0x138   : > { %v682_v33 = vpop.f32.mrb[40].mxu1  ;;  %v1738_v34 = vpop.f32.mrb[41].mxu0 }
 0x139   : > { %v2468_v35 = vadd.f32 %v682_v33, %v454_v45  ;;  %v1808_v36 = vpop.f32.mrb[41].mxu1  ;;  %v457_v40 = vpop.f32.mrb[42].mxu0 }
 0x13a   : > { %v685_v42 = vpop.f32.mrb[42].mxu1  ;;  %v1739_v44 = vpop.f32.mrb[43].mxu0 }
 0x13b   : > { %v2470_v16 = vadd.f32 %v685_v42, %v457_v40  ;;  %v1809_v46 = vpop.f32.mrb[43].mxu1 }
 0x13f   : > { %v462_v47 = vpop.f32.mrb[44].mxu0 }
 0x140   : > { %v690_v50 = vpop.f32.mrb[44].mxu1  ;;  %v1742_v51 = vpop.f32.mrb[45].mxu0 }
 0x141   : > { %v2472_v53 = vadd.f32 %v690_v50, %v462_v47  ;;  %v1812_v56 = vpop.f32.mrb[45].mxu1  ;;  %v465_v52 = vpop.f32.mrb[46].mxu0 }
 0x142   : > { %v693_v57 = vpop.f32.mrb[46].mxu1  ;;  %v1743_v59 = vpop.f32.mrb[47].mxu0 }
 0x143   : > { %v2474_v60 = vadd.f32 %v693_v57, %v465_v52  ;;  %v1813_v19 = vpop.f32.mrb[47].mxu1 }
 0x147   : > { %v470_v0 = vpop.f32.mrb[48].mxu0 }
 0x148   : > { %v698_v62 = vpop.f32.mrb[48].mxu1  ;;  %v1746_v25 = vpop.f32.mrb[49].mxu0 }
 0x149   : > { %v2476_v2 = vadd.f32 %v698_v62, %v470_v0  ;;  %v1816_v31 = vpop.f32.mrb[49].mxu1  ;;  %v473_v3 = vpop.f32.mrb[50].mxu0 }
 0x14a   : > { %v701_v5 = vpop.f32.mrb[50].mxu1  ;;  %v1747_v7 = vpop.f32.mrb[51].mxu0 }
 0x14b   : > { %v2478_v30 = vadd.f32 %v701_v5, %v473_v3  ;;  %v1817_v43 = vpop.f32.mrb[51].mxu1 }
 0x14f   : > { %v478_v8 = vpop.f32.mrb[52].mxu0 }
 0x150   : > { %v706_v11 = vpop.f32.mrb[52].mxu1  ;;  %v1750_v12 = vpop.f32.mrb[53].mxu0 }
 0x151   : > { %v2480_v55 = vadd.f32 %v706_v11, %v478_v8  ;;  %v1820_v13 = vpop.f32.mrb[53].mxu1  ;;  %v481_v15 = vpop.f32.mrb[54].mxu0 }
 0x152   : > { %v709_v17 = vpop.f32.mrb[54].mxu1  ;;  %v1751_v38 = vpop.f32.mrb[55].mxu0 }
 0x153   : > { %v2482_v4 = vadd.f32 %v709_v17, %v481_v15  ;;  %v1821_v21 = vpop.f32.mrb[55].mxu1  ;;  %v2501_v38 = vld [vmem:[%s2648_s2] ss:$0 sm:$0xff] }
 0x157   : > { %v486_v22 = vpop.f32.mrb[56].mxu0 }
 0x158   : > { %v714_v26 = vpop.f32.mrb[56].mxu1  ;;  %v1754_v27 = vpop.f32.mrb[57].mxu0 }
 0x159   : > { %v2484_v28 = vadd.f32 %v714_v26, %v486_v22  ;;  %v1824_v45 = vpop.f32.mrb[57].mxu1  ;;  %v489_v33 = vpop.f32.mrb[58].mxu0 }
 0x15a   : > { %v717_v34 = vpop.f32.mrb[58].mxu1  ;;  %v1755_v36 = vpop.f32.mrb[59].mxu0 }
 0x15b   : > { %v2486_v40 = vadd.f32 %v717_v34, %v489_v33  ;;  %v1825_v42 = vpop.f32.mrb[59].mxu1 }
 0x15f   : > { %v494_v44 = vpop.f32.mrb[60].mxu0 }
 0x160   : > { %v722_v46 = vpop.f32.mrb[60].mxu1  ;;  %v1758_v47 = vpop.f32.mrb[61].mxu0 }
 0x161   : > { %v2488_v50 = vadd.f32 %v722_v46, %v494_v44  ;;  %v1828_v51 = vpop.f32.mrb[61].mxu1  ;;  %v497_v56 = vpop.f32.mrb[62].mxu0 }
 0x162   : > { %v725_v52 = vpop.f32.mrb[62].mxu1  ;;  %v1759_v57 = vpop.f32.mrb[63].mxu0 }
 0x163   : > { %v2490_v59 = vadd.f32 %v725_v52, %v497_v56  ;;  %v1829_v19 = vpop.f32.mrb[63].mxu1 }
 0x167   : > { %v502_v0 = vpop.f32.mrb[64].mxu0 }
 0x168   : > { %v730_v62 = vpop.f32.mrb[64].mxu1  ;;  %v1762_v25 = vpop.f32.mrb[65].mxu0 }
 0x169   : > { %v2492_v31 = vadd.f32 %v730_v62, %v502_v0  ;;  %v1832_v3 = vpop.f32.mrb[65].mxu1  ;;  %v505_v5 = vpop.f32.mrb[66].mxu0 }
 0x16a   : > { %v733_v7 = vpop.f32.mrb[66].mxu1  ;;  %v1763_v43 = vpop.f32.mrb[67].mxu0 }
 0x16b   : > { %v2494_v8 = vadd.f32 %v733_v7, %v505_v5  ;;  %v1833_v11 = vpop.f32.mrb[67].mxu1 }
 0x16f   : > { %v884_v12 = vpop.f32.mrb[68].mxu0 }
 0x170   : > { %v1019_v13 = vadd.f32 %v884_v12, %v2370_v24  ;;  %v1200_v15 = vpop.f32.mrb[68].mxu1  ;;  %v1838_v17 = vpop.f32.mrb[69].mxu0 }
 0x171   : > { %v1908_v21 = vpop.f32.mrb[69].mxu1  ;;  %v887_v22 = vpop.f32.mrb[70].mxu0 }
 0x172   : > { %v1335_v26 = vadd.f32 %v1200_v15, %v1019_v13  ;;  %v1020_v27 = vadd.f32 %v887_v22, %v2372_v32  ;;  %v1203_v45 = vpop.f32.mrb[70].mxu1  ;;  %v1839_v33 = vpop.f32.mrb[71].mxu0 }
 0x173   : > { %v1909_v34 = vpop.f32.mrb[71].mxu1 }
 0x174   : > { %v1376_v36 = vadd.f32 %v2501_v38, %v1335_v26  ;;  %v1336_v42 = vadd.f32 %v1203_v45, %v1020_v27 }
 0x176   : > { %v1410_v24 = vmax.f32 %v1376_v36, 0.0  ;;  %v1377_v44 = vadd.f32 %v2501_v38, %v1336_v42 }
 0x177   : > { %v892_v46 = vpop.f32.mrb[72].mxu0 }
 0x178   : > { %1445 = vst.msk [vmem:[%s2508_s4] sm:$0xff] %vm1444_vm3, %v1410_v24  ;;  %v1411_v32 = vmax.f32 %v1377_v44, 0.0  ;;  %v1021_v47 = vadd.f32 %v892_v46, %v2383_v41  ;;  %v1208_v51 = vpop.f32.mrb[72].mxu1  ;;  %v1842_v56 = vpop.f32.mrb[73].mxu0 }
 0x179   : > { %v1912_v52 = vpop.f32.mrb[73].mxu1  ;;  %v895_v57 = vpop.f32.mrb[74].mxu0 }
 0x17a   : > { %1446 = vst.msk [vmem:[%s2508_s4 + $0x8] sm:$0xff] %vm1444_vm3, %v1411_v32  ;;  %v1337_v19 = vadd.f32 %v1208_v51, %v1021_v47  ;;  %v1022_v0 = vadd.f32 %v895_v57, %v2385_v48  ;;  %v1211_v62 = vpop.f32.mrb[74].mxu1  ;;  %v1843_v25 = vpop.f32.mrb[75].mxu0 }
 0x17b   : > { %v1913_v3 = vpop.f32.mrb[75].mxu1 }
 0x17c   : > { %v1378_v5 = vadd.f32 %v2501_v38, %v1337_v19  ;;  %v1338_v7 = vadd.f32 %v1211_v62, %v1022_v0 }
 0x17e   : > { %v1412_v43 = vmax.f32 %v1378_v5, 0.0  ;;  %v1379_v41 = vadd.f32 %v2501_v38, %v1338_v7 }
 0x17f   : > { %v900_v11 = vpop.f32.mrb[76].mxu0 }
 0x180   : > { %1447 = vst.msk [vmem:[%s2508_s4 + $0x10] sm:$0xff] %vm1444_vm3, %v1412_v43  ;;  %v1413_v12 = vmax.f32 %v1379_v41, 0.0  ;;  %v1023_v13 = vadd.f32 %v900_v11, %v2396_v58  ;;  %v1216_v15 = vpop.f32.mrb[76].mxu1  ;;  %v1846_v17 = vpop.f32.mrb[77].mxu0 }
 0x181   : > { %v1916_v48 = vpop.f32.mrb[77].mxu1  ;;  %v903_v21 = vpop.f32.mrb[78].mxu0 }
 0x182   : > { %1448 = vst.msk [vmem:[%s2508_s4 + $0x18] sm:$0xff] %vm1444_vm3, %v1413_v12  ;;  %v1339_v22 = vadd.f32 %v1216_v15, %v1023_v13  ;;  %v1024_v26 = vadd.f32 %v903_v21, %v2398_v63  ;;  %v1219_v27 = vpop.f32.mrb[78].mxu1  ;;  %v1847_v45 = vpop.f32.mrb[79].mxu0 }
 0x183   : > { %v1917_v33 = vpop.f32.mrb[79].mxu1 }
 0x184   : > { %v1380_v34 = vadd.f32 %v2501_v38, %v1339_v22  ;;  %v1340_v36 = vadd.f32 %v1219_v27, %v1024_v26 }
 0x186   : > { %v1414_v42 = vmax.f32 %v1380_v34, 0.0  ;;  %v1381_v58 = vadd.f32 %v2501_v38, %v1340_v36 }
 0x187   : > { %v908_v24 = vpop.f32.mrb[80].mxu0 }
 0x188   : > { %1449 = vst.msk [vmem:[%s2508_s4 + $0x20] sm:$0xff] %vm1444_vm3, %v1414_v42  ;;  %v1415_v44 = vmax.f32 %v1381_v58, 0.0  ;;  %v1025_v46 = vadd.f32 %v908_v24, %v2409_v37  ;;  %v1224_v32 = vpop.f32.mrb[80].mxu1  ;;  %v1850_v47 = vpop.f32.mrb[81].mxu0 }
 0x189   : > { %v1920_v63 = vpop.f32.mrb[81].mxu1  ;;  %v911_v51 = vpop.f32.mrb[82].mxu0 }
 0x18a   : > { %1450 = vst.msk [vmem:[%s2508_s4 + $0x28] sm:$0xff] %vm1444_vm3, %v1415_v44  ;;  %v1341_v56 = vadd.f32 %v1224_v32, %v1025_v46  ;;  %v1026_v52 = vadd.f32 %v911_v51, %v2411_v9  ;;  %v1227_v57 = vpop.f32.mrb[82].mxu1  ;;  %v1851_v19 = vpop.f32.mrb[83].mxu0 }
 0x18b   : > { %v1921_v0 = vpop.f32.mrb[83].mxu1 }
 0x18c   : > { %v1382_v62 = vadd.f32 %v2501_v38, %v1341_v56  ;;  %v1342_v25 = vadd.f32 %v1227_v57, %v1026_v52 }
 0x18e   : > { %v1416_v3 = vmax.f32 %v1382_v62, 0.0  ;;  %v1383_v37 = vadd.f32 %v2501_v38, %v1342_v25 }
 0x18f   : > { %v916_v5 = vpop.f32.mrb[84].mxu0 }
 0x190   : > { %1451 = vst.msk [vmem:[%s2508_s4 + $0x30] sm:$0xff] %vm1444_vm3, %v1416_v3  ;;  %v1417_v7 = vmax.f32 %v1383_v37, 0.0  ;;  %v1027_v43 = vadd.f32 %v916_v5, %v2422_v61  ;;  %v1232_v41 = vpop.f32.mrb[84].mxu1  ;;  %v1854_v11 = vpop.f32.mrb[85].mxu0 }
 0x191   : > { %v1924_v9 = vpop.f32.mrb[85].mxu1  ;;  %v919_v12 = vpop.f32.mrb[86].mxu0 }
 0x192   : > { %1452 = vst.msk [vmem:[%s2508_s4 + $0x38] sm:$0xff] %vm1444_vm3, %v1417_v7  ;;  %v1343_v13 = vadd.f32 %v1232_v41, %v1027_v43  ;;  %v1028_v15 = vadd.f32 %v919_v12, %v2424_v20  ;;  %v1235_v17 = vpop.f32.mrb[86].mxu1  ;;  %v1855_v48 = vpop.f32.mrb[87].mxu0 }
 0x193   : > { %v1925_v21 = vpop.f32.mrb[87].mxu1 }
 0x194   : > { %v1384_v22 = vadd.f32 %v2501_v38, %v1343_v13  ;;  %v1344_v26 = vadd.f32 %v1235_v17, %v1028_v15 }
 0x196   : > { %v1418_v27 = vmax.f32 %v1384_v22, 0.0  ;;  %v1385_v61 = vadd.f32 %v2501_v38, %v1344_v26 }
 0x197   : > { %v924_v45 = vpop.f32.mrb[88].mxu0 }
 0x198   : > { %1453 = vst.msk [vmem:[%s2508_s4 + $0x40] sm:$0xff] %vm1444_vm3, %v1418_v27  ;;  %v1419_v33 = vmax.f32 %v1385_v61, 0.0  ;;  %v1029_v34 = vadd.f32 %v924_v45, %v2435_v29  ;;  %v1240_v36 = vpop.f32.mrb[88].mxu1  ;;  %v1858_v42 = vpop.f32.mrb[89].mxu0 }
 0x199   : > { %v1928_v20 = vpop.f32.mrb[89].mxu1  ;;  %v927_v58 = vpop.f32.mrb[90].mxu0 }
 0x19a   : > { %1454 = vst.msk [vmem:[%s2508_s4 + $0x48] sm:$0xff] %vm1444_vm3, %v1419_v33  ;;  %v1345_v24 = vadd.f32 %v1240_v36, %v1029_v34  ;;  %v1030_v44 = vadd.f32 %v927_v58, %v2437_v39  ;;  %v1243_v46 = vpop.f32.mrb[90].mxu1  ;;  %v1859_v32 = vpop.f32.mrb[91].mxu0 }
 0x19b   : > { %v1929_v47 = vpop.f32.mrb[91].mxu1 }
 0x19c   : > { %v1386_v63 = vadd.f32 %v2501_v38, %v1345_v24  ;;  %v1346_v51 = vadd.f32 %v1243_v46, %v1030_v44 }
 0x19e   : > { %v1420_v56 = vmax.f32 %v1386_v63, 0.0  ;;  %v1387_v29 = vadd.f32 %v2501_v38, %v1346_v51 }
 0x19f   : > { %v932_v52 = vpop.f32.mrb[92].mxu0 }
 0x1a0   : > { %1455 = vst.msk [vmem:[%s2508_s4 + $0x50] sm:$0xff] %vm1444_vm3, %v1420_v56  ;;  %v1421_v57 = vmax.f32 %v1387_v29, 0.0  ;;  %v1031_v19 = vadd.f32 %v932_v52, %v2450_v54  ;;  %v1248_v0 = vpop.f32.mrb[92].mxu1  ;;  %v1862_v62 = vpop.f32.mrb[93].mxu0 }
 0x1a1   : > { %v1932_v39 = vpop.f32.mrb[93].mxu1  ;;  %v935_v25 = vpop.f32.mrb[94].mxu0 }
 0x1a2   : > { %1456 = vst.msk [vmem:[%s2508_s4 + $0x58] sm:$0xff] %vm1444_vm3, %v1421_v57  ;;  %v1347_v3 = vadd.f32 %v1248_v0, %v1031_v19  ;;  %v1032_v37 = vadd.f32 %v935_v25, %v2452_v23  ;;  %v1251_v5 = vpop.f32.mrb[94].mxu1  ;;  %v1863_v7 = vpop.f32.mrb[95].mxu0 }
 0x1a3   : > { %v1933_v43 = vpop.f32.mrb[95].mxu1 }
 0x1a4   : > { %v1388_v41 = vadd.f32 %v2501_v38, %v1347_v3  ;;  %v1348_v11 = vadd.f32 %v1251_v5, %v1032_v37 }
 0x1a6   : > { %v1422_v9 = vmax.f32 %v1388_v41, 0.0  ;;  %v1389_v54 = vadd.f32 %v2501_v38, %v1348_v11 }
 0x1a7   : > { %v940_v12 = vpop.f32.mrb[96].mxu0 }
 0x1a8   : > { %1457 = vst.msk [vmem:[%s2508_s4 + $0x60] sm:$0xff] %vm1444_vm3, %v1422_v9  ;;  %v1423_v13 = vmax.f32 %v1389_v54, 0.0  ;;  %v1033_v15 = vadd.f32 %v940_v12, %v2456_v1  ;;  %v1256_v17 = vpop.f32.mrb[96].mxu1  ;;  %v1866_v48 = vpop.f32.mrb[97].mxu0 }
 0x1a9   : > { %v1936_v23 = vpop.f32.mrb[97].mxu1  ;;  %v943_v21 = vpop.f32.mrb[98].mxu0 }
 0x1aa   : > { %1458 = vst.msk [vmem:[%s2508_s4 + $0x68] sm:$0xff] %vm1444_vm3, %v1423_v13  ;;  %v1349_v22 = vadd.f32 %v1256_v17, %v1033_v15  ;;  %v1034_v26 = vadd.f32 %v943_v21, %v2458_v6  ;;  %v1259_v27 = vpop.f32.mrb[98].mxu1  ;;  %v1867_v61 = vpop.f32.mrb[99].mxu0 }
 0x1ab   : > { %v1937_v45 = vpop.f32.mrb[99].mxu1 }
 0x1ac   : > { %v1390_v33 = vadd.f32 %v2501_v38, %v1349_v22  ;;  %v1350_v34 = vadd.f32 %v1259_v27, %v1034_v26 }
 0x1ae   : > { %v1424_v36 = vmax.f32 %v1390_v33, 0.0  ;;  %v1391_v1 = vadd.f32 %v2501_v38, %v1350_v34 }
 0x1af   : > { %v948_v42 = vpop.f32.mrb[100].mxu0 }
 0x1b0   : > { %1459 = vst.msk [vmem:[%s2508_s4 + $0x70] sm:$0xff] %vm1444_vm3, %v1424_v36  ;;  %v1425_v20 = vmax.f32 %v1391_v1, 0.0  ;;  %v1035_v58 = vadd.f32 %v948_v42, %v2460_v49  ;;  %v1264_v24 = vpop.f32.mrb[100].mxu1  ;;  %v1870_v44 = vpop.f32.mrb[101].mxu0 }
 0x1b1   : > { %v1940_v6 = vpop.f32.mrb[101].mxu1  ;;  %v951_v46 = vpop.f32.mrb[102].mxu0 }
 0x1b2   : > { %1460 = vst.msk [vmem:[%s2508_s4 + $0x78] sm:$0xff] %vm1444_vm3, %v1425_v20  ;;  %v1351_v32 = vadd.f32 %v1264_v24, %v1035_v58  ;;  %v1036_v47 = vadd.f32 %v951_v46, %v2462_v14  ;;  %v1267_v63 = vpop.f32.mrb[102].mxu1  ;;  %v1871_v51 = vpop.f32.mrb[103].mxu0 }
 0x1b3   : > { %v1941_v56 = vpop.f32.mrb[103].mxu1 }
 0x1b4   : > { %v1392_v29 = vadd.f32 %v2501_v38, %v1351_v32  ;;  %v1352_v52 = vadd.f32 %v1267_v63, %v1036_v47 }
 0x1b6   : > { %v1426_v57 = vmax.f32 %v1392_v29, 0.0  ;;  %v1393_v49 = vadd.f32 %v2501_v38, %v1352_v52 }
 0x1b7   : > { %v956_v19 = vpop.f32.mrb[104].mxu0 }
 0x1b8   : > { %1461 = vst.msk [vmem:[%s2508_s4 + $0x80] sm:$0xff] %vm1444_vm3, %v1426_v57  ;;  %v1427_v0 = vmax.f32 %v1393_v49, 0.0  ;;  %v1037_v62 = vadd.f32 %v956_v19, %v2464_v18  ;;  %v1272_v39 = vpop.f32.mrb[104].mxu1  ;;  %v1874_v25 = vpop.f32.mrb[105].mxu0 }
 0x1b9   : > { %v1944_v14 = vpop.f32.mrb[105].mxu1  ;;  %v959_v3 = vpop.f32.mrb[106].mxu0 }
 0x1ba   : > { %1462 = vst.msk [vmem:[%s2508_s4 + $0x88] sm:$0xff] %vm1444_vm3, %v1427_v0  ;;  %v1353_v37 = vadd.f32 %v1272_v39, %v1037_v62  ;;  %v1038_v5 = vadd.f32 %v959_v3, %v2466_v10  ;;  %v1275_v7 = vpop.f32.mrb[106].mxu1  ;;  %v1875_v43 = vpop.f32.mrb[107].mxu0 }
 0x1bb   : > { %v1945_v41 = vpop.f32.mrb[107].mxu1 }
 0x1bc   : > { %v1394_v11 = vadd.f32 %v2501_v38, %v1353_v37  ;;  %v1354_v9 = vadd.f32 %v1275_v7, %v1038_v5 }
 0x1be   : > { %v1428_v54 = vmax.f32 %v1394_v11, 0.0  ;;  %v1395_v18 = vadd.f32 %v2501_v38, %v1354_v9 }
 0x1bf   : > { %v964_v12 = vpop.f32.mrb[108].mxu0 }
 0x1c0   : > { %1463 = vst.msk [vmem:[%s2508_s4 + $0x90] sm:$0xff] %vm1444_vm3, %v1428_v54  ;;  %v1429_v13 = vmax.f32 %v1395_v18, 0.0  ;;  %v1039_v15 = vadd.f32 %v964_v12, %v2468_v35  ;;  %v1280_v17 = vpop.f32.mrb[108].mxu1  ;;  %v1878_v48 = vpop.f32.mrb[109].mxu0 }
 0x1c1   : > { %v1948_v10 = vpop.f32.mrb[109].mxu1  ;;  %v967_v23 = vpop.f32.mrb[110].mxu0 }
 0x1c2   : > { %1464 = vst.msk [vmem:[%s2508_s4 + $0x98] sm:$0xff] %vm1444_vm3, %v1429_v13  ;;  %v1355_v21 = vadd.f32 %v1280_v17, %v1039_v15  ;;  %v1040_v22 = vadd.f32 %v967_v23, %v2470_v16  ;;  %v1283_v26 = vpop.f32.mrb[110].mxu1  ;;  %v1879_v27 = vpop.f32.mrb[111].mxu0 }
 0x1c3   : > { %v1949_v61 = vpop.f32.mrb[111].mxu1 }
 0x1c4   : > { %v1396_v45 = vadd.f32 %v2501_v38, %v1355_v21  ;;  %v1356_v33 = vadd.f32 %v1283_v26, %v1040_v22 }
 0x1c6   : > { %v1430_v34 = vmax.f32 %v1396_v45, 0.0  ;;  %v1397_v35 = vadd.f32 %v2501_v38, %v1356_v33 }
 0x1c7   : > { %v972_v36 = vpop.f32.mrb[112].mxu0 }
 0x1c8   : > { %1465 = vst.msk [vmem:[%s2508_s4 + $0xa0] sm:$0xff] %vm1444_vm3, %v1430_v34  ;;  %v1431_v1 = vmax.f32 %v1397_v35, 0.0  ;;  %v1041_v42 = vadd.f32 %v972_v36, %v2472_v53  ;;  %v1288_v20 = vpop.f32.mrb[112].mxu1  ;;  %v1882_v58 = vpop.f32.mrb[113].mxu0 }
 0x1c9   : > { %v1952_v16 = vpop.f32.mrb[113].mxu1  ;;  %v975_v24 = vpop.f32.mrb[114].mxu0 }
 0x1ca   : > { %1466 = vst.msk [vmem:[%s2508_s4 + $0xa8] sm:$0xff] %vm1444_vm3, %v1431_v1  ;;  %v1357_v44 = vadd.f32 %v1288_v20, %v1041_v42  ;;  %v1042_v6 = vadd.f32 %v975_v24, %v2474_v60  ;;  %v1291_v46 = vpop.f32.mrb[114].mxu1  ;;  %v1883_v32 = vpop.f32.mrb[115].mxu0 }
 0x1cb   : > { %v1953_v47 = vpop.f32.mrb[115].mxu1 }
 0x1cc   : > { %v1398_v63 = vadd.f32 %v2501_v38, %v1357_v44  ;;  %v1358_v51 = vadd.f32 %v1291_v46, %v1042_v6 }
 0x1ce   : > { %v1432_v56 = vmax.f32 %v1398_v63, 0.0  ;;  %v1399_v53 = vadd.f32 %v2501_v38, %v1358_v51 }
 0x1cf   : > { %v980_v29 = vpop.f32.mrb[116].mxu0 }
 0x1d0   : > { %1467 = vst.msk [vmem:[%s2508_s4 + $0xb0] sm:$0xff] %vm1444_vm3, %v1432_v56  ;;  %v1433_v52 = vmax.f32 %v1399_v53, 0.0  ;;  %v1043_v57 = vadd.f32 %v980_v29, %v2476_v2  ;;  %v1296_v49 = vpop.f32.mrb[116].mxu1  ;;  %v1886_v19 = vpop.f32.mrb[117].mxu0 }
 0x1d1   : > { %v1956_v60 = vpop.f32.mrb[117].mxu1  ;;  %v983_v0 = vpop.f32.mrb[118].mxu0 }
 0x1d2   : > { %1468 = vst.msk [vmem:[%s2508_s4 + $0xb8] sm:$0xff] %vm1444_vm3, %v1433_v52  ;;  %v1359_v62 = vadd.f32 %v1296_v49, %v1043_v57  ;;  %v1044_v39 = vadd.f32 %v983_v0, %v2478_v30  ;;  %v1299_v25 = vpop.f32.mrb[118].mxu1  ;;  %v1887_v14 = vpop.f32.mrb[119].mxu0 }
 0x1d3   : > { %v1957_v3 = vpop.f32.mrb[119].mxu1 }
 0x1d4   : > { %v1400_v37 = vadd.f32 %v2501_v38, %v1359_v62  ;;  %v1360_v5 = vadd.f32 %v1299_v25, %v1044_v39 }
 0x1d6   : > { %v1434_v7 = vmax.f32 %v1400_v37, 0.0  ;;  %v1401_v2 = vadd.f32 %v2501_v38, %v1360_v5 }
 0x1d7   : > { %v988_v43 = vpop.f32.mrb[120].mxu0 }
 0x1d8   : > { %1469 = vst.msk [vmem:[%s2508_s4 + $0xc0] sm:$0xff] %vm1444_vm3, %v1434_v7  ;;  %v1435_v41 = vmax.f32 %v1401_v2, 0.0  ;;  %v1045_v11 = vadd.f32 %v988_v43, %v2480_v55  ;;  %v1304_v9 = vpop.f32.mrb[120].mxu1  ;;  %v1890_v54 = vpop.f32.mrb[121].mxu0 }
 0x1d9   : > { %v1960_v30 = vpop.f32.mrb[121].mxu1  ;;  %v991_v18 = vpop.f32.mrb[122].mxu0 }
 0x1da   : > { %1470 = vst.msk [vmem:[%s2508_s4 + $0xc8] sm:$0xff] %vm1444_vm3, %v1435_v41  ;;  %v1361_v12 = vadd.f32 %v1304_v9, %v1045_v11  ;;  %v1046_v13 = vadd.f32 %v991_v18, %v2482_v4  ;;  %v1307_v15 = vpop.f32.mrb[122].mxu1  ;;  %v1891_v17 = vpop.f32.mrb[123].mxu0 }
 0x1db   : > { %v1961_v48 = vpop.f32.mrb[123].mxu1 }
 0x1dc   : > { %v1402_v10 = vadd.f32 %v2501_v38, %v1361_v12  ;;  %v1362_v23 = vadd.f32 %v1307_v15, %v1046_v13 }
 0x1de   : > { %v1436_v21 = vmax.f32 %v1402_v10, 0.0  ;;  %v1403_v55 = vadd.f32 %v2501_v38, %v1362_v23 }
 0x1df   : > { %v996_v22 = vpop.f32.mrb[124].mxu0 }
 0x1e0   : > { %1471 = vst.msk [vmem:[%s2508_s4 + $0xd0] sm:$0xff] %vm1444_vm3, %v1436_v21  ;;  %v1437_v26 = vmax.f32 %v1403_v55, 0.0  ;;  %v1047_v27 = vadd.f32 %v996_v22, %v2484_v28  ;;  %v1312_v61 = vpop.f32.mrb[124].mxu1  ;;  %v1894_v45 = vpop.f32.mrb[125].mxu0 }
 0x1e1   : > { %v1964_v4 = vpop.f32.mrb[125].mxu1  ;;  %v999_v33 = vpop.f32.mrb[126].mxu0 }
 0x1e2   : > { %1472 = vst.msk [vmem:[%s2508_s4 + $0xd8] sm:$0xff] %vm1444_vm3, %v1437_v26  ;;  %v1363_v34 = vadd.f32 %v1312_v61, %v1047_v27  ;;  %v1048_v35 = vadd.f32 %v999_v33, %v2486_v40  ;;  %v1315_v36 = vpop.f32.mrb[126].mxu1  ;;  %v1895_v1 = vpop.f32.mrb[127].mxu0 }
 0x1e3   : > { %v1965_v42 = vpop.f32.mrb[127].mxu1 }
 0x1e4   : > { %v1404_v20 = vadd.f32 %v2501_v38, %v1363_v34  ;;  %v1364_v58 = vadd.f32 %v1315_v36, %v1048_v35 }
 0x1e6   : > { %v1438_v16 = vmax.f32 %v1404_v20, 0.0  ;;  %v1405_v28 = vadd.f32 %v2501_v38, %v1364_v58 }
 0x1e7   : > { %v1004_v24 = vpop.f32.mrb[128].mxu0 }
 0x1e8   : > { %1473 = vst.msk [vmem:[%s2508_s4 + $0xe0] sm:$0xff] %vm1444_vm3, %v1438_v16  ;;  %v1439_v44 = vmax.f32 %v1405_v28, 0.0  ;;  %v1049_v6 = vadd.f32 %v1004_v24, %v2488_v50  ;;  %v1320_v46 = vpop.f32.mrb[128].mxu1  ;;  %v1898_v32 = vpop.f32.mrb[129].mxu0 }
 0x1e9   : > { %v1968_v40 = vpop.f32.mrb[129].mxu1  ;;  %v1007_v47 = vpop.f32.mrb[130].mxu0 }
 0x1ea   : > { %1474 = vst.msk [vmem:[%s2508_s4 + $0xe8] sm:$0xff] %vm1444_vm3, %v1439_v44  ;;  %v1365_v63 = vadd.f32 %v1320_v46, %v1049_v6  ;;  %v1050_v51 = vadd.f32 %v1007_v47, %v2490_v59  ;;  %v1323_v56 = vpop.f32.mrb[130].mxu1  ;;  %v1899_v53 = vpop.f32.mrb[131].mxu0 }
 0x1eb   : > { %v1969_v29 = vpop.f32.mrb[131].mxu1 }
 0x1ec   : > { %v1406_v52 = vadd.f32 %v2501_v38, %v1365_v63  ;;  %v1366_v57 = vadd.f32 %v1323_v56, %v1050_v51 }
 0x1ee   : > { %v1440_v49 = vmax.f32 %v1406_v52, 0.0  ;;  %v1407_v50 = vadd.f32 %v2501_v38, %v1366_v57 }
 0x1ef   : > { %v1012_v19 = vpop.f32.mrb[132].mxu0 }
 0x1f0   : > { %1475 = vst.msk [vmem:[%s2508_s4 + $0xf0] sm:$0xff] %vm1444_vm3, %v1440_v49  ;;  %v1441_v60 = vmax.f32 %v1407_v50, 0.0  ;;  %v1051_v0 = vadd.f32 %v1012_v19, %v2492_v31  ;;  %v1328_v62 = vpop.f32.mrb[132].mxu1  ;;  %v1902_v59 = vpop.f32.mrb[133].mxu0 }
 0x1f1   : > { %v1972_v39 = vpop.f32.mrb[133].mxu1  ;;  %v1015_v25 = vpop.f32.mrb[134].mxu0 }
 0x1f2   : > { %1476 = vst.msk [vmem:[%s2508_s4 + $0xf8] sm:$0xff] %vm1444_vm3, %v1441_v60  ;;  %v1367_v14 = vadd.f32 %v1328_v62, %v1051_v0  ;;  %v1052_v3 = vadd.f32 %v1015_v25, %v2494_v8  ;;  %v1331_v37 = vpop.f32.mrb[134].mxu1  ;;  %v1903_v5 = vpop.f32.mrb[135].mxu0 }
 0x1f3   : > { %v1973_v7 = vpop.f32.mrb[135].mxu1 }
 0x1f4   : > { %v1408_v2 = vadd.f32 %v2501_v38, %v1367_v14  ;;  %v1368_v43 = vadd.f32 %v1331_v37, %v1052_v3 }
 0x1f6   : > { %v1442_v41 = vmax.f32 %v1408_v2, 0.0  ;;  %v1409_v11 = vadd.f32 %v2501_v38, %v1368_v43 }
 0x1f8   : > { %1477 = vst.msk [vmem:[%s2508_s4 + $0x100] sm:$0xff] %vm1444_vm3, %v1442_v41  ;;  %v1443_v31 = vmax.f32 %v1409_v11, 0.0 }
 0x1fa   : > { %1478 = vst.msk [vmem:[%s2508_s4 + $0x108] sm:$0xff] %vm1444_vm3, %v1443_v31 }
 0x1fb PF: > { %s13_s12 = sadd.s32 1, %s1996_s12  }
 0x1fc   : > { %p10_p4 = scmp.ge.s32.totalorder %s13_s12, 4  }
 0x1fe   :  { %12 = sbr.rel (!%p10_p4) target bundleno = 1 (0x1), region = 65 }

// kernel: cnn_vae_forward.9
= control target key start
LH: loop header
LB: loop body
LE: loop exit
PB: predicated region body
PF: predicated region fallthrough
CT: control target
= control target key end

     0   :  { %s976_s12 = smov 0   ;;  %s1168_s0 = inlined_call_operand.vmem [shape: f32[2,89,32], index: 0, kind: input, shape index: {}]   ;;  %s1169_s1 = inlined_call_operand.vmem [shape: bf16[4,32,16], index: 1, kind: input, shape index: {}]   ;;  %s1170_s2 = inlined_call_operand.vmem [shape: f32[1,16], index: 2, kind: input, shape index: {}]   ;;  %s1171_s3 = inlined_call_operand.vmem [shape: f32[2,72,16], index: 3, kind: output, shape index: {}]  }
   0x1 LB: > { %s752_s13 = sadd.s32 4294967295, %s952_s12   ;;  %p756_p0 = scmp.ge.s32.totalorder %s952_s12, 1  ;;  %s952_s12 = sphi %s976_s12, %s13_s12  }
   0x2   : > { %p137_p1 = scmp.lt.s32.totalorder %s952_s12, 3 }
   0x4   : > { %p138_p2 = pnand %p756_p0, %p137_p1 }
   0x5   : > { %v938_v0 = vld [vmem:[%s1169_s1 + $0x10] sm:$0xff] (!%p138_p2)   ;;  %v954_v1 = vmov (!%p138_p2), 0.0   ;;  %v939_v2 = vld [vmem:[%s1169_s1] sm:$0xff] (!%p138_p2)   ;;  %v940_v3 = vld [vmem:[%s1169_s1 + $0x18] sm:$0xff] (!%p138_p2)   ;;  %vm955_vm0 = vmmov (!%p138_p2), 0   ;;  %p161_p3 = scmp.lt.s32.totalorder (!%p138_p2), %s752_s13, 1 }
   0x6   : > { %141 = sbr.rel (%p138_p2) target bundleno = 313 (0x139), region = 32  ;;  %830 = vmatprep.subr.bf16.mxu0 (!%p138_p2), %v954_v1  ;;  %854 = vmatprep.subr.bf16.mxu1 (!%p138_p2), %v954_v1  ;;  %v941_v4 = vld [vmem:[%s1169_s1 + $0x8] sm:$0xff] (!%p138_p2)   ;;  %v942_v5 = vld [vmem:[%s1169_s1 + $0x20] sm:$0xff] (!%p138_p2)   ;;  %vm221_vm1 = vcmask (!%p138_p2), 261120   ;;  %v943_v11 = vld [vmem:[%s1169_s1 + $0x30] sm:$0xff] (!%p138_p2)   ;;  %vm687_vm2 = vcmask (!%p138_p2), 130048  }
   0x7   : > { %831 = vmatpush3.bf16.msra.mxu0 (!%p138_p2), %v938_v0  ;;  %834 = vmatprep.mubr.msk.bf16.mxu0 (!%p138_p2), %vm955_vm0, %v954_v1  ;;  %v944_v15 = vld [vmem:[%s1169_s1 + $0x28] sm:$0xff] (!%p138_p2)   ;;  %v945_v18 = vld [vmem:[%s1169_s1 + $0x38] sm:$0xff] (!%p138_p2)  }
   0x8   : > { %855 = vmatpush3.bf16.msra.mxu1 (!%p138_p2), %v939_v2  ;;  %832 = vmatprep.subr.bf16.mxu0 (!%p138_p2), %v954_v1 }
   0x9   : > { %856 = vmatprep.subr.bf16.mxu1 (!%p138_p2), %v954_v1  ;;  %858 = vmatprep.mubr.msk.bf16.mxu1 (!%p138_p2), %vm955_vm0, %v954_v1 }
   0xb   : > { %833 = vmatpush3.bf16.msra.mxu0 (!%p138_p2), %v940_v3 }
   0xc   : > { %857 = vmatpush3.bf16.msra.mxu1 (!%p138_p2), %v941_v4  ;;  %878 = vmatprep.subr.bf16.mxu0 (!%p138_p2), %v954_v1 }
   0xd   : > { %s1173_s13 = smov (!%p161_p3, %s752_s13), 1  ;;  %902 = vmatprep.subr.bf16.mxu1 %v954_v1 }
   0xe   : > { %s926_s22 = smul.u32 96, %s1173_s13 }
   0xf   : > { %s927_s7 = smul.u32 72, %s1173_s13 }
  0x10   : > { %s1011_s25 = scalar_lea.vmem %s1168_s0, %s926_s22 }
  0x11   : > { %v190_v6 = vld [vmem:[%s1011_s25 + $0x1] sm:$0xff]  ;;  %v191_v7 = vld [vmem:[%s1011_s25 + $0x9] sm:$0xff]  ;;  %v192_v13 = vld [vmem:[%s1011_s25 + $0x11] sm:$0xff]  ;;  %s1132_s14 = scalar_lea.vmem %s1171_s3, %s927_s7 }
  0x12   : > { %v172_v8 = vld [vmem:[%s1011_s25] sm:$0xff]  ;;  %v199_v9 = vpack.c.bf16 %v191_v7, %v190_v6  ;;  %v173_v10 = vld [vmem:[%s1011_s25 + $0x8] sm:$0xff]  ;;  %v174_v16 = vld [vmem:[%s1011_s25 + $0x10] sm:$0xff]  ;;  %v417_v39 = vpack.c.bf16 %v192_v13, %v191_v7 }
  0x13   : > { %v181_v12 = vpack.c.bf16 %v173_v10, %v172_v8  ;;  %v193_v14 = vld [vmem:[%s1011_s25 + $0x19] sm:$0xff]  ;;  %v194_v21 = vld [vmem:[%s1011_s25 + $0x21] sm:$0xff]  ;;  %v195_v22 = vld [vmem:[%s1011_s25 + $0x29] sm:$0xff] }
  0x14   : > { %835 = vmatmul.mubr.msk.bf16.vlgmr.msra.gmra.mrb[0].mxu0 %vm221_vm1, %v199_v9  ;;  %v175_v17 = vld [vmem:[%s1011_s25 + $0x18] sm:$0xff]  ;;  %v200_v19 = vpack.c.bf16 %v193_v14, %v192_v13  ;;  %v176_v23 = vld [vmem:[%s1011_s25 + $0x20] sm:$0xff]  ;;  %v177_v24 = vld [vmem:[%s1011_s25 + $0x28] sm:$0xff]  ;;  %v201_v25 = vpack.c.bf16 %v195_v22, %v194_v21  ;;  %v418_v43 = vpack.c.bf16 %v194_v21, %v193_v14 }
  0x15   : > { %859 = vmatmul.mubr.msk.bf16.vlgmr.msra.gmra.mrb[0].mxu1 %vm221_vm1, %v181_v12  ;;  %879 = vmatpush3.bf16.msra.mxu0 %v942_v5  ;;  %v182_v20 = vpack.c.bf16 %v175_v17, %v174_v16  ;;  %v183_v26 = vpack.c.bf16 %v177_v24, %v176_v23  ;;  %v196_v27 = vld [vmem:[%s1011_s25 + $0x31] sm:$0xff]  ;;  %v197_v28 = vld [vmem:[%s1011_s25 + $0x39] sm:$0xff]  ;;  %v198_v33 = vld [vmem:[%s1011_s25 + $0x41] sm:$0xff] }
  0x16   : > { %903 = vmatpush3.bf16.msra.mxu1 %v943_v11  ;;  %838 = vmatprep.mubr.msk.bf16.mxu0 %vm955_vm0, %v954_v1  ;;  %v178_v29 = vld [vmem:[%s1011_s25 + $0x30] sm:$0xff]  ;;  %v179_v30 = vld [vmem:[%s1011_s25 + $0x38] sm:$0xff]  ;;  %v202_v31 = vpack.c.bf16 %v197_v28, %v196_v27  ;;  %v180_v34 = vld [vmem:[%s1011_s25 + $0x40] sm:$0xff]  ;;  %v203_v35 = vpack.c.bf16 %v198_v33, %v198_v33  ;;  %v419_v47 = vpack.c.bf16 %v196_v27, %v195_v22 }
  0x17   : > { %862 = vmatprep.mubr.msk.bf16.mxu1 %vm955_vm0, %v954_v1  ;;  %880 = vmatprep.subr.bf16.mxu0 %v954_v1  ;;  %v184_v32 = vpack.c.bf16 %v179_v30, %v178_v29  ;;  %v185_v36 = vpack.c.bf16 %v180_v34, %v180_v34  ;;  %v535_v37 = vld [vmem:[%s1011_s25 + $0xa] sm:$0xff]  ;;  %v536_v38 = vld [vmem:[%s1011_s25 + $0x12] sm:$0xff]  ;;  %v537_v41 = vld [vmem:[%s1011_s25 + $0x1a] sm:$0xff]  ;;  %v420_v51 = vpack.c.bf16 %v198_v33, %v197_v28 }
  0x18   : > { %904 = vmatprep.subr.bf16.mxu1 %v954_v1  ;;  %v544_v40 = vpack.c.bf16 %v536_v38, %v535_v37  ;;  %v538_v42 = vld [vmem:[%s1011_s25 + $0x22] sm:$0xff]  ;;  %v539_v45 = vld [vmem:[%s1011_s25 + $0x2a] sm:$0xff]  ;;  %v540_v46 = vld [vmem:[%s1011_s25 + $0x32] sm:$0xff] }
  0x19   : > { %881 = vmatpush3.bf16.msra.mxu0 %v944_v15  ;;  %v545_v44 = vpack.c.bf16 %v538_v42, %v537_v41  ;;  %v546_v48 = vpack.c.bf16 %v540_v46, %v539_v45  ;;  %v541_v49 = vld [vmem:[%s1011_s25 + $0x3a] sm:$0xff]  ;;  %v542_v50 = vld [vmem:[%s1011_s25 + $0x42] sm:$0xff]  ;;  %v543_v54 = vld [vmem:[%s1011_s25 + $0x4a] sm:$0xff] }
  0x1a   : > { %905 = vmatpush3.bf16.msra.mxu1 %v945_v18  ;;  %v547_v52 = vpack.c.bf16 %v542_v50, %v541_v49  ;;  %v416_v53 = vld [vmem:[%s1011_s25 + $0x49] sm:$0xff]  ;;  %v548_v56 = vpack.c.bf16 %v543_v54, %v543_v54  ;;  %v1126_v46 = vld [vmem:[%s1170_s2] ss:$0 sm:$0xff] }
  0x1b   : > { %v421_v55 = vpack.c.bf16 %v416_v53, %v416_v53 }
  0x1c   : > { %839 = vmatmul.mubr.msk.bf16.gmra.mrb[4].mxu0 %vm221_vm1, %v200_v19 }
  0x1d   : > { %863 = vmatmul.mubr.msk.bf16.gmra.mrb[4].mxu1 %vm221_vm1, %v182_v20  ;;  %842 = vmatprep.mubr.msk.bf16.mxu0 %vm955_vm0, %v954_v1 }
  0x1e   : > { %866 = vmatprep.mubr.msk.bf16.mxu1 %vm955_vm0, %v954_v1 }
  0x24   : > { %843 = vmatmul.mubr.msk.bf16.gmra.mrb[8].mxu0 %vm221_vm1, %v201_v25 }
  0x25   : > { %867 = vmatmul.mubr.msk.bf16.gmra.mrb[8].mxu1 %vm221_vm1, %v183_v26  ;;  %846 = vmatprep.mubr.msk.bf16.mxu0 %vm955_vm0, %v954_v1 }
  0x26   : > { %870 = vmatprep.mubr.msk.bf16.mxu1 %vm955_vm0, %v954_v1 }
  0x2c   : > { %847 = vmatmul.mubr.msk.bf16.gmra.mrb[12].mxu0 %vm221_vm1, %v202_v31 }
  0x2d   : > { %871 = vmatmul.mubr.msk.bf16.gmra.mrb[12].mxu1 %vm221_vm1, %v184_v32  ;;  %850 = vmatprep.mubr.msk.bf16.mxu0 %vm955_vm0, %v954_v1 }
  0x2e   : > { %874 = vmatprep.mubr.msk.bf16.mxu1 %vm955_vm0, %v954_v1 }
  0x34   : > { %851 = vmatmul.mubr.msk.bf16.gmra.mrb[16].mxu0 %vm221_vm1, %v203_v35 }
  0x35   : > { %875 = vmatmul.mubr.msk.bf16.gmra.mrb[16].mxu1 %vm221_vm1, %v185_v36  ;;  %882 = vmatprep.mubr.msk.bf16.mxu0 %vm955_vm0, %v954_v1 }
  0x36   : > { %906 = vmatprep.mubr.msk.bf16.mxu1 %vm955_vm0, %v954_v1 }
  0x3c   : > { %883 = vmatmul.mubr.msk.bf16.vlgmr.msra.gmra.mrb[20].mxu0 %vm221_vm1, %v417_v39 }
  0x3d   : > { %907 = vmatmul.mubr.msk.bf16.vlgmr.msra.gmra.mrb[20].mxu1 %vm221_vm1, %v544_v40  ;;  %886 = vmatprep.mubr.msk.bf16.mxu0 %vm955_vm0, %v954_v1 }
  0x3e   : > { %910 = vmatprep.mubr.msk.bf16.mxu1 %vm955_vm0, %v954_v1 }
  0x44   : > { %887 = vmatmul.mubr.msk.bf16.gmra.mrb[24].mxu0 %vm221_vm1, %v418_v43 }
  0x45   : > { %911 = vmatmul.mubr.msk.bf16.gmra.mrb[24].mxu1 %vm221_vm1, %v545_v44  ;;  %890 = vmatprep.mubr.msk.bf16.mxu0 %vm955_vm0, %v954_v1 }
  0x46   : > { %914 = vmatprep.mubr.msk.bf16.mxu1 %vm955_vm0, %v954_v1 }
  0x4c   : > { %891 = vmatmul.mubr.msk.bf16.gmra.mrb[28].mxu0 %vm221_vm1, %v419_v47 }
  0x4d   : > { %915 = vmatmul.mubr.msk.bf16.gmra.mrb[28].mxu1 %vm221_vm1, %v546_v48  ;;  %894 = vmatprep.mubr.msk.bf16.mxu0 %vm955_vm0, %v954_v1 }
  0x4e   : > { %918 = vmatprep.mubr.msk.bf16.mxu1 %vm955_vm0, %v954_v1 }
  0x54   : > { %895 = vmatmul.mubr.msk.bf16.gmra.mrb[32].mxu0 %vm221_vm1, %v420_v51 }
  0x55   : > { %919 = vmatmul.mubr.msk.bf16.gmra.mrb[32].mxu1 %vm221_vm1, %v547_v52  ;;  %898 = vmatprep.mubr.msk.bf16.mxu0 %vm955_vm0, %v954_v1 }
  0x56   : > { %922 = vmatprep.mubr.msk.bf16.mxu1 %vm955_vm0, %v954_v1 }
  0x5c   : > { %899 = vmatmul.mubr.msk.bf16.gmra.mrb[36].mxu0 %vm221_vm1, %v421_v55 }
  0x5d   : > { %923 = vmatmul.mubr.msk.bf16.gmra.mrb[36].mxu1 %vm221_vm1, %v548_v56 }
  0xe7   : > { %v271_v57 = vpop.f32.mrb[0].mxu0 }
  0xe8   : > { %v370_v58 = vpop.f32.mrb[0].mxu1  ;;  %v836_v59 = vpop.f32.mrb[1].mxu0 }
  0xe9   : > { %v371_v60 = vadd.f32 %v370_v58, %v271_v57  ;;  %v860_v61 = vpop.f32.mrb[1].mxu1  ;;  %v274_v62 = vpop.f32.mrb[2].mxu0 }
  0xea   : > { %v373_v63 = vpop.f32.mrb[2].mxu1  ;;  %v837_v0 = vpop.f32.mrb[3].mxu0 }
  0xeb   : > { %v374_v2 = vadd.f32 %v373_v63, %v274_v62  ;;  %v861_v3 = vpop.f32.mrb[3].mxu1 }
  0xef   : > { %v279_v4 = vpop.f32.mrb[4].mxu0 }
  0xf0   : > { %v378_v5 = vpop.f32.mrb[4].mxu1  ;;  %v840_v1 = vpop.f32.mrb[5].mxu0 }
  0xf1   : > { %v379_v6 = vadd.f32 %v378_v5, %v279_v4  ;;  %v864_v7 = vpop.f32.mrb[5].mxu1  ;;  %v282_v8 = vpop.f32.mrb[6].mxu0 }
  0xf2   : > { %v381_v9 = vpop.f32.mrb[6].mxu1  ;;  %v841_v10 = vpop.f32.mrb[7].mxu0 }
  0xf3   : > { %v382_v11 = vadd.f32 %v381_v9, %v282_v8  ;;  %v865_v12 = vpop.f32.mrb[7].mxu1 }
  0xf7   : > { %v287_v13 = vpop.f32.mrb[8].mxu0 }
  0xf8   : > { %v386_v14 = vpop.f32.mrb[8].mxu1  ;;  %v844_v15 = vpop.f32.mrb[9].mxu0 }
  0xf9   : > { %v1112_v16 = vadd.f32 %v386_v14, %v287_v13  ;;  %v868_v17 = vpop.f32.mrb[9].mxu1  ;;  %v290_v18 = vpop.f32.mrb[10].mxu0 }
  0xfa   : > { %v389_v19 = vpop.f32.mrb[10].mxu1  ;;  %v845_v20 = vpop.f32.mrb[11].mxu0 }
  0xfb   : > { %v1114_v21 = vadd.f32 %v389_v19, %v290_v18  ;;  %v869_v22 = vpop.f32.mrb[11].mxu1 }
  0xff   : > { %v295_v23 = vpop.f32.mrb[12].mxu0 }
 0x100   : > { %v394_v24 = vpop.f32.mrb[12].mxu1  ;;  %v848_v25 = vpop.f32.mrb[13].mxu0 }
 0x101   : > { %v1116_v26 = vadd.f32 %v394_v24, %v295_v23  ;;  %v872_v27 = vpop.f32.mrb[13].mxu1  ;;  %v298_v28 = vpop.f32.mrb[14].mxu0 }
 0x102   : > { %v397_v29 = vpop.f32.mrb[14].mxu1  ;;  %v849_v30 = vpop.f32.mrb[15].mxu0 }
 0x103   : > { %v1118_v31 = vadd.f32 %v397_v29, %v298_v28  ;;  %v873_v32 = vpop.f32.mrb[15].mxu1 }
 0x107   : > { %v303_v33 = vpop.f32.mrb[16].mxu0 }
 0x108   : > { %v402_v34 = vpop.f32.mrb[16].mxu1  ;;  %v852_v35 = vpop.f32.mrb[17].mxu0 }
 0x109   : > { %v1120_v36 = vadd.f32 %v402_v34, %v303_v33  ;;  %v876_v37 = vpop.f32.mrb[17].mxu1  ;;  %v306_v38 = vpop.f32.mrb[18].mxu0 }
 0x10a   : > { %v405_v39 = vpop.f32.mrb[18].mxu1  ;;  %v853_v40 = vpop.f32.mrb[19].mxu0 }
 0x10b   : > { %v877_v41 = vpop.f32.mrb[19].mxu1 }
 0x10f   : > { %v488_v42 = vpop.f32.mrb[20].mxu0 }
 0x110   : > { %v526_v43 = vadd.f32 %v488_v42, %v371_v60  ;;  %v615_v44 = vpop.f32.mrb[20].mxu1  ;;  %v884_v45 = vpop.f32.mrb[21].mxu0 }
 0x111   : > { %v908_v47 = vpop.f32.mrb[21].mxu1  ;;  %v491_v48 = vpop.f32.mrb[22].mxu0 }
 0x112   : > { %v653_v49 = vadd.f32 %v615_v44, %v526_v43  ;;  %v527_v50 = vadd.f32 %v491_v48, %v374_v2  ;;  %v618_v51 = vpop.f32.mrb[22].mxu1  ;;  %v885_v52 = vpop.f32.mrb[23].mxu0 }
 0x113   : > { %v909_v53 = vpop.f32.mrb[23].mxu1 }
 0x114   : > { %v669_v54 = vadd.f32 %v1126_v46, %v653_v49  ;;  %v654_v55 = vadd.f32 %v618_v51, %v527_v50 }
 0x116   : > { %v678_v56 = vmax.f32 %v669_v54, 0.0  ;;  %v670_v57 = vadd.f32 %v1126_v46, %v654_v55 }
 0x117   : > { %v496_v58 = vpop.f32.mrb[24].mxu0 }
 0x118   : > { %688 = vst.msk [vmem:[%s1132_s14] sm:$0xff] %vm687_vm2, %v678_v56  ;;  %v679_v59 = vmax.f32 %v670_v57, 0.0  ;;  %v528_v60 = vadd.f32 %v496_v58, %v379_v6  ;;  %v623_v61 = vpop.f32.mrb[24].mxu1  ;;  %v888_v62 = vpop.f32.mrb[25].mxu0 }
 0x119   : > { %v912_v63 = vpop.f32.mrb[25].mxu1  ;;  %v499_v0 = vpop.f32.mrb[26].mxu0 }
 0x11a   : > { %689 = vst.msk [vmem:[%s1132_s14 + $0x8] sm:$0xff] %vm687_vm2, %v679_v59  ;;  %v655_v2 = vadd.f32 %v623_v61, %v528_v60  ;;  %v529_v3 = vadd.f32 %v499_v0, %v382_v11  ;;  %v626_v4 = vpop.f32.mrb[26].mxu1  ;;  %v889_v5 = vpop.f32.mrb[27].mxu0 }
 0x11b   : > { %v913_v1 = vpop.f32.mrb[27].mxu1 }
 0x11c   : > { %v671_v7 = vadd.f32 %v1126_v46, %v655_v2  ;;  %v656_v8 = vadd.f32 %v626_v4, %v529_v3 }
 0x11e   : > { %v680_v9 = vmax.f32 %v671_v7, 0.0  ;;  %v672_v10 = vadd.f32 %v1126_v46, %v656_v8 }
 0x11f   : > { %v504_v6 = vpop.f32.mrb[28].mxu0 }
 0x120   : > { %690 = vst.msk [vmem:[%s1132_s14 + $0x10] sm:$0xff] %vm687_vm2, %v680_v9  ;;  %v681_v12 = vmax.f32 %v672_v10, 0.0  ;;  %v530_v13 = vadd.f32 %v504_v6, %v1112_v16  ;;  %v631_v14 = vpop.f32.mrb[28].mxu1  ;;  %v892_v15 = vpop.f32.mrb[29].mxu0 }
 0x121   : > { %v916_v11 = vpop.f32.mrb[29].mxu1  ;;  %v507_v17 = vpop.f32.mrb[30].mxu0 }
 0x122   : > { %691 = vst.msk [vmem:[%s1132_s14 + $0x18] sm:$0xff] %vm687_vm2, %v681_v12  ;;  %v657_v18 = vadd.f32 %v631_v14, %v530_v13  ;;  %v531_v19 = vadd.f32 %v507_v17, %v1114_v21  ;;  %v634_v20 = vpop.f32.mrb[30].mxu1  ;;  %v893_v22 = vpop.f32.mrb[31].mxu0 }
 0x123   : > { %v917_v23 = vpop.f32.mrb[31].mxu1 }
 0x124   : > { %v673_v24 = vadd.f32 %v1126_v46, %v657_v18  ;;  %v658_v25 = vadd.f32 %v634_v20, %v531_v19 }
 0x126   : > { %v682_v27 = vmax.f32 %v673_v24, 0.0  ;;  %v674_v16 = vadd.f32 %v1126_v46, %v658_v25 }
 0x127   : > { %v512_v28 = vpop.f32.mrb[32].mxu0 }
 0x128   : > { %692 = vst.msk [vmem:[%s1132_s14 + $0x20] sm:$0xff] %vm687_vm2, %v682_v27  ;;  %v683_v29 = vmax.f32 %v674_v16, 0.0  ;;  %v532_v30 = vadd.f32 %v512_v28, %v1116_v26  ;;  %v639_v32 = vpop.f32.mrb[32].mxu1  ;;  %v896_v33 = vpop.f32.mrb[33].mxu0 }
 0x129   : > { %v920_v21 = vpop.f32.mrb[33].mxu1  ;;  %v515_v34 = vpop.f32.mrb[34].mxu0 }
 0x12a   : > { %693 = vst.msk [vmem:[%s1132_s14 + $0x28] sm:$0xff] %vm687_vm2, %v683_v29  ;;  %v659_v35 = vadd.f32 %v639_v32, %v532_v30  ;;  %v533_v37 = vadd.f32 %v515_v34, %v1118_v31  ;;  %v642_v38 = vpop.f32.mrb[34].mxu1  ;;  %v897_v39 = vpop.f32.mrb[35].mxu0 }
 0x12b   : > { %v921_v40 = vpop.f32.mrb[35].mxu1 }
 0x12c   : > { %v675_v41 = vadd.f32 %v1126_v46, %v659_v35  ;;  %v660_v42 = vadd.f32 %v642_v38, %v533_v37 }
 0x12e   : > { %v684_v43 = vmax.f32 %v675_v41, 0.0  ;;  %v676_v26 = vadd.f32 %v1126_v46, %v660_v42 }
 0x12f   : > { %v520_v44 = vpop.f32.mrb[36].mxu0 }
 0x130   : > { %694 = vst.msk [vmem:[%s1132_s14 + $0x30] sm:$0xff] %vm687_vm2, %v684_v43  ;;  %v685_v45 = vmax.f32 %v676_v26, 0.0  ;;  %v534_v47 = vadd.f32 %v520_v44, %v1120_v36  ;;  %v647_v48 = vpop.f32.mrb[36].mxu1  ;;  %v900_v49 = vpop.f32.mrb[37].mxu0 }
 0x131   : > { %v924_v31 = vpop.f32.mrb[37].mxu1  ;;  %v523_v50 = vpop.f32.mrb[38].mxu0 }
 0x132   : > { %695 = vst.msk [vmem:[%s1132_s14 + $0x38] sm:$0xff] %vm687_vm2, %v685_v45  ;;  %v661_v51 = vadd.f32 %v647_v48, %v534_v47  ;;  %v650_v52 = vpop.f32.mrb[38].mxu1  ;;  %v901_v53 = vpop.f32.mrb[39].mxu0 }
 0x133   : > { %v925_v54 = vpop.f32.mrb[39].mxu1 }
 0x134   : > { %v677_v55 = vadd.f32 %v1126_v46, %v661_v51 }
 0x136   : > { %v686_v56 = vmax.f32 %v677_v55, 0.0 }
 0x138   : > { %696 = vst.msk [vmem:[%s1132_s14 + $0x40] sm:$0xff] %vm687_vm2, %v686_v56 }
 0x139 PF: > { %s13_s12 = sadd.s32 1, %s952_s12  }
 0x13a   : > { %p10_p4 = scmp.ge.s32.totalorder %s13_s12, 4  }
 0x13c   :  { %12 = sbr.rel (!%p10_p4) target bundleno = 1 (0x1), region = 65 }

// kernel: cnn_vae_forward.10
= control target key start
LH: loop header
LB: loop body
LE: loop exit
PB: predicated region body
PF: predicated region fallthrough
CT: control target
= control target key end

     0   :  { %s803_s12 = smov 0   ;;  %s897_s0 = inlined_call_operand.vmem [shape: f32[2,33,64], index: 0, kind: input, shape index: {}]   ;;  %s898_s1 = inlined_call_operand.vmem [shape: bf16[4,64,32], index: 1, kind: input, shape index: {}]   ;;  %s899_s2 = inlined_call_operand.vmem [shape: f32[1,32], index: 2, kind: input, shape index: {}]   ;;  %s900_s3 = inlined_call_operand.vmem [shape: f32[2,20,32], index: 3, kind: output, shape index: {}]  }
   0x1 LB: > { %s619_s13 = sadd.s32 4294967295, %s781_s12   ;;  %p623_p0 = scmp.ge.s32.totalorder %s781_s12, 1  ;;  %s781_s12 = sphi %s803_s12, %s13_s12  }
   0x2   : > { %p137_p1 = scmp.lt.s32.totalorder %s781_s12, 3 }
   0x4   : > { %p138_p2 = pnand %p623_p0, %p137_p1 }
   0x5   : > { %v759_v0 = vld [vmem:[%s898_s1 + $0x20] sm:$0xff] (!%p138_p2)   ;;  %p161_p3 = scmp.lt.s32.totalorder (!%p138_p2), %s619_s13, 1  ;;  %v761_v2 = vld [vmem:[%s898_s1 + $0x28] sm:$0xff] (!%p138_p2)   ;;  %v763_v4 = vld [vmem:[%s898_s1 + $0x30] sm:$0xff] (!%p138_p2)   ;;  %vm223_vm0 = vcmask (!%p138_p2), 523264   ;;  %vm562_vm1 = vcmask (!%p138_p2), 257024  }
   0x6   : > { %141 = sbr.rel (%p138_p2) target bundleno = 262 (0x106), region = 32  ;;  %v760_v1 = vld [vmem:[%s898_s1] sm:$0xff] (!%p138_p2)   ;;  %701 = vmatprep.subr.bf16.mxu0 (!%p138_p2), %v759_v0  ;;  %v762_v3 = vld [vmem:[%s898_s1 + $0x8] sm:$0xff] (!%p138_p2)   ;;  %v764_v5 = vld [vmem:[%s898_s1 + $0x10] sm:$0xff] (!%p138_p2)   ;;  %vm559_vm2 = vcmask (!%p138_p2), 261120  }
   0x7   : > { %713 = vmatprep.subr.bf16.mxu1 (!%p138_p2), %v760_v1  ;;  %702 = vmatpush3.bf16.msra.mxu0 (!%p138_p2), %v759_v0  ;;  %v765_v6 = vld [vmem:[%s898_s1 + $0x38] sm:$0xff] (!%p138_p2)   ;;  %v767_v16 = vld [vmem:[%s898_s1 + $0x40] sm:$0xff] (!%p138_p2)   ;;  %v769_v20 = vld [vmem:[%s898_s1 + $0x48] sm:$0xff] (!%p138_p2)  }
   0x8   : > { %714 = vmatpush3.bf16.msra.mxu1 (!%p138_p2), %v760_v1  ;;  %703 = vmatprep.subr.bf16.mxu0 (!%p138_p2), %v761_v2  ;;  %v766_v10 = vld [vmem:[%s898_s1 + $0x18] sm:$0xff] (!%p138_p2)   ;;  %v768_v17 = vld [vmem:[%s898_s1 + $0x60] sm:$0xff] (!%p138_p2)   ;;  %v770_v21 = vld [vmem:[%s898_s1 + $0x68] sm:$0xff] (!%p138_p2)  }
   0x9   : > { %715 = vmatprep.subr.bf16.mxu1 (!%p138_p2), %v762_v3  ;;  %v771_v27 = vld [vmem:[%s898_s1 + $0x50] sm:$0xff] (!%p138_p2)   ;;  %v773_v30 = vld [vmem:[%s898_s1 + $0x58] sm:$0xff] (!%p138_p2)   ;;  %v674_v51 = vld [vmem:[%s899_s2] ss:$0 sm:$0xff] (!%p138_p2) }
   0xa   : > { %v772_v29 = vld [vmem:[%s898_s1 + $0x70] sm:$0xff] (!%p138_p2)   ;;  %v774_v31 = vld [vmem:[%s898_s1 + $0x78] sm:$0xff] (!%p138_p2)  }
   0xb   : > { %704 = vmatpush3.bf16.msra.mxu0 (!%p138_p2), %v761_v2 }
   0xc   : > { %716 = vmatpush3.bf16.msra.mxu1 (!%p138_p2), %v762_v3  ;;  %705 = vmatprep.subr.bf16.mxu0 (!%p138_p2), %v763_v4 }
   0xd   : > { %s902_s13 = smov (!%p161_p3, %s619_s13), 1  ;;  %717 = vmatprep.subr.bf16.mxu1 %v764_v5 }
   0xe   : > { %s749_s24 = smul.u32 40, %s902_s13 }
   0xf   : > { %706 = vmatpush3.bf16.msra.mxu0 %v763_v4  ;;  %s750_s25 = smul.u32 24, %s902_s13 }
  0x10   : > { %s835_s29 = scalar_lea.vmem %s897_s0, %s749_s24  ;;  %718 = vmatpush3.bf16.msra.mxu1 %v764_v5  ;;  %707 = vmatprep.subr.bf16.mxu0 %v765_v6 }
  0x11   : > { %v185_v7 = vld [vmem:[%s835_s29 + $0x1] sm:$0xff]  ;;  %v186_v8 = vld [vmem:[%s835_s29 + $0x9] sm:$0xff]  ;;  %v187_v14 = vld [vmem:[%s835_s29 + $0x11] sm:$0xf]  ;;  %719 = vmatprep.subr.bf16.mxu1 %v766_v10  ;;  %s170_s30 = scalar_lea.vmem %s900_s3, %s750_s25 }
  0x12   : > { %v172_v9 = vld [vmem:[%s835_s29] sm:$0xff]  ;;  %v188_v11 = vpack.c.bf16 %v186_v8, %v185_v7  ;;  %v173_v12 = vld [vmem:[%s835_s29 + $0x8] sm:$0xff]  ;;  %v174_v15 = vld [vmem:[%s835_s29 + $0x10] sm:$0xf]  ;;  %v189_v18 = vpack.c.bf16 %v187_v14, %v187_v14 }
  0x13   : > { %v175_v13 = vpack.c.bf16 %v173_v12, %v172_v9  ;;  %708 = vmatpush3.bf16.msra.mxu0 %v765_v6  ;;  %v176_v19 = vpack.c.bf16 %v174_v15, %v174_v15  ;;  %v356_v22 = vld [vmem:[%s835_s29 + $0x5] sm:$0xff]  ;;  %v357_v23 = vld [vmem:[%s835_s29 + $0xd] sm:$0xff]  ;;  %v358_v32 = vld [vmem:[%s835_s29 + $0x15] sm:$0xf] }
  0x14   : > { %709 = vmatprep.mubr.msk.bf16.mxu0 %vm223_vm0, %v188_v11  ;;  %720 = vmatpush3.bf16.msra.mxu1 %v766_v10  ;;  %v451_v24 = vld [vmem:[%s835_s29 + $0x6] sm:$0xff]  ;;  %v359_v25 = vpack.c.bf16 %v357_v23, %v356_v22  ;;  %v452_v26 = vld [vmem:[%s835_s29 + $0xe] sm:$0xff]  ;;  %v453_v33 = vld [vmem:[%s835_s29 + $0x16] sm:$0xf]  ;;  %v360_v34 = vpack.c.bf16 %v358_v32, %v358_v32 }
  0x15   : > { %721 = vmatprep.mubr.msk.bf16.mxu1 %vm223_vm0, %v175_v13  ;;  %725 = vmatprep.subr.bf16.mxu0 %v767_v16  ;;  %v454_v28 = vpack.c.bf16 %v452_v26, %v451_v24  ;;  %v455_v35 = vpack.c.bf16 %v453_v33, %v453_v33 }
  0x16   : > { %737 = vmatprep.subr.bf16.mxu1 %v768_v17  ;;  %710 = vmatmul.mubr.msk.bf16.vlgmr.msra.gmra.mrb[0].mxu0 %vm223_vm0, %v189_v18 }
  0x17   : > { %722 = vmatmul.mubr.msk.bf16.vlgmr.msra.gmra.mrb[0].mxu1 %vm223_vm0, %v176_v19  ;;  %726 = vmatpush3.bf16.msra.mxu0 %v767_v16 }
  0x18   : > { %738 = vmatpush3.bf16.msra.mxu1 %v768_v17  ;;  %727 = vmatprep.subr.bf16.mxu0 %v769_v20 }
  0x19   : > { %739 = vmatprep.subr.bf16.mxu1 %v770_v21  ;;  %733 = vmatprep.mubr.msk.bf16.mxu0 %vm223_vm0, %v359_v25 }
  0x1a   : > { %745 = vmatprep.mubr.msk.bf16.mxu1 %vm223_vm0, %v454_v28 }
  0x1b   : > { %728 = vmatpush3.bf16.msra.mxu0 %v769_v20 }
  0x1c   : > { %740 = vmatpush3.bf16.msra.mxu1 %v770_v21  ;;  %729 = vmatprep.subr.bf16.mxu0 %v771_v27 }
  0x1d   : > { %741 = vmatprep.subr.bf16.mxu1 %v772_v29 }
  0x1f   : > { %730 = vmatpush3.bf16.msra.mxu0 %v771_v27 }
  0x20   : > { %742 = vmatpush3.bf16.msra.mxu1 %v772_v29  ;;  %731 = vmatprep.subr.bf16.mxu0 %v773_v30 }
  0x21   : > { %743 = vmatprep.subr.bf16.mxu1 %v774_v31 }
  0x23   : > { %732 = vmatpush3.bf16.msra.mxu0 %v773_v30 }
  0x24   : > { %744 = vmatpush3.bf16.msra.mxu1 %v774_v31 }
  0x26   : > { %734 = vmatmul.mubr.msk.bf16.vlgmr.msra.gmra.mrb[4].mxu0 %vm223_vm0, %v360_v34 }
  0x27   : > { %746 = vmatmul.mubr.msk.bf16.vlgmr.msra.gmra.mrb[4].mxu1 %vm223_vm0, %v455_v35 }
  0xe9   : > { %v711_v36 = vpop.f32.mrb[0].mxu0 }
  0xea   : > { %v723_v37 = vpop.f32.mrb[0].mxu1  ;;  %v264_v38 = vpop.f32.mrb[1].mxu0 }
  0xeb   : > { %v351_v39 = vadd.f32 %v723_v37, %v711_v36  ;;  %v342_v40 = vpop.f32.mrb[1].mxu1  ;;  %v712_v41 = vpop.f32.mrb[2].mxu0 }
  0xec   : > { %v343_v42 = vadd.f32 %v342_v40, %v264_v38  ;;  %v724_v43 = vpop.f32.mrb[2].mxu1  ;;  %v267_v44 = vpop.f32.mrb[3].mxu0 }
  0xed   : > { %v345_v45 = vpop.f32.mrb[3].mxu1 }
  0xee   : > { %v346_v46 = vadd.f32 %v345_v45, %v267_v44 }
  0xf9   : > { %v735_v47 = vpop.f32.mrb[4].mxu0 }
  0xfa   : > { %v450_v48 = vadd.f32 %v735_v47, %v351_v39  ;;  %v747_v49 = vpop.f32.mrb[4].mxu1  ;;  %v434_v50 = vpop.f32.mrb[5].mxu0 }
  0xfb   : > { %v448_v52 = vadd.f32 %v434_v50, %v343_v42  ;;  %v529_v53 = vpop.f32.mrb[5].mxu1  ;;  %v736_v54 = vpop.f32.mrb[6].mxu0 }
  0xfc   : > { %v545_v55 = vadd.f32 %v747_v49, %v450_v48  ;;  %v748_v56 = vpop.f32.mrb[6].mxu1  ;;  %v437_v57 = vpop.f32.mrb[7].mxu0 }
  0xfd   : > { %v543_v58 = vadd.f32 %v529_v53, %v448_v52  ;;  %v449_v59 = vadd.f32 %v437_v57, %v346_v46  ;;  %v532_v60 = vpop.f32.mrb[7].mxu1 }
  0xfe   : > { %v555_v61 = vadd.f32 %v674_v51, %v545_v55 }
  0xff   : > { %v553_v62 = vadd.f32 %v674_v51, %v543_v58  ;;  %v544_v63 = vadd.f32 %v532_v60, %v449_v59 }
 0x100   : > { %v558_v0 = vmax.f32 %v555_v61, 0.0 }
 0x101   : > { %v556_v1 = vmax.f32 %v553_v62, 0.0  ;;  %v554_v2 = vadd.f32 %v674_v51, %v544_v63 }
 0x102   : > { %563 = vst.msk [vmem:[%s170_s30 + $0x10] sm:$0xf] %vm562_vm1, %v558_v0 }
 0x103   : > { %560 = vst.msk [vmem:[%s170_s30] sm:$0xff] %vm559_vm2, %v556_v1  ;;  %v557_v3 = vmax.f32 %v554_v2, 0.0 }
 0x105   : > { %561 = vst.msk [vmem:[%s170_s30 + $0x8] sm:$0xff] %vm559_vm2, %v557_v3 }
 0x106 PF: > { %s13_s12 = sadd.s32 1, %s781_s12  }
 0x107   : > { %p10_p4 = scmp.ge.s32.totalorder %s13_s12, 4  }
 0x109   :  { %12 = sbr.rel (!%p10_p4) target bundleno = 1 (0x1), region = 65 }

// kernel: cnn_vae_forward.11
= control target key start
LH: loop header
LB: loop body
LE: loop exit
PB: predicated region body
PF: predicated region fallthrough
CT: control target
= control target key end

     0   :  { %v502_v22 = vmov 1983009808   ;;  %v21_v24 = vlaneseq  ;;  %vm385_vm0 = vcmask 254976   ;;  %s628_s1 = inlined_call_operand.vmem [shape: bf16[512,32], index: 1, kind: input, shape index: {}]   ;;  %s629_s0 = inlined_call_operand.vmem [shape: f32[2,512], index: 0, kind: input, shape index: {}]   ;;  %s630_s2 = inlined_call_operand.vmem [shape: f32[1,32], index: 2, kind: input, shape index: {}]   ;;  %s631_s3 = inlined_call_operand.vmem [shape: f32[2,32], index: 3, kind: output, shape index: {}]  }
   0x1   :  { %v469_v0 = vld [vmem:[%s628_s1 + $0x40] sm:$0xff]   ;;  %v473_v4 = vld [vmem:[%s628_s1 + $0x48] sm:$0xff]   ;;  %v477_v8 = vld [vmem:[%s628_s1 + $0x50] sm:$0xff]   ;;  %v19_v23 = vunpack.c.l.s4 %v502_v22 }
   0x2   :  { %v470_v1 = vld [vmem:[%s628_s1 + $0xc0] sm:$0xff]   ;;  %424 = vmatprep.subr.bf16.mxu0 %v469_v0  ;;  %v474_v5 = vld [vmem:[%s628_s1 + $0xc8] sm:$0xff]   ;;  %v478_v9 = vld [vmem:[%s628_s1 + $0xd0] sm:$0xff]   ;;  %v22_v30 = vshrl.u32 %v21_v24, 7 }
   0x3   :  { %v471_v2 = vld [vmem:[%s628_s1] sm:$0xff]   ;;  %446 = vmatprep.subr.bf16.mxu1 %v470_v1  ;;  %v475_v6 = vld [vmem:[%s628_s1 + $0x8] sm:$0xff]   ;;  %v479_v10 = vld [vmem:[%s628_s1 + $0x10] sm:$0xff]   ;;  %v20_v29 = vunpack.c.0.s8 %v19_v23 }
   0x4   :  { %v472_v3 = vld [vmem:[%s628_s1 + $0x80] sm:$0xff]   ;;  %425 = vmatpush3.bf16.msra.mxu0 %v471_v2  ;;  %v476_v7 = vld [vmem:[%s628_s1 + $0x88] sm:$0xff]   ;;  %v480_v11 = vld [vmem:[%s628_s1 + $0x90] sm:$0xff]  }
   0x5   :  { %447 = vmatpush3.bf16.msra.mxu1 %v472_v3  ;;  %426 = vmatprep.subr.bf16.mxu0 %v473_v4  ;;  %v481_v12 = vld [vmem:[%s628_s1 + $0x58] sm:$0xff]   ;;  %v485_v16 = vld [vmem:[%s628_s1 + $0x60] sm:$0xff]   ;;  %v489_v20 = vld [vmem:[%s628_s1 + $0x68] sm:$0xff]   ;;  %v23_v35 = vsub.s32 %v20_v29, %v22_v30 }
   0x6   :  { %448 = vmatprep.subr.bf16.mxu1 %v474_v5  ;;  %v482_v13 = vld [vmem:[%s628_s1 + $0xd8] sm:$0xff]   ;;  %v486_v17 = vld [vmem:[%s628_s1 + $0xe0] sm:$0xff]   ;;  %v490_v21 = vld [vmem:[%s628_s1 + $0xe8] sm:$0xff]  }
   0x7   :  { %v483_v14 = vld [vmem:[%s628_s1 + $0x18] sm:$0xff]   ;;  %v487_v18 = vld [vmem:[%s628_s1 + $0x20] sm:$0xff]   ;;  %v491_v25 = vld [vmem:[%s628_s1 + $0x28] sm:$0xff]  }
   0x8   :  { %427 = vmatpush3.bf16.msra.mxu0 %v475_v6  ;;  %v484_v15 = vld [vmem:[%s628_s1 + $0x98] sm:$0xff]   ;;  %v488_v19 = vld [vmem:[%s628_s1 + $0xa0] sm:$0xff]   ;;  %v492_v26 = vld [vmem:[%s628_s1 + $0xa8] sm:$0xff]  }
   0x9   :  { %449 = vmatpush3.bf16.msra.mxu1 %v476_v7  ;;  %428 = vmatprep.subr.bf16.mxu0 %v477_v8  ;;  %v493_v27 = vld [vmem:[%s628_s1 + $0x70] sm:$0xff]   ;;  %v497_v33 = vld [vmem:[%s628_s1 + $0x78] sm:$0xff]   ;;  %v15_v38 = vld [vmem:[%s629_s0] sm:$0xff] }
   0xa   :  { %450 = vmatprep.subr.bf16.mxu1 %v478_v9  ;;  %v494_v28 = vld [vmem:[%s628_s1 + $0xf0] sm:$0xff]   ;;  %v498_v34 = vld [vmem:[%s628_s1 + $0xf8] sm:$0xff]   ;;  %v24_v39 = vrot.slane %v15_v38, %v23_v35  ;;  %v17_v40 = vcombine.high %v15_v38, %v15_v38  ;;  %v391_v49 = vld [vmem:[%s630_s2] ss:$0 sm:$0xff] }
   0xb   :  { %v495_v31 = vld [vmem:[%s628_s1 + $0x30] sm:$0xff]   ;;  %v499_v36 = vld [vmem:[%s628_s1 + $0x38] sm:$0xff]  }
   0xc   :  { %429 = vmatpush3.bf16.msra.mxu0 %v479_v10  ;;  %v496_v32 = vld [vmem:[%s628_s1 + $0xb0] sm:$0xff]   ;;  %v500_v37 = vld [vmem:[%s628_s1 + $0xb8] sm:$0xff]   ;;  %v32_v41 = vcombine.high %v24_v39, %v24_v39  ;;  %v31_v42 = vrot.slane %v17_v40, %v23_v35  ;;  %v38_v43 = vpack.c.bf16 %v24_v39, %v24_v39 }
   0xd   :  { %451 = vmatpush3.bf16.msra.mxu1 %v480_v11  ;;  %430 = vmatprep.subr.bf16.mxu0 %v481_v12 }
   0xe   :  { %452 = vmatprep.subr.bf16.mxu1 %v482_v13  ;;  %v39_v44 = vpack.c.bf16 %v32_v41, %v32_v41  ;;  %v33_v45 = vcombine.high %v31_v42, %v31_v42  ;;  %v40_v46 = vpack.c.bf16 %v31_v42, %v31_v42 }
  0x10   :  { %431 = vmatpush3.bf16.msra.mxu0 %v483_v14  ;;  %337 = vmatprep.mubr.bf16.mxu0 %v39_v44  ;;  %v41_v47 = vpack.c.bf16 %v33_v45, %v33_v45 }
  0x11   :  { %453 = vmatpush3.bf16.msra.mxu1 %v484_v15  ;;  %432 = vmatprep.subr.bf16.mxu0 %v485_v16 }
  0x12   :  { %454 = vmatprep.subr.bf16.mxu1 %v486_v17  ;;  %377 = vmatprep.mubr.bf16.mxu1 %v41_v47 }
  0x14   :  { %433 = vmatpush3.bf16.msra.mxu0 %v487_v18 }
  0x15   :  { %455 = vmatpush3.bf16.msra.mxu1 %v488_v19  ;;  %434 = vmatprep.subr.bf16.mxu0 %v489_v20 }
  0x16   :  { %456 = vmatprep.subr.bf16.mxu1 %v490_v21 }
  0x18   :  { %435 = vmatpush3.bf16.msra.mxu0 %v491_v25 }
  0x19   :  { %457 = vmatpush3.bf16.msra.mxu1 %v492_v26  ;;  %436 = vmatprep.subr.bf16.mxu0 %v493_v27 }
  0x1a   :  { %458 = vmatprep.subr.bf16.mxu1 %v494_v28 }
  0x1c   :  { %437 = vmatpush3.bf16.msra.mxu0 %v495_v31 }
  0x1d   :  { %459 = vmatpush3.bf16.msra.mxu1 %v496_v32  ;;  %438 = vmatprep.subr.bf16.mxu0 %v497_v33 }
  0x1e   :  { %460 = vmatprep.subr.bf16.mxu1 %v498_v34 }
  0x20   :  { %439 = vmatpush3.bf16.msra.mxu0 %v499_v36 }
  0x21   :  { %461 = vmatpush3.bf16.msra.mxu1 %v500_v37 }
  0x23   :  { %338 = vmatmul.mubr.bf16.vlgmr.msra.gmra.mrb[0].mxu0 %v38_v43 }
  0x24   :  { %378 = vmatmul.mubr.bf16.vlgmr.msra.gmra.mrb[0].mxu1 %v40_v46 }
  0xf6   :  { %v440_v48 = vpop.f32.mrb[0].mxu0 }
  0xf7   :  { %v441_v50 = vpop.f32.mrb[1].mxu0  ;;  %v462_v51 = vpop.f32.mrb[0].mxu1 }
  0xf8   :  { %v442_v52 = vadd.f32 %v441_v50, %v440_v48  ;;  %v443_v53 = vpop.f32.mrb[2].mxu0  ;;  %v463_v54 = vpop.f32.mrb[1].mxu1 }
  0xf9   :  { %v444_v55 = vpop.f32.mrb[3].mxu0  ;;  %v464_v57 = vadd.f32 %v463_v54, %v462_v51  ;;  %v465_v58 = vpop.f32.mrb[2].mxu1 }
  0xfa   :  { %v340_v56 = vadd.f32 %v442_v52, %v391_v49  ;;  %v466_v59 = vpop.f32.mrb[3].mxu1 }
  0xfc   :  { %v380_v60 = vadd.f32 %v464_v57, %v340_v56 }
  0xfe   :  { %386 = vst.msk [vmem:[%s631_s3] sm:$0x3] %vm385_vm0, %v380_v60 }

// kernel: cnn_vae_forward.12
= control target key start
LH: loop header
LB: loop body
LE: loop exit
PB: predicated region body
PF: predicated region fallthrough
CT: control target
= control target key end

     0   :  { %v205_v1 = vmov 0   ;;  %vm76_vm0 = vcmask 130048   ;;  %v36_v14 = vlaneseq  ;;  %v206_v20 = vmov 1983009808   ;;  %s264_s3 = inlined_call_operand.vmem [shape: bf16[16,512], index: 3, kind: input, shape index: {}]   ;;  %s265_s1 = inlined_call_operand.vmem [shape: f32[2,16], index: 1, kind: input, shape index: {}]   ;;  %s266_s2 = inlined_call_operand.vmem [shape: f32[2,16], index: 2, kind: input, shape index: {}]   ;;  %s267_s0 = inlined_call_operand.vmem [shape: f32[2,16], index: 0, kind: input, shape index: {}]   ;;  %s268_s4 = inlined_call_operand.vmem [shape: f32[1,512], index: 4, kind: input, shape index: {}]   ;;  %s269_s5 = inlined_call_operand.vmem [shape: f32[2,512], index: 5, kind: output, shape index: {}]  }
   0x1   :  { %v197_v0 = vld [vmem:[%s264_s3 + $0x4] ss:$16 sps:$4 sm:$0xff]   ;;  %112 = vmatprep.mubr.bf16.mxu0 %v205_v1  ;;  %153 = vmatprep.mubr.bf16.mxu1 %v205_v1  ;;  %v199_v2 = vld [vmem:[%s264_s3 + $0xc] ss:$16 sps:$4 sm:$0xff]   ;;  %v201_v3 = vld [vmem:[%s264_s3] ss:$16 sps:$4 sm:$0xff]   ;;  %v169_v21 = vunpack.c.l.s4 %v206_v20 }
   0x2   :  { %80 = vmatprep.subr.bf16.mxu0 %v197_v0  ;;  %v202_v4 = vld [vmem:[%s264_s3 + $0x8] ss:$16 sps:$4 sm:$0xff]   ;;  %121 = vmatprep.subr.bf16.mxu1 %v199_v2  ;;  %v23_v5 = vld [vmem:[%s265_s1] sm:$0x3]  ;;  %v37_v15 = vshrl.u32 %v36_v14, 7 }
   0x3   :  { %81 = vmatpush1.bf16.msra.mxu0 %v201_v3  ;;  %122 = vmatpush1.bf16.msra.mxu1 %v202_v4  ;;  %v24_v6 = vmul.f32 0.5, %v23_v5  ;;  %v22_v8 = vld [vmem:[%s266_s2] sm:$0x3]  ;;  %v170_v26 = vunpack.c.0.s8 %v169_v21 }
   0x4   :  { %v21_v10 = vld [vmem:[%s267_s0] sm:$0x3]  ;;  %v38_v16 = vsub.s32 0, %v37_v15  ;;  %v46_v17 = vsub.s32 2, %v37_v15  ;;  %v42_v19 = vsub.s32 1, %v37_v15  ;;  %v50_v22 = vsub.s32 3, %v37_v15 }
   0x5   :  { %v25_v7 = vmul.f32 1.442695, %v24_v6  ;;  %v34_v18 = vld [vmem:[%s268_s4] sm:$0xf]  ;;  %v173_v35 = vsub.s32 %v170_v26, %v37_v15 }
   0x6   :  { %v39_v23 = vrot.slane %v34_v18, %v38_v16  ;;  %v47_v24 = vrot.slane %v34_v18, %v46_v17  ;;  %v43_v25 = vrot.slane %v34_v18, %v42_v19  ;;  %v51_v27 = vrot.slane %v34_v18, %v50_v22 }
   0x7   :  { %203 = vpow2.f32 %v25_v7 }
  0x11   :  { %v204_v9 = vpop.eup %203 }
  0x12   :  { %v27_v11 = vmul.f32 %v204_v9, %v22_v8 }
  0x14   :  { %v28_v12 = vadd.f32 %v27_v11, %v21_v10 }
  0x16   :  { %v29_v13 = vpack.c.bf16 %v28_v12, %v28_v12 }
  0x18   :  { %193 = vmatmul.mubr.msk.bf16.vlgmr.msra.gmra.mrb[0].mxu0 %vm76_vm0, %v29_v13  ;;  %194 = vmatmul.mubr.msk.bf16.vlgmr.msra.gmra.mrb[0].mxu1 %vm76_vm0, %v29_v13 }
  0xeb   :  { %v114_v28 = vpop.f32.mrb[0].mxu0  ;;  %v155_v29 = vpop.f32.mrb[0].mxu1 }
  0xec   :  { %v115_v30 = vadd.f32 %v114_v28, %v39_v23  ;;  %v156_v31 = vadd.f32 %v155_v29, %v47_v24  ;;  %v116_v32 = vpop.f32.mrb[1].mxu0  ;;  %v157_v33 = vpop.f32.mrb[1].mxu1 }
  0xed   :  { %v117_v34 = vadd.f32 %v116_v32, %v43_v25  ;;  %v158_v36 = vadd.f32 %v157_v33, %v51_v27  ;;  %v118_v37 = vpop.f32.mrb[2].mxu0  ;;  %v159_v38 = vpop.f32.mrb[2].mxu1 }
  0xee   :  { %v119_v39 = vpop.f32.mrb[3].mxu0  ;;  %v160_v40 = vpop.f32.mrb[3].mxu1 }
  0xef   :  { %v166_v41 = vcombine.low %v115_v30, %v117_v34  ;;  %v167_v42 = vcombine.low %v156_v31, %v158_v36 }
  0xf1   :  { %v174_v43 = vrot.slane %v166_v41, %v173_v35  ;;  %v181_v44 = vrot.slane %v167_v42, %v173_v35 }
  0xf3   :  { %v182_v45 = vcombine.low %v174_v43, %v181_v44 }
  0xf5   :  { %184 = vst [vmem:[%s269_s5] sm:$0xff] %v182_v45 }

// kernel: cnn_vae_forward.13
= control target key start
LH: loop header
LB: loop body
LE: loop exit
PB: predicated region body
PF: predicated region fallthrough
CT: control target
= control target key end

     0   :  { %s1931_s12 = smov 0   ;;  %s2185_s0 = inlined_call_operand.vmem [shape: f32[2,44,32], index: 0, kind: input, shape index: {}]   ;;  %s2186_s1 = inlined_call_operand.vmem [shape: bf16[4,4,32,16], index: 1, kind: input, shape index: {}]   ;;  %s2187_s2 = inlined_call_operand.vmem [shape: f32[1,16], index: 2, kind: input, shape index: {}]   ;;  %s2188_s3 = inlined_call_operand.vmem [shape: f32[2,96,16], index: 3, kind: output, shape index: {}]  }
   0x1 LB: > { %s1532_s13 = sadd.s32 4294967295, %s1909_s12   ;;  %p1536_p0 = scmp.ge.s32.totalorder %s1909_s12, 1  ;;  %s1909_s12 = sphi %s1931_s12, %s13_s12  }
   0x2   : > { %p137_p1 = scmp.lt.s32.totalorder %s1909_s12, 3 }
   0x4   : > { %p138_p2 = pnand %p1536_p0, %p137_p1 }
   0x5   : > { %v1871_v0 = vld [vmem:[%s2186_s1 + $0x10] sm:$0xff] (!%p138_p2)   ;;  %p161_p3 = scmp.lt.s32.totalorder (!%p138_p2), %s1532_s13, 1  ;;  %v1872_v1 = vld [vmem:[%s2186_s1] sm:$0xff] (!%p138_p2)   ;;  %v1873_v2 = vld [vmem:[%s2186_s1 + $0x18] sm:$0xff] (!%p138_p2)   ;;  %vm203_vm0 = vcmask (!%p138_p2), 261120   ;;  %vm495_vm1 = vcmask (!%p138_p2), 130048  }
   0x6   : > { %141 = sbr.rel (%p138_p2) target bundleno = 301 (0x12d), region = 32  ;;  %1733 = vmatprep.subr.bf16.mxu0 (!%p138_p2), %v1871_v0  ;;  %1741 = vmatprep.subr.bf16.mxu1 (!%p138_p2), %v1872_v1  ;;  %v1874_v3 = vld [vmem:[%s2186_s1 + $0x8] sm:$0xff] (!%p138_p2)   ;;  %v1875_v4 = vld [vmem:[%s2186_s1 + $0x20] sm:$0xff] (!%p138_p2)   ;;  %v1876_v5 = vld [vmem:[%s2186_s1 + $0x30] sm:$0xff] (!%p138_p2)  }
   0x7   : > { %1734 = vmatpush3.bf16.msra.mxu0 (!%p138_p2), %v1871_v0  ;;  %1742 = vmatpush3.bf16.msra.mxu1 (!%p138_p2), %v1872_v1  ;;  %v1877_v9 = vld [vmem:[%s2186_s1 + $0x28] sm:$0xff] (!%p138_p2)   ;;  %v1878_v17 = vld [vmem:[%s2186_s1 + $0x38] sm:$0xff] (!%p138_p2)   ;;  %v1879_v26 = vld [vmem:[%s2186_s1 + $0x50] sm:$0xff] (!%p138_p2)  }
   0x8   : > { %1735 = vmatprep.subr.bf16.mxu0 (!%p138_p2), %v1873_v2  ;;  %1743 = vmatprep.subr.bf16.mxu1 (!%p138_p2), %v1874_v3  ;;  %v1880_v27 = vld [vmem:[%s2186_s1 + $0x40] sm:$0xff] (!%p138_p2)   ;;  %v1881_v32 = vld [vmem:[%s2186_s1 + $0x58] sm:$0xff] (!%p138_p2)   ;;  %v1882_v33 = vld [vmem:[%s2186_s1 + $0x48] sm:$0xff] (!%p138_p2)  }
   0x9   : > { %v1883_v36 = vld [vmem:[%s2186_s1 + $0x60] sm:$0xff] (!%p138_p2)   ;;  %v1884_v37 = vld [vmem:[%s2186_s1 + $0x70] sm:$0xff] (!%p138_p2)   ;;  %v1885_v39 = vld [vmem:[%s2186_s1 + $0x68] sm:$0xff] (!%p138_p2)  }
   0xa   : > { %v1886_v40 = vld [vmem:[%s2186_s1 + $0x78] sm:$0xff] (!%p138_p2)   ;;  %v1887_v43 = vld [vmem:[%s2186_s1 + $0x90] sm:$0xff] (!%p138_p2)   ;;  %v1888_v44 = vld [vmem:[%s2186_s1 + $0x80] sm:$0xff] (!%p138_p2)  }
   0xb   : > { %1736 = vmatpush3.bf16.msra.mxu0 (!%p138_p2), %v1873_v2  ;;  %1744 = vmatpush3.bf16.msra.mxu1 (!%p138_p2), %v1874_v3  ;;  %v1889_v46 = vld [vmem:[%s2186_s1 + $0x98] sm:$0xff] (!%p138_p2)   ;;  %v1890_v47 = vld [vmem:[%s2186_s1 + $0x88] sm:$0xff] (!%p138_p2)   ;;  %v1891_v48 = vld [vmem:[%s2186_s1 + $0xa0] sm:$0xff] (!%p138_p2)  }
   0xc   : > { %1749 = vmatprep.subr.bf16.mxu0 (!%p138_p2), %v1875_v4  ;;  %1757 = vmatprep.subr.bf16.mxu1 (!%p138_p2), %v1876_v5  ;;  %v1892_v49 = vld [vmem:[%s2186_s1 + $0xb0] sm:$0xff] (!%p138_p2)   ;;  %v1893_v54 = vld [vmem:[%s2186_s1 + $0xa8] sm:$0xff] (!%p138_p2)   ;;  %v1894_v55 = vld [vmem:[%s2186_s1 + $0xb8] sm:$0xff] (!%p138_p2)  }
   0xd   : > { %s2190_s13 = smov (!%p161_p3, %s1532_s13), 1  ;;  %v1895_v60 = vld [vmem:[%s2186_s1 + $0xd0] sm:$0xff]   ;;  %v1896_v61 = vld [vmem:[%s2186_s1 + $0xc0] sm:$0xff]   ;;  %v1897_v0 = vld [vmem:[%s2186_s1 + $0xd8] sm:$0xff]  }
   0xe   : > { %s1861_s22 = smul.u32 48, %s2190_s13  ;;  %v1898_v1 = vld [vmem:[%s2186_s1 + $0xc8] sm:$0xff]   ;;  %v1899_v2 = vld [vmem:[%s2186_s1 + $0xe0] sm:$0xff]   ;;  %v1900_v3 = vld [vmem:[%s2186_s1 + $0xf0] sm:$0xff]  }
  0x10   : > { %s1963_s29 = scalar_lea.vmem %s2185_s0, %s1861_s22 }
  0x11   : > { %v181_v6 = vld [vmem:[%s1963_s29 + $0x1] sm:$0xff]  ;;  %v182_v7 = vld [vmem:[%s1963_s29 + $0x9] sm:$0xff]  ;;  %v183_v12 = vld [vmem:[%s1963_s29 + $0x11] sm:$0xff] }
  0x12   : > { %v172_v8 = vld [vmem:[%s1963_s29] sm:$0xff]  ;;  %v184_v10 = vpack.c.bf16 %v182_v7, %v181_v6  ;;  %v173_v11 = vld [vmem:[%s1963_s29 + $0x8] sm:$0xff]  ;;  %v174_v13 = vld [vmem:[%s1963_s29 + $0x10] sm:$0xff]  ;;  %v185_v15 = vpack.c.bf16 %v183_v12, %v183_v12 }
  0x13   : > { %v175_v14 = vpack.c.bf16 %v173_v11, %v172_v8  ;;  %v176_v16 = vpack.c.bf16 %v174_v13, %v174_v13  ;;  %v324_v18 = vld [vmem:[%s1963_s29 + $0x6] sm:$0xff]  ;;  %v1980_v19 = vld [vmem:[%s1963_s29 + $0xe] sm:$0xff]  ;;  %v1990_v23 = vld [vmem:[%s1963_s29 + $0x16] sm:$0xff]  ;;  %v2040_v41 = vpack.c.bf16 %v174_v13, %v173_v11 }
  0x14   : > { %1737 = vmatprep.mubr.msk.bf16.mxu0 %vm203_vm0, %v184_v10  ;;  %v403_v20 = vld [vmem:[%s1963_s29 + $0x7] sm:$0xff]  ;;  %v1986_v21 = vpack.c.bf16 %v1980_v19, %v324_v18  ;;  %v404_v22 = vld [vmem:[%s1963_s29 + $0xf] sm:$0xff]  ;;  %v405_v25 = vld [vmem:[%s1963_s29 + $0x17] sm:$0xff]  ;;  %v2008_v28 = vpack.c.bf16 %v1990_v23, %v1990_v23  ;;  %v1385_v6 = vpack.c.bf16 %v1990_v23, %v1980_v19 }
  0x15   : > { %1745 = vmatprep.mubr.msk.bf16.mxu1 %vm203_vm0, %v175_v14  ;;  %1738 = vmatmul.mubr.msk.bf16.vlgmr.msra.gmra.mrb[0].mxu0 %vm203_vm0, %v185_v15  ;;  %v1993_v24 = vpack.c.bf16 %v404_v22, %v403_v20  ;;  %v2010_v29 = vpack.c.bf16 %v405_v25, %v405_v25  ;;  %v509_v30 = vld [vmem:[%s1963_s29 + $0x2] sm:$0xff]  ;;  %v510_v31 = vld [vmem:[%s1963_s29 + $0xa] sm:$0xff]  ;;  %v511_v35 = vld [vmem:[%s1963_s29 + $0x12] sm:$0xff] }
  0x16   : > { %1746 = vmatmul.mubr.msk.bf16.vlgmr.msra.gmra.mrb[0].mxu1 %vm203_vm0, %v176_v16  ;;  %1750 = vmatpush3.bf16.msra.mxu0 %v1875_v4  ;;  %v512_v34 = vpack.c.bf16 %v510_v31, %v509_v30  ;;  %v513_v38 = vpack.c.bf16 %v511_v35, %v511_v35  ;;  %v732_v42 = vld [vmem:[%s1963_s29 + $0x18] sm:$0xff]  ;;  %v977_v50 = vld [vmem:[%s1963_s29 + $0xc] sm:$0xff] }
  0x17   : > { %1758 = vmatpush3.bf16.msra.mxu1 %v1876_v5  ;;  %1751 = vmatprep.subr.bf16.mxu0 %v1877_v9  ;;  %v2054_v45 = vpack.c.bf16 %v732_v42, %v732_v42  ;;  %v978_v51 = vld [vmem:[%s1963_s29 + $0x14] sm:$0xff]  ;;  %v979_v58 = vld [vmem:[%s1963_s29 + $0x1c] sm:$0xff]  ;;  %v1901_v4 = vld [vmem:[%s2186_s1 + $0xe8] sm:$0xff]  }
  0x18   : > { %1759 = vmatprep.subr.bf16.mxu1 %v1878_v17  ;;  %1753 = vmatprep.mubr.msk.bf16.mxu0 %vm203_vm0, %v1986_v21  ;;  %v1056_v52 = vld [vmem:[%s1963_s29 + $0xd] sm:$0xff]  ;;  %v1057_v53 = vld [vmem:[%s1963_s29 + $0x15] sm:$0xff]  ;;  %v980_v56 = vpack.c.bf16 %v978_v51, %v977_v50  ;;  %v1058_v59 = vld [vmem:[%s1963_s29 + $0x1d] sm:$0xff]  ;;  %v981_v62 = vpack.c.bf16 %v979_v58, %v979_v58 }
  0x19   : > { %1761 = vmatprep.mubr.msk.bf16.mxu1 %vm203_vm0, %v1993_v24  ;;  %v1059_v57 = vpack.c.bf16 %v1057_v53, %v1056_v52  ;;  %v1060_v63 = vpack.c.bf16 %v1058_v59, %v1058_v59  ;;  %v1902_v5 = vld [vmem:[%s2186_s1 + $0xf8] sm:$0xff]  }
  0x1a   : > { %1752 = vmatpush3.bf16.msra.mxu0 %v1877_v9  ;;  %v1384_v7 = vld [vmem:[%s1963_s29 + $0x1e] sm:$0xff]  ;;  %s1862_s29 = smul.u32 96, %s2190_s13 }
  0x1b   : > { %1760 = vmatpush3.bf16.msra.mxu1 %v1878_v17  ;;  %1765 = vmatprep.subr.bf16.mxu0 %v1879_v26  ;;  %v1386_v8 = vpack.c.bf16 %v1384_v7, %v1384_v7 }
  0x1c   : > { %1773 = vmatprep.subr.bf16.mxu1 %v1880_v27  ;;  %s2145_s13 = scalar_lea.vmem %s2188_s3, %s1862_s29 }
  0x1d   : > { %1754 = vmatmul.mubr.msk.bf16.vlgmr.msra.gmra.mrb[4].mxu0 %vm203_vm0, %v2008_v28 }
  0x1e   : > { %1762 = vmatmul.mubr.msk.bf16.vlgmr.msra.gmra.mrb[4].mxu1 %vm203_vm0, %v2010_v29  ;;  %1766 = vmatpush3.bf16.msra.mxu0 %v1879_v26 }
  0x1f   : > { %1774 = vmatpush3.bf16.msra.mxu1 %v1880_v27  ;;  %1767 = vmatprep.subr.bf16.mxu0 %v1881_v32 }
  0x20   : > { %1775 = vmatprep.subr.bf16.mxu1 %v1882_v33  ;;  %1769 = vmatprep.mubr.msk.bf16.mxu0 %vm203_vm0, %v512_v34 }
  0x21   : > { %1777 = vmatprep.mubr.msk.bf16.mxu1 %vm203_vm0, %v184_v10 }
  0x22   : > { %1768 = vmatpush3.bf16.msra.mxu0 %v1881_v32 }
  0x23   : > { %1776 = vmatpush3.bf16.msra.mxu1 %v1882_v33  ;;  %1781 = vmatprep.subr.bf16.mxu0 %v1883_v36 }
  0x24   : > { %1789 = vmatprep.subr.bf16.mxu1 %v1884_v37 }
  0x25   : > { %1770 = vmatmul.mubr.msk.bf16.vlgmr.msra.gmra.mrb[8].mxu0 %vm203_vm0, %v513_v38 }
  0x26   : > { %1778 = vmatmul.mubr.msk.bf16.vlgmr.msra.gmra.mrb[8].mxu1 %vm203_vm0, %v185_v15  ;;  %1782 = vmatpush3.bf16.msra.mxu0 %v1883_v36 }
  0x27   : > { %1790 = vmatpush3.bf16.msra.mxu1 %v1884_v37  ;;  %1783 = vmatprep.subr.bf16.mxu0 %v1885_v39 }
  0x28   : > { %1791 = vmatprep.subr.bf16.mxu1 %v1886_v40  ;;  %1785 = vmatprep.mubr.msk.bf16.mxu0 %vm203_vm0, %v1993_v24 }
  0x29   : > { %1793 = vmatprep.mubr.msk.bf16.mxu1 %vm203_vm0, %v2040_v41 }
  0x2a   : > { %1784 = vmatpush3.bf16.msra.mxu0 %v1885_v39 }
  0x2b   : > { %1792 = vmatpush3.bf16.msra.mxu1 %v1886_v40  ;;  %1797 = vmatprep.subr.bf16.mxu0 %v1887_v43 }
  0x2c   : > { %1805 = vmatprep.subr.bf16.mxu1 %v1888_v44 }
  0x2d   : > { %1786 = vmatmul.mubr.msk.bf16.vlgmr.msra.gmra.mrb[12].mxu0 %vm203_vm0, %v2010_v29 }
  0x2e   : > { %1794 = vmatmul.mubr.msk.bf16.vlgmr.msra.gmra.mrb[12].mxu1 %vm203_vm0, %v2054_v45  ;;  %1798 = vmatpush3.bf16.msra.mxu0 %v1887_v43 }
  0x2f   : > { %1806 = vmatpush3.bf16.msra.mxu1 %v1888_v44  ;;  %1799 = vmatprep.subr.bf16.mxu0 %v1889_v46 }
  0x30   : > { %1807 = vmatprep.subr.bf16.mxu1 %v1890_v47  ;;  %1801 = vmatprep.mubr.msk.bf16.mxu0 %vm203_vm0, %v1993_v24 }
  0x31   : > { %1809 = vmatprep.mubr.msk.bf16.mxu1 %vm203_vm0, %v1986_v21 }
  0x32   : > { %1800 = vmatpush3.bf16.msra.mxu0 %v1889_v46 }
  0x33   : > { %1808 = vmatpush3.bf16.msra.mxu1 %v1890_v47  ;;  %1813 = vmatprep.subr.bf16.mxu0 %v1891_v48 }
  0x34   : > { %1821 = vmatprep.subr.bf16.mxu1 %v1892_v49 }
  0x35   : > { %1802 = vmatmul.mubr.msk.bf16.vlgmr.msra.gmra.mrb[16].mxu0 %vm203_vm0, %v2010_v29 }
  0x36   : > { %1810 = vmatmul.mubr.msk.bf16.vlgmr.msra.gmra.mrb[16].mxu1 %vm203_vm0, %v2008_v28  ;;  %1814 = vmatpush3.bf16.msra.mxu0 %v1891_v48 }
  0x37   : > { %1822 = vmatpush3.bf16.msra.mxu1 %v1892_v49  ;;  %1815 = vmatprep.subr.bf16.mxu0 %v1893_v54 }
  0x38   : > { %1823 = vmatprep.subr.bf16.mxu1 %v1894_v55  ;;  %1817 = vmatprep.mubr.msk.bf16.mxu0 %vm203_vm0, %v980_v56 }
  0x39   : > { %1825 = vmatprep.mubr.msk.bf16.mxu1 %vm203_vm0, %v1059_v57 }
  0x3a   : > { %1816 = vmatpush3.bf16.msra.mxu0 %v1893_v54 }
  0x3b   : > { %1824 = vmatpush3.bf16.msra.mxu1 %v1894_v55  ;;  %1829 = vmatprep.subr.bf16.mxu0 %v1895_v60 }
  0x3c   : > { %1837 = vmatprep.subr.bf16.mxu1 %v1896_v61 }
  0x3d   : > { %1818 = vmatmul.mubr.msk.bf16.vlgmr.msra.gmra.mrb[20].mxu0 %vm203_vm0, %v981_v62 }
  0x3e   : > { %1826 = vmatmul.mubr.msk.bf16.vlgmr.msra.gmra.mrb[20].mxu1 %vm203_vm0, %v1060_v63  ;;  %1830 = vmatpush3.bf16.msra.mxu0 %v1895_v60 }
  0x3f   : > { %1838 = vmatpush3.bf16.msra.mxu1 %v1896_v61  ;;  %1831 = vmatprep.subr.bf16.mxu0 %v1897_v0 }
  0x40   : > { %1839 = vmatprep.subr.bf16.mxu1 %v1898_v1  ;;  %1833 = vmatprep.mubr.msk.bf16.mxu0 %vm203_vm0, %v2040_v41 }
  0x41   : > { %1841 = vmatprep.mubr.msk.bf16.mxu1 %vm203_vm0, %v1993_v24  ;;  %v2139_v24 = vld [vmem:[%s2187_s2] ss:$0 sm:$0xff] }
  0x42   : > { %1832 = vmatpush3.bf16.msra.mxu0 %v1897_v0 }
  0x43   : > { %1840 = vmatpush3.bf16.msra.mxu1 %v1898_v1  ;;  %1845 = vmatprep.subr.bf16.mxu0 %v1899_v2 }
  0x44   : > { %1853 = vmatprep.subr.bf16.mxu1 %v1900_v3 }
  0x45   : > { %1834 = vmatmul.mubr.msk.bf16.vlgmr.msra.gmra.mrb[24].mxu0 %vm203_vm0, %v2054_v45 }
  0x46   : > { %1842 = vmatmul.mubr.msk.bf16.vlgmr.msra.gmra.mrb[24].mxu1 %vm203_vm0, %v2010_v29  ;;  %1846 = vmatpush3.bf16.msra.mxu0 %v1899_v2 }
  0x47   : > { %1854 = vmatpush3.bf16.msra.mxu1 %v1900_v3  ;;  %1847 = vmatprep.subr.bf16.mxu0 %v1901_v4 }
  0x48   : > { %1855 = vmatprep.subr.bf16.mxu1 %v1902_v5  ;;  %1849 = vmatprep.mubr.msk.bf16.mxu0 %vm203_vm0, %v1059_v57 }
  0x49   : > { %1857 = vmatprep.mubr.msk.bf16.mxu1 %vm203_vm0, %v1385_v6 }
  0x4a   : > { %1848 = vmatpush3.bf16.msra.mxu0 %v1901_v4 }
  0x4b   : > { %1856 = vmatpush3.bf16.msra.mxu1 %v1902_v5 }
  0x4d   : > { %1850 = vmatmul.mubr.msk.bf16.vlgmr.msra.gmra.mrb[28].mxu0 %vm203_vm0, %v1060_v63 }
  0x4e   : > { %1858 = vmatmul.mubr.msk.bf16.vlgmr.msra.gmra.mrb[28].mxu1 %vm203_vm0, %v1386_v8 }
  0xe8   : > { %v1739_v9 = vpop.f32.mrb[0].mxu0 }
  0xe9   : > { %v1747_v10 = vpop.f32.mrb[0].mxu1  ;;  %v244_v11 = vpop.f32.mrb[1].mxu0 }
  0xea   : > { %v319_v12 = vadd.f32 %v1747_v10, %v1739_v9  ;;  %v310_v13 = vpop.f32.mrb[1].mxu1  ;;  %v1740_v14 = vpop.f32.mrb[2].mxu0 }
  0xeb   : > { %v311_v15 = vadd.f32 %v310_v13, %v244_v11  ;;  %v1748_v16 = vpop.f32.mrb[2].mxu1  ;;  %v247_v17 = vpop.f32.mrb[3].mxu0 }
  0xec   : > { %v313_v18 = vpop.f32.mrb[3].mxu1 }
  0xed   : > { %v314_v19 = vadd.f32 %v313_v18, %v247_v17 }
  0xf0   : > { %v1755_v20 = vpop.f32.mrb[4].mxu0 }
  0xf1   : > { %v402_v21 = vadd.f32 %v1755_v20, %v319_v12  ;;  %v1763_v22 = vpop.f32.mrb[4].mxu1  ;;  %v386_v23 = vpop.f32.mrb[5].mxu0 }
  0xf2   : > { %v400_v25 = vadd.f32 %v386_v23, %v311_v15  ;;  %v465_v26 = vpop.f32.mrb[5].mxu1  ;;  %v1756_v27 = vpop.f32.mrb[6].mxu0 }
  0xf3   : > { %v481_v28 = vadd.f32 %v1763_v22, %v402_v21  ;;  %v1764_v29 = vpop.f32.mrb[6].mxu1  ;;  %v389_v30 = vpop.f32.mrb[7].mxu0 }
  0xf4   : > { %v479_v31 = vadd.f32 %v465_v26, %v400_v25  ;;  %v401_v32 = vadd.f32 %v389_v30, %v314_v19  ;;  %v468_v33 = vpop.f32.mrb[7].mxu1 }
  0xf5   : > { %v491_v34 = vadd.f32 %v2139_v24, %v481_v28 }
  0xf6   : > { %v489_v35 = vadd.f32 %v2139_v24, %v479_v31  ;;  %v480_v36 = vadd.f32 %v468_v33, %v401_v32 }
  0xf7   : > { %v494_v37 = vmax.f32 %v491_v34, 0.0 }
  0xf8   : > { %v492_v38 = vmax.f32 %v489_v35, 0.0  ;;  %v490_v39 = vadd.f32 %v2139_v24, %v480_v36  ;;  %v1771_v40 = vpop.f32.mrb[8].mxu0 }
  0xf9   : > { %498 = vst.msk [vmem:[%s2145_s13 + $0x10] sm:$0xff] %vm495_vm1, %v494_v37  ;;  %v1779_v41 = vpop.f32.mrb[8].mxu1  ;;  %v571_v42 = vpop.f32.mrb[9].mxu0 }
  0xfa   : > { %496 = vst.msk [vmem:[%s2145_s13] sm:$0xff] %vm495_vm1, %v492_v38  ;;  %v493_v43 = vmax.f32 %v490_v39, 0.0  ;;  %v646_v44 = vadd.f32 %v1779_v41, %v1771_v40  ;;  %v637_v45 = vpop.f32.mrb[9].mxu1  ;;  %v1772_v46 = vpop.f32.mrb[10].mxu0 }
  0xfb   : > { %v638_v47 = vadd.f32 %v637_v45, %v571_v42  ;;  %v1780_v48 = vpop.f32.mrb[10].mxu1  ;;  %v574_v49 = vpop.f32.mrb[11].mxu0 }
  0xfc   : > { %497 = vst.msk [vmem:[%s2145_s13 + $0x8] sm:$0xff] %vm495_vm1, %v493_v43  ;;  %v640_v50 = vpop.f32.mrb[11].mxu1 }
  0xfd   : > { %v641_v51 = vadd.f32 %v640_v50, %v574_v49 }
 0x100   : > { %v1787_v52 = vpop.f32.mrb[12].mxu0 }
 0x101   : > { %v729_v53 = vadd.f32 %v1787_v52, %v646_v44  ;;  %v1795_v54 = vpop.f32.mrb[12].mxu1  ;;  %v713_v55 = vpop.f32.mrb[13].mxu0 }
 0x102   : > { %v727_v56 = vadd.f32 %v713_v55, %v638_v47  ;;  %v792_v57 = vpop.f32.mrb[13].mxu1  ;;  %v1788_v58 = vpop.f32.mrb[14].mxu0 }
 0x103   : > { %v808_v59 = vadd.f32 %v1795_v54, %v729_v53  ;;  %v1796_v60 = vpop.f32.mrb[14].mxu1  ;;  %v716_v61 = vpop.f32.mrb[15].mxu0 }
 0x104   : > { %v806_v62 = vadd.f32 %v792_v57, %v727_v56  ;;  %v728_v63 = vadd.f32 %v716_v61, %v641_v51  ;;  %v795_v0 = vpop.f32.mrb[15].mxu1 }
 0x105   : > { %v818_v1 = vadd.f32 %v2139_v24, %v808_v59 }
 0x106   : > { %v816_v2 = vadd.f32 %v2139_v24, %v806_v62  ;;  %v807_v3 = vadd.f32 %v795_v0, %v728_v63 }
 0x107   : > { %v821_v4 = vmax.f32 %v818_v1, 0.0 }
 0x108   : > { %v819_v5 = vmax.f32 %v816_v2, 0.0  ;;  %v817_v6 = vadd.f32 %v2139_v24, %v807_v3  ;;  %v1803_v7 = vpop.f32.mrb[16].mxu0 }
 0x109   : > { %824 = vst.msk [vmem:[%s2145_s13 + $0x28] sm:$0xff] %vm495_vm1, %v821_v4  ;;  %v1811_v8 = vpop.f32.mrb[16].mxu1  ;;  %v897_v9 = vpop.f32.mrb[17].mxu0 }
 0x10a   : > { %822 = vst.msk [vmem:[%s2145_s13 + $0x18] sm:$0xff] %vm495_vm1, %v819_v5  ;;  %v820_v10 = vmax.f32 %v817_v6, 0.0  ;;  %v972_v11 = vadd.f32 %v1811_v8, %v1803_v7  ;;  %v963_v12 = vpop.f32.mrb[17].mxu1  ;;  %v1804_v13 = vpop.f32.mrb[18].mxu0 }
 0x10b   : > { %v964_v14 = vadd.f32 %v963_v12, %v897_v9  ;;  %v1812_v15 = vpop.f32.mrb[18].mxu1  ;;  %v900_v16 = vpop.f32.mrb[19].mxu0 }
 0x10c   : > { %823 = vst.msk [vmem:[%s2145_s13 + $0x20] sm:$0xff] %vm495_vm1, %v820_v10  ;;  %v966_v17 = vpop.f32.mrb[19].mxu1 }
 0x10d   : > { %v967_v18 = vadd.f32 %v966_v17, %v900_v16 }
 0x110   : > { %v1819_v19 = vpop.f32.mrb[20].mxu0 }
 0x111   : > { %v1055_v20 = vadd.f32 %v1819_v19, %v972_v11  ;;  %v1827_v21 = vpop.f32.mrb[20].mxu1  ;;  %v1039_v22 = vpop.f32.mrb[21].mxu0 }
 0x112   : > { %v1053_v23 = vadd.f32 %v1039_v22, %v964_v14  ;;  %v1118_v25 = vpop.f32.mrb[21].mxu1  ;;  %v1820_v26 = vpop.f32.mrb[22].mxu0 }
 0x113   : > { %v1134_v27 = vadd.f32 %v1827_v21, %v1055_v20  ;;  %v1828_v28 = vpop.f32.mrb[22].mxu1  ;;  %v1042_v29 = vpop.f32.mrb[23].mxu0 }
 0x114   : > { %v1132_v30 = vadd.f32 %v1118_v25, %v1053_v23  ;;  %v1054_v31 = vadd.f32 %v1042_v29, %v967_v18  ;;  %v1121_v32 = vpop.f32.mrb[23].mxu1 }
 0x115   : > { %v1144_v33 = vadd.f32 %v2139_v24, %v1134_v27 }
 0x116   : > { %v1142_v34 = vadd.f32 %v2139_v24, %v1132_v30  ;;  %v1133_v35 = vadd.f32 %v1121_v32, %v1054_v31 }
 0x117   : > { %v1147_v36 = vmax.f32 %v1144_v33, 0.0 }
 0x118   : > { %v1145_v37 = vmax.f32 %v1142_v34, 0.0  ;;  %v1143_v38 = vadd.f32 %v2139_v24, %v1133_v35  ;;  %v1835_v39 = vpop.f32.mrb[24].mxu0 }
 0x119   : > { %1150 = vst.msk [vmem:[%s2145_s13 + $0x40] sm:$0xff] %vm495_vm1, %v1147_v36  ;;  %v1843_v40 = vpop.f32.mrb[24].mxu1  ;;  %v1223_v41 = vpop.f32.mrb[25].mxu0 }
 0x11a   : > { %1148 = vst.msk [vmem:[%s2145_s13 + $0x30] sm:$0xff] %vm495_vm1, %v1145_v37  ;;  %v1146_v42 = vmax.f32 %v1143_v38, 0.0  ;;  %v1298_v43 = vadd.f32 %v1843_v40, %v1835_v39  ;;  %v1289_v44 = vpop.f32.mrb[25].mxu1  ;;  %v1836_v45 = vpop.f32.mrb[26].mxu0 }
 0x11b   : > { %v1290_v46 = vadd.f32 %v1289_v44, %v1223_v41  ;;  %v1844_v47 = vpop.f32.mrb[26].mxu1  ;;  %v1226_v48 = vpop.f32.mrb[27].mxu0 }
 0x11c   : > { %1149 = vst.msk [vmem:[%s2145_s13 + $0x38] sm:$0xff] %vm495_vm1, %v1146_v42  ;;  %v1292_v49 = vpop.f32.mrb[27].mxu1 }
 0x11d   : > { %v1293_v50 = vadd.f32 %v1292_v49, %v1226_v48 }
 0x120   : > { %v1851_v51 = vpop.f32.mrb[28].mxu0 }
 0x121   : > { %v1381_v52 = vadd.f32 %v1851_v51, %v1298_v43  ;;  %v1859_v53 = vpop.f32.mrb[28].mxu1  ;;  %v1365_v54 = vpop.f32.mrb[29].mxu0 }
 0x122   : > { %v1379_v55 = vadd.f32 %v1365_v54, %v1290_v46  ;;  %v1444_v56 = vpop.f32.mrb[29].mxu1  ;;  %v1852_v57 = vpop.f32.mrb[30].mxu0 }
 0x123   : > { %v1460_v58 = vadd.f32 %v1859_v53, %v1381_v52  ;;  %v1860_v59 = vpop.f32.mrb[30].mxu1  ;;  %v1368_v60 = vpop.f32.mrb[31].mxu0 }
 0x124   : > { %v1458_v61 = vadd.f32 %v1444_v56, %v1379_v55  ;;  %v1380_v62 = vadd.f32 %v1368_v60, %v1293_v50  ;;  %v1447_v63 = vpop.f32.mrb[31].mxu1 }
 0x125   : > { %v1470_v0 = vadd.f32 %v2139_v24, %v1460_v58 }
 0x126   : > { %v1468_v1 = vadd.f32 %v2139_v24, %v1458_v61  ;;  %v1459_v2 = vadd.f32 %v1447_v63, %v1380_v62 }
 0x127   : > { %v1473_v3 = vmax.f32 %v1470_v0, 0.0 }
 0x128   : > { %v1471_v4 = vmax.f32 %v1468_v1, 0.0  ;;  %v1469_v5 = vadd.f32 %v2139_v24, %v1459_v2 }
 0x129   : > { %1476 = vst.msk [vmem:[%s2145_s13 + $0x58] sm:$0xff] %vm495_vm1, %v1473_v3 }
 0x12a   : > { %1474 = vst.msk [vmem:[%s2145_s13 + $0x48] sm:$0xff] %vm495_vm1, %v1471_v4  ;;  %v1472_v6 = vmax.f32 %v1469_v5, 0.0 }
 0x12c   : > { %1475 = vst.msk [vmem:[%s2145_s13 + $0x50] sm:$0xff] %vm495_vm1, %v1472_v6 }
 0x12d PF: > { %s13_s12 = sadd.s32 1, %s1909_s12  }
 0x12e   : > { %p10_p4 = scmp.ge.s32.totalorder %s13_s12, 4  }
 0x130   :  { %12 = sbr.rel (!%p10_p4) target bundleno = 1 (0x1), region = 77 }

// kernel: cnn_vae_forward.14
= control target key start
LH: loop header
LB: loop body
LE: loop exit
PB: predicated region body
PF: predicated region fallthrough
CT: control target
= control target key end

     0   :  { %s2894_s12 = smov 0   ;;  %s3682_s0 = inlined_call_operand.vmem [shape: f32[2,108,16], index: 0, kind: input, shape index: {}]   ;;  %s3683_s1 = inlined_call_operand.vmem [shape: bf16[4,4,16,8], index: 1, kind: input, shape index: {}]   ;;  %s3684_s2 = inlined_call_operand.vmem [shape: f32[1,8], index: 2, kind: input, shape index: {}]   ;;  %s3685_s3 = inlined_call_operand.vmem [shape: f32[2,320,8], index: 3, kind: output, shape index: {}]  }
   0x1 LB: > { %s2248_s13 = sadd.s32 4294967295, %s2870_s12   ;;  %p2252_p0 = scmp.ge.s32.totalorder %s2870_s12, 1  ;;  %s2870_s12 = sphi %s2894_s12, %s13_s12  }
   0x2   : > { %p137_p1 = scmp.lt.s32.totalorder %s2870_s12, 3 }
   0x4   : > { %p138_p2 = pnand %p2252_p0, %p137_p1 }
   0x5   : > { %v2847_v0 = vld [vmem:[%s3683_s1 + $0x8] sm:$0xff] (!%p138_p2)   ;;  %v2872_v1 = vmov (!%p138_p2), 0.0   ;;  %v2848_v2 = vld [vmem:[%s3683_s1] sm:$0xff] (!%p138_p2)   ;;  %vm2873_vm0 = vmmov (!%p138_p2), 0   ;;  %p161_p3 = scmp.lt.s32.totalorder (!%p138_p2), %s2248_s13, 1  ;;  %v2849_v3 = vld [vmem:[%s3683_s1 + $0x10] sm:$0xff] (!%p138_p2)  }
   0x6   : > { %141 = sbr.rel (%p138_p2) target bundleno = 555 (0x22b), region = 32  ;;  %2483 = vmatprep.subr.bf16.mxu0 (!%p138_p2), %v2872_v1  ;;  %2505 = vmatprep.subr.bf16.mxu1 (!%p138_p2), %v2872_v1  ;;  %vm213_vm1 = vcmask (!%p138_p2), 130048   ;;  %v2850_v9 = vld [vmem:[%s3683_s1 + $0x18] sm:$0xff] (!%p138_p2)   ;;  %v2851_v41 = vld [vmem:[%s3683_s1 + $0x28] sm:$0xff] (!%p138_p2)   ;;  %v2852_v42 = vld [vmem:[%s3683_s1 + $0x20] sm:$0xff] (!%p138_p2)   ;;  %vm667_vm2 = vcmask (!%p138_p2), 64512  }
   0x7   : > { %2484 = vmatpush3.bf16.msra.mxu0 (!%p138_p2), %v2847_v0  ;;  %2485 = vmatprep.mubr.msk.bf16.mxu0 (!%p138_p2), %vm2873_vm0, %v2872_v1 }
   0x8   : > { %2506 = vmatpush3.bf16.msra.mxu1 (!%p138_p2), %v2848_v2  ;;  %2507 = vmatprep.mubr.msk.bf16.mxu1 (!%p138_p2), %vm2873_vm0, %v2872_v1 }
   0x9   : > { %2527 = vmatprep.subr.bf16.mxu0 (!%p138_p2), %v2872_v1  ;;  %2549 = vmatprep.subr.bf16.mxu1 (!%p138_p2), %v2872_v1 }
   0xd   : > { %s3687_s13 = smov (!%p161_p3, %s2248_s13), 1 }
   0xe   : > { %s2835_s18 = smul.u32 112, %s3687_s13 }
   0xf   : > { %s2836_s26 = smul.u32 320, %s3687_s13 }
  0x10   : > { %s2922_s21 = scalar_lea.vmem %s3682_s0, %s2835_s18 }
  0x11   : > { %v189_v4 = vld [vmem:[%s2922_s21 + $0x1] sm:$0xff]  ;;  %v190_v5 = vld [vmem:[%s2922_s21 + $0x9] sm:$0xff]  ;;  %v191_v11 = vld [vmem:[%s2922_s21 + $0x11] sm:$0xff]  ;;  %s3423_s30 = scalar_lea.vmem %s3685_s3, %s2836_s26 }
  0x12   : > { %v172_v6 = vld [vmem:[%s2922_s21] sm:$0xff]  ;;  %v2930_v7 = vpack.c.bf16 %v190_v5, %v189_v4  ;;  %v173_v8 = vld [vmem:[%s2922_s21 + $0x8] sm:$0xff]  ;;  %v174_v13 = vld [vmem:[%s2922_s21 + $0x10] sm:$0xff] }
  0x13   : > { %v182_v10 = vpack.c.bf16 %v173_v8, %v172_v6  ;;  %v192_v12 = vld [vmem:[%s2922_s21 + $0x19] sm:$0xff]  ;;  %v193_v17 = vld [vmem:[%s2922_s21 + $0x21] sm:$0xff]  ;;  %v194_v18 = vld [vmem:[%s2922_s21 + $0x29] sm:$0xff] }
  0x14   : > { %2486 = vmatmul.mubr.msk.bf16.vlgmr.msra.gmra.mrb[0].mxu0 %vm213_vm1, %v2930_v7  ;;  %v175_v14 = vld [vmem:[%s2922_s21 + $0x18] sm:$0xff]  ;;  %v2948_v15 = vpack.c.bf16 %v192_v12, %v191_v11  ;;  %v176_v19 = vld [vmem:[%s2922_s21 + $0x20] sm:$0xff]  ;;  %v177_v20 = vld [vmem:[%s2922_s21 + $0x28] sm:$0xff]  ;;  %v2962_v21 = vpack.c.bf16 %v194_v18, %v193_v17 }
  0x15   : > { %2508 = vmatmul.mubr.msk.bf16.vlgmr.msra.gmra.mrb[0].mxu1 %vm213_vm1, %v182_v10  ;;  %2528 = vmatpush3.bf16.msra.mxu0 %v2849_v3  ;;  %v183_v16 = vpack.c.bf16 %v175_v14, %v174_v13  ;;  %v184_v22 = vpack.c.bf16 %v177_v20, %v176_v19  ;;  %v195_v23 = vld [vmem:[%s2922_s21 + $0x31] sm:$0xff]  ;;  %v196_v24 = vld [vmem:[%s2922_s21 + $0x39] sm:$0xff]  ;;  %v197_v29 = vld [vmem:[%s2922_s21 + $0x41] sm:$0xff] }
  0x16   : > { %2550 = vmatpush3.bf16.msra.mxu1 %v2850_v9  ;;  %2489 = vmatprep.mubr.msk.bf16.mxu0 %vm2873_vm0, %v2872_v1  ;;  %v178_v25 = vld [vmem:[%s2922_s21 + $0x30] sm:$0xff]  ;;  %v179_v26 = vld [vmem:[%s2922_s21 + $0x38] sm:$0xff]  ;;  %v2975_v27 = vpack.c.bf16 %v196_v24, %v195_v23  ;;  %v180_v31 = vld [vmem:[%s2922_s21 + $0x40] sm:$0xff] }
  0x17   : > { %2511 = vmatprep.mubr.msk.bf16.mxu1 %vm2873_vm0, %v2872_v1  ;;  %2571 = vmatprep.subr.bf16.mxu0 %v2872_v1  ;;  %v185_v28 = vpack.c.bf16 %v179_v26, %v178_v25  ;;  %v198_v30 = vld [vmem:[%s2922_s21 + $0x49] sm:$0xff]  ;;  %v2999_v36 = vld [vmem:[%s2922_s21 + $0x12] sm:$0xff]  ;;  %v3022_v43 = vld [vmem:[%s2922_s21 + $0x1a] sm:$0xff] }
  0x18   : > { %2593 = vmatprep.subr.bf16.mxu1 %v2872_v1  ;;  %v181_v32 = vld [vmem:[%s2922_s21 + $0x48] sm:$0xff]  ;;  %v2988_v33 = vpack.c.bf16 %v198_v30, %v197_v29  ;;  %v519_v38 = vld [vmem:[%s2922_s21 + $0x13] sm:$0xff]  ;;  %v520_v45 = vld [vmem:[%s2922_s21 + $0x1b] sm:$0xff] }
  0x19   : > { %v186_v34 = vpack.c.bf16 %v181_v32, %v180_v31  ;;  %v2996_v35 = vld [vmem:[%s2922_s21 + $0xa] sm:$0xff]  ;;  %v3025_v44 = vld [vmem:[%s2922_s21 + $0x22] sm:$0xff]  ;;  %v401_v50 = vld [vmem:[%s2922_s21 + $0x32] sm:$0xff] }
  0x1a   : > { %v518_v37 = vld [vmem:[%s2922_s21 + $0xb] sm:$0xff]  ;;  %v3007_v39 = vpack.c.bf16 %v2999_v36, %v2996_v35  ;;  %v521_v46 = vld [vmem:[%s2922_s21 + $0x23] sm:$0xff]  ;;  %v3036_v47 = vpack.c.bf16 %v3025_v44, %v3022_v43  ;;  %v523_v52 = vld [vmem:[%s2922_s21 + $0x33] sm:$0xff] }
  0x1b   : > { %v3009_v40 = vpack.c.bf16 %v519_v38, %v518_v37  ;;  %v3039_v48 = vpack.c.bf16 %v521_v46, %v520_v45  ;;  %v400_v49 = vld [vmem:[%s2922_s21 + $0x2a] sm:$0xff]  ;;  %v402_v55 = vld [vmem:[%s2922_s21 + $0x3a] sm:$0xff]  ;;  %v403_v56 = vld [vmem:[%s2922_s21 + $0x42] sm:$0xff] }
  0x1c   : > { %2490 = vmatmul.mubr.msk.bf16.gmra.mrb[4].mxu0 %vm213_vm1, %v2948_v15  ;;  %v522_v51 = vld [vmem:[%s2922_s21 + $0x2b] sm:$0xff]  ;;  %v3053_v53 = vpack.c.bf16 %v401_v50, %v400_v49  ;;  %v524_v57 = vld [vmem:[%s2922_s21 + $0x3b] sm:$0xff]  ;;  %v525_v58 = vld [vmem:[%s2922_s21 + $0x43] sm:$0xff]  ;;  %v3069_v59 = vpack.c.bf16 %v403_v56, %v402_v55 }
  0x1d   : > { %2512 = vmatmul.mubr.msk.bf16.gmra.mrb[4].mxu1 %vm213_vm1, %v183_v16  ;;  %2493 = vmatprep.mubr.msk.bf16.mxu0 %vm2873_vm0, %v2872_v1  ;;  %v3055_v54 = vpack.c.bf16 %v523_v52, %v522_v51  ;;  %v3071_v60 = vpack.c.bf16 %v525_v58, %v524_v57  ;;  %v404_v61 = vld [vmem:[%s2922_s21 + $0x4a] sm:$0xff]  ;;  %v405_v62 = vld [vmem:[%s2922_s21 + $0x52] sm:$0xff]  ;;  %v3085_v0 = vld [vmem:[%s2922_s21 + $0x1c] sm:$0xff]  ;;  %v707_v16 = vpack.c.bf16 %v3022_v43, %v2999_v36 }
  0x1e   : > { %2515 = vmatprep.mubr.msk.bf16.mxu1 %vm2873_vm0, %v2872_v1  ;;  %v3082_v63 = vld [vmem:[%s2922_s21 + $0x14] sm:$0xff]  ;;  %v526_v2 = vld [vmem:[%s2922_s21 + $0x4b] sm:$0xff]  ;;  %v3093_v5 = vpack.c.bf16 %v405_v62, %v404_v61  ;;  %v696_v8 = vld [vmem:[%s2922_s21 + $0x2] sm:$0xff]  ;;  %v710_v17 = vpack.c.bf16 %v404_v61, %v403_v56 }
  0x1f   : > { %v527_v3 = vld [vmem:[%s2922_s21 + $0x53] sm:$0xff]  ;;  %v1417_v4 = vpack.c.bf16 %v3085_v0, %v3082_v63  ;;  %v3107_v9 = vld [vmem:[%s2922_s21 + $0x24] sm:$0xff]  ;;  %v706_v12 = vpack.c.bf16 %v2996_v35, %v696_v8  ;;  %v3209_v25 = vld [vmem:[%s2922_s21 + $0x3c] sm:$0xff] }
  0x20   : > { %v3095_v6 = vpack.c.bf16 %v527_v3, %v526_v2  ;;  %v3110_v10 = vld [vmem:[%s2922_s21 + $0x2c] sm:$0xff]  ;;  %v2854_v14 = vld [vmem:[%s3683_s1 + $0x38] sm:$0xff]   ;;  %v3212_v26 = vld [vmem:[%s2922_s21 + $0x44] sm:$0xff] }
  0x21   : > { %v1418_v11 = vpack.c.bf16 %v3110_v10, %v3107_v9  ;;  %v2853_v13 = vld [vmem:[%s3683_s1 + $0x30] sm:$0xff]   ;;  %v2855_v20 = vld [vmem:[%s3683_s1 + $0x48] sm:$0xff]   ;;  %v2858_v32 = vld [vmem:[%s3683_s1 + $0x58] sm:$0xff]  }
  0x22   : > { %v1024_v18 = vld [vmem:[%s2922_s21 + $0xc] sm:$0xff]  ;;  %v3194_v23 = vld [vmem:[%s2922_s21 + $0x34] sm:$0xff]  ;;  %v2860_v37 = vld [vmem:[%s3683_s1 + $0x60] sm:$0xff]  }
  0x23   : > { %v3163_v19 = vpack.c.bf16 %v3082_v63, %v1024_v18  ;;  %v3198_v24 = vpack.c.bf16 %v3194_v23, %v3110_v10  ;;  %v3230_v29 = vld [vmem:[%s2922_s21 + $0x54] sm:$0xff]  ;;  %v2859_v36 = vld [vmem:[%s3683_s1 + $0x68] sm:$0xff]   ;;  %v1534_v43 = vld [vmem:[%s2922_s21 + $0x3d] sm:$0xff] }
  0x24   : > { %2494 = vmatmul.mubr.msk.bf16.gmra.mrb[8].mxu0 %vm213_vm1, %v2962_v21  ;;  %v2857_v31 = vld [vmem:[%s3683_s1 + $0x50] sm:$0xff]   ;;  %v1531_v38 = vld [vmem:[%s2922_s21 + $0x25] sm:$0xff] }
  0x25   : > { %2516 = vmatmul.mubr.msk.bf16.gmra.mrb[8].mxu1 %vm213_vm1, %v184_v22  ;;  %2497 = vmatprep.mubr.msk.bf16.mxu0 %vm2873_vm0, %v2872_v1  ;;  %v3183_v22 = vpack.c.bf16 %v3107_v9, %v3085_v0  ;;  %v1535_v58 = vld [vmem:[%s2922_s21 + $0x45] sm:$0xff] }
  0x26   : > { %2519 = vmatprep.mubr.msk.bf16.mxu1 %vm2873_vm0, %v2872_v1 }
  0x2c   : > { %2498 = vmatmul.mubr.msk.bf16.gmra.mrb[12].mxu0 %vm213_vm1, %v2975_v27 }
  0x2d   : > { %2520 = vmatmul.mubr.msk.bf16.gmra.mrb[12].mxu1 %vm213_vm1, %v185_v28  ;;  %2501 = vmatprep.mubr.msk.bf16.mxu0 %vm2873_vm0, %v2872_v1  ;;  %v3227_v28 = vld [vmem:[%s2922_s21 + $0x4c] sm:$0xff] }
  0x2e   : > { %2523 = vmatprep.mubr.msk.bf16.mxu1 %vm2873_vm0, %v2872_v1  ;;  %v3234_v30 = vpack.c.bf16 %v3230_v29, %v3227_v28  ;;  %v1420_v0 = vpack.c.bf16 %v3227_v28, %v3212_v26 }
  0x34   : > { %2502 = vmatmul.mubr.msk.bf16.gmra.mrb[16].mxu0 %vm213_vm1, %v2988_v33 }
  0x35   : > { %2524 = vmatmul.mubr.msk.bf16.gmra.mrb[16].mxu1 %vm213_vm1, %v186_v34  ;;  %2529 = vmatprep.mubr.msk.bf16.mxu0 %vm2873_vm0, %v2872_v1  ;;  %v1530_v34 = vld [vmem:[%s2922_s21 + $0x1d] sm:$0xff] }
  0x36   : > { %2551 = vmatprep.mubr.msk.bf16.mxu1 %vm2873_vm0, %v2872_v1 }
  0x3c   : > { %2530 = vmatmul.mubr.msk.bf16.vlgmr.msra.gmra.mrb[20].mxu0 %vm213_vm1, %v3007_v39 }
  0x3d   : > { %2552 = vmatmul.mubr.msk.bf16.vlgmr.msra.gmra.mrb[20].mxu1 %vm213_vm1, %v3009_v40  ;;  %2572 = vmatpush3.bf16.msra.mxu0 %v2851_v41 }
  0x3e   : > { %2594 = vmatpush3.bf16.msra.mxu1 %v2852_v42  ;;  %2533 = vmatprep.mubr.msk.bf16.mxu0 %vm2873_vm0, %v2872_v1  ;;  %v1533_v42 = vld [vmem:[%s2922_s21 + $0x35] sm:$0xff] }
  0x3f   : > { %2555 = vmatprep.mubr.msk.bf16.mxu1 %vm2873_vm0, %v2872_v1  ;;  %2615 = vmatprep.subr.bf16.mxu0 %v2872_v1  ;;  %v3334_v52 = vpack.c.bf16 %v1534_v43, %v1533_v42  ;;  %v2862_v43 = vld [vmem:[%s3683_s1 + $0x78] sm:$0xff]  }
  0x40   : > { %2637 = vmatprep.subr.bf16.mxu1 %v2872_v1 }
  0x44   : > { %2534 = vmatmul.mubr.msk.bf16.gmra.mrb[24].mxu0 %vm213_vm1, %v3036_v47 }
  0x45   : > { %2556 = vmatmul.mubr.msk.bf16.gmra.mrb[24].mxu1 %vm213_vm1, %v3039_v48  ;;  %2537 = vmatprep.mubr.msk.bf16.mxu0 %vm2873_vm0, %v2872_v1 }
  0x46   : > { %2559 = vmatprep.mubr.msk.bf16.mxu1 %vm2873_vm0, %v2872_v1 }
  0x4c   : > { %2538 = vmatmul.mubr.msk.bf16.gmra.mrb[28].mxu0 %vm213_vm1, %v3053_v53 }
  0x4d   : > { %2560 = vmatmul.mubr.msk.bf16.gmra.mrb[28].mxu1 %vm213_vm1, %v3055_v54  ;;  %2541 = vmatprep.mubr.msk.bf16.mxu0 %vm2873_vm0, %v2872_v1 }
  0x4e   : > { %2563 = vmatprep.mubr.msk.bf16.mxu1 %vm2873_vm0, %v2872_v1 }
  0x54   : > { %2542 = vmatmul.mubr.msk.bf16.gmra.mrb[32].mxu0 %vm213_vm1, %v3069_v59 }
  0x55   : > { %2564 = vmatmul.mubr.msk.bf16.gmra.mrb[32].mxu1 %vm213_vm1, %v3071_v60  ;;  %2545 = vmatprep.mubr.msk.bf16.mxu0 %vm2873_vm0, %v2872_v1 }
  0x56   : > { %2567 = vmatprep.mubr.msk.bf16.mxu1 %vm2873_vm0, %v2872_v1 }
  0x5c   : > { %2546 = vmatmul.mubr.msk.bf16.gmra.mrb[36].mxu0 %vm213_vm1, %v3093_v5 }
  0x5d   : > { %2568 = vmatmul.mubr.msk.bf16.gmra.mrb[36].mxu1 %vm213_vm1, %v3095_v6  ;;  %2573 = vmatprep.mubr.msk.bf16.mxu0 %vm2873_vm0, %v2872_v1 }
  0x5e   : > { %2595 = vmatprep.mubr.msk.bf16.mxu1 %vm2873_vm0, %v2872_v1 }
  0x64   : > { %2574 = vmatmul.mubr.msk.bf16.vlgmr.msra.gmra.mrb[40].mxu0 %vm213_vm1, %v706_v12  ;;  %v1416_v12 = vld [vmem:[%s2922_s21 + $0x5c] sm:$0xff] }
  0x65   : > { %2596 = vmatmul.mubr.msk.bf16.vlgmr.msra.gmra.mrb[40].mxu1 %vm213_vm1, %v2930_v7  ;;  %2616 = vmatpush3.bf16.msra.mxu0 %v2853_v13  ;;  %v708_v7 = vpack.c.bf16 %v400_v49, %v3025_v44  ;;  %v1537_v13 = vld [vmem:[%s2922_s21 + $0x55] sm:$0xff] }
  0x66   : > { %2638 = vmatpush3.bf16.msra.mxu1 %v2854_v14  ;;  %2577 = vmatprep.mubr.msk.bf16.mxu0 %vm2873_vm0, %v2872_v1  ;;  %v1538_v14 = vld [vmem:[%s2922_s21 + $0x5d] sm:$0xff] }
  0x67   : > { %2599 = vmatprep.mubr.msk.bf16.mxu1 %vm2873_vm0, %v2872_v1  ;;  %2659 = vmatprep.subr.bf16.mxu0 %v2872_v1 }
  0x68   : > { %2681 = vmatprep.subr.bf16.mxu1 %v2872_v1 }
  0x6c   : > { %2578 = vmatmul.mubr.msk.bf16.gmra.mrb[44].mxu0 %vm213_vm1, %v707_v16 }
  0x6d   : > { %2600 = vmatmul.mubr.msk.bf16.gmra.mrb[44].mxu1 %vm213_vm1, %v2948_v15  ;;  %2581 = vmatprep.mubr.msk.bf16.mxu0 %vm2873_vm0, %v2872_v1  ;;  %v709_v15 = vpack.c.bf16 %v402_v55, %v401_v50 }
  0x6e   : > { %2603 = vmatprep.mubr.msk.bf16.mxu1 %vm2873_vm0, %v2872_v1 }
  0x74   : > { %2582 = vmatmul.mubr.msk.bf16.gmra.mrb[48].mxu0 %vm213_vm1, %v708_v7 }
  0x75   : > { %2604 = vmatmul.mubr.msk.bf16.gmra.mrb[48].mxu1 %vm213_vm1, %v2962_v21  ;;  %2585 = vmatprep.mubr.msk.bf16.mxu0 %vm2873_vm0, %v2872_v1  ;;  %v2856_v21 = vld [vmem:[%s3683_s1 + $0x40] sm:$0xff]  }
  0x76   : > { %2607 = vmatprep.mubr.msk.bf16.mxu1 %vm2873_vm0, %v2872_v1 }
  0x7c   : > { %2586 = vmatmul.mubr.msk.bf16.gmra.mrb[52].mxu0 %vm213_vm1, %v709_v15 }
  0x7d   : > { %2608 = vmatmul.mubr.msk.bf16.gmra.mrb[52].mxu1 %vm213_vm1, %v2975_v27  ;;  %2589 = vmatprep.mubr.msk.bf16.mxu0 %vm2873_vm0, %v2872_v1  ;;  %v3216_v27 = vpack.c.bf16 %v3212_v26, %v3209_v25 }
  0x7e   : > { %2611 = vmatprep.mubr.msk.bf16.mxu1 %vm2873_vm0, %v2872_v1 }
  0x84   : > { %2590 = vmatmul.mubr.msk.bf16.gmra.mrb[56].mxu0 %vm213_vm1, %v710_v17  ;;  %v1421_v17 = vpack.c.bf16 %v1416_v12, %v3230_v29 }
  0x85   : > { %2612 = vmatmul.mubr.msk.bf16.gmra.mrb[56].mxu1 %vm213_vm1, %v2988_v33  ;;  %2617 = vmatprep.mubr.msk.bf16.mxu0 %vm2873_vm0, %v2872_v1  ;;  %v1529_v33 = vld [vmem:[%s2922_s21 + $0x15] sm:$0xff] }
  0x86   : > { %2639 = vmatprep.mubr.msk.bf16.mxu1 %vm2873_vm0, %v2872_v1  ;;  %v3294_v35 = vpack.c.bf16 %v1530_v34, %v1529_v33 }
  0x8c   : > { %2618 = vmatmul.mubr.msk.bf16.vlgmr.msra.gmra.mrb[60].mxu0 %vm213_vm1, %v3009_v40 }
  0x8d   : > { %2640 = vmatmul.mubr.msk.bf16.vlgmr.msra.gmra.mrb[60].mxu1 %vm213_vm1, %v3163_v19  ;;  %2660 = vmatpush3.bf16.msra.mxu0 %v2855_v20 }
  0x8e   : > { %2682 = vmatpush3.bf16.msra.mxu1 %v2856_v21  ;;  %2621 = vmatprep.mubr.msk.bf16.mxu0 %vm2873_vm0, %v2872_v1 }
  0x8f   : > { %2643 = vmatprep.mubr.msk.bf16.mxu1 %vm2873_vm0, %v2872_v1  ;;  %2703 = vmatprep.subr.bf16.mxu0 %v2872_v1 }
  0x90   : > { %2725 = vmatprep.subr.bf16.mxu1 %v2872_v1 }
  0x94   : > { %2622 = vmatmul.mubr.msk.bf16.gmra.mrb[64].mxu0 %vm213_vm1, %v3039_v48 }
  0x95   : > { %2644 = vmatmul.mubr.msk.bf16.gmra.mrb[64].mxu1 %vm213_vm1, %v3183_v22  ;;  %2625 = vmatprep.mubr.msk.bf16.mxu0 %vm2873_vm0, %v2872_v1 }
  0x96   : > { %2647 = vmatprep.mubr.msk.bf16.mxu1 %vm2873_vm0, %v2872_v1 }
  0x9c   : > { %2626 = vmatmul.mubr.msk.bf16.gmra.mrb[68].mxu0 %vm213_vm1, %v3055_v54 }
  0x9d   : > { %2648 = vmatmul.mubr.msk.bf16.gmra.mrb[68].mxu1 %vm213_vm1, %v3198_v24  ;;  %2629 = vmatprep.mubr.msk.bf16.mxu0 %vm2873_vm0, %v2872_v1 }
  0x9e   : > { %2651 = vmatprep.mubr.msk.bf16.mxu1 %vm2873_vm0, %v2872_v1 }
  0xa4   : > { %2630 = vmatmul.mubr.msk.bf16.gmra.mrb[72].mxu0 %vm213_vm1, %v3071_v60 }
  0xa5   : > { %2652 = vmatmul.mubr.msk.bf16.gmra.mrb[72].mxu1 %vm213_vm1, %v3216_v27  ;;  %2633 = vmatprep.mubr.msk.bf16.mxu0 %vm2873_vm0, %v2872_v1 }
  0xa6   : > { %2655 = vmatprep.mubr.msk.bf16.mxu1 %vm2873_vm0, %v2872_v1 }
  0xac   : > { %2634 = vmatmul.mubr.msk.bf16.gmra.mrb[76].mxu0 %vm213_vm1, %v3095_v6 }
  0xad   : > { %2656 = vmatmul.mubr.msk.bf16.gmra.mrb[76].mxu1 %vm213_vm1, %v3234_v30  ;;  %2661 = vmatprep.mubr.msk.bf16.mxu0 %vm2873_vm0, %v2872_v1 }
  0xae   : > { %2683 = vmatprep.mubr.msk.bf16.mxu1 %vm2873_vm0, %v2872_v1 }
  0xb4   : > { %2662 = vmatmul.mubr.msk.bf16.vlgmr.msra.gmra.mrb[80].mxu0 %vm213_vm1, %v3009_v40 }
  0xb5   : > { %2684 = vmatmul.mubr.msk.bf16.vlgmr.msra.gmra.mrb[80].mxu1 %vm213_vm1, %v3007_v39  ;;  %2704 = vmatpush3.bf16.msra.mxu0 %v2857_v31  ;;  %v1532_v39 = vld [vmem:[%s2922_s21 + $0x2d] sm:$0xff] }
  0xb6   : > { %2726 = vmatpush3.bf16.msra.mxu1 %v2858_v32  ;;  %2665 = vmatprep.mubr.msk.bf16.mxu0 %vm2873_vm0, %v2872_v1  ;;  %v3316_v41 = vpack.c.bf16 %v1532_v39, %v1531_v38  ;;  %v2861_v38 = vld [vmem:[%s3683_s1 + $0x70] sm:$0xff]  }
  0xb7   : > { %2687 = vmatprep.mubr.msk.bf16.mxu1 %vm2873_vm0, %v2872_v1  ;;  %2747 = vmatprep.subr.bf16.mxu0 %v2872_v1 }
  0xb8   : > { %2769 = vmatprep.subr.bf16.mxu1 %v2872_v1 }
  0xbc   : > { %2666 = vmatmul.mubr.msk.bf16.gmra.mrb[84].mxu0 %vm213_vm1, %v3039_v48 }
  0xbd   : > { %2688 = vmatmul.mubr.msk.bf16.gmra.mrb[84].mxu1 %vm213_vm1, %v3036_v47  ;;  %2669 = vmatprep.mubr.msk.bf16.mxu0 %vm2873_vm0, %v2872_v1  ;;  %v1419_v47 = vpack.c.bf16 %v3209_v25, %v3194_v23  ;;  %v3368_v23 = vpack.c.bf16 %v1538_v14, %v1537_v13 }
  0xbe   : > { %2691 = vmatprep.mubr.msk.bf16.mxu1 %vm2873_vm0, %v2872_v1 }
  0xc4   : > { %2670 = vmatmul.mubr.msk.bf16.gmra.mrb[88].mxu0 %vm213_vm1, %v3055_v54 }
  0xc5   : > { %2692 = vmatmul.mubr.msk.bf16.gmra.mrb[88].mxu1 %vm213_vm1, %v3053_v53  ;;  %2673 = vmatprep.mubr.msk.bf16.mxu0 %vm2873_vm0, %v2872_v1 }
  0xc6   : > { %2695 = vmatprep.mubr.msk.bf16.mxu1 %vm2873_vm0, %v2872_v1 }
  0xcc   : > { %2674 = vmatmul.mubr.msk.bf16.gmra.mrb[92].mxu0 %vm213_vm1, %v3071_v60 }
  0xcd   : > { %2696 = vmatmul.mubr.msk.bf16.gmra.mrb[92].mxu1 %vm213_vm1, %v3069_v59  ;;  %2677 = vmatprep.mubr.msk.bf16.mxu0 %vm2873_vm0, %v2872_v1  ;;  %v1536_v59 = vld [vmem:[%s2922_s21 + $0x4d] sm:$0xff] }
  0xce   : > { %2699 = vmatprep.mubr.msk.bf16.mxu1 %vm2873_vm0, %v2872_v1 }
  0xd4   : > { %2678 = vmatmul.mubr.msk.bf16.gmra.mrb[96].mxu0 %vm213_vm1, %v3095_v6 }
  0xd5   : > { %2700 = vmatmul.mubr.msk.bf16.gmra.mrb[96].mxu1 %vm213_vm1, %v3093_v5  ;;  %2705 = vmatprep.mubr.msk.bf16.mxu0 %vm2873_vm0, %v2872_v1  ;;  %v3351_v5 = vpack.c.bf16 %v1536_v59, %v1535_v58 }
  0xd6   : > { %2727 = vmatprep.mubr.msk.bf16.mxu1 %vm2873_vm0, %v2872_v1 }
  0xdc   : > { %2706 = vmatmul.mubr.msk.bf16.vlgmr.msra.gmra.mrb[100].mxu0 %vm213_vm1, %v1417_v4 }
  0xdd   : > { %2728 = vmatmul.mubr.msk.bf16.vlgmr.msra.gmra.mrb[100].mxu1 %vm213_vm1, %v3294_v35  ;;  %2748 = vmatpush3.bf16.msra.mxu0 %v2859_v36 }
  0xde   : > { %2770 = vmatpush3.bf16.msra.mxu1 %v2860_v37  ;;  %2709 = vmatprep.mubr.msk.bf16.mxu0 %vm2873_vm0, %v2872_v1 }
  0xdf   : > { %2731 = vmatprep.mubr.msk.bf16.mxu1 %vm2873_vm0, %v2872_v1  ;;  %2791 = vmatprep.subr.bf16.mxu0 %v2872_v1 }
  0xe0   : > { %2813 = vmatprep.subr.bf16.mxu1 %v2872_v1 }
  0xe4   : > { %2710 = vmatmul.mubr.msk.bf16.gmra.mrb[104].mxu0 %vm213_vm1, %v1418_v11 }
  0xe5   : > { %2732 = vmatmul.mubr.msk.bf16.gmra.mrb[104].mxu1 %vm213_vm1, %v3316_v41  ;;  %2713 = vmatprep.mubr.msk.bf16.mxu0 %vm2873_vm0, %v2872_v1 }
  0xe6   : > { %2735 = vmatprep.mubr.msk.bf16.mxu1 %vm2873_vm0, %v2872_v1 }
  0xe7   : > { %v263_v44 = vpop.f32.mrb[0].mxu0 }
  0xe8   : > { %v357_v45 = vpop.f32.mrb[0].mxu1  ;;  %v2487_v46 = vpop.f32.mrb[1].mxu0 }
  0xe9   : > { %v3332_v49 = vadd.f32 %v357_v45, %v263_v44  ;;  %v2509_v50 = vpop.f32.mrb[1].mxu1  ;;  %v266_v51 = vpop.f32.mrb[2].mxu0 }
  0xea   : > { %v360_v53 = vpop.f32.mrb[2].mxu1  ;;  %v2488_v55 = vpop.f32.mrb[3].mxu0 }
  0xeb   : > { %v3336_v56 = vadd.f32 %v360_v53, %v266_v51  ;;  %v2510_v57 = vpop.f32.mrb[3].mxu1 }
  0xec   : > { %2714 = vmatmul.mubr.msk.bf16.gmra.mrb[108].mxu0 %vm213_vm1, %v1419_v47 }
  0xed   : > { %2736 = vmatmul.mubr.msk.bf16.gmra.mrb[108].mxu1 %vm213_vm1, %v3334_v52  ;;  %2717 = vmatprep.mubr.msk.bf16.mxu0 %vm2873_vm0, %v2872_v1 }
  0xee   : > { %2739 = vmatprep.mubr.msk.bf16.mxu1 %vm2873_vm0, %v2872_v1 }
  0xef   : > { %v271_v61 = vpop.f32.mrb[4].mxu0 }
  0xf0   : > { %v365_v62 = vpop.f32.mrb[4].mxu1  ;;  %v2491_v63 = vpop.f32.mrb[5].mxu0 }
  0xf1   : > { %v3349_v2 = vadd.f32 %v365_v62, %v271_v61  ;;  %v2513_v3 = vpop.f32.mrb[5].mxu1  ;;  %v274_v4 = vpop.f32.mrb[6].mxu0 }
  0xf2   : > { %v368_v8 = vpop.f32.mrb[6].mxu1  ;;  %v2492_v9 = vpop.f32.mrb[7].mxu0 }
  0xf3   : > { %v3353_v10 = vadd.f32 %v368_v8, %v274_v4  ;;  %v2514_v11 = vpop.f32.mrb[7].mxu1 }
  0xf4   : > { %2718 = vmatmul.mubr.msk.bf16.gmra.mrb[112].mxu0 %vm213_vm1, %v1420_v0  ;;  %v3414_v0 = vld [vmem:[%s3684_s2] ss:$0 sm:$0xff] }
  0xf5   : > { %2740 = vmatmul.mubr.msk.bf16.gmra.mrb[112].mxu1 %vm213_vm1, %v3351_v5  ;;  %2721 = vmatprep.mubr.msk.bf16.mxu0 %vm2873_vm0, %v2872_v1 }
  0xf6   : > { %2743 = vmatprep.mubr.msk.bf16.mxu1 %vm2873_vm0, %v2872_v1 }
  0xf7   : > { %v279_v16 = vpop.f32.mrb[8].mxu0 }
  0xf8   : > { %v373_v7 = vpop.f32.mrb[8].mxu1  ;;  %v2495_v15 = vpop.f32.mrb[9].mxu0 }
  0xf9   : > { %v3366_v18 = vadd.f32 %v373_v7, %v279_v16  ;;  %v2517_v20 = vpop.f32.mrb[9].mxu1  ;;  %v282_v21 = vpop.f32.mrb[10].mxu0 }
  0xfa   : > { %v376_v25 = vpop.f32.mrb[10].mxu1  ;;  %v2496_v26 = vpop.f32.mrb[11].mxu0 }
  0xfb   : > { %v3370_v28 = vadd.f32 %v376_v25, %v282_v21  ;;  %v2518_v31 = vpop.f32.mrb[11].mxu1 }
  0xfc   : > { %2722 = vmatmul.mubr.msk.bf16.gmra.mrb[116].mxu0 %vm213_vm1, %v1421_v17 }
  0xfd   : > { %2744 = vmatmul.mubr.msk.bf16.gmra.mrb[116].mxu1 %vm213_vm1, %v3368_v23  ;;  %2749 = vmatprep.mubr.msk.bf16.mxu0 %vm2873_vm0, %v2872_v1 }
  0xfe   : > { %2771 = vmatprep.mubr.msk.bf16.mxu1 %vm2873_vm0, %v2872_v1 }
  0xff   : > { %v287_v29 = vpop.f32.mrb[12].mxu0 }
 0x100   : > { %v381_v32 = vpop.f32.mrb[12].mxu1  ;;  %v2499_v33 = vpop.f32.mrb[13].mxu0 }
 0x101   : > { %v3379_v34 = vadd.f32 %v381_v32, %v287_v29  ;;  %v2521_v36 = vpop.f32.mrb[13].mxu1  ;;  %v290_v37 = vpop.f32.mrb[14].mxu0 }
 0x102   : > { %v384_v39 = vpop.f32.mrb[14].mxu1  ;;  %v2500_v42 = vpop.f32.mrb[15].mxu0 }
 0x103   : > { %v3387_v44 = vadd.f32 %v384_v39, %v290_v37  ;;  %v2522_v45 = vpop.f32.mrb[15].mxu1 }
 0x104   : > { %2750 = vmatmul.mubr.msk.bf16.vlgmr.msra.gmra.mrb[120].mxu0 %vm213_vm1, %v3163_v19 }
 0x105   : > { %2772 = vmatmul.mubr.msk.bf16.vlgmr.msra.gmra.mrb[120].mxu1 %vm213_vm1, %v3009_v40  ;;  %2792 = vmatpush3.bf16.msra.mxu0 %v2861_v38 }
 0x106   : > { %2814 = vmatpush3.bf16.msra.mxu1 %v2862_v43  ;;  %2753 = vmatprep.mubr.msk.bf16.mxu0 %vm2873_vm0, %v2872_v1 }
 0x107   : > { %v295_v46 = vpop.f32.mrb[16].mxu0  ;;  %2775 = vmatprep.mubr.msk.bf16.mxu1 %vm2873_vm0, %v2872_v1 }
 0x108   : > { %v389_v47 = vpop.f32.mrb[16].mxu1  ;;  %v2503_v50 = vpop.f32.mrb[17].mxu0 }
 0x109   : > { %v3397_v51 = vadd.f32 %v389_v47, %v295_v46  ;;  %v2525_v53 = vpop.f32.mrb[17].mxu1  ;;  %v298_v55 = vpop.f32.mrb[18].mxu0 }
 0x10a   : > { %v392_v19 = vpop.f32.mrb[18].mxu1  ;;  %v2504_v57 = vpop.f32.mrb[19].mxu0 }
 0x10b   : > { %v3399_v58 = vadd.f32 %v392_v19, %v298_v55  ;;  %v2526_v40 = vpop.f32.mrb[19].mxu1  ;;  %v2035_v19 = vld [vmem:[%s2922_s21 + $0x1e] sm:$0xff] }
 0x10c   : > { %2754 = vmatmul.mubr.msk.bf16.gmra.mrb[124].mxu0 %vm213_vm1, %v3183_v22 }
 0x10d   : > { %2776 = vmatmul.mubr.msk.bf16.gmra.mrb[124].mxu1 %vm213_vm1, %v3039_v48  ;;  %2757 = vmatprep.mubr.msk.bf16.mxu0 %vm2873_vm0, %v2872_v1 }
 0x10e   : > { %2779 = vmatprep.mubr.msk.bf16.mxu1 %vm2873_vm0, %v2872_v1 }
 0x10f   : > { %v469_v59 = vpop.f32.mrb[20].mxu0 }
 0x110   : > { %v508_v61 = vadd.f32 %v469_v59, %v3332_v49  ;;  %v591_v62 = vpop.f32.mrb[20].mxu1  ;;  %v2531_v63 = vpop.f32.mrb[21].mxu0 }
 0x111   : > { %v2553_v22 = vpop.f32.mrb[21].mxu1  ;;  %v472_v3 = vpop.f32.mrb[22].mxu0 }
 0x112   : > { %v630_v48 = vadd.f32 %v591_v62, %v508_v61  ;;  %v509_v4 = vadd.f32 %v472_v3, %v3336_v56  ;;  %v594_v8 = vpop.f32.mrb[22].mxu1  ;;  %v2532_v9 = vpop.f32.mrb[23].mxu0 }
 0x113   : > { %v2554_v11 = vpop.f32.mrb[23].mxu1 }
 0x114   : > { %v647_v12 = vadd.f32 %v3414_v0, %v630_v48  ;;  %v631_v13 = vadd.f32 %v594_v8, %v509_v4  ;;  %2758 = vmatmul.mubr.msk.bf16.gmra.mrb[128].mxu0 %vm213_vm1, %v3198_v24 }
 0x115   : > { %2780 = vmatmul.mubr.msk.bf16.gmra.mrb[128].mxu1 %vm213_vm1, %v3055_v54  ;;  %2761 = vmatprep.mubr.msk.bf16.mxu0 %vm2873_vm0, %v2872_v1 }
 0x116   : > { %v657_v49 = vmax.f32 %v647_v12, 0.0  ;;  %v648_v56 = vadd.f32 %v3414_v0, %v631_v13  ;;  %2783 = vmatprep.mubr.msk.bf16.mxu1 %vm2873_vm0, %v2872_v1  ;;  %v2037_v13 = vld [vmem:[%s2922_s21 + $0x2e] sm:$0xff] }
 0x117   : > { %v477_v24 = vpop.f32.mrb[24].mxu0 }
 0x118   : > { %668 = vst.msk [vmem:[%s3423_s30] sm:$0xff] %vm667_vm2, %v657_v49  ;;  %v658_v14 = vmax.f32 %v648_v56, 0.0  ;;  %v510_v16 = vadd.f32 %v477_v24, %v3349_v2  ;;  %v599_v7 = vpop.f32.mrb[24].mxu1  ;;  %v2535_v15 = vpop.f32.mrb[25].mxu0 }
 0x119   : > { %v2557_v17 = vpop.f32.mrb[25].mxu1  ;;  %v480_v20 = vpop.f32.mrb[26].mxu0 }
 0x11a   : > { %669 = vst.msk [vmem:[%s3423_s30 + $0x8] sm:$0xff] %vm667_vm2, %v658_v14  ;;  %v632_v54 = vadd.f32 %v599_v7, %v510_v16  ;;  %v511_v21 = vadd.f32 %v480_v20, %v3353_v10  ;;  %v602_v25 = vpop.f32.mrb[26].mxu1  ;;  %v2536_v26 = vpop.f32.mrb[27].mxu0 }
 0x11b   : > { %v2558_v31 = vpop.f32.mrb[27].mxu1 }
 0x11c   : > { %v649_v29 = vadd.f32 %v3414_v0, %v632_v54  ;;  %v633_v32 = vadd.f32 %v602_v25, %v511_v21  ;;  %2762 = vmatmul.mubr.msk.bf16.gmra.mrb[132].mxu0 %vm213_vm1, %v3216_v27 }
 0x11d   : > { %2784 = vmatmul.mubr.msk.bf16.gmra.mrb[132].mxu1 %vm213_vm1, %v3071_v60  ;;  %2765 = vmatprep.mubr.msk.bf16.mxu0 %vm2873_vm0, %v2872_v1 }
 0x11e   : > { %v659_v2 = vmax.f32 %v649_v29, 0.0  ;;  %v650_v33 = vadd.f32 %v3414_v0, %v633_v32  ;;  %2787 = vmatprep.mubr.msk.bf16.mxu1 %vm2873_vm0, %v2872_v1  ;;  %v2039_v32 = vld [vmem:[%s2922_s21 + $0x3e] sm:$0xff] }
 0x11f   : > { %v485_v10 = vpop.f32.mrb[28].mxu0 }
 0x120   : > { %670 = vst.msk [vmem:[%s3423_s30 + $0x10] sm:$0xff] %vm667_vm2, %v659_v2  ;;  %v660_v36 = vmax.f32 %v650_v33, 0.0  ;;  %v512_v37 = vadd.f32 %v485_v10, %v3366_v18  ;;  %v607_v38 = vpop.f32.mrb[28].mxu1  ;;  %v2539_v27 = vpop.f32.mrb[29].mxu0 }
 0x121   : > { %v2561_v39 = vpop.f32.mrb[29].mxu1  ;;  %v488_v60 = vpop.f32.mrb[30].mxu0 }
 0x122   : > { %671 = vst.msk [vmem:[%s3423_s30 + $0x18] sm:$0xff] %vm667_vm2, %v660_v36  ;;  %v634_v42 = vadd.f32 %v607_v38, %v512_v37  ;;  %v513_v43 = vadd.f32 %v488_v60, %v3370_v28  ;;  %v610_v45 = vpop.f32.mrb[30].mxu1  ;;  %v2540_v46 = vpop.f32.mrb[31].mxu0  ;;  %v2034_v28 = vld [vmem:[%s2922_s21 + $0x16] sm:$0xff] }
 0x123   : > { %v2562_v47 = vpop.f32.mrb[31].mxu1  ;;  %v2044_v63 = vpack.c.bf16 %v2035_v19, %v2034_v28  ;;  %v2041_v46 = vld [vmem:[%s2922_s21 + $0x4e] sm:$0xff] }
 0x124   : > { %v651_v50 = vadd.f32 %v3414_v0, %v634_v42  ;;  %v635_v53 = vadd.f32 %v610_v45, %v513_v43  ;;  %2766 = vmatmul.mubr.msk.bf16.gmra.mrb[136].mxu0 %vm213_vm1, %v3234_v30  ;;  %v2040_v45 = vld [vmem:[%s2922_s21 + $0x46] sm:$0xff] }
 0x125   : > { %2788 = vmatmul.mubr.msk.bf16.gmra.mrb[136].mxu1 %vm213_vm1, %v3095_v6  ;;  %2793 = vmatprep.mubr.msk.bf16.mxu0 %vm2873_vm0, %v2872_v1 }
 0x126   : > { %v661_v18 = vmax.f32 %v651_v50, 0.0  ;;  %v652_v55 = vadd.f32 %v3414_v0, %v635_v53  ;;  %2815 = vmatprep.mubr.msk.bf16.mxu1 %vm2873_vm0, %v2872_v1 }
 0x127   : > { %v493_v57 = vpop.f32.mrb[32].mxu0 }
 0x128   : > { %672 = vst.msk [vmem:[%s3423_s30 + $0x20] sm:$0xff] %vm667_vm2, %v661_v18  ;;  %v662_v40 = vmax.f32 %v652_v55, 0.0  ;;  %v514_v30 = vadd.f32 %v493_v57, %v3379_v34  ;;  %v615_v59 = vpop.f32.mrb[32].mxu1  ;;  %v2543_v6 = vpop.f32.mrb[33].mxu0 }
 0x129   : > { %v2565_v61 = vpop.f32.mrb[33].mxu1  ;;  %v496_v62 = vpop.f32.mrb[34].mxu0  ;;  %v2043_v6 = vld [vmem:[%s2922_s21 + $0x5e] sm:$0xff] }
 0x12a   : > { %673 = vst.msk [vmem:[%s3423_s30 + $0x28] sm:$0xff] %vm667_vm2, %v662_v40  ;;  %v636_v22 = vadd.f32 %v615_v59, %v514_v30  ;;  %v515_v3 = vadd.f32 %v496_v62, %v3387_v44  ;;  %v618_v48 = vpop.f32.mrb[34].mxu1  ;;  %v2544_v4 = vpop.f32.mrb[35].mxu0  ;;  %v2036_v44 = vld [vmem:[%s2922_s21 + $0x26] sm:$0xff]  ;;  %v2042_v59 = vld [vmem:[%s2922_s21 + $0x56] sm:$0xff] }
 0x12b   : > { %v2566_v8 = vpop.f32.mrb[35].mxu1  ;;  %v2045_v15 = vpack.c.bf16 %v2037_v13, %v2036_v44  ;;  %v2048_v4 = vpack.c.bf16 %v2043_v6, %v2042_v59 }
 0x12c   : > { %v653_v9 = vadd.f32 %v3414_v0, %v636_v22  ;;  %v637_v11 = vadd.f32 %v618_v48, %v515_v3  ;;  %2794 = vmatmul.mubr.msk.bf16.vlgmr.msra.gmra.mrb[140].mxu0 %vm213_vm1, %v3294_v35 }
 0x12d   : > { %2816 = vmatmul.mubr.msk.bf16.vlgmr.msra.gmra.mrb[140].mxu1 %vm213_vm1, %v2044_v63  ;;  %2797 = vmatprep.mubr.msk.bf16.mxu0 %vm2873_vm0, %v2872_v1 }
 0x12e   : > { %v663_v34 = vmax.f32 %v653_v9, 0.0  ;;  %v654_v12 = vadd.f32 %v3414_v0, %v637_v11  ;;  %2819 = vmatprep.mubr.msk.bf16.mxu1 %vm2873_vm0, %v2872_v1 }
 0x12f   : > { %v501_v49 = vpop.f32.mrb[36].mxu0 }
 0x130   : > { %674 = vst.msk [vmem:[%s3423_s30 + $0x30] sm:$0xff] %vm667_vm2, %v663_v34  ;;  %v664_v56 = vmax.f32 %v654_v12, 0.0  ;;  %v516_v35 = vadd.f32 %v501_v49, %v3397_v51  ;;  %v623_v24 = vpop.f32.mrb[36].mxu1  ;;  %v2547_v14 = vpop.f32.mrb[37].mxu0 }
 0x131   : > { %v2569_v16 = vpop.f32.mrb[37].mxu1  ;;  %v504_v7 = vpop.f32.mrb[38].mxu0 }
 0x132   : > { %675 = vst.msk [vmem:[%s3423_s30 + $0x38] sm:$0xff] %vm667_vm2, %v664_v56  ;;  %v638_v17 = vadd.f32 %v623_v24, %v516_v35  ;;  %v517_v20 = vadd.f32 %v504_v7, %v3399_v58  ;;  %v626_v54 = vpop.f32.mrb[38].mxu1  ;;  %v2548_v21 = vpop.f32.mrb[39].mxu0  ;;  %v2038_v58 = vld [vmem:[%s2922_s21 + $0x36] sm:$0xff] }
 0x133   : > { %v2570_v25 = vpop.f32.mrb[39].mxu1  ;;  %v2046_v27 = vpack.c.bf16 %v2039_v32, %v2038_v58 }
 0x134   : > { %v655_v26 = vadd.f32 %v3414_v0, %v638_v17  ;;  %v639_v31 = vadd.f32 %v626_v54, %v517_v20  ;;  %2798 = vmatmul.mubr.msk.bf16.gmra.mrb[144].mxu0 %vm213_vm1, %v3316_v41 }
 0x135   : > { %2820 = vmatmul.mubr.msk.bf16.gmra.mrb[144].mxu1 %vm213_vm1, %v2045_v15  ;;  %2801 = vmatprep.mubr.msk.bf16.mxu0 %vm2873_vm0, %v2872_v1 }
 0x136   : > { %v665_v51 = vmax.f32 %v655_v26, 0.0  ;;  %v656_v29 = vadd.f32 %v3414_v0, %v639_v31  ;;  %2823 = vmatprep.mubr.msk.bf16.mxu1 %vm2873_vm0, %v2872_v1 }
 0x137   : > { %v769_v2 = vpop.f32.mrb[40].mxu0 }
 0x138   : > { %676 = vst.msk [vmem:[%s3423_s30 + $0x40] sm:$0xff] %vm667_vm2, %v665_v51  ;;  %v666_v33 = vmax.f32 %v656_v29, 0.0  ;;  %v863_v41 = vpop.f32.mrb[40].mxu1  ;;  %v2575_v10 = vpop.f32.mrb[41].mxu0 }
 0x139   : > { %v3502_v36 = vadd.f32 %v863_v41, %v769_v2  ;;  %v2597_v37 = vpop.f32.mrb[41].mxu1  ;;  %v772_v38 = vpop.f32.mrb[42].mxu0 }
 0x13a   : > { %677 = vst.msk [vmem:[%s3423_s30 + $0x48] sm:$0xff] %vm667_vm2, %v666_v33  ;;  %v866_v39 = vpop.f32.mrb[42].mxu1  ;;  %v2576_v60 = vpop.f32.mrb[43].mxu0 }
 0x13b   : > { %v3506_v42 = vadd.f32 %v866_v39, %v772_v38  ;;  %v2598_v43 = vpop.f32.mrb[43].mxu1 }
 0x13c   : > { %2802 = vmatmul.mubr.msk.bf16.gmra.mrb[148].mxu0 %vm213_vm1, %v3334_v52  ;;  %v2047_v52 = vpack.c.bf16 %v2041_v46, %v2040_v45 }
 0x13d   : > { %2824 = vmatmul.mubr.msk.bf16.gmra.mrb[148].mxu1 %vm213_vm1, %v2046_v27  ;;  %2805 = vmatprep.mubr.msk.bf16.mxu0 %vm2873_vm0, %v2872_v1 }
 0x13e   : > { %2827 = vmatprep.mubr.msk.bf16.mxu1 %vm2873_vm0, %v2872_v1 }
 0x13f   : > { %v777_v47 = vpop.f32.mrb[44].mxu0 }
 0x140   : > { %v871_v50 = vpop.f32.mrb[44].mxu1  ;;  %v2579_v53 = vpop.f32.mrb[45].mxu0 }
 0x141   : > { %v3517_v18 = vadd.f32 %v871_v50, %v777_v47  ;;  %v2601_v55 = vpop.f32.mrb[45].mxu1  ;;  %v780_v28 = vpop.f32.mrb[46].mxu0 }
 0x142   : > { %v874_v19 = vpop.f32.mrb[46].mxu1  ;;  %v2580_v57 = vpop.f32.mrb[47].mxu0 }
 0x143   : > { %v3519_v40 = vadd.f32 %v874_v19, %v780_v28  ;;  %v2602_v30 = vpop.f32.mrb[47].mxu1 }
 0x144   : > { %2806 = vmatmul.mubr.msk.bf16.gmra.mrb[152].mxu0 %vm213_vm1, %v3351_v5 }
 0x145   : > { %2828 = vmatmul.mubr.msk.bf16.gmra.mrb[152].mxu1 %vm213_vm1, %v2047_v52  ;;  %2809 = vmatprep.mubr.msk.bf16.mxu0 %vm2873_vm0, %v2872_v1 }
 0x146   : > { %2831 = vmatprep.mubr.msk.bf16.mxu1 %vm2873_vm0, %v2872_v1 }
 0x147   : > { %v785_v61 = vpop.f32.mrb[48].mxu0 }
 0x148   : > { %v879_v62 = vpop.f32.mrb[48].mxu1  ;;  %v2583_v63 = vpop.f32.mrb[49].mxu0 }
 0x149   : > { %v3530_v22 = vadd.f32 %v879_v62, %v785_v61  ;;  %v2605_v3 = vpop.f32.mrb[49].mxu1  ;;  %v788_v48 = vpop.f32.mrb[50].mxu0 }
 0x14a   : > { %v882_v8 = vpop.f32.mrb[50].mxu1  ;;  %v2584_v5 = vpop.f32.mrb[51].mxu0 }
 0x14b   : > { %v3532_v9 = vadd.f32 %v882_v8, %v788_v48  ;;  %v2606_v11 = vpop.f32.mrb[51].mxu1 }
 0x14c   : > { %2810 = vmatmul.mubr.msk.bf16.gmra.mrb[156].mxu0 %vm213_vm1, %v3368_v23 }
 0x14d   : > { %2832 = vmatmul.mubr.msk.bf16.gmra.mrb[156].mxu1 %vm213_vm1, %v2048_v4 }
 0x14f   : > { %v793_v1 = vpop.f32.mrb[52].mxu0 }
 0x150   : > { %v887_v34 = vpop.f32.mrb[52].mxu1  ;;  %v2587_v12 = vpop.f32.mrb[53].mxu0 }
 0x151   : > { %v3537_v44 = vadd.f32 %v887_v34, %v793_v1  ;;  %v2609_v13 = vpop.f32.mrb[53].mxu1  ;;  %v796_v49 = vpop.f32.mrb[54].mxu0 }
 0x152   : > { %v890_v56 = vpop.f32.mrb[54].mxu1  ;;  %v2588_v35 = vpop.f32.mrb[55].mxu0 }
 0x153   : > { %v3539_v24 = vadd.f32 %v890_v56, %v796_v49  ;;  %v2610_v14 = vpop.f32.mrb[55].mxu1 }
 0x157   : > { %v801_v16 = vpop.f32.mrb[56].mxu0 }
 0x158   : > { %v895_v7 = vpop.f32.mrb[56].mxu1  ;;  %v2591_v15 = vpop.f32.mrb[57].mxu0 }
 0x159   : > { %v3541_v17 = vadd.f32 %v895_v7, %v801_v16  ;;  %v2613_v23 = vpop.f32.mrb[57].mxu1  ;;  %v804_v20 = vpop.f32.mrb[58].mxu0 }
 0x15a   : > { %v898_v54 = vpop.f32.mrb[58].mxu1  ;;  %v2592_v21 = vpop.f32.mrb[59].mxu0 }
 0x15b   : > { %v3543_v25 = vadd.f32 %v898_v54, %v804_v20  ;;  %v2614_v26 = vpop.f32.mrb[59].mxu1 }
 0x15f   : > { %v975_v31 = vpop.f32.mrb[60].mxu0 }
 0x160   : > { %v1014_v51 = vadd.f32 %v975_v31, %v3502_v36  ;;  %v1097_v29 = vpop.f32.mrb[60].mxu1  ;;  %v2619_v58 = vpop.f32.mrb[61].mxu0 }
 0x161   : > { %v2641_v32 = vpop.f32.mrb[61].mxu1  ;;  %v978_v2 = vpop.f32.mrb[62].mxu0 }
 0x162   : > { %v1136_v33 = vadd.f32 %v1097_v29, %v1014_v51  ;;  %v1015_v41 = vadd.f32 %v978_v2, %v3506_v42  ;;  %v1100_v10 = vpop.f32.mrb[62].mxu1  ;;  %v2620_v37 = vpop.f32.mrb[63].mxu0 }
 0x163   : > { %v2642_v38 = vpop.f32.mrb[63].mxu1 }
 0x164   : > { %v1153_v27 = vadd.f32 %v3414_v0, %v1136_v33  ;;  %v1137_v39 = vadd.f32 %v1100_v10, %v1015_v41 }
 0x166   : > { %v1163_v60 = vmax.f32 %v1153_v27, 0.0  ;;  %v1154_v43 = vadd.f32 %v3414_v0, %v1137_v39 }
 0x167   : > { %v983_v45 = vpop.f32.mrb[64].mxu0 }
 0x168   : > { %1173 = vst.msk [vmem:[%s3423_s30 + $0x50] sm:$0xff] %vm667_vm2, %v1163_v60  ;;  %v1164_v36 = vmax.f32 %v1154_v43, 0.0  ;;  %v1016_v46 = vadd.f32 %v983_v45, %v3517_v18  ;;  %v1105_v47 = vpop.f32.mrb[64].mxu1  ;;  %v2623_v50 = vpop.f32.mrb[65].mxu0 }
 0x169   : > { %v2645_v42 = vpop.f32.mrb[65].mxu1  ;;  %v986_v53 = vpop.f32.mrb[66].mxu0 }
 0x16a   : > { %1174 = vst.msk [vmem:[%s3423_s30 + $0x58] sm:$0xff] %vm667_vm2, %v1164_v36  ;;  %v1138_v55 = vadd.f32 %v1105_v47, %v1016_v46  ;;  %v1017_v28 = vadd.f32 %v986_v53, %v3519_v40  ;;  %v1108_v52 = vpop.f32.mrb[66].mxu1  ;;  %v2624_v19 = vpop.f32.mrb[67].mxu0 }
 0x16b   : > { %v2646_v57 = vpop.f32.mrb[67].mxu1 }
 0x16c   : > { %v1155_v30 = vadd.f32 %v3414_v0, %v1138_v55  ;;  %v1139_v59 = vadd.f32 %v1108_v52, %v1017_v28 }
 0x16e   : > { %v1165_v6 = vmax.f32 %v1155_v30, 0.0  ;;  %v1156_v18 = vadd.f32 %v3414_v0, %v1139_v59 }
 0x16f   : > { %v991_v61 = vpop.f32.mrb[68].mxu0 }
 0x170   : > { %1175 = vst.msk [vmem:[%s3423_s30 + $0x60] sm:$0xff] %vm667_vm2, %v1165_v6  ;;  %v1166_v62 = vmax.f32 %v1156_v18, 0.0  ;;  %v1018_v63 = vadd.f32 %v991_v61, %v3530_v22  ;;  %v1113_v3 = vpop.f32.mrb[68].mxu1  ;;  %v2627_v48 = vpop.f32.mrb[69].mxu0 }
 0x171   : > { %v2649_v40 = vpop.f32.mrb[69].mxu1  ;;  %v994_v4 = vpop.f32.mrb[70].mxu0 }
 0x172   : > { %1176 = vst.msk [vmem:[%s3423_s30 + $0x68] sm:$0xff] %vm667_vm2, %v1166_v62  ;;  %v1140_v8 = vadd.f32 %v1113_v3, %v1018_v63  ;;  %v1019_v5 = vadd.f32 %v994_v4, %v3532_v9  ;;  %v1116_v11 = vpop.f32.mrb[70].mxu1  ;;  %v2628_v1 = vpop.f32.mrb[71].mxu0 }
 0x173   : > { %v2650_v34 = vpop.f32.mrb[71].mxu1 }
 0x174   : > { %v1157_v12 = vadd.f32 %v3414_v0, %v1140_v8  ;;  %v1141_v13 = vadd.f32 %v1116_v11, %v1019_v5 }
 0x176   : > { %v1167_v49 = vmax.f32 %v1157_v12, 0.0  ;;  %v1158_v22 = vadd.f32 %v3414_v0, %v1141_v13 }
 0x177   : > { %v999_v56 = vpop.f32.mrb[72].mxu0 }
 0x178   : > { %1177 = vst.msk [vmem:[%s3423_s30 + $0x70] sm:$0xff] %vm667_vm2, %v1167_v49  ;;  %v1168_v35 = vmax.f32 %v1158_v22, 0.0  ;;  %v1020_v14 = vadd.f32 %v999_v56, %v3537_v44  ;;  %v1121_v16 = vpop.f32.mrb[72].mxu1  ;;  %v2631_v7 = vpop.f32.mrb[73].mxu0 }
 0x179   : > { %v2653_v9 = vpop.f32.mrb[73].mxu1  ;;  %v1002_v15 = vpop.f32.mrb[74].mxu0 }
 0x17a   : > { %1178 = vst.msk [vmem:[%s3423_s30 + $0x78] sm:$0xff] %vm667_vm2, %v1168_v35  ;;  %v1142_v23 = vadd.f32 %v1121_v16, %v1020_v14  ;;  %v1021_v20 = vadd.f32 %v1002_v15, %v3539_v24  ;;  %v1124_v54 = vpop.f32.mrb[74].mxu1  ;;  %v2632_v21 = vpop.f32.mrb[75].mxu0 }
 0x17b   : > { %v2654_v26 = vpop.f32.mrb[75].mxu1 }
 0x17c   : > { %v1159_v31 = vadd.f32 %v3414_v0, %v1142_v23  ;;  %v1143_v51 = vadd.f32 %v1124_v54, %v1021_v20 }
 0x17e   : > { %v1169_v29 = vmax.f32 %v1159_v31, 0.0  ;;  %v1160_v44 = vadd.f32 %v3414_v0, %v1143_v51 }
 0x17f   : > { %v1007_v58 = vpop.f32.mrb[76].mxu0 }
 0x180   : > { %1179 = vst.msk [vmem:[%s3423_s30 + $0x80] sm:$0xff] %vm667_vm2, %v1169_v29  ;;  %v1170_v32 = vmax.f32 %v1160_v44, 0.0  ;;  %v1022_v2 = vadd.f32 %v1007_v58, %v3541_v17  ;;  %v1129_v33 = vpop.f32.mrb[76].mxu1  ;;  %v2635_v41 = vpop.f32.mrb[77].mxu0 }
 0x181   : > { %v2657_v24 = vpop.f32.mrb[77].mxu1  ;;  %v1010_v10 = vpop.f32.mrb[78].mxu0 }
 0x182   : > { %1180 = vst.msk [vmem:[%s3423_s30 + $0x88] sm:$0xff] %vm667_vm2, %v1170_v32  ;;  %v1144_v37 = vadd.f32 %v1129_v33, %v1022_v2  ;;  %v1023_v38 = vadd.f32 %v1010_v10, %v3543_v25  ;;  %v1132_v27 = vpop.f32.mrb[78].mxu1  ;;  %v2636_v39 = vpop.f32.mrb[79].mxu0 }
 0x183   : > { %v2658_v60 = vpop.f32.mrb[79].mxu1 }
 0x184   : > { %v1161_v43 = vadd.f32 %v3414_v0, %v1144_v37  ;;  %v1145_v45 = vadd.f32 %v1132_v27, %v1023_v38 }
 0x186   : > { %v1171_v36 = vmax.f32 %v1161_v43, 0.0  ;;  %v1162_v17 = vadd.f32 %v3414_v0, %v1145_v45 }
 0x187   : > { %v1274_v46 = vpop.f32.mrb[80].mxu0 }
 0x188   : > { %1181 = vst.msk [vmem:[%s3423_s30 + $0x90] sm:$0xff] %vm667_vm2, %v1171_v36  ;;  %v1172_v47 = vmax.f32 %v1162_v17, 0.0  ;;  %v1368_v50 = vpop.f32.mrb[80].mxu1  ;;  %v2663_v42 = vpop.f32.mrb[81].mxu0 }
 0x189   : > { %v1369_v53 = vadd.f32 %v1368_v50, %v1274_v46  ;;  %v2685_v55 = vpop.f32.mrb[81].mxu1  ;;  %v1277_v28 = vpop.f32.mrb[82].mxu0 }
 0x18a   : > { %1182 = vst.msk [vmem:[%s3423_s30 + $0x98] sm:$0xff] %vm667_vm2, %v1172_v47  ;;  %v1371_v25 = vpop.f32.mrb[82].mxu1  ;;  %v2664_v52 = vpop.f32.mrb[83].mxu0 }
 0x18b   : > { %v1372_v19 = vadd.f32 %v1371_v25, %v1277_v28  ;;  %v2686_v57 = vpop.f32.mrb[83].mxu1 }
 0x18f   : > { %v1282_v30 = vpop.f32.mrb[84].mxu0 }
 0x190   : > { %v1376_v59 = vpop.f32.mrb[84].mxu1  ;;  %v2667_v6 = vpop.f32.mrb[85].mxu0 }
 0x191   : > { %v1377_v18 = vadd.f32 %v1376_v59, %v1282_v30  ;;  %v2689_v61 = vpop.f32.mrb[85].mxu1  ;;  %v1285_v62 = vpop.f32.mrb[86].mxu0 }
 0x192   : > { %v1379_v63 = vpop.f32.mrb[86].mxu1  ;;  %v2668_v3 = vpop.f32.mrb[87].mxu0 }
 0x193   : > { %v1380_v48 = vadd.f32 %v1379_v63, %v1285_v62  ;;  %v2690_v40 = vpop.f32.mrb[87].mxu1 }
 0x197   : > { %v1290_v4 = vpop.f32.mrb[88].mxu0 }
 0x198   : > { %v1384_v8 = vpop.f32.mrb[88].mxu1  ;;  %v2671_v5 = vpop.f32.mrb[89].mxu0 }
 0x199   : > { %v3585_v11 = vadd.f32 %v1384_v8, %v1290_v4  ;;  %v2693_v1 = vpop.f32.mrb[89].mxu1  ;;  %v1293_v34 = vpop.f32.mrb[90].mxu0 }
 0x19a   : > { %v1387_v12 = vpop.f32.mrb[90].mxu1  ;;  %v2672_v13 = vpop.f32.mrb[91].mxu0 }
 0x19b   : > { %v3587_v49 = vadd.f32 %v1387_v12, %v1293_v34  ;;  %v2694_v22 = vpop.f32.mrb[91].mxu1 }
 0x19f   : > { %v1298_v56 = vpop.f32.mrb[92].mxu0 }
 0x1a0   : > { %v1392_v35 = vpop.f32.mrb[92].mxu1  ;;  %v2675_v14 = vpop.f32.mrb[93].mxu0 }
 0x1a1   : > { %v3589_v16 = vadd.f32 %v1392_v35, %v1298_v56  ;;  %v2697_v7 = vpop.f32.mrb[93].mxu1  ;;  %v1301_v9 = vpop.f32.mrb[94].mxu0 }
 0x1a2   : > { %v1395_v15 = vpop.f32.mrb[94].mxu1  ;;  %v2676_v23 = vpop.f32.mrb[95].mxu0 }
 0x1a3   : > { %v3591_v20 = vadd.f32 %v1395_v15, %v1301_v9  ;;  %v2698_v54 = vpop.f32.mrb[95].mxu1 }
 0x1a7   : > { %v1306_v21 = vpop.f32.mrb[96].mxu0 }
 0x1a8   : > { %v1400_v26 = vpop.f32.mrb[96].mxu1  ;;  %v2679_v31 = vpop.f32.mrb[97].mxu0 }
 0x1a9   : > { %v3593_v51 = vadd.f32 %v1400_v26, %v1306_v21  ;;  %v2701_v29 = vpop.f32.mrb[97].mxu1  ;;  %v1309_v44 = vpop.f32.mrb[98].mxu0 }
 0x1aa   : > { %v1403_v58 = vpop.f32.mrb[98].mxu1  ;;  %v2680_v32 = vpop.f32.mrb[99].mxu0 }
 0x1ab   : > { %v3595_v2 = vadd.f32 %v1403_v58, %v1309_v44  ;;  %v2702_v33 = vpop.f32.mrb[99].mxu1 }
 0x1af   : > { %v1480_v41 = vpop.f32.mrb[100].mxu0 }
 0x1b0   : > { %v1519_v24 = vadd.f32 %v1480_v41, %v1369_v53  ;;  %v1602_v10 = vpop.f32.mrb[100].mxu1  ;;  %v2707_v37 = vpop.f32.mrb[101].mxu0 }
 0x1b1   : > { %v2729_v38 = vpop.f32.mrb[101].mxu1  ;;  %v1483_v27 = vpop.f32.mrb[102].mxu0 }
 0x1b2   : > { %v1641_v39 = vadd.f32 %v1602_v10, %v1519_v24  ;;  %v1520_v60 = vadd.f32 %v1483_v27, %v1372_v19  ;;  %v1605_v43 = vpop.f32.mrb[102].mxu1  ;;  %v2708_v45 = vpop.f32.mrb[103].mxu0 }
 0x1b3   : > { %v2730_v36 = vpop.f32.mrb[103].mxu1 }
 0x1b4   : > { %v1658_v17 = vadd.f32 %v3414_v0, %v1641_v39  ;;  %v1642_v46 = vadd.f32 %v1605_v43, %v1520_v60 }
 0x1b6   : > { %v1668_v47 = vmax.f32 %v1658_v17, 0.0  ;;  %v1659_v50 = vadd.f32 %v3414_v0, %v1642_v46 }
 0x1b7   : > { %v1488_v42 = vpop.f32.mrb[104].mxu0 }
 0x1b8   : > { %1678 = vst.msk [vmem:[%s3423_s30 + $0xa0] sm:$0xff] %vm667_vm2, %v1668_v47  ;;  %v1669_v53 = vmax.f32 %v1659_v50, 0.0  ;;  %v1521_v55 = vadd.f32 %v1488_v42, %v1377_v18  ;;  %v1610_v28 = vpop.f32.mrb[104].mxu1  ;;  %v2711_v25 = vpop.f32.mrb[105].mxu0 }
 0x1b9   : > { %v2733_v52 = vpop.f32.mrb[105].mxu1  ;;  %v1491_v19 = vpop.f32.mrb[106].mxu0 }
 0x1ba   : > { %1679 = vst.msk [vmem:[%s3423_s30 + $0xa8] sm:$0xff] %vm667_vm2, %v1669_v53  ;;  %v1643_v57 = vadd.f32 %v1610_v28, %v1521_v55  ;;  %v1522_v30 = vadd.f32 %v1491_v19, %v1380_v48  ;;  %v1613_v59 = vpop.f32.mrb[106].mxu1  ;;  %v2712_v6 = vpop.f32.mrb[107].mxu0 }
 0x1bb   : > { %v2734_v61 = vpop.f32.mrb[107].mxu1 }
 0x1bc   : > { %v1660_v62 = vadd.f32 %v3414_v0, %v1643_v57  ;;  %v1644_v63 = vadd.f32 %v1613_v59, %v1522_v30 }
 0x1be   : > { %v1670_v3 = vmax.f32 %v1660_v62, 0.0  ;;  %v1661_v40 = vadd.f32 %v3414_v0, %v1644_v63 }
 0x1bf   : > { %v1496_v18 = vpop.f32.mrb[108].mxu0 }
 0x1c0   : > { %1680 = vst.msk [vmem:[%s3423_s30 + $0xb0] sm:$0xff] %vm667_vm2, %v1670_v3  ;;  %v1671_v4 = vmax.f32 %v1661_v40, 0.0  ;;  %v1523_v8 = vadd.f32 %v1496_v18, %v3585_v11  ;;  %v1618_v5 = vpop.f32.mrb[108].mxu1  ;;  %v2715_v1 = vpop.f32.mrb[109].mxu0 }
 0x1c1   : > { %v2737_v48 = vpop.f32.mrb[109].mxu1  ;;  %v1499_v34 = vpop.f32.mrb[110].mxu0 }
 0x1c2   : > { %1681 = vst.msk [vmem:[%s3423_s30 + $0xb8] sm:$0xff] %vm667_vm2, %v1671_v4  ;;  %v1645_v12 = vadd.f32 %v1618_v5, %v1523_v8  ;;  %v1524_v13 = vadd.f32 %v1499_v34, %v3587_v49  ;;  %v1621_v22 = vpop.f32.mrb[110].mxu1  ;;  %v2716_v56 = vpop.f32.mrb[111].mxu0 }
 0x1c3   : > { %v2738_v35 = vpop.f32.mrb[111].mxu1 }
 0x1c4   : > { %v1662_v14 = vadd.f32 %v3414_v0, %v1645_v12  ;;  %v1646_v7 = vadd.f32 %v1621_v22, %v1524_v13 }
 0x1c6   : > { %v1672_v9 = vmax.f32 %v1662_v14, 0.0  ;;  %v1663_v11 = vadd.f32 %v3414_v0, %v1646_v7 }
 0x1c7   : > { %v1504_v15 = vpop.f32.mrb[112].mxu0 }
 0x1c8   : > { %1682 = vst.msk [vmem:[%s3423_s30 + $0xc0] sm:$0xff] %vm667_vm2, %v1672_v9  ;;  %v1673_v23 = vmax.f32 %v1663_v11, 0.0  ;;  %v1525_v54 = vadd.f32 %v1504_v15, %v3589_v16  ;;  %v1626_v21 = vpop.f32.mrb[112].mxu1  ;;  %v2719_v26 = vpop.f32.mrb[113].mxu0 }
 0x1c9   : > { %v2741_v49 = vpop.f32.mrb[113].mxu1  ;;  %v1507_v31 = vpop.f32.mrb[114].mxu0 }
 0x1ca   : > { %1683 = vst.msk [vmem:[%s3423_s30 + $0xc8] sm:$0xff] %vm667_vm2, %v1673_v23  ;;  %v1647_v29 = vadd.f32 %v1626_v21, %v1525_v54  ;;  %v1526_v44 = vadd.f32 %v1507_v31, %v3591_v20  ;;  %v1629_v58 = vpop.f32.mrb[114].mxu1  ;;  %v2720_v32 = vpop.f32.mrb[115].mxu0 }
 0x1cb   : > { %v2742_v33 = vpop.f32.mrb[115].mxu1 }
 0x1cc   : > { %v1664_v41 = vadd.f32 %v3414_v0, %v1647_v29  ;;  %v1648_v24 = vadd.f32 %v1629_v58, %v1526_v44 }
 0x1ce   : > { %v1674_v10 = vmax.f32 %v1664_v41, 0.0  ;;  %v1665_v16 = vadd.f32 %v3414_v0, %v1648_v24 }
 0x1cf   : > { %v1512_v37 = vpop.f32.mrb[116].mxu0 }
 0x1d0   : > { %1684 = vst.msk [vmem:[%s3423_s30 + $0xd0] sm:$0xff] %vm667_vm2, %v1674_v10  ;;  %v1675_v38 = vmax.f32 %v1665_v16, 0.0  ;;  %v1527_v27 = vadd.f32 %v1512_v37, %v3593_v51  ;;  %v1634_v39 = vpop.f32.mrb[116].mxu1  ;;  %v2723_v60 = vpop.f32.mrb[117].mxu0 }
 0x1d1   : > { %v2745_v20 = vpop.f32.mrb[117].mxu1  ;;  %v1515_v43 = vpop.f32.mrb[118].mxu0 }
 0x1d2   : > { %1685 = vst.msk [vmem:[%s3423_s30 + $0xd8] sm:$0xff] %vm667_vm2, %v1675_v38  ;;  %v1649_v45 = vadd.f32 %v1634_v39, %v1527_v27  ;;  %v1528_v36 = vadd.f32 %v1515_v43, %v3595_v2  ;;  %v1637_v17 = vpop.f32.mrb[118].mxu1  ;;  %v2724_v46 = vpop.f32.mrb[119].mxu0 }
 0x1d3   : > { %v2746_v47 = vpop.f32.mrb[119].mxu1 }
 0x1d4   : > { %v1666_v50 = vadd.f32 %v3414_v0, %v1649_v45  ;;  %v1650_v42 = vadd.f32 %v1637_v17, %v1528_v36 }
 0x1d6   : > { %v1676_v53 = vmax.f32 %v1666_v50, 0.0  ;;  %v1667_v51 = vadd.f32 %v3414_v0, %v1650_v42 }
 0x1d7   : > { %v1779_v55 = vpop.f32.mrb[120].mxu0 }
 0x1d8   : > { %1686 = vst.msk [vmem:[%s3423_s30 + $0xe0] sm:$0xff] %vm667_vm2, %v1676_v53  ;;  %v1677_v28 = vmax.f32 %v1667_v51, 0.0  ;;  %v1873_v25 = vpop.f32.mrb[120].mxu1  ;;  %v2751_v52 = vpop.f32.mrb[121].mxu0 }
 0x1d9   : > { %v1874_v19 = vadd.f32 %v1873_v25, %v1779_v55  ;;  %v2773_v57 = vpop.f32.mrb[121].mxu1  ;;  %v1782_v30 = vpop.f32.mrb[122].mxu0 }
 0x1da   : > { %1687 = vst.msk [vmem:[%s3423_s30 + $0xe8] sm:$0xff] %vm667_vm2, %v1677_v28  ;;  %v1876_v2 = vpop.f32.mrb[122].mxu1  ;;  %v2752_v59 = vpop.f32.mrb[123].mxu0 }
 0x1db   : > { %v1877_v6 = vadd.f32 %v1876_v2, %v1782_v30  ;;  %v2774_v61 = vpop.f32.mrb[123].mxu1 }
 0x1df   : > { %v1787_v62 = vpop.f32.mrb[124].mxu0 }
 0x1e0   : > { %v1881_v63 = vpop.f32.mrb[124].mxu1  ;;  %v2755_v3 = vpop.f32.mrb[125].mxu0 }
 0x1e1   : > { %v1882_v40 = vadd.f32 %v1881_v63, %v1787_v62  ;;  %v2777_v18 = vpop.f32.mrb[125].mxu1  ;;  %v1790_v4 = vpop.f32.mrb[126].mxu0 }
 0x1e2   : > { %v1884_v8 = vpop.f32.mrb[126].mxu1  ;;  %v2756_v5 = vpop.f32.mrb[127].mxu0 }
 0x1e3   : > { %v1885_v1 = vadd.f32 %v1884_v8, %v1790_v4  ;;  %v2778_v48 = vpop.f32.mrb[127].mxu1 }
 0x1e7   : > { %v1795_v34 = vpop.f32.mrb[128].mxu0 }
 0x1e8   : > { %v1889_v12 = vpop.f32.mrb[128].mxu1  ;;  %v2759_v13 = vpop.f32.mrb[129].mxu0 }
 0x1e9   : > { %v3633_v22 = vadd.f32 %v1889_v12, %v1795_v34  ;;  %v2781_v56 = vpop.f32.mrb[129].mxu1  ;;  %v1798_v35 = vpop.f32.mrb[130].mxu0 }
 0x1ea   : > { %v1892_v14 = vpop.f32.mrb[130].mxu1  ;;  %v2760_v7 = vpop.f32.mrb[131].mxu0 }
 0x1eb   : > { %v3635_v9 = vadd.f32 %v1892_v14, %v1798_v35  ;;  %v2782_v11 = vpop.f32.mrb[131].mxu1 }
 0x1ef   : > { %v1803_v15 = vpop.f32.mrb[132].mxu0 }
 0x1f0   : > { %v1897_v23 = vpop.f32.mrb[132].mxu1  ;;  %v2763_v54 = vpop.f32.mrb[133].mxu0 }
 0x1f1   : > { %v3637_v21 = vadd.f32 %v1897_v23, %v1803_v15  ;;  %v2785_v26 = vpop.f32.mrb[133].mxu1  ;;  %v1806_v49 = vpop.f32.mrb[134].mxu0 }
 0x1f2   : > { %v1900_v31 = vpop.f32.mrb[134].mxu1  ;;  %v2764_v29 = vpop.f32.mrb[135].mxu0 }
 0x1f3   : > { %v3639_v44 = vadd.f32 %v1900_v31, %v1806_v49  ;;  %v2786_v58 = vpop.f32.mrb[135].mxu1 }
 0x1f7   : > { %v1811_v32 = vpop.f32.mrb[136].mxu0 }
 0x1f8   : > { %v1905_v33 = vpop.f32.mrb[136].mxu1  ;;  %v2767_v41 = vpop.f32.mrb[137].mxu0 }
 0x1f9   : > { %v3641_v24 = vadd.f32 %v1905_v33, %v1811_v32  ;;  %v2789_v10 = vpop.f32.mrb[137].mxu1  ;;  %v1814_v16 = vpop.f32.mrb[138].mxu0 }
 0x1fa   : > { %v1908_v37 = vpop.f32.mrb[138].mxu1  ;;  %v2768_v38 = vpop.f32.mrb[139].mxu0 }
 0x1fb   : > { %v3643_v27 = vadd.f32 %v1908_v37, %v1814_v16  ;;  %v2790_v39 = vpop.f32.mrb[139].mxu1 }
 0x1ff   : > { %v1985_v60 = vpop.f32.mrb[140].mxu0 }
 0x200   : > { %v2024_v20 = vadd.f32 %v1985_v60, %v1874_v19  ;;  %v2107_v43 = vpop.f32.mrb[140].mxu1  ;;  %v2795_v45 = vpop.f32.mrb[141].mxu0 }
 0x201   : > { %v2817_v36 = vpop.f32.mrb[141].mxu1  ;;  %v1988_v17 = vpop.f32.mrb[142].mxu0 }
 0x202   : > { %v2146_v46 = vadd.f32 %v2107_v43, %v2024_v20  ;;  %v2025_v47 = vadd.f32 %v1988_v17, %v1877_v6  ;;  %v2110_v50 = vpop.f32.mrb[142].mxu1  ;;  %v2796_v42 = vpop.f32.mrb[143].mxu0 }
 0x203   : > { %v2818_v53 = vpop.f32.mrb[143].mxu1 }
 0x204   : > { %v2163_v51 = vadd.f32 %v3414_v0, %v2146_v46  ;;  %v2147_v55 = vadd.f32 %v2110_v50, %v2025_v47 }
 0x206   : > { %v2173_v28 = vmax.f32 %v2163_v51, 0.0  ;;  %v2164_v25 = vadd.f32 %v3414_v0, %v2147_v55 }
 0x207   : > { %v1993_v52 = vpop.f32.mrb[144].mxu0 }
 0x208   : > { %2183 = vst.msk [vmem:[%s3423_s30 + $0xf0] sm:$0xff] %vm667_vm2, %v2173_v28  ;;  %v2174_v19 = vmax.f32 %v2164_v25, 0.0  ;;  %v2026_v57 = vadd.f32 %v1993_v52, %v1882_v40  ;;  %v2115_v30 = vpop.f32.mrb[144].mxu1  ;;  %v2799_v2 = vpop.f32.mrb[145].mxu0 }
 0x209   : > { %v2821_v59 = vpop.f32.mrb[145].mxu1  ;;  %v1996_v6 = vpop.f32.mrb[146].mxu0 }
 0x20a   : > { %2184 = vst.msk [vmem:[%s3423_s30 + $0xf8] sm:$0xff] %vm667_vm2, %v2174_v19  ;;  %v2148_v61 = vadd.f32 %v2115_v30, %v2026_v57  ;;  %v2027_v62 = vadd.f32 %v1996_v6, %v1885_v1  ;;  %v2118_v63 = vpop.f32.mrb[146].mxu1  ;;  %v2800_v3 = vpop.f32.mrb[147].mxu0 }
 0x20b   : > { %v2822_v18 = vpop.f32.mrb[147].mxu1 }
 0x20c   : > { %v2165_v4 = vadd.f32 %v3414_v0, %v2148_v61  ;;  %v2149_v8 = vadd.f32 %v2118_v63, %v2027_v62 }
 0x20e   : > { %v2175_v5 = vmax.f32 %v2165_v4, 0.0  ;;  %v2166_v48 = vadd.f32 %v3414_v0, %v2149_v8 }
 0x20f   : > { %v2001_v40 = vpop.f32.mrb[148].mxu0 }
 0x210   : > { %2185 = vst.msk [vmem:[%s3423_s30 + $0x100] sm:$0xff] %vm667_vm2, %v2175_v5  ;;  %v2176_v34 = vmax.f32 %v2166_v48, 0.0  ;;  %v2028_v12 = vadd.f32 %v2001_v40, %v3633_v22  ;;  %v2123_v13 = vpop.f32.mrb[148].mxu1  ;;  %v2803_v56 = vpop.f32.mrb[149].mxu0  ;;  %v2863_v22 = vld [vmem:[%s3684_s2] ss:$0 sm:$0xff] }
 0x211   : > { %v2825_v1 = vpop.f32.mrb[149].mxu1  ;;  %v2004_v35 = vpop.f32.mrb[150].mxu0 }
 0x212   : > { %2186 = vst.msk [vmem:[%s3423_s30 + $0x108] sm:$0xff] %vm667_vm2, %v2176_v34  ;;  %v2150_v14 = vadd.f32 %v2123_v13, %v2028_v12  ;;  %v2029_v7 = vadd.f32 %v2004_v35, %v3635_v9  ;;  %v2126_v11 = vpop.f32.mrb[150].mxu1  ;;  %v2804_v15 = vpop.f32.mrb[151].mxu0 }
 0x213   : > { %v2826_v23 = vpop.f32.mrb[151].mxu1 }
 0x214   : > { %v2167_v54 = vadd.f32 %v3414_v0, %v2150_v14  ;;  %v2151_v26 = vadd.f32 %v2126_v11, %v2029_v7 }
 0x216   : > { %v2177_v49 = vmax.f32 %v2167_v54, 0.0  ;;  %v2168_v31 = vadd.f32 %v2863_v22, %v2151_v26 }
 0x217   : > { %v2009_v29 = vpop.f32.mrb[152].mxu0 }
 0x218   : > { %2187 = vst.msk [vmem:[%s3423_s30 + $0x110] sm:$0xff] %vm667_vm2, %v2177_v49  ;;  %v2178_v58 = vmax.f32 %v2168_v31, 0.0  ;;  %v2030_v32 = vadd.f32 %v2009_v29, %v3637_v21  ;;  %v2131_v9 = vpop.f32.mrb[152].mxu1  ;;  %v2807_v33 = vpop.f32.mrb[153].mxu0 }
 0x219   : > { %v2829_v41 = vpop.f32.mrb[153].mxu1  ;;  %v2012_v10 = vpop.f32.mrb[154].mxu0 }
 0x21a   : > { %2188 = vst.msk [vmem:[%s3423_s30 + $0x118] sm:$0xff] %vm667_vm2, %v2178_v58  ;;  %v2152_v0 = vadd.f32 %v2131_v9, %v2030_v32  ;;  %v2031_v16 = vadd.f32 %v2012_v10, %v3639_v44  ;;  %v2134_v37 = vpop.f32.mrb[154].mxu1  ;;  %v2808_v38 = vpop.f32.mrb[155].mxu0 }
 0x21b   : > { %v2830_v39 = vpop.f32.mrb[155].mxu1 }
 0x21c   : > { %v2169_v60 = vadd.f32 %v2863_v22, %v2152_v0  ;;  %v2153_v20 = vadd.f32 %v2134_v37, %v2031_v16 }
 0x21e   : > { %v2179_v43 = vmax.f32 %v2169_v60, 0.0  ;;  %v2170_v45 = vadd.f32 %v2863_v22, %v2153_v20 }
 0x21f   : > { %v2017_v36 = vpop.f32.mrb[156].mxu0 }
 0x220   : > { %2189 = vst.msk [vmem:[%s3423_s30 + $0x120] sm:$0xff] %vm667_vm2, %v2179_v43  ;;  %v2180_v21 = vmax.f32 %v2170_v45, 0.0  ;;  %v2032_v17 = vadd.f32 %v2017_v36, %v3641_v24  ;;  %v2139_v46 = vpop.f32.mrb[156].mxu1  ;;  %v2811_v47 = vpop.f32.mrb[157].mxu0 }
 0x221   : > { %v2833_v50 = vpop.f32.mrb[157].mxu1  ;;  %v2020_v44 = vpop.f32.mrb[158].mxu0 }
 0x222   : > { %2190 = vst.msk [vmem:[%s3423_s30 + $0x128] sm:$0xff] %vm667_vm2, %v2180_v21  ;;  %v2154_v42 = vadd.f32 %v2139_v46, %v2032_v17  ;;  %v2033_v53 = vadd.f32 %v2020_v44, %v3643_v27  ;;  %v2142_v51 = vpop.f32.mrb[158].mxu1  ;;  %v2812_v55 = vpop.f32.mrb[159].mxu0 }
 0x223   : > { %v2834_v28 = vpop.f32.mrb[159].mxu1 }
 0x224   : > { %v2171_v25 = vadd.f32 %v2863_v22, %v2154_v42  ;;  %v2155_v52 = vadd.f32 %v2142_v51, %v2033_v53 }
 0x226   : > { %v2181_v19 = vmax.f32 %v2171_v25, 0.0  ;;  %v2172_v57 = vadd.f32 %v2863_v22, %v2155_v52 }
 0x228   : > { %2191 = vst.msk [vmem:[%s3423_s30 + $0x130] sm:$0xff] %vm667_vm2, %v2181_v19  ;;  %v2182_v24 = vmax.f32 %v2172_v57, 0.0 }
 0x22a   : > { %2192 = vst.msk [vmem:[%s3423_s30 + $0x138] sm:$0xff] %vm667_vm2, %v2182_v24 }
 0x22b PF: > { %s13_s12 = sadd.s32 1, %s2870_s12  }
 0x22c   : > { %p10_p4 = scmp.ge.s32.totalorder %s13_s12, 4  }
 0x22e   :  { %12 = sbr.rel (!%p10_p4) target bundleno = 1 (0x1), region = 77 }

// kernel: cnn_vae_forward.15
= control target key start
LH: loop header
LB: loop body
LE: loop exit
PB: predicated region body
PF: predicated region fallthrough
CT: control target
= control target key end

     0   :  { %s8917_s12 = smov 0   ;;  %s10865_s0 = inlined_call_operand.vmem [shape: f32[2,332,8], index: 0, kind: input, shape index: {}]   ;;  %s10866_s1 = inlined_call_operand.vmem [shape: bf16[4,4,8,3], index: 1, kind: input, shape index: {}]   ;;  %s10867_s2 = inlined_call_operand.vmem [shape: f32[1,3], index: 2, kind: input, shape index: {}]   ;;  %s10868_s3 = inlined_call_operand.vmem [shape: f32[2,1152,3], index: 3, kind: output, shape index: {}]  }
   0x1 LB: > { %s6481_s13 = sadd.s32 4294967295, %s8895_s12   ;;  %p6485_p0 = scmp.ge.s32.totalorder %s8895_s12, 1  ;;  %s8895_s12 = sphi %s8917_s12, %s13_s12  }
   0x2   : > { %p137_p1 = scmp.lt.s32.totalorder %s8895_s12, 3 }
   0x4   : > { %p138_p2 = pnand %p6485_p0, %p137_p1 }
   0x6   : > { %141 = sbr.rel (%p138_p2) target bundleno = 919 (0x397), region = 32 }
   0xd   : > { %v6488_v0 = vld [vmem:[%s10866_s1 + $0x4] sm:$0xf]  ;;  %vm338_vm0 = vcmask 1043456   ;;  %v6601_v1 = vld [vmem:[%s10866_s1 + $0x14] sm:$0xf]  ;;  %p161_p3 = scmp.lt.s32.totalorder %s6481_s13, 1 }
   0xe   : > { %8285 = vmatprep.subr.msk.bf16.mxu0 %vm338_vm0, %v6488_v0  ;;  %8289 = vmatprep.subr.msk.bf16.mxu1 %vm338_vm0, %v6601_v1  ;;  %v340_v2 = vsel %vm338_vm0, %v6488_v0, 0  ;;  %v1904_v3 = vsel %vm338_vm0, %v6601_v1, 0  ;;  %v226_v4 = vld [vmem:[%s10866_s1] sm:$0xf]  ;;  %v6600_v5 = vld [vmem:[%s10866_s1 + $0x10] sm:$0xf] }
   0xf   : > { %7246 = vmatpush3.bf16.msra.mxu0 %v340_v2  ;;  %7398 = vmatpush3.bf16.msra.mxu1 %v1904_v3  ;;  %s10879_s13 = smov (!%p161_p3, %s6481_s13), 1  ;;  %vm283_vm1 = vcmask 64512   ;;  %v574_v15 = vsel %vm338_vm0, %v226_v4, 0  ;;  %v2138_v20 = vsel %vm338_vm0, %v6600_v5, 0  ;;  %v8983_v26 = vld [vmem:[%s10866_s1 + $0x8] sm:$0xf] }
  0x10   : > { %8286 = vmatprep.subr.msk.bf16.mxu0 %vm338_vm0, %v226_v4  ;;  %8290 = vmatprep.subr.msk.bf16.mxu1 %vm338_vm0, %v6600_v5  ;;  %s8301_s22 = smul.u32 336, %s10879_s13  ;;  %v8988_v27 = vld [vmem:[%s10866_s1 + $0x18] sm:$0xf]  ;;  %vm1700_vm2 = vcmask 23552  }
  0x11   : > { %s8302_s28 = smul.u32 1152, %s10879_s13 }
  0x12   : > { %s8949_s25 = scalar_lea.vmem %s10865_s0, %s8301_s22 }
  0x13   : > { %v227_v6 = vld [vmem:[%s8949_s25 + $0x1] sm:$0xff]  ;;  %v228_v7 = vld [vmem:[%s8949_s25 + $0x9] sm:$0xff]  ;;  %v229_v11 = vld [vmem:[%s8949_s25 + $0x11] sm:$0xff]  ;;  %s9941_s30 = scalar_lea.vmem %s10868_s3, %s8302_s28 }
  0x14   : > { %v1793_v8 = vld [vmem:[%s8949_s25 + $0x2] sm:$0xff]  ;;  %v8954_v9 = vpack.c.bf16 %v228_v7, %v227_v6  ;;  %v1794_v10 = vld [vmem:[%s8949_s25 + $0xa] sm:$0xff]  ;;  %v230_v12 = vld [vmem:[%s8949_s25 + $0x19] sm:$0xff] }
  0x15   : > { %v1829_v13 = vpack.c.bf16 %v1794_v10, %v1793_v8  ;;  %v8959_v14 = vpack.c.bf16 %v230_v12, %v229_v11  ;;  %v1795_v16 = vld [vmem:[%s8949_s25 + $0x12] sm:$0xff]  ;;  %v1796_v17 = vld [vmem:[%s8949_s25 + $0x1a] sm:$0xff]  ;;  %v232_v21 = vld [vmem:[%s8949_s25 + $0x29] sm:$0xff] }
  0x16   : > { %v231_v18 = vld [vmem:[%s8949_s25 + $0x21] sm:$0xff]  ;;  %7247 = vmatprep.mubr.msk.bf16.mxu0 %vm283_vm1, %v8954_v9  ;;  %v8967_v19 = vpack.c.bf16 %v1796_v17, %v1795_v16  ;;  %v1798_v23 = vld [vmem:[%s8949_s25 + $0x2a] sm:$0xff]  ;;  %v234_v29 = vld [vmem:[%s8949_s25 + $0x39] sm:$0xff] }
  0x17   : > { %v1797_v22 = vld [vmem:[%s8949_s25 + $0x22] sm:$0xff]  ;;  %7399 = vmatprep.mubr.msk.bf16.mxu1 %vm283_vm1, %v1829_v13  ;;  %7248 = vmatmul.mubr.msk.bf16.vlgmr.msra.gmra.mrb[0].mxu0 %vm283_vm1, %v8959_v14  ;;  %v8976_v24 = vpack.c.bf16 %v232_v21, %v231_v18  ;;  %v233_v28 = vld [vmem:[%s8949_s25 + $0x31] sm:$0xff]  ;;  %v1800_v31 = vld [vmem:[%s8949_s25 + $0x3a] sm:$0xff] }
  0x18   : > { %v8978_v25 = vpack.c.bf16 %v1798_v23, %v1797_v22  ;;  %7284 = vmatpush3.bf16.msra.mxu0 %v574_v15  ;;  %7400 = vmatmul.mubr.msk.bf16.vlgmr.msra.gmra.mrb[0].mxu1 %vm283_vm1, %v8967_v19  ;;  %v1799_v30 = vld [vmem:[%s8949_s25 + $0x32] sm:$0xff]  ;;  %v235_v32 = vld [vmem:[%s8949_s25 + $0x41] sm:$0xff]  ;;  %v236_v33 = vld [vmem:[%s8949_s25 + $0x49] sm:$0xff]  ;;  %v9006_v36 = vpack.c.bf16 %v234_v29, %v233_v28 }
  0x19   : > { %7436 = vmatpush3.bf16.msra.mxu1 %v2138_v20  ;;  %7251 = vmatprep.mubr.msk.bf16.mxu0 %vm283_vm1, %v8976_v24  ;;  %v1801_v34 = vld [vmem:[%s8949_s25 + $0x42] sm:$0xff]  ;;  %v1802_v35 = vld [vmem:[%s8949_s25 + $0x4a] sm:$0xff]  ;;  %v9010_v37 = vpack.c.bf16 %v1800_v31, %v1799_v30  ;;  %v9012_v38 = vpack.c.bf16 %v236_v33, %v235_v32  ;;  %v238_v41 = vld [vmem:[%s8949_s25 + $0x59] sm:$0xff] }
  0x1a   : > { %7403 = vmatprep.mubr.msk.bf16.mxu1 %vm283_vm1, %v8978_v25  ;;  %8287 = vmatprep.subr.msk.bf16.mxu0 %vm338_vm0, %v8983_v26  ;;  %v9014_v39 = vpack.c.bf16 %v1802_v35, %v1801_v34  ;;  %v237_v40 = vld [vmem:[%s8949_s25 + $0x51] sm:$0xff]  ;;  %v1804_v43 = vld [vmem:[%s8949_s25 + $0x5a] sm:$0xff]  ;;  %v240_v45 = vld [vmem:[%s8949_s25 + $0x69] sm:$0xff] }
  0x1b   : > { %8291 = vmatprep.subr.msk.bf16.mxu1 %vm338_vm0, %v8988_v27  ;;  %v1803_v42 = vld [vmem:[%s8949_s25 + $0x52] sm:$0xff]  ;;  %v239_v44 = vld [vmem:[%s8949_s25 + $0x61] sm:$0xff]  ;;  %v1806_v47 = vld [vmem:[%s8949_s25 + $0x6a] sm:$0xff]  ;;  %v9032_v48 = vpack.c.bf16 %v238_v41, %v237_v40 }
  0x1c   : > { %v1805_v46 = vld [vmem:[%s8949_s25 + $0x62] sm:$0xff]  ;;  %v9034_v49 = vpack.c.bf16 %v1804_v43, %v1803_v42  ;;  %v9036_v50 = vpack.c.bf16 %v240_v45, %v239_v44  ;;  %v241_v52 = vld [vmem:[%s8949_s25 + $0x71] sm:$0xff]  ;;  %v242_v53 = vld [vmem:[%s8949_s25 + $0x79] sm:$0xff] }
  0x1d   : > { %v9038_v51 = vpack.c.bf16 %v1806_v47, %v1805_v46  ;;  %v1807_v54 = vld [vmem:[%s8949_s25 + $0x72] sm:$0xff]  ;;  %v1808_v55 = vld [vmem:[%s8949_s25 + $0x7a] sm:$0xff]  ;;  %v244_v57 = vld [vmem:[%s8949_s25 + $0x89] sm:$0xff]  ;;  %v9056_v60 = vpack.c.bf16 %v242_v53, %v241_v52 }
  0x1e   : > { %v243_v56 = vld [vmem:[%s8949_s25 + $0x81] sm:$0xff]  ;;  %v1810_v59 = vld [vmem:[%s8949_s25 + $0x8a] sm:$0xff]  ;;  %v9058_v61 = vpack.c.bf16 %v1808_v55, %v1807_v54  ;;  %v246_v1 = vld [vmem:[%s8949_s25 + $0x99] sm:$0xff] }
  0x1f   : > { %7252 = vmatmul.mubr.msk.bf16.gmra.mrb[4].mxu0 %vm283_vm1, %v9006_v36  ;;  %v1809_v58 = vld [vmem:[%s8949_s25 + $0x82] sm:$0xff]  ;;  %v9060_v62 = vpack.c.bf16 %v244_v57, %v243_v56  ;;  %v245_v0 = vld [vmem:[%s8949_s25 + $0x91] sm:$0xff]  ;;  %v1812_v3 = vld [vmem:[%s8949_s25 + $0x9a] sm:$0xff] }
  0x20   : > { %7404 = vmatmul.mubr.msk.bf16.gmra.mrb[4].mxu1 %vm283_vm1, %v9010_v37  ;;  %7255 = vmatprep.mubr.msk.bf16.mxu0 %vm283_vm1, %v9012_v38  ;;  %v9062_v63 = vpack.c.bf16 %v1810_v59, %v1809_v58  ;;  %v1811_v2 = vld [vmem:[%s8949_s25 + $0x92] sm:$0xff]  ;;  %v247_v4 = vld [vmem:[%s8949_s25 + $0xa1] sm:$0xff]  ;;  %v248_v5 = vld [vmem:[%s8949_s25 + $0xa9] sm:$0xff]  ;;  %v9080_v8 = vpack.c.bf16 %v246_v1, %v245_v0 }
  0x21   : > { %7407 = vmatprep.mubr.msk.bf16.mxu1 %vm283_vm1, %v9014_v39  ;;  %v1813_v6 = vld [vmem:[%s8949_s25 + $0xa2] sm:$0xff]  ;;  %v1814_v7 = vld [vmem:[%s8949_s25 + $0xaa] sm:$0xff]  ;;  %v9082_v10 = vpack.c.bf16 %v1812_v3, %v1811_v2  ;;  %v9084_v11 = vpack.c.bf16 %v248_v5, %v247_v4  ;;  %v250_v15 = vld [vmem:[%s8949_s25 + $0xb9] sm:$0xff] }
  0x22   : > { %v9086_v12 = vpack.c.bf16 %v1814_v7, %v1813_v6  ;;  %v249_v13 = vld [vmem:[%s8949_s25 + $0xb1] sm:$0xff]  ;;  %v1816_v17 = vld [vmem:[%s8949_s25 + $0xba] sm:$0xff]  ;;  %v252_v20 = vld [vmem:[%s8949_s25 + $0xc9] sm:$0xff] }
  0x23   : > { %v1815_v16 = vld [vmem:[%s8949_s25 + $0xb2] sm:$0xff]  ;;  %v251_v18 = vld [vmem:[%s8949_s25 + $0xc1] sm:$0xff]  ;;  %v1818_v22 = vld [vmem:[%s8949_s25 + $0xca] sm:$0xff]  ;;  %v9104_v23 = vpack.c.bf16 %v250_v15, %v249_v13 }
  0x24   : > { %v1817_v21 = vld [vmem:[%s8949_s25 + $0xc2] sm:$0xff]  ;;  %v9106_v28 = vpack.c.bf16 %v1816_v17, %v1815_v16  ;;  %v9108_v29 = vpack.c.bf16 %v252_v20, %v251_v18  ;;  %v253_v31 = vld [vmem:[%s8949_s25 + $0xd1] sm:$0xff]  ;;  %v254_v32 = vld [vmem:[%s8949_s25 + $0xd9] sm:$0xff] }
  0x25   : > { %v9110_v30 = vpack.c.bf16 %v1818_v22, %v1817_v21  ;;  %v1819_v33 = vld [vmem:[%s8949_s25 + $0xd2] sm:$0xff]  ;;  %v1820_v34 = vld [vmem:[%s8949_s25 + $0xda] sm:$0xff]  ;;  %v256_v40 = vld [vmem:[%s8949_s25 + $0xe9] sm:$0xff]  ;;  %v9128_v43 = vpack.c.bf16 %v254_v32, %v253_v31  ;;  %v864_v32 = vsel %vm338_vm0, %v8983_v26, 0 }
  0x26   : > { %v255_v35 = vld [vmem:[%s8949_s25 + $0xe1] sm:$0xff]  ;;  %v1822_v42 = vld [vmem:[%s8949_s25 + $0xea] sm:$0xff]  ;;  %v9130_v44 = vpack.c.bf16 %v1820_v34, %v1819_v33  ;;  %v258_v52 = vld [vmem:[%s8949_s25 + $0xf9] sm:$0xff]  ;;  %v2428_v34 = vsel %vm338_vm0, %v8988_v27, 0 }
  0x27   : > { %7256 = vmatmul.mubr.msk.bf16.gmra.mrb[8].mxu0 %vm283_vm1, %v9032_v48  ;;  %v1821_v41 = vld [vmem:[%s8949_s25 + $0xe2] sm:$0xff]  ;;  %v9132_v45 = vpack.c.bf16 %v256_v40, %v255_v35  ;;  %v257_v47 = vld [vmem:[%s8949_s25 + $0xf1] sm:$0xff]  ;;  %v1824_v54 = vld [vmem:[%s8949_s25 + $0xfa] sm:$0xff] }
  0x28   : > { %7408 = vmatmul.mubr.msk.bf16.gmra.mrb[8].mxu1 %vm283_vm1, %v9034_v49  ;;  %7259 = vmatprep.mubr.msk.bf16.mxu0 %vm283_vm1, %v9036_v50  ;;  %v9134_v46 = vpack.c.bf16 %v1822_v42, %v1821_v41  ;;  %v1823_v53 = vld [vmem:[%s8949_s25 + $0xf2] sm:$0xff]  ;;  %v259_v55 = vld [vmem:[%s8949_s25 + $0x101] sm:$0xff]  ;;  %v260_v56 = vld [vmem:[%s8949_s25 + $0x109] sm:$0xff]  ;;  %v9152_v59 = vpack.c.bf16 %v258_v52, %v257_v47 }
  0x29   : > { %7411 = vmatprep.mubr.msk.bf16.mxu1 %vm283_vm1, %v9038_v51  ;;  %v1825_v57 = vld [vmem:[%s8949_s25 + $0x102] sm:$0xff]  ;;  %v1826_v58 = vld [vmem:[%s8949_s25 + $0x10a] sm:$0xff]  ;;  %v9154_v0 = vpack.c.bf16 %v1824_v54, %v1823_v53  ;;  %v9156_v1 = vpack.c.bf16 %v260_v56, %v259_v55  ;;  %v262_v4 = vld [vmem:[%s8949_s25 + $0x119] sm:$0xff] }
  0x2a   : > { %v9158_v2 = vpack.c.bf16 %v1826_v58, %v1825_v57  ;;  %v261_v3 = vld [vmem:[%s8949_s25 + $0x111] sm:$0xff]  ;;  %v1828_v6 = vld [vmem:[%s8949_s25 + $0x11a] sm:$0xff]  ;;  %v173_v13 = vld [vmem:[%s8949_s25 + $0x8] sm:$0xff] }
  0x2b   : > { %v1827_v5 = vld [vmem:[%s8949_s25 + $0x112] sm:$0xff]  ;;  %v172_v7 = vld [vmem:[%s8949_s25] sm:$0xff]  ;;  %v9174_v15 = vpack.c.bf16 %v262_v4, %v261_v3  ;;  %v177_v22 = vld [vmem:[%s8949_s25 + $0x28] sm:$0xff] }
  0x2c   : > { %v9176_v16 = vpack.c.bf16 %v1828_v6, %v1827_v5  ;;  %v208_v17 = vpack.c.bf16 %v173_v13, %v172_v7  ;;  %v174_v18 = vld [vmem:[%s8949_s25 + $0x10] sm:$0xff]  ;;  %v175_v20 = vld [vmem:[%s8949_s25 + $0x18] sm:$0xff]  ;;  %v176_v21 = vld [vmem:[%s8949_s25 + $0x20] sm:$0xff] }
  0x2d   : > { %v209_v31 = vpack.c.bf16 %v175_v20, %v174_v18  ;;  %v210_v33 = vpack.c.bf16 %v177_v22, %v176_v21  ;;  %v9197_v35 = vld [vmem:[%s10866_s1 + $0xc] sm:$0xf]  ;;  %v179_v40 = vld [vmem:[%s8949_s25 + $0x38] sm:$0xff]  ;;  %v180_v27 = vld [vmem:[%s8949_s25 + $0x40] sm:$0xff] }
  0x2e   : > { %v9206_v26 = vld [vmem:[%s10866_s1 + $0x1c] sm:$0xf]  ;;  %v181_v41 = vld [vmem:[%s8949_s25 + $0x48] sm:$0xff]  ;;  %v184_v52 = vld [vmem:[%s8949_s25 + $0x60] sm:$0xff] }
  0x2f   : > { %7260 = vmatmul.mubr.msk.bf16.gmra.mrb[12].mxu0 %vm283_vm1, %v9056_v60  ;;  %v212_v42 = vpack.c.bf16 %v181_v41, %v180_v27  ;;  %v183_v47 = vld [vmem:[%s8949_s25 + $0x58] sm:$0xff]  ;;  %v185_v53 = vld [vmem:[%s8949_s25 + $0x68] sm:$0xff] }
  0x30   : > { %7412 = vmatmul.mubr.msk.bf16.gmra.mrb[12].mxu1 %vm283_vm1, %v9058_v61  ;;  %7263 = vmatprep.mubr.msk.bf16.mxu0 %vm283_vm1, %v9060_v62  ;;  %v214_v55 = vpack.c.bf16 %v185_v53, %v184_v52  ;;  %v187_v56 = vld [vmem:[%s8949_s25 + $0x78] sm:$0xff]  ;;  %v189_v57 = vld [vmem:[%s8949_s25 + $0x88] sm:$0xff]  ;;  %v1190_v53 = vsel %vm338_vm0, %v9197_v35, 0 }
  0x31   : > { %7415 = vmatprep.mubr.msk.bf16.mxu1 %vm283_vm1, %v9062_v63  ;;  %v191_v4 = vld [vmem:[%s8949_s25 + $0x98] sm:$0xff]  ;;  %v193_v5 = vld [vmem:[%s8949_s25 + $0xa8] sm:$0xff] }
  0x32   : > { %v195_v13 = vld [vmem:[%s8949_s25 + $0xb8] sm:$0xff]  ;;  %v201_v22 = vld [vmem:[%s8949_s25 + $0xe8] sm:$0xff] }
  0x33   : > { %v199_v21 = vld [vmem:[%s8949_s25 + $0xd8] sm:$0xff] }
  0x34   : > { %v207_v27 = vld [vmem:[%s8949_s25 + $0x118] sm:$0xff] }
  0x35   : > { %v2318_v41 = vld [vmem:[%s8949_s25 + $0x1b] sm:$0xff] }
  0x37   : > { %7264 = vmatmul.mubr.msk.bf16.gmra.mrb[16].mxu0 %vm283_vm1, %v9080_v8 }
  0x38   : > { %7416 = vmatmul.mubr.msk.bf16.gmra.mrb[16].mxu1 %vm283_vm1, %v9082_v10  ;;  %7267 = vmatprep.mubr.msk.bf16.mxu0 %vm283_vm1, %v9084_v11 }
  0x39   : > { %7419 = vmatprep.mubr.msk.bf16.mxu1 %vm283_vm1, %v9086_v12 }
  0x3f   : > { %7268 = vmatmul.mubr.msk.bf16.gmra.mrb[20].mxu0 %vm283_vm1, %v9104_v23 }
  0x40   : > { %7420 = vmatmul.mubr.msk.bf16.gmra.mrb[20].mxu1 %vm283_vm1, %v9106_v28  ;;  %7271 = vmatprep.mubr.msk.bf16.mxu0 %vm283_vm1, %v9108_v29 }
  0x41   : > { %7423 = vmatprep.mubr.msk.bf16.mxu1 %vm283_vm1, %v9110_v30 }
  0x47   : > { %7272 = vmatmul.mubr.msk.bf16.gmra.mrb[24].mxu0 %vm283_vm1, %v9128_v43 }
  0x48   : > { %7424 = vmatmul.mubr.msk.bf16.gmra.mrb[24].mxu1 %vm283_vm1, %v9130_v44  ;;  %7275 = vmatprep.mubr.msk.bf16.mxu0 %vm283_vm1, %v9132_v45 }
  0x49   : > { %7427 = vmatprep.mubr.msk.bf16.mxu1 %vm283_vm1, %v9134_v46 }
  0x4f   : > { %7276 = vmatmul.mubr.msk.bf16.gmra.mrb[28].mxu0 %vm283_vm1, %v9152_v59 }
  0x50   : > { %7428 = vmatmul.mubr.msk.bf16.gmra.mrb[28].mxu1 %vm283_vm1, %v9154_v0  ;;  %7279 = vmatprep.mubr.msk.bf16.mxu0 %vm283_vm1, %v9156_v1 }
  0x51   : > { %7431 = vmatprep.mubr.msk.bf16.mxu1 %vm283_vm1, %v9158_v2 }
  0x57   : > { %7280 = vmatmul.mubr.msk.bf16.gmra.mrb[32].mxu0 %vm283_vm1, %v9174_v15 }
  0x58   : > { %7432 = vmatmul.mubr.msk.bf16.gmra.mrb[32].mxu1 %vm283_vm1, %v9176_v16  ;;  %7285 = vmatprep.mubr.msk.bf16.mxu0 %vm283_vm1, %v208_v17  ;;  %v197_v17 = vld [vmem:[%s8949_s25 + $0xc8] sm:$0xff] }
  0x59   : > { %7437 = vmatprep.mubr.msk.bf16.mxu1 %vm283_vm1, %v8954_v9  ;;  %v178_v9 = vld [vmem:[%s8949_s25 + $0x30] sm:$0xff] }
  0x5f   : > { %7286 = vmatmul.mubr.msk.bf16.vlgmr.msra.gmra.mrb[0].mxu0 %vm283_vm1, %v209_v31 }
  0x60   : > { %7322 = vmatpush3.bf16.msra.mxu0 %v864_v32  ;;  %7438 = vmatmul.mubr.msk.bf16.vlgmr.msra.gmra.mrb[0].mxu1 %vm283_vm1, %v8959_v14  ;;  %v211_v14 = vpack.c.bf16 %v179_v40, %v178_v9 }
  0x61   : > { %7474 = vmatpush3.bf16.msra.mxu1 %v2428_v34  ;;  %7289 = vmatprep.mubr.msk.bf16.mxu0 %vm283_vm1, %v210_v33  ;;  %v203_v33 = vld [vmem:[%s8949_s25 + $0xf8] sm:$0xff]  ;;  %v205_v34 = vld [vmem:[%s8949_s25 + $0x108] sm:$0xff] }
  0x62   : > { %7441 = vmatprep.mubr.msk.bf16.mxu1 %vm283_vm1, %v8976_v24  ;;  %8288 = vmatprep.subr.msk.bf16.mxu0 %vm338_vm0, %v9197_v35  ;;  %v182_v24 = vld [vmem:[%s8949_s25 + $0x50] sm:$0xff] }
  0x63   : > { %8292 = vmatprep.subr.msk.bf16.mxu1 %vm338_vm0, %v9206_v26  ;;  %v213_v54 = vpack.c.bf16 %v183_v47, %v182_v24  ;;  %v2321_v24 = vld [vmem:[%s8949_s25 + $0x33] sm:$0xff]  ;;  %v2322_v47 = vld [vmem:[%s8949_s25 + $0x3b] sm:$0xff] }
  0x64   : > { %v9320_v35 = vld [vmem:[%s10866_s1 + $0x34] sm:$0xf] }
  0x67   : > { %7290 = vmatmul.mubr.msk.bf16.gmra.mrb[4].mxu0 %vm283_vm1, %v211_v14 }
  0x68   : > { %7442 = vmatmul.mubr.msk.bf16.gmra.mrb[4].mxu1 %vm283_vm1, %v9006_v36  ;;  %7293 = vmatprep.mubr.msk.bf16.mxu0 %vm283_vm1, %v212_v42  ;;  %v186_v36 = vld [vmem:[%s8949_s25 + $0x70] sm:$0xff] }
  0x69   : > { %7445 = vmatprep.mubr.msk.bf16.mxu1 %vm283_vm1, %v9012_v38  ;;  %v188_v38 = vld [vmem:[%s8949_s25 + $0x80] sm:$0xff]  ;;  %v215_v58 = vpack.c.bf16 %v187_v56, %v186_v36 }
  0x6a   : > { %v216_v3 = vpack.c.bf16 %v189_v57, %v188_v38  ;;  %v2326_v36 = vld [vmem:[%s8949_s25 + $0x5b] sm:$0xff]  ;;  %v2328_v57 = vld [vmem:[%s8949_s25 + $0x6b] sm:$0xff] }
  0x6f   : > { %7294 = vmatmul.mubr.msk.bf16.gmra.mrb[8].mxu0 %vm283_vm1, %v213_v54  ;;  %v9313_v54 = vld [vmem:[%s10866_s1 + $0x24] sm:$0xf] }
  0x70   : > { %7446 = vmatmul.mubr.msk.bf16.gmra.mrb[8].mxu1 %vm283_vm1, %v9032_v48  ;;  %7297 = vmatprep.mubr.msk.bf16.mxu0 %vm283_vm1, %v214_v55  ;;  %v190_v48 = vld [vmem:[%s8949_s25 + $0x90] sm:$0xff] }
  0x71   : > { %7449 = vmatprep.mubr.msk.bf16.mxu1 %vm283_vm1, %v9036_v50  ;;  %v192_v50 = vld [vmem:[%s8949_s25 + $0xa0] sm:$0xff]  ;;  %v217_v6 = vpack.c.bf16 %v191_v4, %v190_v48  ;;  %v2325_v55 = vld [vmem:[%s8949_s25 + $0x53] sm:$0xff] }
  0x72   : > { %v218_v7 = vpack.c.bf16 %v193_v5, %v192_v50  ;;  %v9336_v38 = vpack.c.bf16 %v2326_v36, %v2325_v55  ;;  %v2333_v50 = vld [vmem:[%s8949_s25 + $0x93] sm:$0xff]  ;;  %v2334_v5 = vld [vmem:[%s8949_s25 + $0x9b] sm:$0xff] }
  0x73   : > { %v2651_v55 = vld [vmem:[%s8949_s25 + $0x54] sm:$0xff]  ;;  %v2652_v36 = vld [vmem:[%s8949_s25 + $0x5c] sm:$0xff] }
  0x77   : > { %7298 = vmatmul.mubr.msk.bf16.gmra.mrb[12].mxu0 %vm283_vm1, %v215_v58  ;;  %v2329_v58 = vld [vmem:[%s8949_s25 + $0x73] sm:$0xff] }
  0x78   : > { %7450 = vmatmul.mubr.msk.bf16.gmra.mrb[12].mxu1 %vm283_vm1, %v9056_v60  ;;  %7301 = vmatprep.mubr.msk.bf16.mxu0 %vm283_vm1, %v216_v3  ;;  %v194_v60 = vld [vmem:[%s8949_s25 + $0xb0] sm:$0xff]  ;;  %v2330_v3 = vld [vmem:[%s8949_s25 + $0x7b] sm:$0xff] }
  0x79   : > { %7453 = vmatprep.mubr.msk.bf16.mxu1 %vm283_vm1, %v9060_v62  ;;  %v196_v62 = vld [vmem:[%s8949_s25 + $0xc0] sm:$0xff]  ;;  %v219_v18 = vpack.c.bf16 %v195_v13, %v194_v60  ;;  %v9352_v4 = vpack.c.bf16 %v2330_v3, %v2329_v58  ;;  %v2337_v60 = vld [vmem:[%s8949_s25 + $0xb3] sm:$0xff] }
  0x7a   : > { %v220_v20 = vpack.c.bf16 %v197_v17, %v196_v62  ;;  %v2338_v13 = vld [vmem:[%s8949_s25 + $0xbb] sm:$0xff]  ;;  %v2653_v58 = vld [vmem:[%s8949_s25 + $0x64] sm:$0xff]  ;;  %v2654_v3 = vld [vmem:[%s8949_s25 + $0x6c] sm:$0xff] }
  0x7b   : > { %v9384_v17 = vpack.c.bf16 %v2338_v13, %v2337_v60  ;;  %v2659_v60 = vld [vmem:[%s8949_s25 + $0x94] sm:$0xff]  ;;  %v2660_v13 = vld [vmem:[%s8949_s25 + $0x9c] sm:$0xff] }
  0x7f   : > { %7302 = vmatmul.mubr.msk.bf16.gmra.mrb[16].mxu0 %vm283_vm1, %v217_v6 }
  0x80   : > { %7454 = vmatmul.mubr.msk.bf16.gmra.mrb[16].mxu1 %vm283_vm1, %v9080_v8  ;;  %7305 = vmatprep.mubr.msk.bf16.mxu0 %vm283_vm1, %v218_v7  ;;  %v198_v8 = vld [vmem:[%s8949_s25 + $0xd0] sm:$0xff]  ;;  %v9368_v7 = vpack.c.bf16 %v2334_v5, %v2333_v50  ;;  %v9516_v50 = vpack.c.bf16 %v2654_v3, %v2653_v58 }
  0x81   : > { %7457 = vmatprep.mubr.msk.bf16.mxu1 %vm283_vm1, %v9084_v11  ;;  %v200_v11 = vld [vmem:[%s8949_s25 + $0xe0] sm:$0xff]  ;;  %v221_v31 = vpack.c.bf16 %v199_v21, %v198_v8 }
  0x82   : > { %v222_v32 = vpack.c.bf16 %v201_v22, %v200_v11  ;;  %v2345_v11 = vld [vmem:[%s8949_s25 + $0xf3] sm:$0xff]  ;;  %v2346_v22 = vld [vmem:[%s8949_s25 + $0xfb] sm:$0xff] }
  0x87   : > { %7306 = vmatmul.mubr.msk.bf16.gmra.mrb[20].mxu0 %vm283_vm1, %v219_v18  ;;  %v2341_v18 = vld [vmem:[%s8949_s25 + $0xd3] sm:$0xff] }
  0x88   : > { %7458 = vmatmul.mubr.msk.bf16.gmra.mrb[20].mxu1 %vm283_vm1, %v9104_v23  ;;  %7309 = vmatprep.mubr.msk.bf16.mxu0 %vm283_vm1, %v220_v20  ;;  %v202_v23 = vld [vmem:[%s8949_s25 + $0xf0] sm:$0xff]  ;;  %v2342_v20 = vld [vmem:[%s8949_s25 + $0xdb] sm:$0xff] }
  0x89   : > { %7461 = vmatprep.mubr.msk.bf16.mxu1 %vm283_vm1, %v9108_v29  ;;  %v204_v29 = vld [vmem:[%s8949_s25 + $0x100] sm:$0xff]  ;;  %v223_v9 = vpack.c.bf16 %v203_v33, %v202_v23  ;;  %v9400_v21 = vpack.c.bf16 %v2342_v20, %v2341_v18  ;;  %v2349_v23 = vld [vmem:[%s8949_s25 + $0x113] sm:$0xff] }
  0x8a   : > { %v224_v40 = vpack.c.bf16 %v205_v34, %v204_v29  ;;  %v2350_v33 = vld [vmem:[%s8949_s25 + $0x11b] sm:$0xff]  ;;  %v788_v34 = vld [vmem:[%s8949_s25 + $0x12a] sm:$0xff] }
  0x8b   : > { %v2661_v18 = vld [vmem:[%s8949_s25 + $0xa4] sm:$0xff]  ;;  %v2662_v20 = vld [vmem:[%s8949_s25 + $0xac] sm:$0xff] }
  0x8f   : > { %7310 = vmatmul.mubr.msk.bf16.gmra.mrb[24].mxu0 %vm283_vm1, %v221_v31 }
  0x90   : > { %7462 = vmatmul.mubr.msk.bf16.gmra.mrb[24].mxu1 %vm283_vm1, %v9128_v43  ;;  %7313 = vmatprep.mubr.msk.bf16.mxu0 %vm283_vm1, %v222_v32  ;;  %v206_v43 = vld [vmem:[%s8949_s25 + $0x110] sm:$0xff] }
  0x91   : > { %7465 = vmatprep.mubr.msk.bf16.mxu1 %vm283_vm1, %v9132_v45  ;;  %v2317_v45 = vld [vmem:[%s8949_s25 + $0x13] sm:$0xff]  ;;  %v225_v14 = vpack.c.bf16 %v207_v27, %v206_v43  ;;  %v2348_v32 = vld [vmem:[%s8949_s25 + $0x10b] sm:$0xff]  ;;  %v2644_v27 = vld [vmem:[%s8949_s25 + $0x1c] sm:$0xff] }
  0x92   : > { %v9287_v42 = vpack.c.bf16 %v2318_v41, %v2317_v45  ;;  %v2643_v43 = vld [vmem:[%s8949_s25 + $0x14] sm:$0xff] }
  0x93   : > { %v9452_v41 = vpack.c.bf16 %v2644_v27, %v2643_v43  ;;  %v2671_v43 = vld [vmem:[%s8949_s25 + $0xf4] sm:$0xff]  ;;  %v2672_v27 = vld [vmem:[%s8949_s25 + $0xfc] sm:$0xff] }
  0x97   : > { %7314 = vmatmul.mubr.msk.bf16.gmra.mrb[28].mxu0 %vm283_vm1, %v223_v9  ;;  %v2351_v9 = vld [vmem:[%s8949_s25 + $0x123] sm:$0xff] }
  0x98   : > { %7466 = vmatmul.mubr.msk.bf16.gmra.mrb[28].mxu1 %vm283_vm1, %v9152_v59  ;;  %7317 = vmatprep.mubr.msk.bf16.mxu0 %vm283_vm1, %v224_v40  ;;  %v2319_v59 = vld [vmem:[%s8949_s25 + $0x23] sm:$0xff]  ;;  %v2352_v40 = vld [vmem:[%s8949_s25 + $0x12b] sm:$0xff] }
  0x99   : > { %7469 = vmatprep.mubr.msk.bf16.mxu1 %vm283_vm1, %v9156_v1  ;;  %v2320_v1 = vld [vmem:[%s8949_s25 + $0x2b] sm:$0xff]  ;;  %v9450_v45 = vpack.c.bf16 %v2352_v40, %v2351_v9 }
  0x9a   : > { %v9300_v52 = vpack.c.bf16 %v2320_v1, %v2319_v59  ;;  %v2647_v59 = vld [vmem:[%s8949_s25 + $0x34] sm:$0xff]  ;;  %v2648_v1 = vld [vmem:[%s8949_s25 + $0x3c] sm:$0xff]  ;;  %v2669_v9 = vld [vmem:[%s8949_s25 + $0xe4] sm:$0xff] }
  0x9b   : > { %v2670_v40 = vld [vmem:[%s8949_s25 + $0xec] sm:$0xff] }
  0x9f   : > { %7318 = vmatmul.mubr.msk.bf16.gmra.mrb[32].mxu0 %vm283_vm1, %v225_v14  ;;  %v2646_v14 = vld [vmem:[%s8949_s25 + $0x2c] sm:$0xff] }
  0xa0   : > { %7470 = vmatmul.mubr.msk.bf16.gmra.mrb[32].mxu1 %vm283_vm1, %v9174_v15  ;;  %7323 = vmatprep.mubr.msk.bf16.mxu0 %vm283_vm1, %v8967_v19  ;;  %v2754_v15 = vsel %vm338_vm0, %v9206_v26, 0  ;;  %v9306_v19 = vpack.c.bf16 %v2322_v47, %v2321_v24  ;;  %v2324_v26 = vld [vmem:[%s8949_s25 + $0x4b] sm:$0xff]  ;;  %v3467_v47 = vsel %vm338_vm0, %v9313_v54, 0 }
  0xa1   : > { %7475 = vmatprep.mubr.msk.bf16.mxu1 %vm283_vm1, %v9287_v42 }
  0xa7   : > { %7324 = vmatmul.mubr.msk.bf16.vlgmr.msra.gmra.mrb[0].mxu0 %vm283_vm1, %v8978_v25  ;;  %v2323_v25 = vld [vmem:[%s8949_s25 + $0x43] sm:$0xff] }
  0xa8   : > { %7360 = vmatpush3.bf16.msra.mxu0 %v1190_v53  ;;  %7476 = vmatmul.mubr.msk.bf16.vlgmr.msra.gmra.mrb[0].mxu1 %vm283_vm1, %v9300_v52  ;;  %v9334_v56 = vpack.c.bf16 %v2324_v26, %v2323_v25  ;;  %v5030_v53 = vsel %vm338_vm0, %v9320_v35, 0  ;;  %v9479_v25 = vld [vmem:[%s10866_s1 + $0x20] sm:$0xf]  ;;  %v2650_v26 = vld [vmem:[%s8949_s25 + $0x4c] sm:$0xff] }
  0xa9   : > { %7512 = vmatpush3.bf16.msra.mxu1 %v2754_v15  ;;  %7327 = vmatprep.mubr.msk.bf16.mxu0 %vm283_vm1, %v9010_v37  ;;  %v2327_v37 = vld [vmem:[%s8949_s25 + $0x63] sm:$0xff]  ;;  %v9472_v15 = vpack.c.bf16 %v2648_v1, %v2647_v59  ;;  %v2674_v1 = vld [vmem:[%s8949_s25 + $0x10c] sm:$0xff]  ;;  %v3701_v3 = vsel %vm338_vm0, %v9479_v25, 0 }
  0xaa   : > { %7479 = vmatprep.mubr.msk.bf16.mxu1 %vm283_vm1, %v9306_v19  ;;  %8293 = vmatprep.subr.msk.bf16.mxu0 %vm338_vm0, %v9313_v54  ;;  %v9350_v48 = vpack.c.bf16 %v2328_v57, %v2327_v37  ;;  %v9486_v54 = vld [vmem:[%s10866_s1 + $0x30] sm:$0xf]  ;;  %v9502_v57 = vpack.c.bf16 %v2652_v36, %v2651_v55  ;;  %v2673_v59 = vld [vmem:[%s8949_s25 + $0x104] sm:$0xff] }
  0xab   : > { %8297 = vmatprep.subr.msk.bf16.mxu1 %vm338_vm0, %v9320_v35  ;;  %v2649_v35 = vld [vmem:[%s8949_s25 + $0x44] sm:$0xff]  ;;  %v2678_v36 = vld [vmem:[%s8949_s25 + $0x12c] sm:$0xff] }
  0xac   : > { %v9500_v37 = vpack.c.bf16 %v2650_v26, %v2649_v35  ;;  %v2694_v35 = vpack.c.bf16 %v2674_v1, %v2673_v59  ;;  %v2677_v55 = vld [vmem:[%s8949_s25 + $0x124] sm:$0xff]  ;;  %v3325_v1 = vld [vmem:[%s8949_s25 + $0xda] sm:$0xff] }
  0xad   : > { %v2696_v58 = vpack.c.bf16 %v2678_v36, %v2677_v55  ;;  %v3323_v59 = vld [vmem:[%s8949_s25 + $0xca] sm:$0xff] }
  0xaf   : > { %7328 = vmatmul.mubr.msk.bf16.gmra.mrb[4].mxu0 %vm283_vm1, %v9014_v39  ;;  %v2331_v39 = vld [vmem:[%s8949_s25 + $0x83] sm:$0xff] }
  0xb0   : > { %7480 = vmatmul.mubr.msk.bf16.gmra.mrb[4].mxu1 %vm283_vm1, %v9334_v56  ;;  %7331 = vmatprep.mubr.msk.bf16.mxu0 %vm283_vm1, %v9034_v49  ;;  %v2332_v49 = vld [vmem:[%s8949_s25 + $0x8b] sm:$0xff] }
  0xb1   : > { %7483 = vmatprep.mubr.msk.bf16.mxu1 %vm283_vm1, %v9336_v38  ;;  %v9366_v6 = vpack.c.bf16 %v2332_v49, %v2331_v39  ;;  %v2655_v39 = vld [vmem:[%s8949_s25 + $0x74] sm:$0xff]  ;;  %v2656_v49 = vld [vmem:[%s8949_s25 + $0x7c] sm:$0xff] }
  0xb2   : > { %v9518_v5 = vpack.c.bf16 %v2656_v49, %v2655_v39  ;;  %v5264_v39 = vsel %vm338_vm0, %v9486_v54, 0  ;;  %v6751_v49 = vld [vmem:[%s10866_s1 + $0x28] sm:$0xf] }
  0xb7   : > { %7332 = vmatmul.mubr.msk.bf16.gmra.mrb[8].mxu0 %vm283_vm1, %v9038_v51  ;;  %v2335_v51 = vld [vmem:[%s8949_s25 + $0xa3] sm:$0xff] }
  0xb8   : > { %7484 = vmatmul.mubr.msk.bf16.gmra.mrb[8].mxu1 %vm283_vm1, %v9350_v48  ;;  %7335 = vmatprep.mubr.msk.bf16.mxu0 %vm283_vm1, %v9058_v61  ;;  %v2336_v61 = vld [vmem:[%s8949_s25 + $0xab] sm:$0xff] }
  0xb9   : > { %7487 = vmatprep.mubr.msk.bf16.mxu1 %vm283_vm1, %v9352_v4  ;;  %v9382_v62 = vpack.c.bf16 %v2336_v61, %v2335_v51  ;;  %v2657_v51 = vld [vmem:[%s8949_s25 + $0x84] sm:$0xff]  ;;  %v2658_v61 = vld [vmem:[%s8949_s25 + $0x8c] sm:$0xff] }
  0xbf   : > { %7336 = vmatmul.mubr.msk.bf16.gmra.mrb[12].mxu0 %vm283_vm1, %v9062_v63  ;;  %v2339_v63 = vld [vmem:[%s8949_s25 + $0xc3] sm:$0xff] }
  0xc0   : > { %7488 = vmatmul.mubr.msk.bf16.gmra.mrb[12].mxu1 %vm283_vm1, %v9366_v6  ;;  %7339 = vmatprep.mubr.msk.bf16.mxu0 %vm283_vm1, %v9082_v10  ;;  %v2340_v10 = vld [vmem:[%s8949_s25 + $0xcb] sm:$0xff] }
  0xc1   : > { %7491 = vmatprep.mubr.msk.bf16.mxu1 %vm283_vm1, %v9368_v7  ;;  %v9398_v8 = vpack.c.bf16 %v2340_v10, %v2339_v63  ;;  %v9532_v63 = vpack.c.bf16 %v2658_v61, %v2657_v51  ;;  %v9534_v10 = vpack.c.bf16 %v2660_v13, %v2659_v60  ;;  %v3305_v51 = vld [vmem:[%s8949_s25 + $0x3a] sm:$0xff]  ;;  %v3991_v60 = vsel %vm338_vm0, %v6751_v49, 0 }
  0xc7   : > { %7340 = vmatmul.mubr.msk.bf16.gmra.mrb[16].mxu0 %vm283_vm1, %v9086_v12  ;;  %v2343_v12 = vld [vmem:[%s8949_s25 + $0xe3] sm:$0xff] }
  0xc8   : > { %7492 = vmatmul.mubr.msk.bf16.gmra.mrb[16].mxu1 %vm283_vm1, %v9382_v62  ;;  %7343 = vmatprep.mubr.msk.bf16.mxu0 %vm283_vm1, %v9106_v28  ;;  %v2344_v28 = vld [vmem:[%s8949_s25 + $0xeb] sm:$0xff] }
  0xc9   : > { %7495 = vmatprep.mubr.msk.bf16.mxu1 %vm283_vm1, %v9384_v17  ;;  %v9414_v31 = vpack.c.bf16 %v2344_v28, %v2343_v12  ;;  %v2663_v12 = vld [vmem:[%s8949_s25 + $0xb4] sm:$0xff]  ;;  %v2664_v28 = vld [vmem:[%s8949_s25 + $0xbc] sm:$0xff] }
  0xcf   : > { %7344 = vmatmul.mubr.msk.bf16.gmra.mrb[20].mxu0 %vm283_vm1, %v9110_v30  ;;  %v9416_v30 = vpack.c.bf16 %v2346_v22, %v2345_v11  ;;  %v9548_v11 = vpack.c.bf16 %v2662_v20, %v2661_v18  ;;  %v9550_v22 = vpack.c.bf16 %v2664_v28, %v2663_v12  ;;  %v3307_v18 = vld [vmem:[%s8949_s25 + $0x4a] sm:$0xff]  ;;  %v9700_v20 = vld [vmem:[%s10866_s1 + $0x3c] sm:$0xf]  ;;  %v3308_v12 = vld [vmem:[%s8949_s25 + $0x52] sm:$0xff] }
  0xd0   : > { %7496 = vmatmul.mubr.msk.bf16.gmra.mrb[20].mxu1 %vm283_vm1, %v9398_v8  ;;  %7347 = vmatprep.mubr.msk.bf16.mxu0 %vm283_vm1, %v9130_v44  ;;  %v2347_v44 = vld [vmem:[%s8949_s25 + $0x103] sm:$0xff]  ;;  %v3309_v28 = vld [vmem:[%s8949_s25 + $0x5a] sm:$0xff] }
  0xd1   : > { %7499 = vmatprep.mubr.msk.bf16.mxu1 %vm283_vm1, %v9400_v21  ;;  %v9430_v29 = vpack.c.bf16 %v2348_v32, %v2347_v44  ;;  %v2665_v44 = vld [vmem:[%s8949_s25 + $0xc4] sm:$0xff]  ;;  %v2666_v32 = vld [vmem:[%s8949_s25 + $0xcc] sm:$0xff] }
  0xd7   : > { %7348 = vmatmul.mubr.msk.bf16.gmra.mrb[24].mxu0 %vm283_vm1, %v9134_v46  ;;  %v9432_v46 = vpack.c.bf16 %v2350_v33, %v2349_v23  ;;  %v2667_v23 = vld [vmem:[%s8949_s25 + $0xd4] sm:$0xff]  ;;  %v2668_v33 = vld [vmem:[%s8949_s25 + $0xdc] sm:$0xff] }
  0xd8   : > { %7500 = vmatmul.mubr.msk.bf16.gmra.mrb[24].mxu1 %vm283_vm1, %v9414_v31  ;;  %7351 = vmatprep.mubr.msk.bf16.mxu0 %vm283_vm1, %v9154_v0  ;;  %v787_v0 = vld [vmem:[%s8949_s25 + $0x122] sm:$0xff] }
  0xd9   : > { %7503 = vmatprep.mubr.msk.bf16.mxu1 %vm283_vm1, %v9416_v30 }
  0xdf   : > { %7352 = vmatmul.mubr.msk.bf16.gmra.mrb[28].mxu0 %vm283_vm1, %v9158_v2  ;;  %v9448_v2 = vpack.c.bf16 %v788_v34, %v787_v0  ;;  %v2690_v0 = vpack.c.bf16 %v2666_v32, %v2665_v44  ;;  %v9564_v34 = vpack.c.bf16 %v2668_v33, %v2667_v23  ;;  %v3312_v44 = vld [vmem:[%s8949_s25 + $0x72] sm:$0xff]  ;;  %v3313_v32 = vld [vmem:[%s8949_s25 + $0x7a] sm:$0xff] }
  0xe0   : > { %7504 = vmatmul.mubr.msk.bf16.gmra.mrb[28].mxu1 %vm283_vm1, %v9430_v29  ;;  %7355 = vmatprep.mubr.msk.bf16.mxu0 %vm283_vm1, %v9176_v16  ;;  %v2645_v16 = vld [vmem:[%s8949_s25 + $0x24] sm:$0xff]  ;;  %v3342_v33 = vpack.c.bf16 %v3313_v32, %v3312_v44 }
  0xe1   : > { %7507 = vmatprep.mubr.msk.bf16.mxu1 %vm283_vm1, %v9432_v46  ;;  %v9466_v24 = vpack.c.bf16 %v2646_v14, %v2645_v16  ;;  %v2692_v16 = vpack.c.bf16 %v2670_v40, %v2669_v9  ;;  %v2693_v14 = vpack.c.bf16 %v2672_v27, %v2671_v43  ;;  %v3319_v43 = vld [vmem:[%s8949_s25 + $0xaa] sm:$0xff]  ;;  %v3321_v27 = vld [vmem:[%s8949_s25 + $0xba] sm:$0xff] }
  0xe7   : > { %7356 = vmatmul.mubr.msk.bf16.gmra.mrb[32].mxu0 %vm283_vm1, %v9448_v2 }
  0xe8   : > { %7508 = vmatmul.mubr.msk.bf16.gmra.mrb[32].mxu1 %vm283_vm1, %v9450_v45  ;;  %7361 = vmatprep.mubr.msk.bf16.mxu0 %vm283_vm1, %v9287_v42 }
  0xe9   : > { %7513 = vmatprep.mubr.msk.bf16.mxu1 %vm283_vm1, %v9452_v41 }
  0xef   : > { %7362 = vmatmul.mubr.msk.bf16.vlgmr.msra.gmra.mrb[0].mxu0 %vm283_vm1, %v9300_v52 }
  0xf0   : > { %7514 = vmatmul.mubr.msk.bf16.vlgmr.msra.gmra.mrb[0].mxu1 %vm283_vm1, %v9466_v24  ;;  %7550 = vmatpush3.bf16.msra.mxu0 %v3467_v47  ;;  %v2675_v47 = vld [vmem:[%s8949_s25 + $0x114] sm:$0xff] }
  0xf1   : > { %7702 = vmatpush3.bf16.msra.mxu1 %v5030_v53  ;;  %7365 = vmatprep.mubr.msk.bf16.mxu0 %vm283_vm1, %v9306_v19  ;;  %v2676_v53 = vld [vmem:[%s8949_s25 + $0x11c] sm:$0xff] }
  0xf2   : > { %7517 = vmatprep.mubr.msk.bf16.mxu1 %vm283_vm1, %v9472_v15  ;;  %8294 = vmatprep.subr.msk.bf16.mxu0 %vm338_vm0, %v9479_v25  ;;  %v2695_v26 = vpack.c.bf16 %v2676_v53, %v2675_v47  ;;  %v3300_v25 = vld [vmem:[%s8949_s25 + $0x12] sm:$0xff] }
  0xf3   : > { %8298 = vmatprep.subr.msk.bf16.mxu1 %vm338_vm0, %v9486_v54  ;;  %v3301_v54 = vld [vmem:[%s8949_s25 + $0x1a] sm:$0xff] }
  0xf7   : > { %7366 = vmatmul.mubr.msk.bf16.gmra.mrb[4].mxu0 %vm283_vm1, %v9334_v56 }
  0xf8   : > { %7518 = vmatmul.mubr.msk.bf16.gmra.mrb[4].mxu1 %vm283_vm1, %v9500_v37  ;;  %7369 = vmatprep.mubr.msk.bf16.mxu0 %vm283_vm1, %v9336_v38 }
  0xf9   : > { %7521 = vmatprep.mubr.msk.bf16.mxu1 %vm283_vm1, %v9502_v57 }
  0xff   : > { %7370 = vmatmul.mubr.msk.bf16.gmra.mrb[8].mxu0 %vm283_vm1, %v9350_v48 }
 0x100   : > { %7522 = vmatmul.mubr.msk.bf16.gmra.mrb[8].mxu1 %vm283_vm1, %v9516_v50  ;;  %7373 = vmatprep.mubr.msk.bf16.mxu0 %vm283_vm1, %v9352_v4 }
 0x101   : > { %7525 = vmatprep.mubr.msk.bf16.mxu1 %vm283_vm1, %v9518_v5 }
 0x107   : > { %7374 = vmatmul.mubr.msk.bf16.gmra.mrb[12].mxu0 %vm283_vm1, %v9366_v6 }
 0x108   : > { %7526 = vmatmul.mubr.msk.bf16.gmra.mrb[12].mxu1 %vm283_vm1, %v9532_v63  ;;  %7377 = vmatprep.mubr.msk.bf16.mxu0 %vm283_vm1, %v9368_v7 }
 0x109   : > { %7529 = vmatprep.mubr.msk.bf16.mxu1 %vm283_vm1, %v9534_v10 }
 0x10f   : > { %7378 = vmatmul.mubr.msk.bf16.gmra.mrb[16].mxu0 %vm283_vm1, %v9382_v62 }
 0x110   : > { %7530 = vmatmul.mubr.msk.bf16.gmra.mrb[16].mxu1 %vm283_vm1, %v9548_v11  ;;  %7381 = vmatprep.mubr.msk.bf16.mxu0 %vm283_vm1, %v9384_v17 }
 0x111   : > { %7533 = vmatprep.mubr.msk.bf16.mxu1 %vm283_vm1, %v9550_v22 }
 0x117   : > { %7382 = vmatmul.mubr.msk.bf16.gmra.mrb[20].mxu0 %vm283_vm1, %v9398_v8 }
 0x118   : > { %7534 = vmatmul.mubr.msk.bf16.gmra.mrb[20].mxu1 %vm283_vm1, %v2690_v0  ;;  %7385 = vmatprep.mubr.msk.bf16.mxu0 %vm283_vm1, %v9400_v21 }
 0x119   : > { %7537 = vmatprep.mubr.msk.bf16.mxu1 %vm283_vm1, %v9564_v34 }
 0x11f   : > { %7386 = vmatmul.mubr.msk.bf16.gmra.mrb[24].mxu0 %vm283_vm1, %v9414_v31 }
 0x120   : > { %7538 = vmatmul.mubr.msk.bf16.gmra.mrb[24].mxu1 %vm283_vm1, %v2692_v16  ;;  %7389 = vmatprep.mubr.msk.bf16.mxu0 %vm283_vm1, %v9416_v30 }
 0x121   : > { %7541 = vmatprep.mubr.msk.bf16.mxu1 %vm283_vm1, %v2693_v14 }
 0x127   : > { %7390 = vmatmul.mubr.msk.bf16.gmra.mrb[28].mxu0 %vm283_vm1, %v9430_v29 }
 0x128   : > { %7542 = vmatmul.mubr.msk.bf16.gmra.mrb[28].mxu1 %vm283_vm1, %v2694_v35  ;;  %7393 = vmatprep.mubr.msk.bf16.mxu0 %vm283_vm1, %v9432_v46 }
 0x129   : > { %7545 = vmatprep.mubr.msk.bf16.mxu1 %vm283_vm1, %v2695_v26 }
 0x12f   : > { %7394 = vmatmul.mubr.msk.bf16.gmra.mrb[32].mxu0 %vm283_vm1, %v9450_v45 }
 0x130   : > { %7546 = vmatmul.mubr.msk.bf16.gmra.mrb[32].mxu1 %vm283_vm1, %v2696_v58  ;;  %7551 = vmatprep.mubr.msk.bf16.mxu0 %vm283_vm1, %v9287_v42 }
 0x131   : > { %7703 = vmatprep.mubr.msk.bf16.mxu1 %vm283_vm1, %v9452_v41  ;;  %v6864_v41 = vld [vmem:[%s10866_s1 + $0x38] sm:$0xf] }
 0x137   : > { %7552 = vmatmul.mubr.msk.bf16.vlgmr.msra.gmra.mrb[36].mxu0 %vm283_vm1, %v9300_v52 }
 0x138   : > { %7588 = vmatpush3.bf16.msra.mxu0 %v3701_v3  ;;  %7704 = vmatmul.mubr.msk.bf16.vlgmr.msra.gmra.mrb[36].mxu1 %vm283_vm1, %v9466_v24  ;;  %v3333_v3 = vld [vmem:[%s8949_s25 + $0x11a] sm:$0xff] }
 0x139   : > { %7740 = vmatpush3.bf16.msra.mxu1 %v5264_v39  ;;  %7555 = vmatprep.mubr.msk.bf16.mxu0 %vm283_vm1, %v9306_v19 }
 0x13a   : > { %7707 = vmatprep.mubr.msk.bf16.mxu1 %vm283_vm1, %v9472_v15  ;;  %8295 = vmatprep.subr.msk.bf16.mxu0 %vm338_vm0, %v6751_v49 }
 0x13b   : > { %8299 = vmatprep.subr.msk.bf16.mxu1 %vm338_vm0, %v6864_v41 }
 0x13f   : > { %7556 = vmatmul.mubr.msk.bf16.gmra.mrb[40].mxu0 %vm283_vm1, %v9334_v56 }
 0x140   : > { %7708 = vmatmul.mubr.msk.bf16.gmra.mrb[40].mxu1 %vm283_vm1, %v9500_v37  ;;  %7559 = vmatprep.mubr.msk.bf16.mxu0 %vm283_vm1, %v9336_v38  ;;  %v3336_v37 = vpack.c.bf16 %v3301_v54, %v3300_v25  ;;  %v9782_v25 = vld [vmem:[%s10867_s2] ss:$0 sm:$0xff]  ;;  %v5445_v54 = vld [vmem:[%s8949_s25 + $0x35] sm:$0xff] }
 0x141   : > { %7711 = vmatprep.mubr.msk.bf16.mxu1 %vm283_vm1, %v9502_v57  ;;  %v3302_v57 = vld [vmem:[%s8949_s25 + $0x22] sm:$0xff] }
 0x147   : > { %7560 = vmatmul.mubr.msk.bf16.gmra.mrb[44].mxu0 %vm283_vm1, %v9350_v48 }
 0x148   : > { %7712 = vmatmul.mubr.msk.bf16.gmra.mrb[44].mxu1 %vm283_vm1, %v9516_v50  ;;  %7563 = vmatprep.mubr.msk.bf16.mxu0 %vm283_vm1, %v9352_v4  ;;  %v3303_v50 = vld [vmem:[%s8949_s25 + $0x2a] sm:$0xff] }
 0x149   : > { %7715 = vmatprep.mubr.msk.bf16.mxu1 %vm283_vm1, %v9518_v5  ;;  %v3304_v5 = vld [vmem:[%s8949_s25 + $0x32] sm:$0xff]  ;;  %v3337_v61 = vpack.c.bf16 %v3303_v50, %v3302_v57  ;;  %v5447_v57 = vld [vmem:[%s8949_s25 + $0x45] sm:$0xff] }
 0x14a   : > { %v3338_v13 = vpack.c.bf16 %v3305_v51, %v3304_v5  ;;  %v5448_v50 = vld [vmem:[%s8949_s25 + $0x4d] sm:$0xff]  ;;  %v9801_v51 = vld [vmem:[%s8949_s25 + $0x5c] sm:$0xff] }
 0x14b   : > { %v9798_v5 = vld [vmem:[%s8949_s25 + $0x54] sm:$0xff] }
 0x14f   : > { %7564 = vmatmul.mubr.msk.bf16.gmra.mrb[48].mxu0 %vm283_vm1, %v9366_v6 }
 0x150   : > { %7716 = vmatmul.mubr.msk.bf16.gmra.mrb[48].mxu1 %vm283_vm1, %v9532_v63  ;;  %7567 = vmatprep.mubr.msk.bf16.mxu0 %vm283_vm1, %v9368_v7  ;;  %v5554_v63 = vsel %vm338_vm0, %v6864_v41, 0 }
 0x151   : > { %7719 = vmatprep.mubr.msk.bf16.mxu1 %vm283_vm1, %v9534_v10  ;;  %v9691_v10 = vld [vmem:[%s10866_s1 + $0x2c] sm:$0xf] }
 0x157   : > { %7568 = vmatmul.mubr.msk.bf16.gmra.mrb[52].mxu0 %vm283_vm1, %v9382_v62 }
 0x158   : > { %7720 = vmatmul.mubr.msk.bf16.gmra.mrb[52].mxu1 %vm283_vm1, %v9548_v11  ;;  %7571 = vmatprep.mubr.msk.bf16.mxu0 %vm283_vm1, %v9384_v17  ;;  %v3340_v11 = vpack.c.bf16 %v3309_v28, %v3308_v12 }
 0x159   : > { %7723 = vmatprep.mubr.msk.bf16.mxu1 %vm283_vm1, %v9550_v22  ;;  %v3311_v22 = vld [vmem:[%s8949_s25 + $0x6a] sm:$0xff] }
 0x15f   : > { %7572 = vmatmul.mubr.msk.bf16.gmra.mrb[56].mxu0 %vm283_vm1, %v9398_v8 }
 0x160   : > { %7724 = vmatmul.mubr.msk.bf16.gmra.mrb[56].mxu1 %vm283_vm1, %v2690_v0  ;;  %7575 = vmatprep.mubr.msk.bf16.mxu0 %vm283_vm1, %v9400_v21  ;;  %v3315_v0 = vld [vmem:[%s8949_s25 + $0x8a] sm:$0xff] }
 0x161   : > { %7727 = vmatprep.mubr.msk.bf16.mxu1 %vm283_vm1, %v9564_v34  ;;  %v3317_v34 = vld [vmem:[%s8949_s25 + $0x9a] sm:$0xff] }
 0x167   : > { %7576 = vmatmul.mubr.msk.bf16.gmra.mrb[60].mxu0 %vm283_vm1, %v9414_v31 }
 0x168   : > { %7728 = vmatmul.mubr.msk.bf16.gmra.mrb[60].mxu1 %vm283_vm1, %v2692_v16  ;;  %7579 = vmatprep.mubr.msk.bf16.mxu0 %vm283_vm1, %v9416_v30 }
 0x169   : > { %7731 = vmatprep.mubr.msk.bf16.mxu1 %vm283_vm1, %v2693_v14 }
 0x16f   : > { %7580 = vmatmul.mubr.msk.bf16.gmra.mrb[64].mxu0 %vm283_vm1, %v9430_v29 }
 0x170   : > { %7732 = vmatmul.mubr.msk.bf16.gmra.mrb[64].mxu1 %vm283_vm1, %v2694_v35  ;;  %7583 = vmatprep.mubr.msk.bf16.mxu0 %vm283_vm1, %v9432_v46  ;;  %v3327_v35 = vld [vmem:[%s8949_s25 + $0xea] sm:$0xff] }
 0x171   : > { %7735 = vmatprep.mubr.msk.bf16.mxu1 %vm283_vm1, %v2695_v26  ;;  %v3329_v26 = vld [vmem:[%s8949_s25 + $0xfa] sm:$0xff] }
 0x177   : > { %7584 = vmatmul.mubr.msk.bf16.gmra.mrb[68].mxu0 %vm283_vm1, %v9450_v45 }
 0x178   : > { %7736 = vmatmul.mubr.msk.bf16.gmra.mrb[68].mxu1 %vm283_vm1, %v2696_v58  ;;  %7589 = vmatprep.mubr.msk.bf16.mxu0 %vm283_vm1, %v3336_v37  ;;  %v3331_v58 = vld [vmem:[%s8949_s25 + $0x10a] sm:$0xff] }
 0x179   : > { %7741 = vmatprep.mubr.msk.bf16.mxu1 %vm283_vm1, %v9287_v42  ;;  %v3306_v42 = vld [vmem:[%s8949_s25 + $0x42] sm:$0xff] }
 0x17a   : > { %v3884_v37 = vld [vmem:[%s8949_s25 + $0x44] sm:$0xff] }
 0x17f   : > { %7590 = vmatmul.mubr.msk.bf16.vlgmr.msra.gmra.mrb[36].mxu0 %vm283_vm1, %v3337_v61 }
 0x180   : > { %7626 = vmatpush3.bf16.msra.mxu0 %v3991_v60  ;;  %7742 = vmatmul.mubr.msk.bf16.vlgmr.msra.gmra.mrb[36].mxu1 %vm283_vm1, %v9300_v52  ;;  %v3339_v52 = vpack.c.bf16 %v3307_v18, %v3306_v42  ;;  %v5481_v42 = vpack.c.bf16 %v5448_v50, %v5447_v57 }
 0x181   : > { %7778 = vmatpush3.bf16.msra.mxu1 %v5554_v63  ;;  %7593 = vmatprep.mubr.msk.bf16.mxu0 %vm283_vm1, %v3338_v13 }
 0x182   : > { %7745 = vmatprep.mubr.msk.bf16.mxu1 %vm283_vm1, %v9306_v19  ;;  %8296 = vmatprep.subr.msk.bf16.mxu0 %vm338_vm0, %v9691_v10  ;;  %v3310_v19 = vld [vmem:[%s8949_s25 + $0x62] sm:$0xff] }
 0x183   : > { %8300 = vmatprep.subr.msk.bf16.mxu1 %vm338_vm0, %v9700_v20  ;;  %v3341_v23 = vpack.c.bf16 %v3311_v22, %v3310_v19 }
 0x187   : > { %7594 = vmatmul.mubr.msk.bf16.gmra.mrb[40].mxu0 %vm283_vm1, %v3339_v52  ;;  %v4317_v52 = vsel %vm338_vm0, %v9691_v10, 0 }
 0x188   : > { %7746 = vmatmul.mubr.msk.bf16.gmra.mrb[40].mxu1 %vm283_vm1, %v9334_v56  ;;  %7597 = vmatprep.mubr.msk.bf16.mxu0 %vm283_vm1, %v3340_v11  ;;  %v3314_v56 = vld [vmem:[%s8949_s25 + $0x82] sm:$0xff]  ;;  %v3919_v11 = vpack.c.bf16 %v9801_v51, %v9798_v5 }
 0x189   : > { %7749 = vmatprep.mubr.msk.bf16.mxu1 %vm283_vm1, %v9336_v38  ;;  %v3316_v38 = vld [vmem:[%s8949_s25 + $0x92] sm:$0xff]  ;;  %v3343_v9 = vpack.c.bf16 %v3315_v0, %v3314_v56  ;;  %v3892_v51 = vld [vmem:[%s8949_s25 + $0x84] sm:$0xff] }
 0x18a   : > { %v3344_v40 = vpack.c.bf16 %v3317_v34, %v3316_v38  ;;  %v9815_v56 = vld [vmem:[%s8949_s25 + $0x55] sm:$0xff] }
 0x18f   : > { %7598 = vmatmul.mubr.msk.bf16.gmra.mrb[44].mxu0 %vm283_vm1, %v3341_v23 }
 0x190   : > { %7750 = vmatmul.mubr.msk.bf16.gmra.mrb[44].mxu1 %vm283_vm1, %v9350_v48  ;;  %7601 = vmatprep.mubr.msk.bf16.mxu0 %vm283_vm1, %v3342_v33  ;;  %v3318_v48 = vld [vmem:[%s8949_s25 + $0xa2] sm:$0xff]  ;;  %v5880_v33 = vsel %vm338_vm0, %v9700_v20, 0 }
 0x191   : > { %7753 = vmatprep.mubr.msk.bf16.mxu1 %vm283_vm1, %v9352_v4  ;;  %v3320_v4 = vld [vmem:[%s8949_s25 + $0xb2] sm:$0xff]  ;;  %v3345_v16 = vpack.c.bf16 %v3319_v43, %v3318_v48  ;;  %v3888_v48 = vld [vmem:[%s8949_s25 + $0x64] sm:$0xff] }
 0x192   : > { %v3346_v14 = vpack.c.bf16 %v3321_v27, %v3320_v4  ;;  %v3889_v43 = vld [vmem:[%s8949_s25 + $0x6c] sm:$0xff] }
 0x193   : > { %v5451_v20 = vld [vmem:[%s8949_s25 + $0x65] sm:$0xff] }
 0x197   : > { %7602 = vmatmul.mubr.msk.bf16.gmra.mrb[48].mxu0 %vm283_vm1, %v3343_v9 }
 0x198   : > { %7754 = vmatmul.mubr.msk.bf16.gmra.mrb[48].mxu1 %vm283_vm1, %v9366_v6  ;;  %7605 = vmatprep.mubr.msk.bf16.mxu0 %vm283_vm1, %v3344_v40  ;;  %v3322_v6 = vld [vmem:[%s8949_s25 + $0xc2] sm:$0xff] }
 0x199   : > { %7757 = vmatprep.mubr.msk.bf16.mxu1 %vm283_vm1, %v9368_v7  ;;  %v3324_v7 = vld [vmem:[%s8949_s25 + $0xd2] sm:$0xff]  ;;  %v3347_v47 = vpack.c.bf16 %v3323_v59, %v3322_v6  ;;  %v5450_v40 = vld [vmem:[%s8949_s25 + $0x5d] sm:$0xff] }
 0x19a   : > { %v3348_v53 = vpack.c.bf16 %v3325_v1, %v3324_v7  ;;  %v5452_v6 = vld [vmem:[%s8949_s25 + $0x6d] sm:$0xff] }
 0x19f   : > { %7606 = vmatmul.mubr.msk.bf16.gmra.mrb[52].mxu0 %vm283_vm1, %v3345_v16 }
 0x1a0   : > { %7758 = vmatmul.mubr.msk.bf16.gmra.mrb[52].mxu1 %vm283_vm1, %v9382_v62  ;;  %7609 = vmatprep.mubr.msk.bf16.mxu0 %vm283_vm1, %v3346_v14  ;;  %v3326_v62 = vld [vmem:[%s8949_s25 + $0xe2] sm:$0xff] }
 0x1a1   : > { %7761 = vmatprep.mubr.msk.bf16.mxu1 %vm283_vm1, %v9384_v17  ;;  %v3328_v17 = vld [vmem:[%s8949_s25 + $0xf2] sm:$0xff]  ;;  %v3349_v55 = vpack.c.bf16 %v3327_v35, %v3326_v62 }
 0x1a2   : > { %v3350_v36 = vpack.c.bf16 %v3329_v26, %v3328_v17 }
 0x1a7   : > { %7610 = vmatmul.mubr.msk.bf16.gmra.mrb[56].mxu0 %vm283_vm1, %v3347_v47 }
 0x1a8   : > { %7762 = vmatmul.mubr.msk.bf16.gmra.mrb[56].mxu1 %vm283_vm1, %v9398_v8  ;;  %7613 = vmatprep.mubr.msk.bf16.mxu0 %vm283_vm1, %v3348_v53  ;;  %v3330_v8 = vld [vmem:[%s8949_s25 + $0x102] sm:$0xff] }
 0x1a9   : > { %7765 = vmatprep.mubr.msk.bf16.mxu1 %vm283_vm1, %v9400_v21  ;;  %v3332_v21 = vld [vmem:[%s8949_s25 + $0x112] sm:$0xff]  ;;  %v3351_v39 = vpack.c.bf16 %v3331_v58, %v3330_v8 }
 0x1aa   : > { %v3352_v49 = vpack.c.bf16 %v3333_v3, %v3332_v21  ;;  %v5483_v3 = vpack.c.bf16 %v5452_v6, %v5451_v20  ;;  %v9878_v20 = vld [vmem:[%s8949_s25 + $0xac] sm:$0xff] }
 0x1af   : > { %7614 = vmatmul.mubr.msk.bf16.gmra.mrb[60].mxu0 %vm283_vm1, %v3349_v55  ;;  %v3920_v55 = vpack.c.bf16 %v3889_v43, %v3888_v48 }
 0x1b0   : > { %7766 = vmatmul.mubr.msk.bf16.gmra.mrb[60].mxu1 %vm283_vm1, %v9414_v31  ;;  %7617 = vmatprep.mubr.msk.bf16.mxu0 %vm283_vm1, %v3350_v36  ;;  %v5443_v31 = vld [vmem:[%s8949_s25 + $0x25] sm:$0xff] }
 0x1b1   : > { %7769 = vmatprep.mubr.msk.bf16.mxu1 %vm283_vm1, %v9416_v30  ;;  %v5444_v30 = vld [vmem:[%s8949_s25 + $0x2d] sm:$0xff] }
 0x1b2   : > { %v5479_v41 = vpack.c.bf16 %v5444_v30, %v5443_v31 }
 0x1b7   : > { %7618 = vmatmul.mubr.msk.bf16.gmra.mrb[64].mxu0 %vm283_vm1, %v3351_v39 }
 0x1b8   : > { %7770 = vmatmul.mubr.msk.bf16.gmra.mrb[64].mxu1 %vm283_vm1, %v9430_v29  ;;  %7621 = vmatprep.mubr.msk.bf16.mxu0 %vm283_vm1, %v3352_v49  ;;  %v5446_v29 = vld [vmem:[%s8949_s25 + $0x3d] sm:$0xff] }
 0x1b9   : > { %7773 = vmatprep.mubr.msk.bf16.mxu1 %vm283_vm1, %v9432_v46  ;;  %v3885_v46 = vld [vmem:[%s8949_s25 + $0x4c] sm:$0xff]  ;;  %v5480_v63 = vpack.c.bf16 %v5446_v29, %v5445_v54 }
 0x1bf   : > { %7622 = vmatmul.mubr.msk.bf16.gmra.mrb[68].mxu0 %vm283_vm1, %v9448_v2 }
 0x1c0   : > { %7774 = vmatmul.mubr.msk.bf16.gmra.mrb[68].mxu1 %vm283_vm1, %v9450_v45  ;;  %7627 = vmatprep.mubr.msk.bf16.mxu0 %vm283_vm1, %v9466_v24  ;;  %v3918_v45 = vpack.c.bf16 %v3885_v46, %v3884_v37 }
 0x1c1   : > { %7779 = vmatprep.mubr.msk.bf16.mxu1 %vm283_vm1, %v5479_v41 }
 0x1c2   : > { %v7363_v61 = vpop.f32.mrb[0].mxu0 }
 0x1c3   : > { %v1414_v2 = vadd.f32 %v7363_v61, %v9782_v25  ;;  %v7515_v60 = vpop.f32.mrb[0].mxu1  ;;  %v1226_v13 = vpop.f32.mrb[1].mxu0 }
 0x1c4   : > { %v2978_v24 = vadd.f32 %v7515_v60, %v9782_v25  ;;  %v1412_v18 = vadd.f32 %v9782_v25, %v1226_v13  ;;  %v2790_v12 = vpop.f32.mrb[1].mxu1  ;;  %v7364_v28 = vpop.f32.mrb[2].mxu0 }
 0x1c5   : > { %v1450_v19 = vmax.f32 %v1414_v2, 0.0  ;;  %v2976_v22 = vadd.f32 %v9782_v25, %v2790_v12  ;;  %v1415_v44 = vadd.f32 %v7364_v28, %v9782_v25  ;;  %v7516_v32 = vpop.f32.mrb[2].mxu1  ;;  %v1229_v23 = vpop.f32.mrb[3].mxu0  ;;  %v5453_v12 = vld [vmem:[%s8949_s25 + $0x75] sm:$0xff]  ;;  %v5454_v28 = vld [vmem:[%s8949_s25 + $0x7d] sm:$0xff] }
 0x1c6   : > { %v3014_v0 = vmax.f32 %v2978_v24, 0.0  ;;  %v1448_v10 = vmax.f32 %v1412_v18, 0.0  ;;  %v2979_v38 = vadd.f32 %v7516_v32, %v9782_v25  ;;  %v1413_v34 = vadd.f32 %v9782_v25, %v1229_v23  ;;  %v2793_v9 = vpop.f32.mrb[3].mxu1  ;;  %v9856_v32 = vld [vmem:[%s8949_s25 + $0x94] sm:$0xff] }
 0x1c7   : > { %v6566_v4 = vmul.f32 -1.442695, %v1450_v19  ;;  %v3012_v27 = vmax.f32 %v2976_v22, 0.0  ;;  %v1451_v16 = vmax.f32 %v1415_v44, 0.0  ;;  %v2977_v14 = vadd.f32 %v9782_v25, %v2793_v9  ;;  %7628 = vmatmul.mubr.msk.bf16.vlgmr.msra.gmra.mrb[36].mxu0 %vm283_vm1, %v9472_v15  ;;  %v5455_v22 = vld [vmem:[%s8949_s25 + $0x85] sm:$0xff]  ;;  %v5456_v44 = vld [vmem:[%s8949_s25 + $0x8d] sm:$0xff] }
 0x1c8   : > { %v6679_v59 = vmul.f32 -1.442695, %v3014_v0  ;;  %v6564_v7 = vmul.f32 -1.442695, %v1448_v10  ;;  %v3015_v1 = vmax.f32 %v2979_v38, 0.0  ;;  %v1449_v47 = vmax.f32 %v1413_v34, 0.0  ;;  %7664 = vmatpush3.bf16.msra.mxu0 %v4317_v52  ;;  %7780 = vmatmul.mubr.msk.bf16.vlgmr.msra.gmra.mrb[36].mxu1 %vm283_vm1, %v5480_v63 }
 0x1c9   : > { %8311 = vpow2.f32 %v6566_v4  ;;  %v6677_v53 = vmul.f32 -1.442695, %v3012_v27  ;;  %v6567_v62 = vmul.f32 -1.442695, %v1451_v16  ;;  %v3013_v35 = vmax.f32 %v2977_v14, 0.0  ;;  %7816 = vmatpush3.bf16.msra.mxu1 %v5880_v33  ;;  %7631 = vmatprep.mubr.msk.bf16.mxu0 %vm283_vm1, %v3918_v45  ;;  %v3890_v45 = vld [vmem:[%s8949_s25 + $0x74] sm:$0xff] }
 0x1ca   : > { %8313 = vpow2.f32 %v6679_v59  ;;  %v6680_v17 = vmul.f32 -1.442695, %v3015_v1  ;;  %v7367_v26 = vpop.f32.mrb[4].mxu0  ;;  %7783 = vmatprep.mubr.msk.bf16.mxu1 %vm283_vm1, %v5481_v42  ;;  %v5482_v15 = vpack.c.bf16 %v5450_v40, %v9815_v56  ;;  %v6565_v36 = vmul.f32 -1.442695, %v1449_v47  ;;  %v3891_v42 = vld [vmem:[%s8949_s25 + $0x7c] sm:$0xff] }
 0x1cb   : > { %8315 = vpow2.f32 %v6564_v7  ;;  %v1418_v8 = vadd.f32 %v7367_v26, %v9782_v25  ;;  %v7519_v58 = vpop.f32.mrb[4].mxu1  ;;  %v1242_v21 = vpop.f32.mrb[5].mxu0  ;;  %v6678_v39 = vmul.f32 -1.442695, %v3013_v35  ;;  %v3921_v10 = vpack.c.bf16 %v3891_v42, %v3890_v45  ;;  %v9866_v38 = vld [vmem:[%s8949_s25 + $0x9c] sm:$0xff]  ;;  %v9875_v14 = vld [vmem:[%s8949_s25 + $0xa4] sm:$0xff] }
 0x1cc   : > { %8317 = vpow2.f32 %v6677_v53  ;;  %v2982_v49 = vadd.f32 %v7519_v58, %v9782_v25  ;;  %v1416_v31 = vadd.f32 %v9782_v25, %v1242_v21  ;;  %v2806_v30 = vpop.f32.mrb[5].mxu1  ;;  %v7368_v41 = vpop.f32.mrb[6].mxu0  ;;  %v5457_v34 = vld [vmem:[%s8949_s25 + $0x95] sm:$0xff]  ;;  %v5458_v9 = vld [vmem:[%s8949_s25 + $0x9d] sm:$0xff]  ;;  %v5484_v27 = vpack.c.bf16 %v5454_v28, %v5453_v12  ;;  %v5460_v35 = vld [vmem:[%s8949_s25 + $0xad] sm:$0xff] }
 0x1cd   : > { %8319 = vpow2.f32 %v6567_v62  ;;  %v1454_v54 = vmax.f32 %v1418_v8, 0.0  ;;  %v2980_v29 = vadd.f32 %v9782_v25, %v2806_v30  ;;  %v1419_v37 = vadd.f32 %v7368_v41, %v9782_v25  ;;  %v7520_v46 = vpop.f32.mrb[6].mxu1  ;;  %v1245_v57 = vpop.f32.mrb[7].mxu0  ;;  %v5459_v62 = vld [vmem:[%s8949_s25 + $0xa5] sm:$0xff]  ;;  %v9896_v8 = vld [vmem:[%s8949_s25 + $0xb4] sm:$0xff]  ;;  %v9899_v58 = vld [vmem:[%s8949_s25 + $0xbc] sm:$0xff] }
 0x1ce   : > { %8321 = vpow2.f32 %v6680_v17  ;;  %v3018_v50 = vmax.f32 %v2982_v49, 0.0  ;;  %v1452_v61 = vmax.f32 %v1416_v31, 0.0  ;;  %v9836_v2 = vpop.f32.mrb[7].mxu1  ;;  %v9859_v33 = vadd.f32 %v7520_v46, %v9782_v25  ;;  %v5461_v31 = vld [vmem:[%s8949_s25 + $0xb5] sm:$0xff]  ;;  %v5462_v30 = vld [vmem:[%s8949_s25 + $0xbd] sm:$0xff] }
 0x1cf   : > { %8323 = vpow2.f32 %v6565_v36  ;;  %v6570_v60 = vmul.f32 -1.442695, %v1454_v54  ;;  %v3016_v13 = vmax.f32 %v2980_v29, 0.0  ;;  %v1455_v63 = vmax.f32 %v1419_v37, 0.0  ;;  %7632 = vmatmul.mubr.msk.bf16.gmra.mrb[40].mxu0 %vm283_vm1, %v3919_v11  ;;  %v3893_v11 = vld [vmem:[%s8949_s25 + $0x8c] sm:$0xff] }
 0x1d0   : > { %8325 = vpow2.f32 %v6678_v39  ;;  %v6683_v24 = vmul.f32 -1.442695, %v3018_v50  ;;  %v6568_v18 = vmul.f32 -1.442695, %v1452_v61  ;;  %7784 = vmatmul.mubr.msk.bf16.gmra.mrb[40].mxu1 %vm283_vm1, %v5482_v15  ;;  %7635 = vmatprep.mubr.msk.bf16.mxu0 %vm283_vm1, %v3920_v55  ;;  %v3922_v16 = vpack.c.bf16 %v3893_v11, %v3892_v51 }
 0x1d1   : > { %8327 = vpow2.f32 %v6570_v60  ;;  %v6681_v52 = vmul.f32 -1.442695, %v3016_v13  ;;  %v6571_v5 = vmul.f32 -1.442695, %v1455_v63  ;;  %7787 = vmatprep.mubr.msk.bf16.mxu1 %vm283_vm1, %v5483_v3  ;;  %v1417_v7 = vadd.f32 %v9782_v25, %v1245_v57 }
 0x1d2   : > { %8329 = vpow2.f32 %v6683_v24  ;;  %v9851_v19 = vpop.f32.mrb[8].mxu0  ;;  %v9885_v53 = vpack.c.bf16 %v5456_v44, %v5455_v22  ;;  %v3923_v55 = vpack.c.bf16 %v9866_v38, %v9856_v32  ;;  %v9893_v36 = vpack.c.bf16 %v5458_v9, %v5457_v34 }
 0x1d3   : > { %v8312_v23 = vpop.eup %8311  ;;  %8331 = vpow2.f32 %v6568_v18  ;;  %v9861_v56 = vpop.f32.mrb[8].mxu1  ;;  %v3019_v39 = vmax.f32 %v9859_v33, 0.0  ;;  %v3924_v49 = vpack.c.bf16 %v9878_v20, %v9875_v14  ;;  %v2981_v29 = vadd.f32 %v9782_v25, %v9836_v2 }
 0x1d4   : > { %v9863_v0 = vpop.f32.mrb[9].mxu0  ;;  %v8314_v40 = vpop.eup %8313  ;;  %v1594_v48 = vadd.f32 1.0, %v8312_v23  ;;  %8333 = vpow2.f32 %v6681_v52  ;;  %v9911_v37 = vpack.c.bf16 %v5460_v35, %v5459_v62  ;;  %v1453_v50 = vmax.f32 %v1417_v7, 0.0 }
 0x1d5   : > { %v9870_v43 = vpop.f32.mrb[9].mxu1  ;;  %v9872_v4 = vpop.f32.mrb[10].mxu0  ;;  %v3158_v59 = vadd.f32 1.0, %v8314_v40  ;;  %8335 = vpow2.f32 %v6571_v5  ;;  %v3925_v61 = vpack.c.bf16 %v9899_v58, %v9896_v8  ;;  %v1422_v13 = vadd.f32 %v9851_v19, %v9782_v25  ;;  %v5465_v8 = vld [vmem:[%s8949_s25 + $0xd5] sm:$0xff] }
 0x1d6   : > { %v8316_v6 = vpop.eup %8315  ;;  %v9881_v1 = vpop.f32.mrb[10].mxu1  ;;  %8337 = vrcp.f32 %v1594_v48  ;;  %v9920_v45 = vpack.c.bf16 %v5462_v30, %v5461_v31  ;;  %v6684_v18 = vmul.f32 -1.442695, %v3019_v39  ;;  %v2986_v12 = vadd.f32 %v9861_v56, %v9782_v25  ;;  %v5464_v31 = vld [vmem:[%s8949_s25 + $0xcd] sm:$0xff] }
 0x1d7   : > { %v9883_v47 = vpop.f32.mrb[11].mxu0  ;;  %v8318_v17 = vpop.eup %8317  ;;  %v1592_v26 = vadd.f32 1.0, %v8316_v6  ;;  %8339 = vrcp.f32 %v3158_v59  ;;  %7636 = vmatmul.mubr.msk.bf16.gmra.mrb[44].mxu0 %vm283_vm1, %v3921_v10  ;;  %v3017_v11 = vmax.f32 %v2981_v29, 0.0  ;;  %v1420_v19 = vadd.f32 %v9782_v25, %v9863_v0 }
 0x1d8   : > { %v9889_v15 = vpop.f32.mrb[11].mxu1  ;;  %v8320_v21 = vpop.eup %8319  ;;  %v3156_v3 = vadd.f32 1.0, %v8318_v17  ;;  %7788 = vmatmul.mubr.msk.bf16.gmra.mrb[44].mxu1 %vm283_vm1, %v5484_v27  ;;  %7639 = vmatprep.mubr.msk.bf16.mxu0 %vm283_vm1, %v3922_v16  ;;  %v6569_v10 = vmul.f32 -1.442695, %v1453_v50  ;;  %v2984_v56 = vadd.f32 %v9782_v25, %v9870_v43  ;;  %v1458_v48 = vmax.f32 %v1422_v13, 0.0 }
 0x1d9   : > { %v8322_v41 = vpop.eup %8321  ;;  %8341 = vrcp.f32 %v1592_v26  ;;  %v1595_v54 = vadd.f32 1.0, %v8320_v21  ;;  %7791 = vmatprep.mubr.msk.bf16.mxu1 %vm283_vm1, %v9885_v53  ;;  %v1423_v27 = vadd.f32 %v9872_v4, %v9782_v25  ;;  %v3022_v59 = vmax.f32 %v2986_v12, 0.0  ;;  %v3900_v26 = vld [vmem:[%s8949_s25 + $0xc4] sm:$0xff] }
 0x1da   : > { %v8324_v46 = vpop.eup %8323  ;;  %8343 = vrcp.f32 %v3156_v3  ;;  %v3159_v57 = vadd.f32 1.0, %v8322_v41  ;;  %v7375_v63 = vpop.f32.mrb[12].mxu0  ;;  %v2987_v7 = vadd.f32 %v9881_v1, %v9782_v25  ;;  %v1456_v35 = vmax.f32 %v1420_v19, 0.0 }
 0x1db   : > { %v8326_v60 = vpop.eup %8325  ;;  %8345 = vrcp.f32 %v1595_v54  ;;  %v1593_v2 = vadd.f32 1.0, %v8324_v46  ;;  %v7527_v28 = vpop.f32.mrb[12].mxu1  ;;  %v1421_v17 = vadd.f32 %v9782_v25, %v9883_v47  ;;  %v6682_v38 = vmul.f32 -1.442695, %v3017_v11 }
 0x1dc   : > { %v8328_v42 = vpop.eup %8327  ;;  %8347 = vrcp.f32 %v3159_v57  ;;  %v3157_v24 = vadd.f32 1.0, %v8326_v60  ;;  %v9924_v52 = vpop.f32.mrb[13].mxu0  ;;  %v3020_v1 = vmax.f32 %v2984_v56, 0.0  ;;  %v2985_v47 = vadd.f32 %v9782_v25, %v9889_v15 }
 0x1dd   : > { %v8330_v5 = vpop.eup %8329  ;;  %8349 = vrcp.f32 %v1593_v2  ;;  %v1598_v51 = vadd.f32 1.0, %v8328_v42  ;;  %v9928_v22 = vpop.f32.mrb[13].mxu1  ;;  %v6574_v20 = vmul.f32 -1.442695, %v1458_v48  ;;  %v1459_v21 = vmax.f32 %v1423_v27, 0.0  ;;  %v3902_v48 = vld [vmem:[%s8949_s25 + $0xd4] sm:$0xff] }
 0x1de   : > { %v9930_v44 = vpop.f32.mrb[14].mxu0  ;;  %v8332_v23 = vpop.eup %8331  ;;  %8351 = vrcp.f32 %v3157_v24  ;;  %v3162_v33 = vadd.f32 1.0, %v8330_v5  ;;  %v1426_v3 = vadd.f32 %v7375_v63, %v9782_v25  ;;  %v6687_v15 = vmul.f32 -1.442695, %v3022_v59  ;;  %v3903_v27 = vld [vmem:[%s8949_s25 + $0xdc] sm:$0xff]  ;;  %v3905_v59 = vld [vmem:[%s8949_s25 + $0xec] sm:$0xff] }
 0x1df   : > { %v9934_v34 = vpop.f32.mrb[14].mxu1  ;;  %v9936_v9 = vpop.f32.mrb[15].mxu0  ;;  %8353 = vrcp.f32 %v1598_v51  ;;  %v1596_v0 = vadd.f32 1.0, %v8332_v23  ;;  %7640 = vmatmul.mubr.msk.bf16.gmra.mrb[48].mxu0 %vm283_vm1, %v3923_v55  ;;  %v3901_v55 = vld [vmem:[%s8949_s25 + $0xcc] sm:$0xff]  ;;  %v3023_v41 = vmax.f32 %v2987_v7, 0.0  ;;  %v2990_v54 = vadd.f32 %v7527_v28, %v9782_v25 }
 0x1e0   : > { %v8334_v40 = vpop.eup %8333  ;;  %v9945_v16 = vpop.f32.mrb[15].mxu1  ;;  %8355 = vrcp.f32 %v3162_v33  ;;  %7792 = vmatmul.mubr.msk.bf16.gmra.mrb[48].mxu1 %vm283_vm1, %v9893_v36  ;;  %7643 = vmatprep.mubr.msk.bf16.mxu0 %vm283_vm1, %v3924_v49  ;;  %v5463_v49 = vld [vmem:[%s8949_s25 + $0xc5] sm:$0xff]  ;;  %v6572_v50 = vmul.f32 -1.442695, %v1456_v35  ;;  %v1457_v60 = vmax.f32 %v1421_v17, 0.0  ;;  %v3926_v63 = vpack.c.bf16 %v3901_v55, %v3900_v26  ;;  %v5468_v17 = vld [vmem:[%s8949_s25 + $0xed] sm:$0xff] }
 0x1e1   : > { %v8336_v43 = vpop.eup %8335  ;;  %v3160_v6 = vadd.f32 1.0, %v8334_v40  ;;  %8357 = vrcp.f32 %v1596_v0  ;;  %7795 = vmatprep.mubr.msk.bf16.mxu1 %vm283_vm1, %v9911_v37  ;;  %v6685_v24 = vmul.f32 -1.442695, %v3020_v1  ;;  %v9995_v5 = vpack.c.bf16 %v5464_v31, %v5463_v49  ;;  %v5467_v35 = vld [vmem:[%s8949_s25 + $0xe5] sm:$0xff]  ;;  %v10035_v55 = vld [vmem:[%s8949_s25 + $0xf4] sm:$0xff] }
 0x1e2   : > { %v8338_v62 = vpop.eup %8337  ;;  %v1599_v4 = vadd.f32 1.0, %v8336_v43  ;;  %v9972_v39 = vpop.f32.mrb[16].mxu0  ;;  %v6575_v11 = vmul.f32 -1.442695, %v1459_v21  ;;  %v1462_v19 = vmax.f32 %v1426_v3, 0.0  ;;  %v3026_v56 = vmax.f32 %v2990_v54, 0.0 }
 0x1e3   : > { %v8340_v32 = vpop.eup %8339  ;;  %1703 = vst.msk [vmem:[%s9941_s30 + $0x10] sm:$0xff] %vm1700_vm2, %v8338_v62  ;;  %8359 = vrcp.f32 %v3160_v6  ;;  %v9979_v29 = vpop.f32.mrb[16].mxu1  ;;  %v6573_v0 = vmul.f32 -1.442695, %v1457_v60  ;;  %v5466_v43 = vld [vmem:[%s8949_s25 + $0xdd] sm:$0xff]  ;;  %v3927_v26 = vpack.c.bf16 %v3903_v27, %v3902_v48  ;;  %v5473_v27 = vld [vmem:[%s8949_s25 + $0x115] sm:$0xff] }
 0x1e4   : > { %v8342_v14 = vpop.eup %8341  ;;  %3266 = vst.msk [vmem:[%s9941_s30 + $0x130] sm:$0xff] %vm1700_vm2, %v8340_v32  ;;  %8361 = vrcp.f32 %v1599_v4  ;;  %v9981_v46 = vpop.f32.mrb[17].mxu0  ;;  %v3904_v6 = vld [vmem:[%s8949_s25 + $0xe4] sm:$0xff]  ;;  %v6578_v62 = vmul.f32 -1.442695, %v1462_v19  ;;  %v10046_v49 = vpack.c.bf16 %v5466_v43, %v5465_v8 }
 0x1e5   : > { %v8344_v30 = vpop.eup %8343  ;;  %1701 = vst.msk [vmem:[%s9941_s30] sm:$0xff] %vm1700_vm2, %v8342_v14  ;;  %8363 = vpow2.f32 %v6684_v18  ;;  %v9985_v2 = vpop.f32.mrb[17].mxu1  ;;  %v3021_v18 = vmax.f32 %v2985_v47, 0.0  ;;  %v10038_v14 = vld [vmem:[%s8949_s25 + $0xfc] sm:$0xff]  ;;  %v3928_v31 = vpack.c.bf16 %v3905_v59, %v3904_v6  ;;  %v10093_v6 = vld [vmem:[%s8949_s25 + $0x124] sm:$0xff]  ;;  %v10096_v59 = vld [vmem:[%s8949_s25 + $0x12c] sm:$0xff] }
 0x1e6   : > { %v8346_v57 = vpop.eup %8345  ;;  %3264 = vst.msk [vmem:[%s9941_s30 + $0x120] sm:$0xff] %vm1700_vm2, %v8344_v30  ;;  %8365 = vpow2.f32 %v6569_v10  ;;  %v9987_v13 = vpop.f32.mrb[18].mxu0  ;;  %v6688_v10 = vmul.f32 -1.442695, %v3023_v41  ;;  %v5469_v30 = vld [vmem:[%s8949_s25 + $0xf5] sm:$0xff]  ;;  %v10051_v41 = vld [vmem:[%s8949_s25 + $0x104] sm:$0xff] }
 0x1e7   : > { %v8348_v42 = vpop.eup %8347  ;;  %1704 = vst.msk [vmem:[%s9941_s30 + $0x18] sm:$0xff] %vm1700_vm2, %v8346_v57  ;;  %8367 = vpow2.f32 %v6682_v38  ;;  %v9991_v12 = vpop.f32.mrb[18].mxu1  ;;  %7644 = vmatmul.mubr.msk.bf16.gmra.mrb[52].mxu0 %vm283_vm1, %v3925_v61  ;;  %v6686_v61 = vmul.f32 -1.442695, %v3021_v18  ;;  %v6691_v38 = vmul.f32 -1.442695, %v3026_v56  ;;  %v1424_v57 = vadd.f32 %v9782_v25, %v9924_v52 }
 0x1e8   : > { %v9993_v28 = vpop.f32.mrb[19].mxu0  ;;  %v8350_v51 = vpop.eup %8349  ;;  %3267 = vst.msk [vmem:[%s9941_s30 + $0x138] sm:$0xff] %vm1700_vm2, %v8348_v42  ;;  %8369 = vpow2.f32 %v6574_v20  ;;  %7796 = vmatmul.mubr.msk.bf16.gmra.mrb[52].mxu1 %vm283_vm1, %v9920_v45  ;;  %7647 = vmatprep.mubr.msk.bf16.mxu0 %vm283_vm1, %v3926_v63  ;;  %v10061_v63 = vpack.c.bf16 %v5468_v17, %v5467_v35  ;;  %v10064_v42 = vld [vmem:[%s8949_s25 + $0x10c] sm:$0xff]  ;;  %v3929_v52 = vpack.c.bf16 %v10038_v14, %v10035_v55  ;;  %v5474_v8 = vld [vmem:[%s8949_s25 + $0x11d] sm:$0xff] }
 0x1e9   : > { %v9999_v23 = vpop.f32.mrb[19].mxu1  ;;  %v8352_v33 = vpop.eup %8351  ;;  %1702 = vst.msk [vmem:[%s9941_s30 + $0x8] sm:$0xff] %vm1700_vm2, %v8350_v51  ;;  %8371 = vpow2.f32 %v6687_v15  ;;  %7799 = vmatprep.mubr.msk.bf16.mxu1 %vm283_vm1, %v9995_v5  ;;  %v5470_v15 = vld [vmem:[%s8949_s25 + $0xfd] sm:$0xff]  ;;  %v5472_v18 = vld [vmem:[%s8949_s25 + $0x10d] sm:$0xff]  ;;  %v3930_v43 = vpack.c.bf16 %v10064_v42, %v10051_v41  ;;  %v1460_v35 = vmax.f32 %v1424_v57, 0.0  ;;  %v1428_v55 = vadd.f32 %v9782_v25, %v9981_v46 }
 0x1ea   : > { %v8354_v40 = vpop.eup %8353  ;;  %3265 = vst.msk [vmem:[%s9941_s30 + $0x128] sm:$0xff] %vm1700_vm2, %v8352_v33  ;;  %8373 = vpow2.f32 %v6572_v50  ;;  %v10024_v4 = vpop.f32.mrb[20].mxu0  ;;  %v10073_v33 = vld [vmem:[%s8949_s25 + $0x114] sm:$0xff]  ;;  %v10081_v48 = vpack.c.bf16 %v5470_v15, %v5469_v30  ;;  %v10108_v15 = vpack.c.bf16 %v5474_v8, %v5473_v27 }
 0x1eb   : > { %v8356_v58 = vpop.eup %8355  ;;  %1707 = vst.msk [vmem:[%s9941_s30 + $0x30] sm:$0xff] %vm1700_vm2, %v8354_v40  ;;  %8375 = vpow2.f32 %v6685_v24  ;;  %v10030_v1 = vpop.f32.mrb[20].mxu1  ;;  %v5471_v24 = vld [vmem:[%s8949_s25 + $0x105] sm:$0xff] }
 0x1ec   : > { %v8358_v7 = vpop.eup %8357  ;;  %3270 = vst.msk [vmem:[%s9941_s30 + $0x150] sm:$0xff] %vm1700_vm2, %v8356_v58  ;;  %8377 = vpow2.f32 %v6575_v11  ;;  %v10032_v47 = vpop.f32.mrb[21].mxu0  ;;  %10872 = vst [vmem:[#allocation2_spill] sm:$0xff] %v10108_v15 }
 0x1ed   : > { %v8360_v32 = vpop.eup %8359  ;;  %1705 = vst.msk [vmem:[%s9941_s30 + $0x20] sm:$0xff] %vm1700_vm2, %v8358_v7  ;;  %8379 = vpow2.f32 %v6688_v10  ;;  %v10042_v21 = vpop.f32.mrb[21].mxu1  ;;  %v10076_v10 = vld [vmem:[%s8949_s25 + $0x11c] sm:$0xff] }
 0x1ee   : > { %v8362_v20 = vpop.eup %8361  ;;  %3268 = vst.msk [vmem:[%s9941_s30 + $0x140] sm:$0xff] %vm1700_vm2, %v8360_v32  ;;  %8381 = vpow2.f32 %v6573_v0  ;;  %v10044_v3 = vpop.f32.mrb[22].mxu0  ;;  %v2988_v0 = vadd.f32 %v9782_v25, %v9928_v22  ;;  %v10090_v22 = vpack.c.bf16 %v5472_v18, %v5471_v24  ;;  %v3931_v17 = vpack.c.bf16 %v10076_v10, %v10073_v33  ;;  %v5475_v32 = vld [vmem:[%s8949_s25 + $0x125] sm:$0xff]  ;;  %v3914_v33 = vld [vmem:[%s8949_s25 + $0x134] sm:$0xff]  ;;  %v3915_v10 = vld [vmem:[%s8949_s25 + $0x13c] sm:$0xff] }
 0x1ef   : > { %v8364_v54 = vpop.eup %8363  ;;  %1708 = vst.msk [vmem:[%s9941_s30 + $0x38] sm:$0xff] %vm1700_vm2, %v8362_v20  ;;  %8383 = vpow2.f32 %v6686_v61  ;;  %v10057_v50 = vpop.f32.mrb[22].mxu1  ;;  %7648 = vmatmul.mubr.msk.bf16.gmra.mrb[56].mxu0 %vm283_vm1, %v3927_v26  ;;  %v3932_v18 = vpack.c.bf16 %v10096_v59, %v10093_v6 }
 0x1f0   : > { %v10059_v60 = vpop.f32.mrb[23].mxu0  ;;  %v8366_v51 = vpop.eup %8365  ;;  %v3163_v11 = vadd.f32 1.0, %v8364_v54  ;;  %8385 = vpow2.f32 %v6578_v62  ;;  %7800 = vmatmul.mubr.msk.bf16.gmra.mrb[56].mxu1 %vm283_vm1, %v10046_v49  ;;  %7651 = vmatprep.mubr.msk.bf16.mxu0 %vm283_vm1, %v3928_v31  ;;  %v1427_v31 = vadd.f32 %v9930_v44, %v9782_v25  ;;  %v3024_v57 = vmax.f32 %v2988_v0, 0.0 }
 0x1f1   : > { %v10068_v19 = vpop.f32.mrb[23].mxu1  ;;  %v8368_v56 = vpop.eup %8367  ;;  %v1597_v40 = vadd.f32 1.0, %v8366_v51  ;;  %8387 = vpow2.f32 %v6691_v38  ;;  %7803 = vmatprep.mubr.msk.bf16.mxu1 %vm283_vm1, %v10061_v63  ;;  %v5476_v38 = vld [vmem:[%s8949_s25 + $0x12d] sm:$0xff]  ;;  %v2991_v44 = vadd.f32 %v9934_v34, %v9782_v25 }
 0x1f2   : > { %v8370_v58 = vpop.eup %8369  ;;  %8389 = vrcp.f32 %v3163_v11  ;;  %v3161_v61 = vadd.f32 1.0, %v8368_v56  ;;  %v10106_v30 = vpop.f32.mrb[24].mxu0  ;;  %v10122_v27 = vpack.c.bf16 %v5476_v38, %v5475_v32 }
 0x1f3   : > { %v8372_v7 = vpop.eup %8371  ;;  %8391 = vrcp.f32 %v1597_v40  ;;  %v1602_v62 = vadd.f32 1.0, %v8370_v58  ;;  %v10110_v42 = vpop.f32.mrb[24].mxu1  ;;  %v6576_v58 = vmul.f32 -1.442695, %v1460_v35  ;;  %v6689_v35 = vmul.f32 -1.442695, %v3024_v57 }
 0x1f4   : > { %v8374_v26 = vpop.eup %8373  ;;  %8393 = vrcp.f32 %v3161_v61  ;;  %v3166_v20 = vadd.f32 1.0, %v8372_v7  ;;  %v10112_v24 = vpop.f32.mrb[25].mxu0  ;;  %10873 = vst [vmem:[#allocation3_spill] sm:$0xff] %v10122_v27  ;;  %v1425_v61 = vadd.f32 %v9782_v25, %v9936_v9  ;;  %v1430_v9 = vadd.f32 %v9972_v39, %v9782_v25 }
 0x1f5   : > { %v8376_v41 = vpop.eup %8375  ;;  %8395 = vrcp.f32 %v1602_v62  ;;  %v1600_v54 = vadd.f32 1.0, %v8374_v26  ;;  %v10118_v56 = vpop.f32.mrb[25].mxu1 }
 0x1f6   : > { %v8378_v51 = vpop.eup %8377  ;;  %8397 = vrcp.f32 %v3166_v20  ;;  %v3164_v11 = vadd.f32 1.0, %v8376_v41  ;;  %v10120_v40 = vpop.f32.mrb[26].mxu0  ;;  %v1463_v20 = vmax.f32 %v1427_v31, 0.0  ;;  %v2989_v41 = vadd.f32 %v9782_v25, %v9945_v16 }
 0x1f7   : > { %v8380_v0 = vpop.eup %8379  ;;  %8399 = vrcp.f32 %v1600_v54  ;;  %v1603_v8 = vadd.f32 1.0, %v8378_v51  ;;  %v10126_v7 = vpop.f32.mrb[26].mxu1  ;;  %7652 = vmatmul.mubr.msk.bf16.gmra.mrb[60].mxu0 %vm283_vm1, %v3929_v52  ;;  %v2994_v16 = vadd.f32 %v9979_v29, %v9782_v25  ;;  %v1466_v46 = vmax.f32 %v1430_v9, 0.0 }
 0x1f8   : > { %v10128_v62 = vpop.f32.mrb[27].mxu0  ;;  %v8382_v26 = vpop.eup %8381  ;;  %8401 = vrcp.f32 %v3164_v11  ;;  %v3167_v34 = vadd.f32 1.0, %v8380_v0  ;;  %v3027_v11 = vmax.f32 %v2991_v44, 0.0  ;;  %7804 = vmatmul.mubr.msk.bf16.gmra.mrb[60].mxu1 %vm283_vm1, %v10081_v48  ;;  %7655 = vmatprep.mubr.msk.bf16.mxu0 %vm283_vm1, %v3930_v43  ;;  %v1461_v0 = vmax.f32 %v1425_v61, 0.0 }
 0x1f9   : > { %v10132_v32 = vpop.f32.mrb[27].mxu1  ;;  %v8384_v38 = vpop.eup %8383  ;;  %8403 = vrcp.f32 %v1603_v8  ;;  %v1601_v54 = vadd.f32 1.0, %v8382_v26  ;;  %7807 = vmatprep.mubr.msk.bf16.mxu1 %vm283_vm1, %v10090_v22  ;;  %v3025_v52 = vmax.f32 %v2989_v41, 0.0  ;;  %v2992_v44 = vadd.f32 %v9782_v25, %v9985_v2 }
 0x1fa   : > { %v8386_v51 = vpop.eup %8385  ;;  %8405 = vrcp.f32 %v3167_v34  ;;  %v3165_v31 = vadd.f32 1.0, %v8384_v38  ;;  %v10151_v8 = vpop.f32.mrb[28].mxu0  ;;  %v6579_v61 = vmul.f32 -1.442695, %v1463_v20  ;;  %v1431_v26 = vadd.f32 %v9987_v13, %v9782_v25 }
 0x1fb   : > { %v8388_v57 = vpop.eup %8387  ;;  %8407 = vrcp.f32 %v1601_v54  ;;  %v1606_v39 = vadd.f32 1.0, %v8386_v51  ;;  %v10157_v34 = vpop.f32.mrb[28].mxu1  ;;  %v6692_v2 = vmul.f32 -1.442695, %v3027_v11  ;;  %v3030_v54 = vmax.f32 %v2994_v16, 0.0 }
 0x1fc   : > { %v8390_v14 = vpop.eup %8389  ;;  %8409 = vrcp.f32 %v3165_v31  ;;  %v3170_v29 = vadd.f32 1.0, %v8388_v57  ;;  %v10159_v38 = vpop.f32.mrb[29].mxu0  ;;  %v2995_v51 = vadd.f32 %v9991_v12, %v9782_v25  ;;  %v6577_v9 = vmul.f32 -1.442695, %v1461_v0 }
 0x1fd   : > { %v8392_v43 = vpop.eup %8391  ;;  %3271 = vst.msk [vmem:[%s9941_s30 + $0x158] sm:$0xff] %vm1700_vm2, %v8390_v14  ;;  %8411 = vrcp.f32 %v1606_v39  ;;  %v10165_v31 = vpop.f32.mrb[29].mxu1  ;;  %v1464_v57 = vmax.f32 %v1428_v55, 0.0  ;;  %v1429_v39 = vadd.f32 %v9782_v25, %v9993_v28  ;;  %v6690_v14 = vmul.f32 -1.442695, %v3025_v52 }
 0x1fe   : > { %v8394_v41 = vpop.eup %8393  ;;  %1706 = vst.msk [vmem:[%s9941_s30 + $0x28] sm:$0xff] %vm1700_vm2, %v8392_v43  ;;  %8413 = vrcp.f32 %v3170_v29  ;;  %v10167_v20 = vpop.f32.mrb[30].mxu0  ;;  %v3028_v29 = vmax.f32 %v2992_v44, 0.0  ;;  %v6582_v28 = vmul.f32 -1.442695, %v1466_v46  ;;  %v1467_v0 = vmax.f32 %v1431_v26, 0.0 }
 0x1ff   : > { %v8396_v13 = vpop.eup %8395  ;;  %3269 = vst.msk [vmem:[%s9941_s30 + $0x148] sm:$0xff] %vm1700_vm2, %v8394_v41  ;;  %8415 = vpow2.f32 %v6576_v58  ;;  %v10173_v11 = vpop.f32.mrb[30].mxu1  ;;  %7656 = vmatmul.mubr.msk.bf16.gmra.mrb[64].mxu0 %vm283_vm1, %v3931_v17  ;;  %v6695_v55 = vmul.f32 -1.442695, %v3030_v54  ;;  %v3031_v52 = vmax.f32 %v2995_v51, 0.0  ;;  %v5477_v46 = vld [vmem:[%s8949_s25 + $0x135] sm:$0xff] }
 0x200   : > { %v10175_v16 = vpop.f32.mrb[31].mxu0  ;;  %v8398_v12 = vpop.eup %8397  ;;  %1711 = vst.msk [vmem:[%s9941_s30 + $0x50] sm:$0xff] %vm1700_vm2, %v8396_v13  ;;  %8417 = vpow2.f32 %v6689_v35  ;;  %7808 = vmatmul.mubr.msk.bf16.gmra.mrb[64].mxu1 %vm283_vm1, %v10108_v15  ;;  %7659 = vmatprep.mubr.msk.bf16.mxu0 %vm283_vm1, %v3932_v18  ;;  %v6580_v44 = vmul.f32 -1.442695, %v1464_v57  ;;  %v5478_v26 = vld [vmem:[%s8949_s25 + $0x13d] sm:$0xff]  ;;  %v3933_v13 = vpack.c.bf16 %v3915_v10, %v3914_v33 }
 0x201   : > { %v10179_v43 = vpop.f32.mrb[31].mxu1  ;;  %v8400_v58 = vpop.eup %8399  ;;  %3274 = vst.msk [vmem:[%s9941_s30 + $0x170] sm:$0xff] %vm1700_vm2, %v8398_v12  ;;  %8419 = vpow2.f32 %v6579_v61  ;;  %v1465_v61 = vmax.f32 %v1429_v39, 0.0  ;;  %7811 = vmatprep.mubr.msk.bf16.mxu1 %vm283_vm1, %v10122_v27  ;;  %v6693_v6 = vmul.f32 -1.442695, %v3028_v29 }
 0x202   : > { %v8402_v35 = vpop.eup %8401  ;;  %1709 = vst.msk [vmem:[%s9941_s30 + $0x40] sm:$0xff] %vm1700_vm2, %v8400_v58  ;;  %8421 = vpow2.f32 %v6692_v2  ;;  %v10205_v59 = vpop.f32.mrb[32].mxu0  ;;  %v6583_v2 = vmul.f32 -1.442695, %v1467_v0  ;;  %v6696_v57 = vmul.f32 -1.442695, %v3031_v52 }
 0x203   : > { %v8404_v17 = vpop.eup %8403  ;;  %3272 = vst.msk [vmem:[%s9941_s30 + $0x160] sm:$0xff] %vm1700_vm2, %v8402_v35  ;;  %8423 = vpow2.f32 %v6577_v9  ;;  %v10209_v54 = vpop.f32.mrb[32].mxu1  ;;  %v6581_v58 = vmul.f32 -1.442695, %v1465_v61 }
 0x204   : > { %v8406_v41 = vpop.eup %8405  ;;  %1712 = vst.msk [vmem:[%s9941_s30 + $0x58] sm:$0xff] %vm1700_vm2, %v8404_v17  ;;  %8425 = vpow2.f32 %v6690_v14  ;;  %v10211_v51 = vpop.f32.mrb[33].mxu0  ;;  %v10219_v14 = vpack.c.bf16 %v5478_v26, %v5477_v46 }
 0x205   : > { %v8408_v18 = vpop.eup %8407  ;;  %3275 = vst.msk [vmem:[%s9941_s30 + $0x178] sm:$0xff] %vm1700_vm2, %v8406_v41  ;;  %8427 = vpow2.f32 %v6582_v28  ;;  %v10215_v39 = vpop.f32.mrb[33].mxu1 }
 0x206   : > { %v8410_v9 = vpop.eup %8409  ;;  %1710 = vst.msk [vmem:[%s9941_s30 + $0x48] sm:$0xff] %vm1700_vm2, %v8408_v18  ;;  %8429 = vpow2.f32 %v6695_v55  ;;  %v10217_v12 = vpop.f32.mrb[34].mxu0  ;;  %10874 = vst [vmem:[#allocation4_spill] sm:$0xff] %v10219_v14  ;;  %v2993_v55 = vadd.f32 %v9782_v25, %v9999_v23  ;;  %v1434_v23 = vadd.f32 %v10024_v4, %v9782_v25 }
 0x207   : > { %v8412_v29 = vpop.eup %8411  ;;  %3273 = vst.msk [vmem:[%s9941_s30 + $0x168] sm:$0xff] %vm1700_vm2, %v8410_v9  ;;  %8431 = vpow2.f32 %v6580_v44  ;;  %v10223_v28 = vpop.f32.mrb[34].mxu1  ;;  %7660 = vmatmul.mubr.msk.bf16.gmra.mrb[68].mxu0 %vm283_vm1, %v3933_v13  ;;  %v10243_v9 = vld [vmem:[%s10867_s2] ss:$0 sm:$0xff] }
 0x208   : > { %v10225_v0 = vpop.f32.mrb[35].mxu0  ;;  %v8414_v35 = vpop.eup %8413  ;;  %1715 = vst.msk [vmem:[%s9941_s30 + $0x70] sm:$0xff] %vm1700_vm2, %v8412_v29  ;;  %8433 = vpow2.f32 %v6693_v6  ;;  %7812 = vmatmul.mubr.msk.bf16.gmra.mrb[68].mxu1 %vm283_vm1, %v10219_v14  ;;  %v3029_v41 = vmax.f32 %v2993_v55, 0.0  ;;  %v1470_v4 = vmax.f32 %v1434_v23, 0.0 }
 0x209   : > { %v10231_v52 = vpop.f32.mrb[35].mxu1  ;;  %v8416_v33 = vpop.eup %8415  ;;  %3278 = vst.msk [vmem:[%s9941_s30 + $0x190] sm:$0xff] %vm1700_vm2, %v8414_v35  ;;  %8435 = vpow2.f32 %v6583_v2 }
 0x20a   : > { %v8418_v10 = vpop.eup %8417  ;;  %v1604_v17 = vadd.f32 1.0, %v8416_v33  ;;  %8437 = vpow2.f32 %v6696_v57  ;;  %v2998_v57 = vadd.f32 %v10243_v9, %v10030_v1  ;;  %v6694_v33 = vmul.f32 -1.442695, %v3029_v41 }
 0x20b   : > { %v8420_v44 = vpop.eup %8419  ;;  %v3168_v61 = vadd.f32 1.0, %v8418_v10  ;;  %8439 = vpow2.f32 %v6581_v58  ;;  %v1432_v58 = vadd.f32 %v10243_v9, %v10032_v47  ;;  %v2996_v10 = vadd.f32 %v10243_v9, %v10042_v21 }
 0x20c   : > { %v8422_v46 = vpop.eup %8421  ;;  %8441 = vrcp.f32 %v1604_v17  ;;  %v1607_v26 = vadd.f32 1.0, %v8420_v44  ;;  %v1435_v1 = vadd.f32 %v10243_v9, %v10044_v3  ;;  %v3034_v47 = vmax.f32 %v2998_v57, 0.0 }
 0x20d   : > { %v8424_v6 = vpop.eup %8423  ;;  %8443 = vrcp.f32 %v3168_v61  ;;  %v3171_v18 = vadd.f32 1.0, %v8422_v46  ;;  %v2999_v61 = vadd.f32 %v10243_v9, %v10057_v50  ;;  %v6586_v21 = vmul.f32 -1.442695, %v1470_v4 }
 0x20e   : > { %v8426_v2 = vpop.eup %8425  ;;  %8445 = vrcp.f32 %v1607_v26  ;;  %v1605_v13 = vadd.f32 1.0, %v8424_v6  ;;  %v1433_v26 = vadd.f32 %v10243_v9, %v10059_v60  ;;  %v2997_v50 = vadd.f32 %v10243_v9, %v10068_v19 }
 0x20f   : > { %v8428_v29 = vpop.eup %8427  ;;  %8447 = vrcp.f32 %v3171_v18  ;;  %v3169_v25 = vadd.f32 1.0, %v8426_v2  ;;  %v1468_v18 = vmax.f32 %v1432_v58, 0.0  ;;  %v1471_v60 = vmax.f32 %v1435_v1, 0.0 }
 0x210   : > { %v8430_v35 = vpop.eup %8429  ;;  %8449 = vrcp.f32 %v1605_v13  ;;  %v1610_v55 = vadd.f32 1.0, %v8428_v29  ;;  %v3032_v13 = vmax.f32 %v2996_v10, 0.0  ;;  %v4206_v10 = vld [vmem:[%s8949_s25 + $0x25] sm:$0xff]  ;;  %v6699_v1 = vmul.f32 -1.442695, %v3034_v47  ;;  %v4209_v47 = vld [vmem:[%s8949_s25 + $0x3d] sm:$0xff] }
 0x211   : > { %v8432_v17 = vpop.eup %8431  ;;  %8451 = vrcp.f32 %v3169_v25  ;;  %v3174_v44 = vadd.f32 1.0, %v8430_v35  ;;  %v3035_v25 = vmax.f32 %v2999_v61, 0.0  ;;  %v1469_v35 = vmax.f32 %v1433_v26, 0.0  ;;  %v4208_v26 = vld [vmem:[%s8949_s25 + $0x35] sm:$0xff] }
 0x212   : > { %v8434_v23 = vpop.eup %8433  ;;  %8453 = vrcp.f32 %v1610_v55  ;;  %v1608_v46 = vadd.f32 1.0, %v8432_v17  ;;  %v1438_v55 = vadd.f32 %v10243_v9, %v10106_v30  ;;  %v4207_v17 = vld [vmem:[%s8949_s25 + $0x2d] sm:$0xff]  ;;  %v6584_v61 = vmul.f32 -1.442695, %v1468_v18  ;;  %v5771_v18 = vld [vmem:[%s8949_s25 + $0x36] sm:$0xff] }
 0x213   : > { %v8436_v41 = vpop.eup %8435  ;;  %8455 = vrcp.f32 %v3174_v44  ;;  %v3172_v6 = vadd.f32 1.0, %v8434_v23  ;;  %v5769_v44 = vld [vmem:[%s8949_s25 + $0x26] sm:$0xff]  ;;  %v3002_v23 = vadd.f32 %v10243_v9, %v10110_v42  ;;  %v6585_v14 = vmul.f32 -1.442695, %v1469_v35 }
 0x214   : > { %v8438_v2 = vpop.eup %8437  ;;  %8457 = vrcp.f32 %v1608_v46  ;;  %v1611_v3 = vadd.f32 1.0, %v8436_v41  ;;  %v5770_v46 = vld [vmem:[%s8949_s25 + $0x2e] sm:$0xff]  ;;  %v6697_v41 = vmul.f32 -1.442695, %v3032_v13  ;;  %v4210_v13 = vld [vmem:[%s8949_s25 + $0x45] sm:$0xff]  ;;  %v1474_v27 = vmax.f32 %v1438_v55, 0.0 }
 0x215   : > { %v8440_v57 = vpop.eup %8439  ;;  %8459 = vrcp.f32 %v3172_v6  ;;  %v3175_v29 = vadd.f32 1.0, %v8438_v2  ;;  %v3033_v6 = vmax.f32 %v2997_v50, 0.0  ;;  %v1436_v2 = vadd.f32 %v10243_v9, %v10112_v24  ;;  %v5773_v50 = vld [vmem:[%s8949_s25 + $0x46] sm:$0xff] }
 0x216   : > { %v8442_v4 = vpop.eup %8441  ;;  %8461 = vrcp.f32 %v1611_v3  ;;  %v1609_v58 = vadd.f32 1.0, %v8440_v57  ;;  %v5772_v3 = vld [vmem:[%s8949_s25 + $0x3e] sm:$0xff]  ;;  %v6587_v57 = vmul.f32 -1.442695, %v1471_v60  ;;  %v6700_v24 = vmul.f32 -1.442695, %v3035_v25 }
 0x217   : > { %v8444_v19 = vpop.eup %8443  ;;  %1713 = vst.msk [vmem:[%s9941_s30 + $0x60] sm:$0xff] %vm1700_vm2, %v8442_v4  ;;  %8463 = vrcp.f32 %v3175_v29  ;;  %v3000_v29 = vadd.f32 %v10243_v9, %v10118_v56  ;;  %v4242_v4 = vpack.c.bf16 %v4207_v17, %v4206_v10  ;;  %v5805_v56 = vpack.c.bf16 %v5770_v46, %v5769_v44  ;;  %v4213_v46 = vld [vmem:[%s8949_s25 + $0x5d] sm:$0xff] }
 0x218   : > { %v8446_v30 = vpop.eup %8445  ;;  %3276 = vst.msk [vmem:[%s9941_s30 + $0x180] sm:$0xff] %vm1700_vm2, %v8444_v19  ;;  %8465 = vrcp.f32 %v1609_v58  ;;  %v4211_v58 = vld [vmem:[%s8949_s25 + $0x4d] sm:$0xff]  ;;  %v4243_v60 = vpack.c.bf16 %v4209_v47, %v4208_v26  ;;  %v1472_v25 = vmax.f32 %v1436_v2, 0.0  ;;  %v5806_v35 = vpack.c.bf16 %v5772_v3, %v5771_v18  ;;  %v5775_v26 = vld [vmem:[%s8949_s25 + $0x56] sm:$0xff]  ;;  %v5776_v2 = vld [vmem:[%s8949_s25 + $0x5e] sm:$0xff] }
 0x219   : > { %v8448_v42 = vpop.eup %8447  ;;  %1716 = vst.msk [vmem:[%s9941_s30 + $0x78] sm:$0xff] %vm1700_vm2, %v8446_v30  ;;  %8467 = vpow2.f32 %v6694_v33  ;;  %v5774_v30 = vld [vmem:[%s8949_s25 + $0x4e] sm:$0xff]  ;;  %v3038_v33 = vmax.f32 %v3002_v23, 0.0  ;;  %7665 = vmatprep.mubr.msk.bf16.mxu0 %vm283_vm1, %v4242_v4  ;;  %v3036_v17 = vmax.f32 %v3000_v29, 0.0  ;;  %7817 = vmatprep.mubr.msk.bf16.mxu1 %vm283_vm1, %v5805_v56  ;;  %v4244_v44 = vpack.c.bf16 %v4211_v58, %v4210_v13 }
 0x21a   : > { %v8450_v19 = vpop.eup %8449  ;;  %3279 = vst.msk [vmem:[%s9941_s30 + $0x198] sm:$0xff] %vm1700_vm2, %v8448_v42  ;;  %8469 = vpow2.f32 %v6586_v21  ;;  %v6698_v21 = vmul.f32 -1.442695, %v3033_v6  ;;  %7666 = vmatmul.mubr.msk.bf16.vlgmr.msra.gmra.mrb[36].mxu0 %vm283_vm1, %v4243_v60  ;;  %7818 = vmatmul.mubr.msk.bf16.vlgmr.msra.gmra.mrb[36].mxu1 %vm283_vm1, %v5806_v35  ;;  %v4212_v23 = vld [vmem:[%s8949_s25 + $0x55] sm:$0xff]  ;;  %v4215_v47 = vld [vmem:[%s8949_s25 + $0x6d] sm:$0xff]  ;;  %v1439_v42 = vadd.f32 %v10243_v9, %v10120_v40  ;;  %v3003_v60 = vadd.f32 %v10243_v9, %v10126_v7 }
 0x21b   : > { %v8452_v15 = vpop.eup %8451  ;;  %1714 = vst.msk [vmem:[%s9941_s30 + $0x68] sm:$0xff] %vm1700_vm2, %v8450_v19  ;;  %8471 = vpow2.f32 %v6699_v1  ;;  %v6703_v6 = vmul.f32 -1.442695, %v3038_v33  ;;  %7669 = vmatprep.mubr.msk.bf16.mxu0 %vm283_vm1, %v4244_v44  ;;  %v6588_v3 = vmul.f32 -1.442695, %v1472_v25  ;;  %v5778_v29 = vld [vmem:[%s8949_s25 + $0x6e] sm:$0xff]  ;;  %v4245_v58 = vpack.c.bf16 %v4213_v46, %v4212_v23 }
 0x21c   : > { %v8454_v10 = vpop.eup %8453  ;;  %3277 = vst.msk [vmem:[%s9941_s30 + $0x188] sm:$0xff] %vm1700_vm2, %v8452_v15  ;;  %8473 = vpow2.f32 %v6584_v61  ;;  %v5807_v15 = vpack.c.bf16 %v5774_v30, %v5773_v50  ;;  %v6590_v61 = vmul.f32 -1.442695, %v1474_v27  ;;  %v4214_v27 = vld [vmem:[%s8949_s25 + $0x65] sm:$0xff]  ;;  %v6701_v13 = vmul.f32 -1.442695, %v3036_v17 }
 0x21d   : > { %v8456_v55 = vpop.eup %8455  ;;  %1719 = vst.msk [vmem:[%s9941_s30 + $0x90] sm:$0xff] %vm1700_vm2, %v8454_v10  ;;  %8475 = vpow2.f32 %v6697_v41  ;;  %v5808_v19 = vpack.c.bf16 %v5776_v2, %v5775_v26  ;;  %v1475_v56 = vmax.f32 %v1439_v42, 0.0  ;;  %v4216_v7 = vld [vmem:[%s8949_s25 + $0x75] sm:$0xff]  ;;  %v4217_v17 = vld [vmem:[%s8949_s25 + $0x7d] sm:$0xff] }
 0x21e   : > { %v8458_v1 = vpop.eup %8457  ;;  %3282 = vst.msk [vmem:[%s9941_s30 + $0x1b0] sm:$0xff] %vm1700_vm2, %v8456_v55  ;;  %8477 = vpow2.f32 %v6587_v57  ;;  %7821 = vmatprep.mubr.msk.bf16.mxu1 %vm283_vm1, %v5807_v15  ;;  %v5777_v57 = vld [vmem:[%s8949_s25 + $0x66] sm:$0xff]  ;;  %v1437_v55 = vadd.f32 %v10243_v9, %v10128_v62  ;;  %v5780_v23 = vld [vmem:[%s8949_s25 + $0x7e] sm:$0xff]  ;;  %v5782_v2 = vld [vmem:[%s8949_s25 + $0x8e] sm:$0xff] }
 0x21f   : > { %v8460_v41 = vpop.eup %8459  ;;  %1717 = vst.msk [vmem:[%s9941_s30 + $0x80] sm:$0xff] %vm1700_vm2, %v8458_v1  ;;  %8479 = vpow2.f32 %v6700_v24  ;;  %v4246_v24 = vpack.c.bf16 %v4215_v47, %v4214_v27  ;;  %v5809_v30 = vpack.c.bf16 %v5778_v29, %v5777_v57  ;;  %v3001_v1 = vadd.f32 %v10243_v9, %v10132_v32 }
 0x220   : > { %v8462_v18 = vpop.eup %8461  ;;  %3280 = vst.msk [vmem:[%s9941_s30 + $0x1a0] sm:$0xff] %vm1700_vm2, %v8460_v41  ;;  %8481 = vpow2.f32 %v6585_v14  ;;  %v10335_v26 = vmul.f32 -1.442695, %v1475_v56  ;;  %v3039_v41 = vmax.f32 %v3003_v60, 0.0  ;;  %v1473_v57 = vmax.f32 %v1437_v55, 0.0 }
 0x221   : > { %v8464_v4 = vpop.eup %8463  ;;  %1720 = vst.msk [vmem:[%s9941_s30 + $0x98] sm:$0xff] %vm1700_vm2, %v8462_v18  ;;  %8483 = vpow2.f32 %v6698_v21  ;;  %v1442_v18 = vadd.f32 %v10243_v9, %v10151_v8  ;;  %v1440_v56 = vadd.f32 %v10243_v9, %v10159_v38  ;;  %v1443_v55 = vadd.f32 %v10243_v9, %v10167_v20 }
 0x222   : > { %v8466_v50 = vpop.eup %8465  ;;  %3283 = vst.msk [vmem:[%s9941_s30 + $0x1b8] sm:$0xff] %vm1700_vm2, %v8464_v4  ;;  %8485 = vpow2.f32 %v6590_v61  ;;  %7670 = vmatmul.mubr.msk.bf16.gmra.mrb[40].mxu0 %vm283_vm1, %v4245_v58  ;;  %7822 = vmatmul.mubr.msk.bf16.gmra.mrb[40].mxu1 %vm283_vm1, %v5808_v19  ;;  %v5779_v61 = vld [vmem:[%s8949_s25 + $0x76] sm:$0xff]  ;;  %v3037_v58 = vmax.f32 %v3001_v1, 0.0  ;;  %v5785_v1 = vld [vmem:[%s8949_s25 + $0xa6] sm:$0xff] }
 0x223   : > { %v8468_v14 = vpop.eup %8467  ;;  %1718 = vst.msk [vmem:[%s9941_s30 + $0x88] sm:$0xff] %vm1700_vm2, %v8466_v50  ;;  %8487 = vpow2.f32 %v6703_v6  ;;  %7673 = vmatprep.mubr.msk.bf16.mxu0 %vm283_vm1, %v4246_v24  ;;  %7825 = vmatprep.mubr.msk.bf16.mxu1 %vm283_vm1, %v5809_v30  ;;  %v5781_v6 = vld [vmem:[%s8949_s25 + $0x86] sm:$0xff]  ;;  %v5810_v29 = vpack.c.bf16 %v5780_v23, %v5779_v61  ;;  %v3006_v30 = vadd.f32 %v10243_v9, %v10157_v34  ;;  %v5786_v61 = vld [vmem:[%s8949_s25 + $0xae] sm:$0xff] }
 0x224   : > { %v8470_v40 = vpop.eup %8469  ;;  %v3173_v33 = vadd.f32 1.0, %v8468_v14  ;;  %8489 = vpow2.f32 %v6588_v3  ;;  %v4247_v3 = vpack.c.bf16 %v4217_v17, %v4216_v7  ;;  %v5811_v50 = vpack.c.bf16 %v5782_v2, %v5781_v6  ;;  %v5783_v7 = vld [vmem:[%s8949_s25 + $0x96] sm:$0xff] }
 0x225   : > { %v8472_v10 = vpop.eup %8471  ;;  %v1614_v21 = vadd.f32 1.0, %v8470_v40  ;;  %8491 = vpow2.f32 %v6701_v13  ;;  %v6704_v14 = vmul.f32 -1.442695, %v3039_v41 }
 0x226   : > { %v8474_v25 = vpop.eup %8473  ;;  %8493 = vrcp.f32 %v3173_v33  ;;  %v3178_v35 = vadd.f32 1.0, %v8472_v10  ;;  %v1478_v33 = vmax.f32 %v1442_v18, 0.0  ;;  %v5813_v18 = vpack.c.bf16 %v5786_v61, %v5785_v1  ;;  %v5793_v1 = vld [vmem:[%s8949_s25 + $0xe6] sm:$0xff]  ;;  %v5794_v61 = vld [vmem:[%s8949_s25 + $0xee] sm:$0xff] }
 0x227   : > { %v8476_v44 = vpop.eup %8475  ;;  %8495 = vrcp.f32 %v1614_v21  ;;  %v1612_v15 = vadd.f32 1.0, %v8474_v25  ;;  %v6589_v21 = vmul.f32 -1.442695, %v1473_v57  ;;  %v3004_v25 = vadd.f32 %v10243_v9, %v10165_v31  ;;  %v5784_v31 = vld [vmem:[%s8949_s25 + $0x9e] sm:$0xff] }
 0x228   : > { %v8478_v46 = vpop.eup %8477  ;;  %8497 = vrcp.f32 %v3178_v35  ;;  %v3176_v62 = vadd.f32 1.0, %v8476_v44  ;;  %v6702_v35 = vmul.f32 -1.442695, %v3037_v58  ;;  %v6594_v20 = vmul.f32 -1.442695, %v1478_v33 }
 0x229   : > { %v8480_v27 = vpop.eup %8479  ;;  %8499 = vrcp.f32 %v1612_v15  ;;  %v1615_v47 = vadd.f32 1.0, %v8478_v46  ;;  %v3042_v15 = vmax.f32 %v3006_v30, 0.0  ;;  %v1476_v46 = vmax.f32 %v1440_v56, 0.0  ;;  %v5789_v30 = vld [vmem:[%s8949_s25 + $0xc6] sm:$0xff] }
 0x22a   : > { %v8482_v32 = vpop.eup %8481  ;;  %8501 = vrcp.f32 %v3176_v62  ;;  %v3179_v42 = vadd.f32 1.0, %v8480_v27  ;;  %7674 = vmatmul.mubr.msk.bf16.gmra.mrb[44].mxu0 %vm283_vm1, %v4247_v3  ;;  %7826 = vmatmul.mubr.msk.bf16.gmra.mrb[44].mxu1 %vm283_vm1, %v5810_v29  ;;  %v1441_v62 = vadd.f32 %v10243_v9, %v10175_v16  ;;  %v3040_v6 = vmax.f32 %v3004_v25, 0.0 }
 0x22b   : > { %v8484_v4 = vpop.eup %8483  ;;  %8503 = vrcp.f32 %v1615_v47  ;;  %v1613_v13 = vadd.f32 1.0, %v8482_v32  ;;  %7677 = vmatprep.mubr.msk.bf16.mxu0 %vm283_vm1, %v9885_v53  ;;  %7829 = vmatprep.mubr.msk.bf16.mxu1 %vm283_vm1, %v5811_v50  ;;  %v3007_v53 = vadd.f32 %v10243_v9, %v10173_v11  ;;  %v3005_v11 = vadd.f32 %v10243_v9, %v10179_v43  ;;  %v5787_v50 = vld [vmem:[%s8949_s25 + $0xb6] sm:$0xff] }
 0x22c   : > { %v8486_v19 = vpop.eup %8485  ;;  %8505 = vrcp.f32 %v3179_v42  ;;  %v3177_v24 = vadd.f32 1.0, %v8484_v4  ;;  %v5812_v2 = vpack.c.bf16 %v5784_v31, %v5783_v7  ;;  %v1479_v47 = vmax.f32 %v1443_v55, 0.0 }
 0x22d   : > { %v8488_v40 = vpop.eup %8487  ;;  %8507 = vrcp.f32 %v1613_v13  ;;  %v1618_v8 = vadd.f32 1.0, %v8486_v19  ;;  %v1446_v16 = vadd.f32 %v10243_v9, %v10205_v59  ;;  %v6707_v32 = vmul.f32 -1.442695, %v3042_v15  ;;  %v5788_v19 = vld [vmem:[%s8949_s25 + $0xbe] sm:$0xff] }
 0x22e   : > { %v8490_v60 = vpop.eup %8489  ;;  %8509 = vrcp.f32 %v3177_v24  ;;  %v3182_v10 = vadd.f32 1.0, %v8488_v40  ;;  %v3043_v42 = vmax.f32 %v3007_v53, 0.0  ;;  %v6592_v57 = vmul.f32 -1.442695, %v1476_v46 }
 0x22f   : > { %v8492_v34 = vpop.eup %8491  ;;  %8511 = vrcp.f32 %v1618_v8  ;;  %v1616_v38 = vadd.f32 1.0, %v8490_v60  ;;  %v6705_v29 = vmul.f32 -1.442695, %v3040_v6  ;;  %v3041_v4 = vmax.f32 %v3005_v11, 0.0 }
 0x230   : > { %v8494_v17 = vpop.eup %8493  ;;  %8513 = vrcp.f32 %v3182_v10  ;;  %v3180_v44 = vadd.f32 1.0, %v8492_v34  ;;  %v1482_v58 = vmax.f32 %v1446_v16, 0.0  ;;  %v5814_v60 = vpack.c.bf16 %v5788_v19, %v5787_v50  ;;  %v5798_v50 = vld [vmem:[%s8949_s25 + $0x10e] sm:$0xff] }
 0x231   : > { %v8496_v23 = vpop.eup %8495  ;;  %3281 = vst.msk [vmem:[%s9941_s30 + $0x1a8] sm:$0xff] %vm1700_vm2, %v8494_v17  ;;  %8515 = vrcp.f32 %v1616_v38  ;;  %v6706_v56 = vmul.f32 -1.442695, %v3041_v4  ;;  %v5791_v17 = vld [vmem:[%s8949_s25 + $0xd6] sm:$0xff]  ;;  %v3010_v53 = vadd.f32 %v10243_v9, %v10209_v54 }
 0x232   : > { %v8498_v41 = vpop.eup %8497  ;;  %1723 = vst.msk [vmem:[%s9941_s30 + $0xb0] sm:$0xff] %vm1700_vm2, %v8496_v23  ;;  %8517 = vrcp.f32 %v3180_v44  ;;  %7678 = vmatmul.mubr.msk.bf16.gmra.mrb[48].mxu0 %vm283_vm1, %v9893_v36  ;;  %7830 = vmatmul.mubr.msk.bf16.gmra.mrb[48].mxu1 %vm283_vm1, %v5812_v2  ;;  %v6595_v36 = vmul.f32 -1.442695, %v1479_v47  ;;  %v5792_v44 = vld [vmem:[%s8949_s25 + $0xde] sm:$0xff]  ;;  %v3008_v2 = vadd.f32 %v10243_v9, %v10215_v39 }
 0x233   : > { %v8500_v27 = vpop.eup %8499  ;;  %3286 = vst.msk [vmem:[%s9941_s30 + $0x1d0] sm:$0xff] %vm1700_vm2, %v8498_v41  ;;  %8519 = vpow2.f32 %v10335_v26  ;;  %v1477_v26 = vmax.f32 %v1441_v62, 0.0  ;;  %7681 = vmatprep.mubr.msk.bf16.mxu0 %vm283_vm1, %v9911_v37  ;;  %7833 = vmatprep.mubr.msk.bf16.mxu1 %vm283_vm1, %v5813_v18  ;;  %v5790_v37 = vld [vmem:[%s8949_s25 + $0xce] sm:$0xff]  ;;  %v5816_v41 = vpack.c.bf16 %v5792_v44, %v5791_v17  ;;  %v3046_v16 = vmax.f32 %v3010_v53, 0.0  ;;  %v5801_v17 = vld [vmem:[%s8949_s25 + $0x126] sm:$0xff] }
 0x234   : > { %v8502_v3 = vpop.eup %8501  ;;  %1721 = vst.msk [vmem:[%s9941_s30 + $0xa0] sm:$0xff] %vm1700_vm2, %v8500_v27  ;;  %8521 = vpow2.f32 %v6704_v14  ;;  %v6708_v14 = vmul.f32 -1.442695, %v3043_v42  ;;  %v5815_v25 = vpack.c.bf16 %v5790_v37, %v5789_v30  ;;  %v5817_v27 = vpack.c.bf16 %v5794_v61, %v5793_v1  ;;  %v5802_v44 = vld [vmem:[%s8949_s25 + $0x12e] sm:$0xff] }
 0x235   : > { %v8504_v43 = vpop.eup %8503  ;;  %3284 = vst.msk [vmem:[%s9941_s30 + $0x1c0] sm:$0xff] %vm1700_vm2, %v8502_v3  ;;  %8523 = vpow2.f32 %v6589_v21  ;;  %v6593_v8 = vmul.f32 -1.442695, %v1477_v26  ;;  %v6598_v21 = vmul.f32 -1.442695, %v1482_v58  ;;  %v1447_v18 = vadd.f32 %v10243_v9, %v10217_v12  ;;  %v5797_v58 = vld [vmem:[%s8949_s25 + $0x106] sm:$0xff] }
 0x236   : > { %v8506_v59 = vpop.eup %8505  ;;  %1724 = vst.msk [vmem:[%s9941_s30 + $0xb8] sm:$0xff] %vm1700_vm2, %v8504_v43  ;;  %8525 = vpow2.f32 %v6702_v35  ;;  %v3011_v42 = vadd.f32 %v10243_v9, %v10223_v28  ;;  %v3044_v28 = vmax.f32 %v3008_v2, 0.0  ;;  %v5821_v1 = vpack.c.bf16 %v5802_v44, %v5801_v17 }
 0x237   : > { %v8508_v13 = vpop.eup %8507  ;;  %3287 = vst.msk [vmem:[%s9941_s30 + $0x1d8] sm:$0xff] %vm1700_vm2, %v8506_v59  ;;  %8527 = vpow2.f32 %v6594_v20  ;;  %v5795_v59 = vld [vmem:[%s8949_s25 + $0xf6] sm:$0xff] }
 0x238   : > { %v8510_v24 = vpop.eup %8509  ;;  %1722 = vst.msk [vmem:[%s9941_s30 + $0xa8] sm:$0xff] %vm1700_vm2, %v8508_v13  ;;  %8529 = vpow2.f32 %v6707_v32  ;;  %v6711_v13 = vmul.f32 -1.442695, %v3046_v16 }
 0x239   : > { %v8512_v40 = vpop.eup %8511  ;;  %3285 = vst.msk [vmem:[%s9941_s30 + $0x1c8] sm:$0xff] %vm1700_vm2, %v8510_v24  ;;  %8531 = vpow2.f32 %v6592_v57  ;;  %v1445_v57 = vadd.f32 %v10243_v9, %v10225_v0 }
 0x23a   : > { %v8514_v33 = vpop.eup %8513  ;;  %1727 = vst.msk [vmem:[%s9941_s30 + $0xd0] sm:$0xff] %vm1700_vm2, %v8512_v40  ;;  %8533 = vpow2.f32 %v6705_v29  ;;  %7682 = vmatmul.mubr.msk.bf16.gmra.mrb[52].mxu0 %vm283_vm1, %v9920_v45  ;;  %7834 = vmatmul.mubr.msk.bf16.gmra.mrb[52].mxu1 %vm283_vm1, %v5814_v60  ;;  %v5796_v29 = vld [vmem:[%s8949_s25 + $0xfe] sm:$0xff] }
 0x23b   : > { %v8516_v10 = vpop.eup %8515  ;;  %3290 = vst.msk [vmem:[%s9941_s30 + $0x1f0] sm:$0xff] %vm1700_vm2, %v8514_v33  ;;  %8535 = vpow2.f32 %v6595_v36  ;;  %7685 = vmatprep.mubr.msk.bf16.mxu0 %vm283_vm1, %v9995_v5  ;;  %7837 = vmatprep.mubr.msk.bf16.mxu1 %vm283_vm1, %v5815_v25  ;;  %v1444_v5 = vadd.f32 %v10243_v9, %v10211_v51  ;;  %v1483_v36 = vmax.f32 %v1447_v18, 0.0  ;;  %v5818_v37 = vpack.c.bf16 %v5796_v29, %v5795_v59 }
 0x23c   : > { %v8518_v34 = vpop.eup %8517  ;;  %1725 = vst.msk [vmem:[%s9941_s30 + $0xc0] sm:$0xff] %vm1700_vm2, %v8516_v10  ;;  %8537 = vpow2.f32 %v6708_v14  ;;  %v3047_v14 = vmax.f32 %v3011_v42, 0.0 }
 0x23d   : > { %v8520_v38 = vpop.eup %8519  ;;  %3288 = vst.msk [vmem:[%s9941_s30 + $0x1e0] sm:$0xff] %vm1700_vm2, %v8518_v34  ;;  %8539 = vpow2.f32 %v6593_v8  ;;  %v1480_v32 = vmax.f32 %v1444_v5, 0.0  ;;  %v6709_v8 = vmul.f32 -1.442695, %v3044_v28  ;;  %v6599_v10 = vmul.f32 -1.442695, %v1483_v36 }
 0x23e   : > { %v8522_v35 = vpop.eup %8521  ;;  %v1619_v55 = vadd.f32 1.0, %v8520_v38  ;;  %8541 = vpow2.f32 %v6706_v56  ;;  %v5819_v56 = vpack.c.bf16 %v5798_v50, %v5797_v58  ;;  %v6712_v25 = vmul.f32 -1.442695, %v3047_v14 }
 0x23f   : > { %v8524_v7 = vpop.eup %8523  ;;  %v3183_v31 = vadd.f32 1.0, %v8522_v35  ;;  %8543 = vpow2.f32 %v6598_v21  ;;  %v6596_v24 = vmul.f32 -1.442695, %v1480_v32 }
 0x240   : > { %v8526_v15 = vpop.eup %8525  ;;  %8545 = vrcp.f32 %v1619_v55  ;;  %v1617_v45 = vadd.f32 1.0, %v8524_v7  ;;  %v5800_v7 = vld [vmem:[%s8949_s25 + $0x11e] sm:$0xff] }
 0x241   : > { %v8528_v23 = vpop.eup %8527  ;;  %8547 = vrcp.f32 %v3183_v31  ;;  %v3181_v20 = vadd.f32 1.0, %v8526_v15 }
 0x242   : > { %v8530_v46 = vpop.eup %8529  ;;  %8549 = vrcp.f32 %v1617_v45  ;;  %v1622_v62 = vadd.f32 1.0, %v8528_v23  ;;  %7686 = vmatmul.mubr.msk.bf16.gmra.mrb[56].mxu0 %vm283_vm1, %v10046_v49  ;;  %7838 = vmatmul.mubr.msk.bf16.gmra.mrb[56].mxu1 %vm283_vm1, %v5816_v41  ;;  %v3009_v49 = vadd.f32 %v10243_v9, %v10231_v52  ;;  %v1481_v9 = vmax.f32 %v1445_v57, 0.0  ;;  %v5803_v41 = vld [vmem:[%s8949_s25 + $0x136] sm:$0xff] }
 0x243   : > { %v8532_v6 = vpop.eup %8531  ;;  %8551 = vrcp.f32 %v3181_v20  ;;  %v3186_v11 = vadd.f32 1.0, %v8530_v46  ;;  %7689 = vmatprep.mubr.msk.bf16.mxu0 %vm283_vm1, %v10061_v63  ;;  %7841 = vmatprep.mubr.msk.bf16.mxu1 %vm283_vm1, %v5817_v27  ;;  %v10875_v20 = vld [vmem:[#allocation2_spill] sm:$0xff]  ;;  %v10876_v46 = vld [vmem:[#allocation3_spill] sm:$0xff]  ;;  %v10877_v57 = vld [vmem:[#allocation4_spill] sm:$0xff] }
 0x244   : > { %v8534_v54 = vpop.eup %8533  ;;  %8553 = vrcp.f32 %v1622_v62  ;;  %v1620_v47 = vadd.f32 1.0, %v8532_v6  ;;  %v3045_v33 = vmax.f32 %v3009_v49, 0.0  ;;  %v6597_v38 = vmul.f32 -1.442695, %v1481_v9  ;;  %v5804_v6 = vld [vmem:[%s8949_s25 + $0x13e] sm:$0xff] }
 0x245   : > { %v8536_v3 = vpop.eup %8535  ;;  %8555 = vrcp.f32 %v3186_v11  ;;  %v3184_v51 = vadd.f32 1.0, %v8534_v54  ;;  %v5822_v18 = vpack.c.bf16 %v5804_v6, %v5803_v41 }
 0x246   : > { %v8538_v39 = vpop.eup %8537  ;;  %8557 = vrcp.f32 %v1620_v47  ;;  %v1623_v43 = vadd.f32 1.0, %v8536_v3  ;;  %v6710_v55 = vmul.f32 -1.442695, %v3045_v33 }
 0x247   : > { %v8540_v12 = vpop.eup %8539  ;;  %8559 = vrcp.f32 %v3184_v51  ;;  %v3187_v26 = vadd.f32 1.0, %v8538_v39 }
 0x248   : > { %v8542_v4 = vpop.eup %8541  ;;  %8561 = vrcp.f32 %v1623_v43  ;;  %v1621_v0 = vadd.f32 1.0, %v8540_v12 }
 0x249   : > { %v8544_v63 = vpop.eup %8543  ;;  %8563 = vrcp.f32 %v3187_v26  ;;  %v3185_v19 = vadd.f32 1.0, %v8542_v4 }
 0x24a   : > { %v8546_v30 = vpop.eup %8545  ;;  %8565 = vrcp.f32 %v1621_v0  ;;  %v1626_v52 = vadd.f32 1.0, %v8544_v63  ;;  %7690 = vmatmul.mubr.msk.bf16.gmra.mrb[60].mxu0 %vm283_vm1, %v10081_v48  ;;  %7842 = vmatmul.mubr.msk.bf16.gmra.mrb[60].mxu1 %vm283_vm1, %v5818_v37  ;;  %v5799_v48 = vld [vmem:[%s8949_s25 + $0x116] sm:$0xff] }
 0x24b   : > { %v8548_v40 = vpop.eup %8547  ;;  %1728 = vst.msk [vmem:[%s9941_s30 + $0xd8] sm:$0xff] %vm1700_vm2, %v8546_v30  ;;  %8567 = vrcp.f32 %v3185_v19  ;;  %7693 = vmatprep.mubr.msk.bf16.mxu0 %vm283_vm1, %v10090_v22  ;;  %7845 = vmatprep.mubr.msk.bf16.mxu1 %vm283_vm1, %v5819_v56  ;;  %v5820_v45 = vpack.c.bf16 %v5800_v7, %v5799_v48 }
 0x24c   : > { %v8550_v60 = vpop.eup %8549  ;;  %3291 = vst.msk [vmem:[%s9941_s30 + $0x1f8] sm:$0xff] %vm1700_vm2, %v8548_v40  ;;  %8569 = vrcp.f32 %v1626_v52 }
 0x24d   : > { %v8552_v21 = vpop.eup %8551  ;;  %1726 = vst.msk [vmem:[%s9941_s30 + $0xc8] sm:$0xff] %vm1700_vm2, %v8550_v60  ;;  %8571 = vpow2.f32 %v6711_v13  ;;  %v10501_v13 = vld [vmem:[%s10867_s2] ss:$0 sm:$0xff] }
 0x24e   : > { %v8554_v34 = vpop.eup %8553  ;;  %3289 = vst.msk [vmem:[%s9941_s30 + $0x1e8] sm:$0xff] %vm1700_vm2, %v8552_v21  ;;  %8573 = vpow2.f32 %v6596_v24 }
 0x24f   : > { %v8556_v35 = vpop.eup %8555  ;;  %1731 = vst.msk [vmem:[%s9941_s30 + $0xf0] sm:$0xff] %vm1700_vm2, %v8554_v34  ;;  %8575 = vpow2.f32 %v6709_v8 }
 0x250   : > { %v8558_v31 = vpop.eup %8557  ;;  %3294 = vst.msk [vmem:[%s9941_s30 + $0x210] sm:$0xff] %vm1700_vm2, %v8556_v35  ;;  %8577 = vpow2.f32 %v6599_v10 }
 0x251   : > { %v8560_v22 = vpop.eup %8559  ;;  %1729 = vst.msk [vmem:[%s9941_s30 + $0xe0] sm:$0xff] %vm1700_vm2, %v8558_v31  ;;  %8579 = vpow2.f32 %v6712_v25 }
 0x252   : > { %v8562_v15 = vpop.eup %8561  ;;  %3292 = vst.msk [vmem:[%s9941_s30 + $0x200] sm:$0xff] %vm1700_vm2, %v8560_v22  ;;  %8581 = vpow2.f32 %v6597_v38  ;;  %7694 = vmatmul.mubr.msk.bf16.gmra.mrb[64].mxu0 %vm283_vm1, %v10875_v20  ;;  %7846 = vmatmul.mubr.msk.bf16.gmra.mrb[64].mxu1 %vm283_vm1, %v5820_v45 }
 0x253   : > { %v8564_v53 = vpop.eup %8563  ;;  %1732 = vst.msk [vmem:[%s9941_s30 + $0xf8] sm:$0xff] %vm1700_vm2, %v8562_v15  ;;  %8583 = vpow2.f32 %v6710_v55  ;;  %7697 = vmatprep.mubr.msk.bf16.mxu0 %vm283_vm1, %v10876_v46  ;;  %7849 = vmatprep.mubr.msk.bf16.mxu1 %vm283_vm1, %v5821_v1 }
 0x254   : > { %v8566_v61 = vpop.eup %8565  ;;  %3295 = vst.msk [vmem:[%s9941_s30 + $0x218] sm:$0xff] %vm1700_vm2, %v8564_v53 }
 0x255   : > { %v8568_v23 = vpop.eup %8567  ;;  %1730 = vst.msk [vmem:[%s9941_s30 + $0xe8] sm:$0xff] %vm1700_vm2, %v8566_v61 }
 0x256   : > { %v8570_v5 = vpop.eup %8569  ;;  %3293 = vst.msk [vmem:[%s9941_s30 + $0x208] sm:$0xff] %vm1700_vm2, %v8568_v23 }
 0x257   : > { %v8572_v62 = vpop.eup %8571  ;;  %1735 = vst.msk [vmem:[%s9941_s30 + $0x110] sm:$0xff] %vm1700_vm2, %v8570_v5 }
 0x258   : > { %v8574_v11 = vpop.eup %8573  ;;  %v3190_v2 = vadd.f32 1.0, %v8572_v62 }
 0x259   : > { %v8576_v27 = vpop.eup %8575  ;;  %v1624_v54 = vadd.f32 1.0, %v8574_v11 }
 0x25a   : > { %v8578_v47 = vpop.eup %8577  ;;  %8585 = vrcp.f32 %v3190_v2  ;;  %v3188_v16 = vadd.f32 1.0, %v8576_v27  ;;  %7698 = vmatmul.mubr.msk.bf16.gmra.mrb[68].mxu0 %vm283_vm1, %v10877_v57  ;;  %7850 = vmatmul.mubr.msk.bf16.gmra.mrb[68].mxu1 %vm283_vm1, %v5822_v18 }
 0x25b   : > { %v8580_v3 = vpop.eup %8579  ;;  %8587 = vrcp.f32 %v1624_v54  ;;  %v1627_v51 = vadd.f32 1.0, %v8578_v47 }
 0x25c   : > { %v8582_v32 = vpop.eup %8581  ;;  %8589 = vrcp.f32 %v3188_v16  ;;  %v3191_v42 = vadd.f32 1.0, %v8580_v3 }
 0x25d   : > { %v8584_v39 = vpop.eup %8583  ;;  %8591 = vrcp.f32 %v1627_v51  ;;  %v1625_v43 = vadd.f32 1.0, %v8582_v32 }
 0x25e   : > { %8593 = vrcp.f32 %v3191_v42  ;;  %v3189_v12 = vadd.f32 1.0, %v8584_v39 }
 0x25f   : > { %8595 = vrcp.f32 %v1625_v43 }
 0x260   : > { %8597 = vrcp.f32 %v3189_v12 }
 0x264   : > { %v8586_v26 = vpop.eup %8585 }
 0x265   : > { %v8588_v28 = vpop.eup %8587  ;;  %3298 = vst.msk [vmem:[%s9941_s30 + $0x230] sm:$0xff] %vm1700_vm2, %v8586_v26 }
 0x266   : > { %v8590_v49 = vpop.eup %8589  ;;  %1733 = vst.msk [vmem:[%s9941_s30 + $0x100] sm:$0xff] %vm1700_vm2, %v8588_v28 }
 0x267   : > { %v8592_v59 = vpop.eup %8591  ;;  %3296 = vst.msk [vmem:[%s9941_s30 + $0x220] sm:$0xff] %vm1700_vm2, %v8590_v49 }
 0x268   : > { %v8594_v29 = vpop.eup %8593  ;;  %1736 = vst.msk [vmem:[%s9941_s30 + $0x118] sm:$0xff] %vm1700_vm2, %v8592_v59 }
 0x269   : > { %v8596_v4 = vpop.eup %8595  ;;  %3299 = vst.msk [vmem:[%s9941_s30 + $0x238] sm:$0xff] %vm1700_vm2, %v8594_v29 }
 0x26a   : > { %v8598_v0 = vpop.eup %8597  ;;  %1734 = vst.msk [vmem:[%s9941_s30 + $0x108] sm:$0xff] %vm1700_vm2, %v8596_v4 }
 0x26b   : > { %3297 = vst.msk [vmem:[%s9941_s30 + $0x228] sm:$0xff] %vm1700_vm2, %v8598_v0 }
 0x2ed   : > { %v7667_v36 = vpop.f32.mrb[36].mxu0  ;;  %v7819_v50 = vpop.f32.mrb[36].mxu1 }
 0x2ee   : > { %v4541_v58 = vadd.f32 %v7667_v36, %v10501_v13  ;;  %v4353_v63 = vpop.f32.mrb[37].mxu0  ;;  %v6104_v19 = vadd.f32 %v7819_v50, %v10501_v13  ;;  %v5916_v14 = vpop.f32.mrb[37].mxu1 }
 0x2ef   : > { %v4539_v24 = vadd.f32 %v10501_v13, %v4353_v63  ;;  %v7668_v30 = vpop.f32.mrb[38].mxu0  ;;  %v6102_v9 = vadd.f32 %v10501_v13, %v5916_v14  ;;  %v7820_v40 = vpop.f32.mrb[38].mxu1 }
 0x2f0   : > { %v4577_v52 = vmax.f32 %v4541_v58, 0.0  ;;  %v4542_v37 = vadd.f32 %v7668_v30, %v10501_v13  ;;  %v4356_v8 = vpop.f32.mrb[39].mxu0  ;;  %v6140_v33 = vmax.f32 %v6104_v19, 0.0  ;;  %v6105_v60 = vadd.f32 %v7820_v40, %v10501_v13  ;;  %v5919_v21 = vpop.f32.mrb[39].mxu1 }
 0x2f1   : > { %v4575_v56 = vmax.f32 %v4539_v24, 0.0  ;;  %v4540_v10 = vadd.f32 %v10501_v13, %v4356_v8  ;;  %v6138_v34 = vmax.f32 %v6102_v9, 0.0  ;;  %v6103_v35 = vadd.f32 %v10501_v13, %v5919_v21 }
 0x2f2   : > { %v6792_v25 = vmul.f32 -1.442695, %v4577_v52  ;;  %v4578_v38 = vmax.f32 %v4542_v37, 0.0  ;;  %v6905_v55 = vmul.f32 -1.442695, %v6140_v33  ;;  %v6141_v7 = vmax.f32 %v6105_v60, 0.0 }
 0x2f3   : > { %v6790_v48 = vmul.f32 -1.442695, %v4575_v56  ;;  %v4576_v31 = vmax.f32 %v4540_v10, 0.0  ;;  %v6903_v17 = vmul.f32 -1.442695, %v6138_v34  ;;  %v6139_v22 = vmax.f32 %v6103_v35, 0.0 }
 0x2f4   : > { %8599 = vpow2.f32 %v6792_v25  ;;  %v6793_v44 = vmul.f32 -1.442695, %v4578_v38  ;;  %v6906_v15 = vmul.f32 -1.442695, %v6141_v7 }
 0x2f5   : > { %8601 = vpow2.f32 %v6905_v55  ;;  %v7671_v45 = vpop.f32.mrb[40].mxu0  ;;  %v6791_v53 = vmul.f32 -1.442695, %v4576_v31  ;;  %v7823_v61 = vpop.f32.mrb[40].mxu1  ;;  %v6904_v20 = vmul.f32 -1.442695, %v6139_v22 }
 0x2f6   : > { %8603 = vpow2.f32 %v6790_v48  ;;  %v4545_v1 = vadd.f32 %v7671_v45, %v10501_v13  ;;  %v4369_v23 = vpop.f32.mrb[41].mxu0  ;;  %v6108_v5 = vadd.f32 %v7823_v61, %v10501_v13  ;;  %v5932_v62 = vpop.f32.mrb[41].mxu1 }
 0x2f7   : > { %8605 = vpow2.f32 %v6903_v17  ;;  %v4543_v46 = vadd.f32 %v10501_v13, %v4369_v23  ;;  %v7672_v41 = vpop.f32.mrb[42].mxu0  ;;  %v6106_v11 = vadd.f32 %v10501_v13, %v5932_v62  ;;  %v7824_v27 = vpop.f32.mrb[42].mxu1 }
 0x2f8   : > { %8607 = vpow2.f32 %v6793_v44  ;;  %v4581_v6 = vmax.f32 %v4545_v1, 0.0  ;;  %v4546_v2 = vadd.f32 %v7672_v41, %v10501_v13  ;;  %v4372_v54 = vpop.f32.mrb[43].mxu0  ;;  %v6144_v47 = vmax.f32 %v6108_v5, 0.0  ;;  %v5935_v18 = vpop.f32.mrb[43].mxu1 }
 0x2f9   : > { %8609 = vpow2.f32 %v6906_v15  ;;  %v4579_v16 = vmax.f32 %v4543_v46, 0.0  ;;  %v6142_v51 = vmax.f32 %v6106_v11, 0.0  ;;  %v6109_v28 = vadd.f32 %v7824_v27, %v10501_v13 }
 0x2fa   : > { %8611 = vpow2.f32 %v6791_v53  ;;  %v6796_v3 = vmul.f32 -1.442695, %v4581_v6  ;;  %v4582_v32 = vmax.f32 %v4546_v2, 0.0  ;;  %v6909_v42 = vmul.f32 -1.442695, %v6144_v47 }
 0x2fb   : > { %8613 = vpow2.f32 %v6904_v20  ;;  %v6794_v39 = vmul.f32 -1.442695, %v4579_v16  ;;  %v6907_v43 = vmul.f32 -1.442695, %v6142_v51  ;;  %v4544_v63 = vadd.f32 %v10501_v13, %v4372_v54 }
 0x2fc   : > { %8615 = vpow2.f32 %v6796_v3  ;;  %v6797_v57 = vmul.f32 -1.442695, %v4582_v32  ;;  %v6145_v40 = vmax.f32 %v6109_v28, 0.0  ;;  %v6107_v56 = vadd.f32 %v10501_v13, %v5935_v18 }
 0x2fd   : > { %8617 = vpow2.f32 %v6909_v42  ;;  %v7675_v12 = vpop.f32.mrb[44].mxu0  ;;  %v7827_v49 = vpop.f32.mrb[44].mxu1  ;;  %v4580_v21 = vmax.f32 %v4544_v63, 0.0 }
 0x2fe   : > { %v8600_v26 = vpop.eup %8599  ;;  %8619 = vpow2.f32 %v6794_v39  ;;  %v4385_v59 = vpop.f32.mrb[45].mxu0  ;;  %v4549_v38 = vadd.f32 %v7675_v12, %v10501_v13  ;;  %v6910_v7 = vmul.f32 -1.442695, %v6145_v40  ;;  %v6112_v31 = vadd.f32 %v7827_v49, %v10501_v13 }
 0x2ff   : > { %v8602_v29 = vpop.eup %8601  ;;  %v4721_v4 = vadd.f32 1.0, %v8600_v26  ;;  %8621 = vpow2.f32 %v6907_v43  ;;  %v5948_v0 = vpop.f32.mrb[45].mxu1  ;;  %v6143_v45 = vmax.f32 %v6107_v56, 0.0  ;;  %v4547_v53 = vadd.f32 %v10501_v13, %v4385_v59 }
 0x300   : > { %v7676_v36 = vpop.f32.mrb[46].mxu0  ;;  %v8604_v58 = vpop.eup %8603  ;;  %v6284_v50 = vadd.f32 1.0, %v8602_v29  ;;  %8623 = vpow2.f32 %v6797_v57  ;;  %v6795_v5 = vmul.f32 -1.442695, %v4580_v21  ;;  %v6110_v46 = vadd.f32 %v10501_v13, %v5948_v0 }
 0x301   : > { %v7828_v19 = vpop.f32.mrb[46].mxu1  ;;  %v4388_v24 = vpop.f32.mrb[47].mxu0  ;;  %8625 = vrcp.f32 %v4721_v4  ;;  %v4719_v30 = vadd.f32 1.0, %v8604_v58  ;;  %v4585_v2 = vmax.f32 %v4549_v38, 0.0  ;;  %v4550_v27 = vadd.f32 %v7676_v36, %v10501_v13 }
 0x302   : > { %v8606_v14 = vpop.eup %8605  ;;  %v5951_v52 = vpop.f32.mrb[47].mxu1  ;;  %8627 = vrcp.f32 %v6284_v50  ;;  %v6148_v18 = vmax.f32 %v6112_v31, 0.0  ;;  %v6113_v3 = vadd.f32 %v7828_v19, %v10501_v13  ;;  %v4583_v42 = vmax.f32 %v4547_v53, 0.0 }
 0x303   : > { %v8608_v9 = vpop.eup %8607  ;;  %v6282_v37 = vadd.f32 1.0, %v8606_v14  ;;  %8629 = vrcp.f32 %v4719_v30  ;;  %v4548_v39 = vadd.f32 %v10501_v13, %v4388_v24  ;;  %v6908_v57 = vmul.f32 -1.442695, %v6143_v45 }
 0x304   : > { %v8610_v8 = vpop.eup %8609  ;;  %v4722_v33 = vadd.f32 1.0, %v8608_v9  ;;  %v6146_v12 = vmax.f32 %v6110_v46, 0.0  ;;  %v6111_v26 = vadd.f32 %v10501_v13, %v5951_v52  ;;  %v6800_v49 = vmul.f32 -1.442695, %v4585_v2 }
 0x305   : > { %v8612_v60 = vpop.eup %8611  ;;  %8631 = vrcp.f32 %v6282_v37  ;;  %v6285_v10 = vadd.f32 1.0, %v8610_v8  ;;  %v7679_v35 = vpop.f32.mrb[48].mxu0  ;;  %v4586_v59 = vmax.f32 %v4550_v27, 0.0  ;;  %v6913_v36 = vmul.f32 -1.442695, %v6148_v18 }
 0x306   : > { %v8614_v25 = vpop.eup %8613  ;;  %8633 = vrcp.f32 %v4722_v33  ;;  %v4720_v34 = vadd.f32 1.0, %v8612_v60  ;;  %v7831_v17 = vpop.f32.mrb[48].mxu1  ;;  %v4553_v29 = vadd.f32 %v7679_v35, %v10501_v13  ;;  %v6149_v58 = vmax.f32 %v6113_v3, 0.0 }
 0x307   : > { %v8616_v55 = vpop.eup %8615  ;;  %8635 = vrcp.f32 %v6285_v10  ;;  %v6283_v48 = vadd.f32 1.0, %v8614_v25  ;;  %v10521_v44 = vpop.f32.mrb[49].mxu0  ;;  %v6116_v50 = vadd.f32 %v7831_v17, %v10501_v13  ;;  %v6798_v14 = vmul.f32 -1.442695, %v4583_v42 }
 0x308   : > { %v8618_v22 = vpop.eup %8617  ;;  %8637 = vrcp.f32 %v4720_v34  ;;  %v4725_v15 = vadd.f32 1.0, %v8616_v55  ;;  %v10524_v1 = vpop.f32.mrb[49].mxu1  ;;  %v4584_v30 = vmax.f32 %v4548_v39, 0.0  ;;  %v6911_v40 = vmul.f32 -1.442695, %v6146_v12 }
 0x309   : > { %v10526_v61 = vpop.f32.mrb[50].mxu0  ;;  %v8620_v23 = vpop.eup %8619  ;;  %8639 = vrcp.f32 %v6283_v48  ;;  %v6288_v20 = vadd.f32 1.0, %v8618_v22  ;;  %v6147_v8 = vmax.f32 %v6111_v26, 0.0  ;;  %v6801_v10 = vmul.f32 -1.442695, %v4586_v59 }
 0x30a   : > { %v10529_v62 = vpop.f32.mrb[50].mxu1  ;;  %v10531_v41 = vpop.f32.mrb[51].mxu0  ;;  %8641 = vrcp.f32 %v4725_v15  ;;  %v4723_v11 = vadd.f32 1.0, %v8620_v23  ;;  %v4589_v21 = vmax.f32 %v4553_v29, 0.0  ;;  %v6914_v38 = vmul.f32 -1.442695, %v6149_v58 }
 0x30b   : > { %v8622_v6 = vpop.eup %8621  ;;  %v10534_v54 = vpop.f32.mrb[51].mxu1  ;;  %8643 = vrcp.f32 %v6288_v20  ;;  %v6152_v35 = vmax.f32 %v6116_v50, 0.0  ;;  %v6799_v48 = vmul.f32 -1.442695, %v4584_v30  ;;  %v6912_v31 = vmul.f32 -1.442695, %v6147_v8 }
 0x30c   : > { %v8624_v47 = vpop.eup %8623  ;;  %v6286_v16 = vadd.f32 1.0, %v8622_v6  ;;  %8645 = vrcp.f32 %v4723_v11  ;;  %v6804_v22 = vmul.f32 -1.442695, %v4589_v21  ;;  %v4551_v2 = vadd.f32 %v10501_v13, %v10521_v44 }
 0x30d   : > { %v8626_v51 = vpop.eup %8625  ;;  %v4726_v32 = vadd.f32 1.0, %v8624_v47  ;;  %v10544_v4 = vpop.f32.mrb[52].mxu0  ;;  %v6917_v53 = vmul.f32 -1.442695, %v6152_v35  ;;  %v6114_v42 = vadd.f32 %v10501_v13, %v10524_v1 }
 0x30e   : > { %v8628_v43 = vpop.eup %8627  ;;  %4829 = vst.msk [vmem:[%s9941_s30 + $0x250] sm:$0xff] %vm1700_vm2, %v8626_v51  ;;  %8647 = vrcp.f32 %v6286_v16  ;;  %v10549_v63 = vpop.f32.mrb[52].mxu1  ;;  %v4587_v12 = vmax.f32 %v4551_v2, 0.0 }
 0x30f   : > { %v8630_v28 = vpop.eup %8629  ;;  %6392 = vst.msk [vmem:[%s9941_s30 + $0x370] sm:$0xff] %vm1700_vm2, %v8628_v43  ;;  %8649 = vrcp.f32 %v4726_v32  ;;  %v10551_v19 = vpop.f32.mrb[53].mxu0 }
 0x310   : > { %v8632_v0 = vpop.eup %8631  ;;  %4827 = vst.msk [vmem:[%s9941_s30 + $0x240] sm:$0xff] %vm1700_vm2, %v8630_v28  ;;  %8651 = vpow2.f32 %v6910_v7  ;;  %v10555_v52 = vpop.f32.mrb[53].mxu1  ;;  %v6802_v8 = vmul.f32 -1.442695, %v4587_v12  ;;  %v4555_v2 = vadd.f32 %v10501_v13, %v10551_v19 }
 0x311   : > { %v8634_v24 = vpop.eup %8633  ;;  %6390 = vst.msk [vmem:[%s9941_s30 + $0x360] sm:$0xff] %vm1700_vm2, %v8632_v0  ;;  %8653 = vpow2.f32 %v6795_v5  ;;  %v10557_v9 = vpop.f32.mrb[54].mxu0 }
 0x312   : > { %v8636_v37 = vpop.eup %8635  ;;  %4830 = vst.msk [vmem:[%s9941_s30 + $0x258] sm:$0xff] %vm1700_vm2, %v8634_v24  ;;  %8655 = vpow2.f32 %v6908_v57  ;;  %v10561_v33 = vpop.f32.mrb[54].mxu1  ;;  %v4558_v19 = vadd.f32 %v10557_v9, %v10501_v13 }
 0x313   : > { %v10563_v56 = vpop.f32.mrb[55].mxu0  ;;  %v8638_v60 = vpop.eup %8637  ;;  %6393 = vst.msk [vmem:[%s9941_s30 + $0x378] sm:$0xff] %vm1700_vm2, %v8636_v37  ;;  %8657 = vpow2.f32 %v6800_v49  ;;  %v4554_v49 = vadd.f32 %v10526_v61, %v10501_v13 }
 0x314   : > { %v10567_v25 = vpop.f32.mrb[55].mxu1  ;;  %v8640_v34 = vpop.eup %8639  ;;  %4828 = vst.msk [vmem:[%s9941_s30 + $0x248] sm:$0xff] %vm1700_vm2, %v8638_v60  ;;  %8659 = vpow2.f32 %v6913_v36  ;;  %v6150_v36 = vmax.f32 %v6114_v42, 0.0  ;;  %v4552_v60 = vadd.f32 %v10501_v13, %v10531_v41  ;;  %v4557_v41 = vadd.f32 %v10544_v4, %v10501_v13 }
 0x315   : > { %v8642_v55 = vpop.eup %8641  ;;  %6391 = vst.msk [vmem:[%s9941_s30 + $0x368] sm:$0xff] %vm1700_vm2, %v8640_v34  ;;  %8661 = vpow2.f32 %v6798_v14  ;;  %v10577_v15 = vpop.f32.mrb[56].mxu0  ;;  %v6117_v14 = vadd.f32 %v10529_v62, %v10501_v13  ;;  %v4590_v35 = vmax.f32 %v4554_v49, 0.0  ;;  %v6115_v62 = vadd.f32 %v10501_v13, %v10534_v54 }
 0x316   : > { %v8644_v7 = vpop.eup %8643  ;;  %4833 = vst.msk [vmem:[%s9941_s30 + $0x270] sm:$0xff] %vm1700_vm2, %v8642_v55  ;;  %8663 = vpow2.f32 %v6911_v40  ;;  %v10581_v23 = vpop.f32.mrb[56].mxu1 }
 0x317   : > { %v8646_v17 = vpop.eup %8645  ;;  %6396 = vst.msk [vmem:[%s9941_s30 + $0x390] sm:$0xff] %vm1700_vm2, %v8644_v7  ;;  %8665 = vpow2.f32 %v6801_v10  ;;  %v10583_v20 = vpop.f32.mrb[57].mxu0  ;;  %v6151_v4 = vmax.f32 %v6115_v62, 0.0 }
 0x318   : > { %v8648_v45 = vpop.eup %8647  ;;  %4831 = vst.msk [vmem:[%s9941_s30 + $0x260] sm:$0xff] %vm1700_vm2, %v8646_v17  ;;  %8667 = vpow2.f32 %v6914_v38  ;;  %v10587_v46 = vpop.f32.mrb[57].mxu1 }
 0x319   : > { %v8650_v5 = vpop.eup %8649  ;;  %6394 = vst.msk [vmem:[%s9941_s30 + $0x380] sm:$0xff] %vm1700_vm2, %v8648_v45  ;;  %8669 = vpow2.f32 %v6799_v48  ;;  %v10589_v6 = vpop.f32.mrb[58].mxu0  ;;  %v6153_v45 = vmax.f32 %v6117_v14, 0.0  ;;  %v6916_v14 = vmul.f32 -1.442695, %v6151_v4 }
 0x31a   : > { %v8652_v11 = vpop.eup %8651  ;;  %4834 = vst.msk [vmem:[%s9941_s30 + $0x278] sm:$0xff] %vm1700_vm2, %v8650_v5  ;;  %8671 = vpow2.f32 %v6912_v31  ;;  %v10595_v27 = vpop.f32.mrb[58].mxu1  ;;  %v6915_v31 = vmul.f32 -1.442695, %v6150_v36  ;;  %v4556_v36 = vadd.f32 %v10501_v13, %v10563_v56  ;;  %v4594_v56 = vmax.f32 %v4558_v19, 0.0 }
 0x31b   : > { %v10597_v47 = vpop.f32.mrb[59].mxu0  ;;  %v8654_v16 = vpop.eup %8653  ;;  %v6289_v18 = vadd.f32 1.0, %v8652_v11  ;;  %8673 = vpow2.f32 %v6804_v22  ;;  %v4588_v11 = vmax.f32 %v4552_v60, 0.0 }
 0x31c   : > { %v10599_v3 = vpop.f32.mrb[59].mxu1  ;;  %v8656_v51 = vpop.eup %8655  ;;  %v4724_v32 = vadd.f32 1.0, %v8654_v16  ;;  %8675 = vpow2.f32 %v6917_v53  ;;  %v6120_v53 = vadd.f32 %v10549_v63, %v10501_v13  ;;  %v6805_v63 = vmul.f32 -1.442695, %v4590_v35 }
 0x31d   : > { %v8658_v39 = vpop.eup %8657  ;;  %8677 = vrcp.f32 %v6289_v18  ;;  %v6287_v43 = vadd.f32 1.0, %v8656_v51  ;;  %v10605_v59 = vpop.f32.mrb[60].mxu0  ;;  %v6118_v51 = vadd.f32 %v10501_v13, %v10555_v52  ;;  %v6918_v52 = vmul.f32 -1.442695, %v6153_v45 }
 0x31e   : > { %v8660_v57 = vpop.eup %8659  ;;  %8679 = vrcp.f32 %v4724_v32  ;;  %v4729_v44 = vadd.f32 1.0, %v8658_v39  ;;  %v10607_v1 = vpop.f32.mrb[60].mxu1  ;;  %v4593_v39 = vmax.f32 %v4557_v41, 0.0  ;;  %v6156_v12 = vmax.f32 %v6120_v53, 0.0 }
 0x31f   : > { %v8662_v26 = vpop.eup %8661  ;;  %8681 = vrcp.f32 %v6287_v43  ;;  %v6292_v28 = vadd.f32 1.0, %v8660_v57  ;;  %v10609_v58 = vpop.f32.mrb[61].mxu0  ;;  %v6809_v45 = vmul.f32 -1.442695, %v4594_v56 }
 0x320   : > { %v8664_v29 = vpop.eup %8663  ;;  %8683 = vrcp.f32 %v4729_v44  ;;  %v4727_v0 = vadd.f32 1.0, %v8662_v26  ;;  %v10613_v30 = vpop.f32.mrb[61].mxu1  ;;  %v6121_v26 = vadd.f32 %v10561_v33, %v10501_v13  ;;  %v6808_v60 = vmul.f32 -1.442695, %v4593_v39 }
 0x321   : > { %v8666_v50 = vpop.eup %8665  ;;  %8685 = vrcp.f32 %v6292_v28  ;;  %v6290_v24 = vadd.f32 1.0, %v8664_v29  ;;  %v10615_v37 = vpop.f32.mrb[62].mxu0  ;;  %v6803_v29 = vmul.f32 -1.442695, %v4588_v11 }
 0x322   : > { %v8668_v61 = vpop.eup %8667  ;;  %8687 = vrcp.f32 %v4727_v0  ;;  %v4730_v40 = vadd.f32 1.0, %v8666_v50  ;;  %v10619_v10 = vpop.f32.mrb[62].mxu1  ;;  %v4591_v0 = vmax.f32 %v4555_v2, 0.0  ;;  %v6157_v35 = vmax.f32 %v6121_v26, 0.0 }
 0x323   : > { %v10621_v21 = vpop.f32.mrb[63].mxu0  ;;  %v8670_v34 = vpop.eup %8669  ;;  %8689 = vrcp.f32 %v6290_v24  ;;  %v6293_v38 = vadd.f32 1.0, %v8668_v61  ;;  %v6154_v61 = vmax.f32 %v6118_v51, 0.0 }
 0x324   : > { %v10625_v55 = vpop.f32.mrb[63].mxu1  ;;  %v8672_v48 = vpop.eup %8671  ;;  %8691 = vrcp.f32 %v4730_v40  ;;  %v4728_v7 = vadd.f32 1.0, %v8670_v34  ;;  %v6922_v11 = vmul.f32 -1.442695, %v6157_v35 }
 0x325   : > { %v8674_v17 = vpop.eup %8673  ;;  %8693 = vrcp.f32 %v6293_v38  ;;  %v6291_v22 = vadd.f32 1.0, %v8672_v48  ;;  %v10635_v32 = vpop.f32.mrb[64].mxu0  ;;  %v6921_v38 = vmul.f32 -1.442695, %v6156_v12  ;;  %v6806_v48 = vmul.f32 -1.442695, %v4591_v0 }
 0x326   : > { %v8676_v5 = vpop.eup %8675  ;;  %8695 = vrcp.f32 %v4728_v7  ;;  %v4733_v54 = vadd.f32 1.0, %v8674_v17  ;;  %v10641_v43 = vpop.f32.mrb[64].mxu1  ;;  %v4592_v7 = vmax.f32 %v4556_v36, 0.0  ;;  %v6919_v41 = vmul.f32 -1.442695, %v6154_v61 }
 0x327   : > { %v8678_v16 = vpop.eup %8677  ;;  %8697 = vrcp.f32 %v6291_v22  ;;  %v6296_v18 = vadd.f32 1.0, %v8676_v5  ;;  %v10643_v57 = vpop.f32.mrb[65].mxu0 }
 0x328   : > { %v8680_v42 = vpop.eup %8679  ;;  %6397 = vst.msk [vmem:[%s9941_s30 + $0x398] sm:$0xff] %vm1700_vm2, %v8678_v16  ;;  %8699 = vrcp.f32 %v4733_v54  ;;  %v10649_v28 = vpop.f32.mrb[65].mxu1  ;;  %v6807_v4 = vmul.f32 -1.442695, %v4592_v7 }
 0x329   : > { %v8682_v44 = vpop.eup %8681  ;;  %4832 = vst.msk [vmem:[%s9941_s30 + $0x268] sm:$0xff] %vm1700_vm2, %v8680_v42  ;;  %8701 = vrcp.f32 %v6296_v18  ;;  %v10651_v49 = vpop.f32.mrb[66].mxu0 }
 0x32a   : > { %v8684_v9 = vpop.eup %8683  ;;  %6395 = vst.msk [vmem:[%s9941_s30 + $0x388] sm:$0xff] %vm1700_vm2, %v8682_v44  ;;  %8703 = vpow2.f32 %v6802_v8  ;;  %v10657_v50 = vpop.f32.mrb[66].mxu1  ;;  %v6119_v44 = vadd.f32 %v10501_v13, %v10567_v25  ;;  %v6124_v25 = vadd.f32 %v10581_v23, %v10501_v13 }
 0x32b   : > { %v10659_v24 = vpop.f32.mrb[67].mxu0  ;;  %v8686_v33 = vpop.eup %8685  ;;  %4837 = vst.msk [vmem:[%s9941_s30 + $0x290] sm:$0xff] %vm1700_vm2, %v8684_v9  ;;  %8705 = vpow2.f32 %v6915_v31 }
 0x32c   : > { %v10663_v40 = vpop.f32.mrb[67].mxu1  ;;  %v8688_v8 = vpop.eup %8687  ;;  %6400 = vst.msk [vmem:[%s9941_s30 + $0x3b0] sm:$0xff] %vm1700_vm2, %v8686_v33  ;;  %8707 = vpow2.f32 %v6805_v63  ;;  %v6155_v61 = vmax.f32 %v6119_v44, 0.0 }
 0x32d   : > { %v8690_v34 = vpop.eup %8689  ;;  %4835 = vst.msk [vmem:[%s9941_s30 + $0x280] sm:$0xff] %vm1700_vm2, %v8688_v8  ;;  %8709 = vpow2.f32 %v6918_v52  ;;  %v10673_v17 = vpop.f32.mrb[68].mxu0 }
 0x32e   : > { %v8692_v62 = vpop.eup %8691  ;;  %6398 = vst.msk [vmem:[%s9941_s30 + $0x3a0] sm:$0xff] %vm1700_vm2, %v8690_v34  ;;  %8711 = vpow2.f32 %v6803_v29  ;;  %v10677_v53 = vpop.f32.mrb[68].mxu1  ;;  %v4561_v29 = vadd.f32 %v10577_v15, %v10501_v13 }
 0x32f   : > { %v8694_v31 = vpop.eup %8693  ;;  %4838 = vst.msk [vmem:[%s9941_s30 + $0x298] sm:$0xff] %vm1700_vm2, %v8692_v62  ;;  %8713 = vpow2.f32 %v6916_v14  ;;  %v10679_v5 = vpop.f32.mrb[69].mxu0  ;;  %v4559_v62 = vadd.f32 %v10501_v13, %v10583_v20  ;;  %v6125_v20 = vadd.f32 %v10595_v27, %v10501_v13 }
 0x330   : > { %v8696_v22 = vpop.eup %8695  ;;  %6401 = vst.msk [vmem:[%s9941_s30 + $0x3b8] sm:$0xff] %vm1700_vm2, %v8694_v31  ;;  %8715 = vpow2.f32 %v6808_v60  ;;  %v10683_v2 = vpop.f32.mrb[69].mxu1  ;;  %v6920_v31 = vmul.f32 -1.442695, %v6155_v61 }
 0x331   : > { %v8698_v54 = vpop.eup %8697  ;;  %4836 = vst.msk [vmem:[%s9941_s30 + $0x288] sm:$0xff] %vm1700_vm2, %v8696_v22  ;;  %8717 = vpow2.f32 %v6921_v38  ;;  %v10685_v16 = vpop.f32.mrb[70].mxu0  ;;  %v4597_v38 = vmax.f32 %v4561_v29, 0.0  ;;  %v4595_v44 = vmax.f32 %v4559_v62, 0.0 }
 0x332   : > { %v8700_v18 = vpop.eup %8699  ;;  %6399 = vst.msk [vmem:[%s9941_s30 + $0x3a8] sm:$0xff] %vm1700_vm2, %v8698_v54  ;;  %8719 = vpow2.f32 %v6806_v48  ;;  %v10689_v51 = vpop.f32.mrb[70].mxu1  ;;  %v4562_v54 = vadd.f32 %v10589_v6, %v10501_v13 }
 0x333   : > { %v10691_v42 = vpop.f32.mrb[71].mxu0  ;;  %v8702_v63 = vpop.eup %8701  ;;  %4841 = vst.msk [vmem:[%s9941_s30 + $0x2b0] sm:$0xff] %vm1700_vm2, %v8700_v18  ;;  %8721 = vpow2.f32 %v6919_v41  ;;  %v6122_v41 = vadd.f32 %v10501_v13, %v10587_v46  ;;  %v4560_v46 = vadd.f32 %v10501_v13, %v10597_v47 }
 0x334   : > { %v10695_v39 = vpop.f32.mrb[71].mxu1  ;;  %v8704_v19 = vpop.eup %8703  ;;  %6404 = vst.msk [vmem:[%s9941_s30 + $0x3d0] sm:$0xff] %vm1700_vm2, %v8702_v63  ;;  %8723 = vpow2.f32 %v6809_v45  ;;  %v6160_v45 = vmax.f32 %v6124_v25, 0.0  ;;  %v4598_v27 = vmax.f32 %v4562_v54, 0.0 }
 0x335   : > { %v8706_v52 = vpop.eup %8705  ;;  %v4731_v12 = vadd.f32 1.0, %v8704_v19  ;;  %8725 = vpow2.f32 %v6922_v11  ;;  %v6158_v6 = vmax.f32 %v6122_v41, 0.0 }
 0x336   : > { %v8708_v26 = vpop.eup %8707  ;;  %v6294_v9 = vadd.f32 1.0, %v8706_v52  ;;  %8727 = vpow2.f32 %v6807_v4  ;;  %v6812_v4 = vmul.f32 -1.442695, %v4597_v38  ;;  %v6925_v47 = vmul.f32 -1.442695, %v6160_v45 }
 0x337   : > { %v8710_v0 = vpop.eup %8709  ;;  %8729 = vrcp.f32 %v4731_v12  ;;  %v4734_v36 = vadd.f32 1.0, %v8708_v26  ;;  %v6123_v26 = vadd.f32 %v10501_v13, %v10599_v3  ;;  %v6810_v3 = vmul.f32 -1.442695, %v4595_v44 }
 0x338   : > { %v8712_v33 = vpop.eup %8711  ;;  %8731 = vrcp.f32 %v6294_v9  ;;  %v6297_v14 = vadd.f32 1.0, %v8710_v0  ;;  %v4565_v0 = vadd.f32 %v10605_v59, %v10501_v13  ;;  %v4563_v59 = vadd.f32 %v10501_v13, %v10609_v58 }
 0x339   : > { %v8714_v8 = vpop.eup %8713  ;;  %8733 = vrcp.f32 %v4734_v36  ;;  %v4732_v60 = vadd.f32 1.0, %v8712_v33  ;;  %v6161_v33 = vmax.f32 %v6125_v20, 0.0  ;;  %v6923_v25 = vmul.f32 -1.442695, %v6158_v6 }
 0x33a   : > { %v8716_v56 = vpop.eup %8715  ;;  %8735 = vrcp.f32 %v6297_v14  ;;  %v6295_v34 = vadd.f32 1.0, %v8714_v8  ;;  %v6128_v14 = vadd.f32 %v10607_v1, %v10501_v13  ;;  %v4596_v8 = vmax.f32 %v4560_v46, 0.0 }
 0x33b   : > { %v8718_v35 = vpop.eup %8717  ;;  %8737 = vrcp.f32 %v4732_v60  ;;  %v4737_v15 = vadd.f32 1.0, %v8716_v56  ;;  %v6159_v56 = vmax.f32 %v6123_v26, 0.0  ;;  %v6126_v1 = vadd.f32 %v10501_v13, %v10613_v30 }
 0x33c   : > { %v8720_v48 = vpop.eup %8719  ;;  %8739 = vrcp.f32 %v6295_v34  ;;  %v6300_v7 = vadd.f32 1.0, %v8718_v35  ;;  %v6813_v38 = vmul.f32 -1.442695, %v4598_v27  ;;  %v4601_v35 = vmax.f32 %v4565_v0, 0.0 }
 0x33d   : > { %v8722_v22 = vpop.eup %8721  ;;  %8741 = vrcp.f32 %v4737_v15  ;;  %v4735_v23 = vadd.f32 1.0, %v8720_v48  ;;  %v6926_v58 = vmul.f32 -1.442695, %v6161_v33  ;;  %v6164_v62 = vmax.f32 %v6128_v14, 0.0 }
 0x33e   : > { %v8724_v11 = vpop.eup %8723  ;;  %8743 = vrcp.f32 %v6300_v7  ;;  %v6298_v18 = vadd.f32 1.0, %v8722_v22  ;;  %v6811_v30 = vmul.f32 -1.442695, %v4596_v8  ;;  %v4599_v7 = vmax.f32 %v4563_v59, 0.0 }
 0x33f   : > { %v8726_v63 = vpop.eup %8725  ;;  %8745 = vrcp.f32 %v4735_v23  ;;  %v4738_v19 = vadd.f32 1.0, %v8724_v11  ;;  %v6924_v41 = vmul.f32 -1.442695, %v6159_v56  ;;  %v6162_v22 = vmax.f32 %v6126_v1, 0.0 }
 0x340   : > { %v8728_v52 = vpop.eup %8727  ;;  %8747 = vrcp.f32 %v6298_v18  ;;  %v6301_v12 = vadd.f32 1.0, %v8726_v63  ;;  %v6816_v45 = vmul.f32 -1.442695, %v4601_v35  ;;  %v6929_v11 = vmul.f32 -1.442695, %v6164_v62 }
 0x341   : > { %v8730_v9 = vpop.eup %8729  ;;  %8749 = vrcp.f32 %v4738_v19  ;;  %v4736_v29 = vadd.f32 1.0, %v8728_v52  ;;  %v6927_v63 = vmul.f32 -1.442695, %v6162_v22  ;;  %v4566_v46 = vadd.f32 %v10615_v37, %v10501_v13 }
 0x342   : > { %v8732_v36 = vpop.eup %8731  ;;  %4839 = vst.msk [vmem:[%s9941_s30 + $0x2a0] sm:$0xff] %vm1700_vm2, %v8730_v9  ;;  %8751 = vrcp.f32 %v6301_v12  ;;  %v6129_v27 = vadd.f32 %v10619_v10, %v10501_v13  ;;  %v4564_v37 = vadd.f32 %v10501_v13, %v10621_v21  ;;  %v6127_v8 = vadd.f32 %v10501_v13, %v10625_v55 }
 0x343   : > { %v8734_v61 = vpop.eup %8733  ;;  %6402 = vst.msk [vmem:[%s9941_s30 + $0x3c0] sm:$0xff] %vm1700_vm2, %v8732_v36  ;;  %8753 = vrcp.f32 %v4736_v29 }
 0x344   : > { %v8736_v60 = vpop.eup %8735  ;;  %4842 = vst.msk [vmem:[%s9941_s30 + $0x2b8] sm:$0xff] %vm1700_vm2, %v8734_v61  ;;  %8755 = vpow2.f32 %v6920_v31  ;;  %v6165_v10 = vmax.f32 %v6129_v27, 0.0  ;;  %v4600_v35 = vmax.f32 %v4564_v37, 0.0  ;;  %v6163_v62 = vmax.f32 %v6127_v8, 0.0 }
 0x345   : > { %v8738_v34 = vpop.eup %8737  ;;  %6405 = vst.msk [vmem:[%s9941_s30 + $0x3d8] sm:$0xff] %vm1700_vm2, %v8736_v60  ;;  %8757 = vpow2.f32 %v6812_v4  ;;  %v6814_v4 = vmul.f32 -1.442695, %v4599_v7 }
 0x346   : > { %v8740_v15 = vpop.eup %8739  ;;  %4840 = vst.msk [vmem:[%s9941_s30 + $0x2a8] sm:$0xff] %vm1700_vm2, %v8738_v34  ;;  %8759 = vpow2.f32 %v6925_v47  ;;  %v4602_v47 = vmax.f32 %v4566_v46, 0.0  ;;  %v4569_v34 = vadd.f32 %v10635_v32, %v10501_v13 }
 0x347   : > { %v8742_v48 = vpop.eup %8741  ;;  %6403 = vst.msk [vmem:[%s9941_s30 + $0x3c8] sm:$0xff] %vm1700_vm2, %v8740_v15  ;;  %8761 = vpow2.f32 %v6810_v3  ;;  %v6132_v15 = vadd.f32 %v10641_v43, %v10501_v13 }
 0x348   : > { %v8744_v31 = vpop.eup %8743  ;;  %4845 = vst.msk [vmem:[%s9941_s30 + $0x2d0] sm:$0xff] %vm1700_vm2, %v8742_v48  ;;  %8763 = vpow2.f32 %v6923_v25  ;;  %v6817_v1 = vmul.f32 -1.442695, %v4602_v47  ;;  %v10766_v48 = vld [vmem:[%s10867_s2] ss:$0 sm:$0xff]  ;;  %v4605_v22 = vmax.f32 %v4569_v34, 0.0 }
 0x349   : > { %v8746_v23 = vpop.eup %8745  ;;  %6408 = vst.msk [vmem:[%s9941_s30 + $0x3f0] sm:$0xff] %vm1700_vm2, %v8744_v31  ;;  %8765 = vpow2.f32 %v6813_v38  ;;  %v6930_v31 = vmul.f32 -1.442695, %v6165_v10  ;;  %v6130_v13 = vadd.f32 %v10766_v48, %v10649_v28  ;;  %v6815_v28 = vmul.f32 -1.442695, %v4600_v35 }
 0x34a   : > { %v8748_v54 = vpop.eup %8747  ;;  %4843 = vst.msk [vmem:[%s9941_s30 + $0x2c0] sm:$0xff] %vm1700_vm2, %v8746_v23  ;;  %8767 = vpow2.f32 %v6926_v58  ;;  %v4570_v23 = vadd.f32 %v10766_v48, %v10651_v49  ;;  %v6928_v49 = vmul.f32 -1.442695, %v6163_v62  ;;  %v6820_v46 = vmul.f32 -1.442695, %v4605_v22 }
 0x34b   : > { %v8750_v18 = vpop.eup %8749  ;;  %6406 = vst.msk [vmem:[%s9941_s30 + $0x3e0] sm:$0xff] %vm1700_vm2, %v8748_v54  ;;  %8769 = vpow2.f32 %v6811_v30  ;;  %v4567_v30 = vadd.f32 %v10766_v48, %v10643_v57  ;;  %v6168_v57 = vmax.f32 %v6132_v15, 0.0  ;;  %v6136_v62 = vadd.f32 %v10766_v48, %v10677_v53 }
 0x34c   : > { %v8752_v20 = vpop.eup %8751  ;;  %4846 = vst.msk [vmem:[%s9941_s30 + $0x2d8] sm:$0xff] %vm1700_vm2, %v8750_v18  ;;  %8771 = vpow2.f32 %v6924_v41 }
 0x34d   : > { %v8754_v19 = vpop.eup %8753  ;;  %6409 = vst.msk [vmem:[%s9941_s30 + $0x3f8] sm:$0xff] %vm1700_vm2, %v8752_v20  ;;  %8773 = vpow2.f32 %v6816_v45  ;;  %v4568_v20 = vadd.f32 %v10766_v48, %v10659_v24  ;;  %v4573_v24 = vadd.f32 %v10766_v48, %v10673_v17 }
 0x34e   : > { %v8756_v44 = vpop.eup %8755  ;;  %4844 = vst.msk [vmem:[%s9941_s30 + $0x2c8] sm:$0xff] %vm1700_vm2, %v8754_v19  ;;  %8775 = vpow2.f32 %v6929_v11  ;;  %v6133_v11 = vadd.f32 %v10766_v48, %v10657_v50  ;;  %v6166_v19 = vmax.f32 %v6130_v13, 0.0  ;;  %v6131_v50 = vadd.f32 %v10766_v48, %v10663_v40 }
 0x34f   : > { %v8758_v52 = vpop.eup %8757  ;;  %v6299_v12 = vadd.f32 1.0, %v8756_v44  ;;  %8777 = vpow2.f32 %v6814_v4  ;;  %v4603_v4 = vmax.f32 %v4567_v30, 0.0 }
 0x350   : > { %v8760_v6 = vpop.eup %8759  ;;  %v4741_v26 = vadd.f32 1.0, %v8758_v52  ;;  %8779 = vpow2.f32 %v6927_v63  ;;  %v4606_v52 = vmax.f32 %v4570_v23, 0.0  ;;  %v6931_v17 = vmul.f32 -1.442695, %v6166_v19 }
 0x351   : > { %v8762_v9 = vpop.eup %8761  ;;  %8781 = vrcp.f32 %v6299_v12  ;;  %v6304_v29 = vadd.f32 1.0, %v8760_v6  ;;  %v6933_v6 = vmul.f32 -1.442695, %v6168_v57  ;;  %v6818_v40 = vmul.f32 -1.442695, %v4603_v4 }
 0x352   : > { %v8764_v0 = vpop.eup %8763  ;;  %8783 = vrcp.f32 %v4741_v26  ;;  %v4739_v36 = vadd.f32 1.0, %v8762_v9  ;;  %v6169_v26 = vmax.f32 %v6133_v11, 0.0  ;;  %v6821_v47 = vmul.f32 -1.442695, %v4606_v52 }
 0x353   : > { %v8766_v33 = vpop.eup %8765  ;;  %8785 = vrcp.f32 %v6304_v29  ;;  %v6302_v14 = vadd.f32 1.0, %v8764_v0  ;;  %v4604_v29 = vmax.f32 %v4568_v20, 0.0  ;;  %v6167_v0 = vmax.f32 %v6131_v50, 0.0 }
 0x354   : > { %v8768_v61 = vpop.eup %8767  ;;  %8787 = vrcp.f32 %v4739_v36  ;;  %v4742_v3 = vadd.f32 1.0, %v8766_v33  ;;  %v4609_v33 = vmax.f32 %v4573_v24, 0.0  ;;  %v6934_v37 = vmul.f32 -1.442695, %v6169_v26 }
 0x355   : > { %v8770_v59 = vpop.eup %8769  ;;  %8789 = vrcp.f32 %v6302_v14  ;;  %v6305_v60 = vadd.f32 1.0, %v8768_v61  ;;  %v4574_v23 = vadd.f32 %v10766_v48, %v10685_v16  ;;  %v6137_v57 = vadd.f32 %v10766_v48, %v10689_v51 }
 0x356   : > { %v8772_v25 = vpop.eup %8771  ;;  %8791 = vrcp.f32 %v4742_v3  ;;  %v4740_v56 = vadd.f32 1.0, %v8770_v59  ;;  %v6819_v3 = vmul.f32 -1.442695, %v4604_v29  ;;  %v6932_v59 = vmul.f32 -1.442695, %v6167_v0 }
 0x357   : > { %v8774_v38 = vpop.eup %8773  ;;  %8793 = vrcp.f32 %v6305_v60  ;;  %v6303_v21 = vadd.f32 1.0, %v8772_v25  ;;  %v6824_v10 = vmul.f32 -1.442695, %v4609_v33  ;;  %v6135_v16 = vadd.f32 %v10766_v48, %v10695_v39 }
 0x358   : > { %v8776_v58 = vpop.eup %8775  ;;  %8795 = vrcp.f32 %v4740_v56  ;;  %v4745_v55 = vadd.f32 1.0, %v8774_v38  ;;  %v4610_v19 = vmax.f32 %v4574_v23, 0.0 }
 0x359   : > { %v8778_v32 = vpop.eup %8777  ;;  %8797 = vrcp.f32 %v6303_v21  ;;  %v6308_v7 = vadd.f32 1.0, %v8776_v58 }
 0x35a   : > { %v8780_v43 = vpop.eup %8779  ;;  %8799 = vrcp.f32 %v4745_v55  ;;  %v4743_v41 = vadd.f32 1.0, %v8778_v32 }
 0x35b   : > { %v8782_v45 = vpop.eup %8781  ;;  %8801 = vrcp.f32 %v6308_v7  ;;  %v6306_v54 = vadd.f32 1.0, %v8780_v43  ;;  %v4571_v7 = vadd.f32 %v10766_v48, %v10679_v5  ;;  %v6134_v43 = vadd.f32 %v10766_v48, %v10683_v2 }
 0x35c   : > { %v8784_v18 = vpop.eup %8783  ;;  %6407 = vst.msk [vmem:[%s9941_s30 + $0x3e8] sm:$0xff] %vm1700_vm2, %v8782_v45  ;;  %8803 = vrcp.f32 %v4743_v41  ;;  %v4572_v2 = vadd.f32 %v10766_v48, %v10691_v42  ;;  %v6171_v48 = vmax.f32 %v6135_v16, 0.0 }
 0x35d   : > { %v8786_v63 = vpop.eup %8785  ;;  %4849 = vst.msk [vmem:[%s9941_s30 + $0x2f0] sm:$0xff] %vm1700_vm2, %v8784_v18  ;;  %8805 = vrcp.f32 %v6306_v54  ;;  %v6172_v54 = vmax.f32 %v6136_v62, 0.0  ;;  %v4607_v18 = vmax.f32 %v4571_v7, 0.0  ;;  %v6170_v20 = vmax.f32 %v6134_v43, 0.0 }
 0x35e   : > { %v8788_v44 = vpop.eup %8787  ;;  %6412 = vst.msk [vmem:[%s9941_s30 + $0x410] sm:$0xff] %vm1700_vm2, %v8786_v63  ;;  %8807 = vpow2.f32 %v6817_v1 }
 0x35f   : > { %v8790_v12 = vpop.eup %8789  ;;  %4847 = vst.msk [vmem:[%s9941_s30 + $0x2e0] sm:$0xff] %vm1700_vm2, %v8788_v44  ;;  %8809 = vpow2.f32 %v6930_v31  ;;  %v6937_v44 = vmul.f32 -1.442695, %v6172_v54  ;;  %v6822_v24 = vmul.f32 -1.442695, %v4607_v18 }
 0x360   : > { %v8792_v9 = vpop.eup %8791  ;;  %6410 = vst.msk [vmem:[%s9941_s30 + $0x400] sm:$0xff] %vm1700_vm2, %v8790_v12  ;;  %8811 = vpow2.f32 %v6815_v28  ;;  %v4608_v12 = vmax.f32 %v4572_v2, 0.0  ;;  %v6935_v39 = vmul.f32 -1.442695, %v6170_v20 }
 0x361   : > { %v8794_v27 = vpop.eup %8793  ;;  %4850 = vst.msk [vmem:[%s9941_s30 + $0x2f8] sm:$0xff] %vm1700_vm2, %v8792_v9  ;;  %8813 = vpow2.f32 %v6928_v49  ;;  %v6825_v9 = vmul.f32 -1.442695, %v4610_v19 }
 0x362   : > { %v8796_v36 = vpop.eup %8795  ;;  %6413 = vst.msk [vmem:[%s9941_s30 + $0x418] sm:$0xff] %vm1700_vm2, %v8794_v27  ;;  %8815 = vpow2.f32 %v6820_v46  ;;  %v6173_v46 = vmax.f32 %v6137_v57, 0.0 }
 0x363   : > { %v8798_v14 = vpop.eup %8797  ;;  %4848 = vst.msk [vmem:[%s9941_s30 + $0x2e8] sm:$0xff] %vm1700_vm2, %v8796_v36  ;;  %8817 = vpow2.f32 %v6933_v6  ;;  %v6936_v36 = vmul.f32 -1.442695, %v6171_v48 }
 0x364   : > { %v8800_v61 = vpop.eup %8799  ;;  %6411 = vst.msk [vmem:[%s9941_s30 + $0x408] sm:$0xff] %vm1700_vm2, %v8798_v14  ;;  %8819 = vpow2.f32 %v6818_v40  ;;  %v6938_v29 = vmul.f32 -1.442695, %v6173_v46 }
 0x365   : > { %v8802_v8 = vpop.eup %8801  ;;  %4853 = vst.msk [vmem:[%s9941_s30 + $0x310] sm:$0xff] %vm1700_vm2, %v8800_v61  ;;  %8821 = vpow2.f32 %v6931_v17  ;;  %v6823_v17 = vmul.f32 -1.442695, %v4608_v12 }
 0x366   : > { %v8804_v60 = vpop.eup %8803  ;;  %6416 = vst.msk [vmem:[%s9941_s30 + $0x430] sm:$0xff] %vm1700_vm2, %v8802_v8  ;;  %8823 = vpow2.f32 %v6821_v47 }
 0x367   : > { %v8806_v25 = vpop.eup %8805  ;;  %4851 = vst.msk [vmem:[%s9941_s30 + $0x300] sm:$0xff] %vm1700_vm2, %v8804_v60  ;;  %8825 = vpow2.f32 %v6934_v37 }
 0x368   : > { %v8808_v56 = vpop.eup %8807  ;;  %6414 = vst.msk [vmem:[%s9941_s30 + $0x420] sm:$0xff] %vm1700_vm2, %v8806_v25  ;;  %8827 = vpow2.f32 %v6819_v3 }
 0x369   : > { %v8810_v1 = vpop.eup %8809  ;;  %v4746_v34 = vadd.f32 1.0, %v8808_v56  ;;  %8829 = vpow2.f32 %v6932_v59 }
 0x36a   : > { %v8812_v38 = vpop.eup %8811  ;;  %v6309_v21 = vadd.f32 1.0, %v8810_v1  ;;  %8831 = vpow2.f32 %v6824_v10 }
 0x36b   : > { %v8814_v35 = vpop.eup %8813  ;;  %8833 = vrcp.f32 %v4746_v34  ;;  %v4744_v15 = vadd.f32 1.0, %v8812_v38 }
 0x36c   : > { %v8816_v58 = vpop.eup %8815  ;;  %8835 = vrcp.f32 %v6309_v21  ;;  %v6307_v55 = vadd.f32 1.0, %v8814_v35 }
 0x36d   : > { %v8818_v30 = vpop.eup %8817  ;;  %8837 = vrcp.f32 %v4744_v15  ;;  %v4749_v32 = vadd.f32 1.0, %v8816_v58 }
 0x36e   : > { %v8820_v31 = vpop.eup %8819  ;;  %8839 = vrcp.f32 %v6307_v55  ;;  %v6312_v13 = vadd.f32 1.0, %v8818_v30 }
 0x36f   : > { %v8822_v41 = vpop.eup %8821  ;;  %8841 = vrcp.f32 %v4749_v32  ;;  %v4747_v22 = vadd.f32 1.0, %v8820_v31 }
 0x370   : > { %v8824_v45 = vpop.eup %8823  ;;  %8843 = vrcp.f32 %v6312_v13  ;;  %v6310_v53 = vadd.f32 1.0, %v8822_v41 }
 0x371   : > { %v8826_v5 = vpop.eup %8825  ;;  %8845 = vrcp.f32 %v4747_v22  ;;  %v4750_v11 = vadd.f32 1.0, %v8824_v45 }
 0x372   : > { %v8828_v28 = vpop.eup %8827  ;;  %8847 = vrcp.f32 %v6310_v53  ;;  %v6313_v4 = vadd.f32 1.0, %v8826_v5 }
 0x373   : > { %v8830_v63 = vpop.eup %8829  ;;  %8849 = vrcp.f32 %v4750_v11  ;;  %v4748_v49 = vadd.f32 1.0, %v8828_v28 }
 0x374   : > { %v8832_v51 = vpop.eup %8831  ;;  %8851 = vrcp.f32 %v6313_v4  ;;  %v6311_v50 = vadd.f32 1.0, %v8830_v63 }
 0x375   : > { %v8834_v42 = vpop.eup %8833  ;;  %8853 = vrcp.f32 %v4748_v49  ;;  %v4753_v52 = vadd.f32 1.0, %v8832_v51 }
 0x376   : > { %v8836_v6 = vpop.eup %8835  ;;  %4854 = vst.msk [vmem:[%s9941_s30 + $0x318] sm:$0xff] %vm1700_vm2, %v8834_v42  ;;  %8855 = vrcp.f32 %v6311_v50 }
 0x377   : > { %v8838_v26 = vpop.eup %8837  ;;  %6417 = vst.msk [vmem:[%s9941_s30 + $0x438] sm:$0xff] %vm1700_vm2, %v8836_v6  ;;  %8857 = vrcp.f32 %v4753_v52 }
 0x378   : > { %v8840_v40 = vpop.eup %8839  ;;  %4852 = vst.msk [vmem:[%s9941_s30 + $0x308] sm:$0xff] %vm1700_vm2, %v8838_v26  ;;  %8859 = vpow2.f32 %v6937_v44 }
 0x379   : > { %v8842_v27 = vpop.eup %8841  ;;  %6415 = vst.msk [vmem:[%s9941_s30 + $0x428] sm:$0xff] %vm1700_vm2, %v8840_v40  ;;  %8861 = vpow2.f32 %v6822_v24 }
 0x37a   : > { %v8844_v0 = vpop.eup %8843  ;;  %4857 = vst.msk [vmem:[%s9941_s30 + $0x330] sm:$0xff] %vm1700_vm2, %v8842_v27  ;;  %8863 = vpow2.f32 %v6935_v39 }
 0x37b   : > { %v8846_v47 = vpop.eup %8845  ;;  %6420 = vst.msk [vmem:[%s9941_s30 + $0x450] sm:$0xff] %vm1700_vm2, %v8844_v0  ;;  %8865 = vpow2.f32 %v6825_v9 }
 0x37c   : > { %v8848_v33 = vpop.eup %8847  ;;  %4855 = vst.msk [vmem:[%s9941_s30 + $0x320] sm:$0xff] %vm1700_vm2, %v8846_v47  ;;  %8867 = vpow2.f32 %v6938_v29 }
 0x37d   : > { %v8850_v14 = vpop.eup %8849  ;;  %6418 = vst.msk [vmem:[%s9941_s30 + $0x440] sm:$0xff] %vm1700_vm2, %v8848_v33  ;;  %8869 = vpow2.f32 %v6823_v17 }
 0x37e   : > { %v8852_v37 = vpop.eup %8851  ;;  %4858 = vst.msk [vmem:[%s9941_s30 + $0x338] sm:$0xff] %vm1700_vm2, %v8850_v14  ;;  %8871 = vpow2.f32 %v6936_v36 }
 0x37f   : > { %v8854_v61 = vpop.eup %8853  ;;  %6421 = vst.msk [vmem:[%s9941_s30 + $0x458] sm:$0xff] %vm1700_vm2, %v8852_v37 }
 0x380   : > { %v8856_v3 = vpop.eup %8855  ;;  %4856 = vst.msk [vmem:[%s9941_s30 + $0x328] sm:$0xff] %vm1700_vm2, %v8854_v61 }
 0x381   : > { %v8858_v8 = vpop.eup %8857  ;;  %6419 = vst.msk [vmem:[%s9941_s30 + $0x448] sm:$0xff] %vm1700_vm2, %v8856_v3 }
 0x382   : > { %v8860_v59 = vpop.eup %8859  ;;  %4861 = vst.msk [vmem:[%s9941_s30 + $0x350] sm:$0xff] %vm1700_vm2, %v8858_v8 }
 0x383   : > { %v8862_v60 = vpop.eup %8861  ;;  %v6316_v10 = vadd.f32 1.0, %v8860_v59 }
 0x384   : > { %v8864_v25 = vpop.eup %8863  ;;  %v4751_v56 = vadd.f32 1.0, %v8862_v60 }
 0x385   : > { %v8866_v1 = vpop.eup %8865  ;;  %8873 = vrcp.f32 %v6316_v10  ;;  %v6314_v34 = vadd.f32 1.0, %v8864_v25 }
 0x386   : > { %v8868_v38 = vpop.eup %8867  ;;  %8875 = vrcp.f32 %v4751_v56  ;;  %v4754_v21 = vadd.f32 1.0, %v8866_v1 }
 0x387   : > { %v8870_v35 = vpop.eup %8869  ;;  %8877 = vrcp.f32 %v6314_v34  ;;  %v6317_v15 = vadd.f32 1.0, %v8868_v38 }
 0x388   : > { %v8872_v58 = vpop.eup %8871  ;;  %8879 = vrcp.f32 %v4754_v21  ;;  %v4752_v55 = vadd.f32 1.0, %v8870_v35 }
 0x389   : > { %8881 = vrcp.f32 %v6317_v15  ;;  %v6315_v62 = vadd.f32 1.0, %v8872_v58 }
 0x38a   : > { %8883 = vrcp.f32 %v4752_v55 }
 0x38b   : > { %8885 = vrcp.f32 %v6315_v62 }
 0x38f   : > { %v8874_v30 = vpop.eup %8873 }
 0x390   : > { %v8876_v32 = vpop.eup %8875  ;;  %6424 = vst.msk [vmem:[%s9941_s30 + $0x470] sm:$0xff] %vm1700_vm2, %v8874_v30 }
 0x391   : > { %v8878_v7 = vpop.eup %8877  ;;  %4859 = vst.msk [vmem:[%s9941_s30 + $0x340] sm:$0xff] %vm1700_vm2, %v8876_v32 }
 0x392   : > { %v8880_v31 = vpop.eup %8879  ;;  %6422 = vst.msk [vmem:[%s9941_s30 + $0x460] sm:$0xff] %vm1700_vm2, %v8878_v7 }
 0x393   : > { %v8882_v13 = vpop.eup %8881  ;;  %4862 = vst.msk [vmem:[%s9941_s30 + $0x358] sm:$0xff] %vm1700_vm2, %v8880_v31 }
 0x394   : > { %v8884_v43 = vpop.eup %8883  ;;  %6425 = vst.msk [vmem:[%s9941_s30 + $0x478] sm:$0xff] %vm1700_vm2, %v8882_v13 }
 0x395   : > { %v8886_v41 = vpop.eup %8885  ;;  %4860 = vst.msk [vmem:[%s9941_s30 + $0x348] sm:$0xff] %vm1700_vm2, %v8884_v43 }
 0x396   : > { %6423 = vst.msk [vmem:[%s9941_s30 + $0x468] sm:$0xff] %vm1700_vm2, %v8886_v41 }
 0x397 PF: > { %s13_s12 = sadd.s32 1, %s8895_s12  }
 0x398   : > { %p10_p4 = scmp.ge.s32.totalorder %s13_s12, 4  }
 0x39a   :  { %12 = sbr.rel (!%p10_p4) target bundleno = 1 (0x1), region = 77 }

</bundles_post_ra>
